<compile_context>
chip_gen: v5e
topology: v5e:2x2
jax: 0.10.0
libtpu: 0.0.40
codegen_flags: <defaults>
</compile_context>

<pallas_src>
import functools

import jax
import jax.numpy as jnp
from jax import lax
from jax.experimental import pallas as pl
from jax.experimental.pallas import tpu as pltpu


# ----------------------------------------------------------------------------
# Fused kernel.
#   x_ref:  (B, T, F)   original batch-first input
#   wih{0,1}: (Din, 8H) bf16   [fwd | bwd] input projections (layer-0 has the
#                              input BN folded in), bi{0,1}: (1, 8H) f32
#   whh{0,1}: (2H, 8H) bf16    block-diag([whh_fwd, whh_bwd])
#   wq/wk/wv: (E, E) bf16 (lstm_norm folded), bq/bk/bv: (1, E) f32
#   wo: (nh, dh, E) bf16 per-head row slices of W_o, bo: (1, E) f32
#   w1: (E, H) bf16 (attention_norm + BN1 folded), w2: (H, 32) bf16 (BN2 folded)
#   out_ref: (B, 1)
# ----------------------------------------------------------------------------
def fused_forward_kernel(x_ref,
                         wih0_ref, bi0_ref, whh0_ref,
                         wih1_ref, bi1_ref, whh1_ref,
                         wq_ref, bq_ref, wk_ref, bk_ref, wv_ref, bv_ref,
                         wo_ref, bo_ref,
                         w1_ref, b1_ref, w2_ref, b2_ref, w3_ref, b3_ref,
                         out_ref,
                         xw_scr, h_scr, *, num_heads):
    B, T, F = x_ref.shape
    E = h_scr.shape[-1]          # 2*H (bidirectional hidden width)
    H = E // 2
    G = 4 * H                    # gates per direction
    bf16 = jnp.bfloat16
    f32 = jnp.float32

    def input_proj(x2d_bf16, wih_ref, b_ref):
        # Hoisted input projection for BOTH directions of one layer: a single
        # (T*B, Din)x(Din, 8H) MXU matmul with the folded bias, so the serial
        # recurrence only carries the hidden-state matmul.
        xw = jnp.dot(x2d_bf16, wih_ref[...], preferred_element_type=f32) + b_ref[...]
        xw_scr[...] = xw.reshape(T, B, 2 * G)

    def run_layer(whh_ref):
        # Merged fwd/bwd recurrence: one (B,2H)x(2H,8H) block-diagonal matmul
        # per timestep produces both directions' gates.
        whh_bd = whh_ref[...]                               # (2H, 8H) bf16, invariant

        def cell(g, c):
            # PyTorch gate order i, f, g, o; elementwise math kept in f32.
            sg = jax.nn.sigmoid(g)
            th = jnp.tanh(g)
            c_new = sg[:, H:2 * H] * c + sg[:, 0:H] * th[:, 2 * H:3 * H]
            h_new = sg[:, 3 * H:4 * H] * jnp.tanh(c_new)
            return h_new, c_new

        def body(t, carry):
            h_cat, c_f, c_b = carry                         # (B,2H), (B,H), (B,H)
            rg = jnp.dot(h_cat.astype(bf16), whh_bd,
                         preferred_element_type=f32)        # (B, 8H)
            tb = T - 1 - t
            gf = xw_scr[t][:, 0:G] + rg[:, 0:G]             # fwd gates @ time t
            gb = xw_scr[tb][:, G:2 * G] + rg[:, G:2 * G]    # bwd gates @ time T-1-t
            h_f, c_fn = cell(gf, c_f)
            h_b, c_bn = cell(gb, c_b)
            # Single shared hidden scratch: fwd half / bwd half of the lane dim.
            h_scr[t, :, 0:H] = h_f
            h_scr[tb, :, H:E] = h_b
            return jnp.concatenate([h_f, h_b], axis=-1), c_fn, c_bn

        z_cat = jnp.zeros((B, E), f32)
        z_c = jnp.zeros((B, H), f32)
        lax.fori_loop(0, T, body, (z_cat, z_c, z_c), unroll=True)

    # ---- layer 0 (input BatchNorm folded into wih0/bi0) ---------------------
    x_tm = jnp.transpose(x_ref[...], (1, 0, 2))             # (T, B, F), in-kernel
    x2d = x_tm.reshape(T * B, F).astype(bf16)
    input_proj(x2d, wih0_ref, bi0_ref)
    run_layer(whh0_ref)

    # ---- layer 1 (inter-layer dropout = identity in eval) -------------------
    h0_2d = h_scr[...].reshape(T * B, E).astype(bf16)
    input_proj(h0_2d, wih1_ref, bi1_ref)
    run_layer(whh1_ref)                                     # overwrites h_scr

    # ---- multi-head self-attention (lstm_norm folded into Wq/Wk/Wv) ---------
    nh = num_heads
    dh = E // nh
    scale = 1.0 / float(dh) ** 0.5

    h_bt = jnp.transpose(h_scr[...], (1, 0, 2))             # (B, T, E) batch-major
    h2d = h_bt.reshape(B * T, E).astype(bf16)
    # Lane-dense full-width projections (no per-head weight replication).
    q = (jnp.dot(h2d, wq_ref[...], preferred_element_type=f32)
         + bq_ref[...]).reshape(B, T, E).astype(bf16)
    k = (jnp.dot(h2d, wk_ref[...], preferred_element_type=f32)
         + bk_ref[...]).reshape(B, T, E).astype(bf16)
    v = (jnp.dot(h2d, wv_ref[...], preferred_element_type=f32)
         + bv_ref[...]).reshape(B, T, E).astype(bf16)

    attn = jnp.zeros((B * T, E), f32)
    for hd in range(nh):                                    # static, nh = 8
        sl = slice(hd * dh, (hd + 1) * dh)
        s = jnp.einsum("btd,bud->btu", q[:, :, sl], k[:, :, sl],
                       preferred_element_type=f32) * scale  # (B, T, T)
        p = jax.nn.softmax(s, axis=-1)                      # attn dropout: eval identity
        o_h = jnp.einsum("btu,bud->btd", p.astype(bf16), v[:, :, sl],
                         preferred_element_type=f32)        # (B, T, dh)
        attn = attn + jnp.dot(o_h.reshape(B * T, dh).astype(bf16), wo_ref[hd],
                              preferred_element_type=f32)   # per-head W_o row slice
    attn = attn + bo_ref[...]                               # (B*T, E)

    # ---- mean pool (attention_norm folded into w1/b1) + classifier MLP ------
    pooled = jnp.mean(attn.reshape(B, T, E), axis=1)        # (B, E)
    h1 = jnp.maximum(jnp.dot(pooled.astype(bf16), w1_ref[...],
                             preferred_element_type=f32) + b1_ref[...], 0.0)
    h2 = jnp.maximum(jnp.dot(h1.astype(bf16), w2_ref[...],
                             preferred_element_type=f32) + b2_ref[...], 0.0)
    # TODO(synk): the (B, 1) output is a masked partial store; pad to 128 lanes
    # and slice outside only if the batch grows enough for this to matter.
    out_ref[...] = jnp.dot(h2.astype(bf16), w3_ref[...],
                           preferred_element_type=f32) + b3_ref[...]


def forward(x, p, num_heads=8):
    B, T, _ = x.shape
    H = p["whh0"].shape[0] // 2
    args = [x,
            p["wih0"], p["bi0"], p["whh0"],
            p["wih1"], p["bi1"], p["whh1"],
            p["wq"], p["bq"], p["wk"], p["bk"], p["wv"], p["bv"],
            p["wo"], p["bo"],
            p["w1"], p["b1"], p["w2"], p["b2"], p["w3"], p["b3"]]
    vmem = pl.BlockSpec(memory_space=pltpu.MemorySpace.VMEM)
    return pl.pallas_call(
        functools.partial(fused_forward_kernel, num_heads=num_heads),
        out_shape=jax.ShapeDtypeStruct((B, 1), jnp.float32),
        in_specs=[vmem] * len(args),
        out_specs=vmem,
        scratch_shapes=[
            pltpu.VMEM((T, B, 8 * H), jnp.float32),   # hoisted input projections
            pltpu.VMEM((T, B, 2 * H), jnp.float32),   # shared fwd/bwd hidden sequence
        ],
    )(*args)


# ----------------------------------------------------------------------------
# Parameter init (deterministic synthetic) with all eval-mode BatchNorms folded
# into the adjacent matmul weights/biases (folds done in f32, then cast bf16).
# ----------------------------------------------------------------------------
def _bn_scale_shift(keys, dim):
    gamma = 1.0 + 0.1 * jax.random.normal(next(keys), (dim,), jnp.float32)
    beta = 0.1 * jax.random.normal(next(keys), (dim,), jnp.float32)
    mean = 0.05 * jax.random.normal(next(keys), (dim,), jnp.float32)
    var = 1.0 + 0.1 * jnp.abs(jax.random.normal(next(keys), (dim,), jnp.float32))
    s = gamma / jnp.sqrt(var + 1e-5)
    return s, beta - mean * s


def init_params(key, input_dim, hidden_dim, num_heads=8):
    H = hidden_dim
    E = 2 * H
    G = 4 * H
    nh = num_heads
    dh = E // nh
    keys = iter(jax.random.split(key, 64))
    nrm = lambda shape, s=0.1: s * jax.random.normal(next(keys), shape, jnp.float32)
    bf = lambda a: a.astype(jnp.bfloat16)

    p = {}
    s_in, t_in = _bn_scale_shift(keys, input_dim)           # input BatchNorm1d

    # ---- LSTM (gate order i,f,g,o; bias = b_ih + b_hh), merged fwd/bwd ------
    for layer, din in ((0, input_dim), (1, E)):
        wih_f, whh_f, b_f = nrm((din, G)), nrm((H, G)), nrm((1, G))
        wih_b, whh_b, b_b = nrm((din, G)), nrm((H, G)), nrm((1, G))
        if layer == 0:  # fold input BN: xn@W + b = x@(diag(s)W) + (t@W + b)
            b_f = b_f + (t_in @ wih_f)[None, :]
            b_b = b_b + (t_in @ wih_b)[None, :]
            wih_f = s_in[:, None] * wih_f
            wih_b = s_in[:, None] * wih_b
        whh_bd = jnp.zeros((E, 2 * G), jnp.float32)
        whh_bd = whh_bd.at[:H, :G].set(whh_f).at[H:, G:].set(whh_b)
        p[f"wih{layer}"] = bf(jnp.concatenate([wih_f, wih_b], axis=1))   # (din, 8H)
        p[f"bi{layer}"] = jnp.concatenate([b_f, b_b], axis=1)            # (1, 8H) f32
        p[f"whh{layer}"] = bf(whh_bd)                                     # (2H, 8H)

    # ---- attention in-proj with lstm_norm folded -----------------------------
    s_ln, t_ln = _bn_scale_shift(keys, E)
    for name in ("q", "k", "v"):
        w = nrm((E, E))
        b = nrm((E,))
        p[f"w{name}"] = bf(s_ln[:, None] * w)
        p[f"b{name}"] = (b + t_ln @ w)[None, :]
    wo = nrm((E, E))
    p["wo"] = bf(wo.reshape(nh, dh, E))    # per-head row slices of W_o
    p["bo"] = nrm((E,))[None, :]

    # ---- classifier with attention_norm + BN1 folded into w1/b1, BN2 -> w2/b2
    s_an, t_an = _bn_scale_shift(keys, E)
    w1, b1 = nrm((E, H)), nrm((1, H))
    s1, t1 = _bn_scale_shift(keys, H)
    p["w1"] = bf(s_an[:, None] * w1 * s1[None, :])
    p["b1"] = (b1 + (t_an @ w1)[None, :]) * s1[None, :] + t1[None, :]
    w2, b2 = nrm((H, 32)), nrm((1, 32))
    s2, t2 = _bn_scale_shift(keys, 32)
    p["w2"] = bf(w2 * s2[None, :])
    p["b2"] = b2 * s2[None, :] + t2[None, :]
    p["w3"] = bf(nrm((32, 1)))
    p["b3"] = nrm((1, 1))
    return p


if __name__ == "__main__":
    B, S, F, H = 2, 8, 16, 32   # batch, seq, input_dim, hidden_dim
    key = jax.random.PRNGKey(0)
    kx, kp = jax.random.split(key)
    x = jax.random.normal(kx, (B, S, F), jnp.float32)
    params = init_params(kp, F, H, num_heads=8)

    fwd = jax.jit(forward, static_argnames="num_heads")
    out = jax.block_until_ready(fwd(x, params, num_heads=8))
    assert out.shape == (B, 1) and out.dtype == jnp.float32
    assert bool(jnp.all(jnp.isfinite(out)))
    print("KERNEL_OK")
</pallas_src>

<mosaic_0001>
module attributes {stable_mosaic.version = 11 : i64} {
  func.func @fused_forward_kernel(%arg0: memref<2x8x16xf32, #tpu.memory_space<vmem>>, %arg1: memref<16x256xbf16, #tpu.memory_space<vmem>>, %arg2: memref<1x256xf32, #tpu.memory_space<vmem>>, %arg3: memref<64x256xbf16, #tpu.memory_space<vmem>>, %arg4: memref<64x256xbf16, #tpu.memory_space<vmem>>, %arg5: memref<1x256xf32, #tpu.memory_space<vmem>>, %arg6: memref<64x256xbf16, #tpu.memory_space<vmem>>, %arg7: memref<64x64xbf16, #tpu.memory_space<vmem>>, %arg8: memref<1x64xf32, #tpu.memory_space<vmem>>, %arg9: memref<64x64xbf16, #tpu.memory_space<vmem>>, %arg10: memref<1x64xf32, #tpu.memory_space<vmem>>, %arg11: memref<64x64xbf16, #tpu.memory_space<vmem>>, %arg12: memref<1x64xf32, #tpu.memory_space<vmem>>, %arg13: memref<8x8x64xbf16, #tpu.memory_space<vmem>>, %arg14: memref<1x64xf32, #tpu.memory_space<vmem>>, %arg15: memref<64x32xbf16, #tpu.memory_space<vmem>>, %arg16: memref<1x32xf32, #tpu.memory_space<vmem>>, %arg17: memref<32x32xbf16, #tpu.memory_space<vmem>>, %arg18: memref<1x32xf32, #tpu.memory_space<vmem>>, %arg19: memref<32x1xbf16, #tpu.memory_space<vmem>>, %arg20: memref<1x1xf32, #tpu.memory_space<vmem>>, %arg21: memref<2x1xf32, #tpu.memory_space<vmem>>, %arg22: memref<8x2x256xf32, #tpu.memory_space<vmem>>, %arg23: memref<8x2x64xf32, #tpu.memory_space<vmem>>) attributes {dimension_semantics = [], scalar_prefetch = 0 : i64, scratch_operands = 2 : i64, tpu.core_type = #tpu.core_type<tc>} {
    %c0 = arith.constant 0 : index
    %c0_0 = arith.constant 0 : index
    %c0_1 = arith.constant 0 : index
    %0 = vector.load %arg0[%c0, %c0_0, %c0_1] : memref<2x8x16xf32, #tpu.memory_space<vmem>>, vector<2x8x16xf32>
    %1 = tpu.transpose %0, [1, 0, 2] : vector<2x8x16xf32> -> vector<8x2x16xf32>
    %2 = vector.shape_cast %1 : vector<8x2x16xf32> to vector<16x16xf32>
    %3 = arith.truncf %2 : vector<16x16xf32> to vector<16x16xbf16>
    %c0_2 = arith.constant 0 : index
    %c0_3 = arith.constant 0 : index
    %4 = vector.load %arg1[%c0_2, %c0_3] : memref<16x256xbf16, #tpu.memory_space<vmem>>, vector<16x256xbf16>
    %cst = arith.constant dense<0.000000e+00> : vector<16x256xf32>
    %5 = tpu.matmul %3, %4, %cst {dimension_numbers = #tpu.dot_dimension_numbers<[1], [0], [0], [1], [0, 0, 1, 1], [], []>} : vector<16x16xbf16>, vector<16x256xbf16>, vector<16x256xf32> -> vector<16x256xf32>
    %c0_4 = arith.constant 0 : index
    %c0_5 = arith.constant 0 : index
    %6 = vector.load %arg2[%c0_4, %c0_5] : memref<1x256xf32, #tpu.memory_space<vmem>>, vector<1x256xf32>
    %7 = vector.broadcast %6 : vector<1x256xf32> to vector<16x256xf32>
    %8 = arith.addf %5, %7 : vector<16x256xf32>
    %9 = vector.shape_cast %8 : vector<16x256xf32> to vector<8x2x256xf32>
    %c0_6 = arith.constant 0 : index
    %c0_7 = arith.constant 0 : index
    %c0_8 = arith.constant 0 : index
    %10 = vector.load %arg22[%c0_6, %c0_7, %c0_8] : memref<8x2x256xf32, #tpu.memory_space<vmem>>, vector<8x2x256xf32>
    tpu.vector_store %arg22[%c0_6, %c0_7, %c0_8], %9 {strides = array<i32>} : memref<8x2x256xf32, #tpu.memory_space<vmem>>, vector<8x2x256xf32>,
    %c0_9 = arith.constant 0 : index
    %c0_10 = arith.constant 0 : index
    %11 = vector.load %arg3[%c0_9, %c0_10] : memref<64x256xbf16, #tpu.memory_space<vmem>>, vector<64x256xbf16>
    %cst_11 = arith.constant 0.000000e+00 : f32
    %12 = vector.broadcast %cst_11 : f32 to vector<2x64xf32>
    %cst_12 = arith.constant 0.000000e+00 : f32
    %13 = vector.broadcast %cst_12 : f32 to vector<2x32xf32>
    %c0_i32 = arith.constant 0 : i32
    %14 = arith.truncf %12 : vector<2x64xf32> to vector<2x64xbf16>
    %cst_13 = arith.constant dense<0.000000e+00> : vector<2x256xf32>
    %15 = tpu.matmul %14, %11, %cst_13 {dimension_numbers = #tpu.dot_dimension_numbers<[1], [0], [0], [1], [0, 0, 1, 1], [], []>} : vector<2x64xbf16>, vector<64x256xbf16>, vector<2x256xf32> -> vector<2x256xf32>
    %c7_i32 = arith.constant 7 : i32
    %16 = arith.subi %c7_i32, %c0_i32 : i32
    %17 = arith.index_cast %c0_i32 : i32 to index
    %c0_14 = arith.constant 0 : index
    %c0_15 = arith.constant 0 : index
    %18 = vector.load %arg22[%17, %c0_14, %c0_15] : memref<8x2x256xf32, #tpu.memory_space<vmem>>, vector<1x2x256xf32>
    %19 = vector.shape_cast %18 : vector<1x2x256xf32> to vector<2x256xf32>
    %20 = vector.extract_strided_slice %19 {offsets = [0, 0], sizes = [2, 128], strides = [1, 1]} : vector<2x256xf32> to vector<2x128xf32>
    %21 = vector.extract_strided_slice %15 {offsets = [0, 0], sizes = [2, 128], strides = [1, 1]} : vector<2x256xf32> to vector<2x128xf32>
    %22 = arith.addf %20, %21 : vector<2x128xf32>
    %23 = arith.index_cast %16 : i32 to index
    %c0_16 = arith.constant 0 : index
    %c0_17 = arith.constant 0 : index
    %24 = vector.load %arg22[%23, %c0_16, %c0_17] : memref<8x2x256xf32, #tpu.memory_space<vmem>>, vector<1x2x256xf32>
    %25 = vector.shape_cast %24 : vector<1x2x256xf32> to vector<2x256xf32>
    %26 = vector.extract_strided_slice %25 {offsets = [0, 128], sizes = [2, 128], strides = [1, 1]} : vector<2x256xf32> to vector<2x128xf32>
    %27 = vector.extract_strided_slice %15 {offsets = [0, 128], sizes = [2, 128], strides = [1, 1]} : vector<2x256xf32> to vector<2x128xf32>
    %28 = arith.addf %26, %27 : vector<2x128xf32>
    %29 = arith.negf %22 : vector<2x128xf32>
    %30 = math.exp %29 : vector<2x128xf32>
    %cst_18 = arith.constant 1.000000e+00 : f32
    %31 = vector.broadcast %cst_18 : f32 to vector<2x128xf32>
    %32 = arith.addf %31, %30 : vector<2x128xf32>
    %33 = arith.divf %31, %32 : vector<2x128xf32>
    %34 = math.tanh %22 : vector<2x128xf32>
    %35 = vector.extract_strided_slice %33 {offsets = [0, 32], sizes = [2, 32], strides = [1, 1]} : vector<2x128xf32> to vector<2x32xf32>
    %36 = arith.mulf %35, %13 : vector<2x32xf32>
    %37 = vector.extract_strided_slice %33 {offsets = [0, 0], sizes = [2, 32], strides = [1, 1]} : vector<2x128xf32> to vector<2x32xf32>
    %38 = vector.extract_strided_slice %34 {offsets = [0, 64], sizes = [2, 32], strides = [1, 1]} : vector<2x128xf32> to vector<2x32xf32>
    %39 = arith.mulf %37, %38 : vector<2x32xf32>
    %40 = arith.addf %36, %39 : vector<2x32xf32>
    %41 = vector.extract_strided_slice %33 {offsets = [0, 96], sizes = [2, 32], strides = [1, 1]} : vector<2x128xf32> to vector<2x32xf32>
    %42 = math.tanh %40 : vector<2x32xf32>
    %43 = arith.mulf %41, %42 : vector<2x32xf32>
    %44 = arith.negf %28 : vector<2x128xf32>
    %45 = math.exp %44 : vector<2x128xf32>
    %cst_19 = arith.constant 1.000000e+00 : f32
    %46 = vector.broadcast %cst_19 : f32 to vector<2x128xf32>
    %47 = arith.addf %46, %45 : vector<2x128xf32>
    %48 = arith.divf %46, %47 : vector<2x128xf32>
    %49 = math.tanh %28 : vector<2x128xf32>
    %50 = vector.extract_strided_slice %48 {offsets = [0, 32], sizes = [2, 32], strides = [1, 1]} : vector<2x128xf32> to vector<2x32xf32>
    %51 = arith.mulf %50, %13 : vector<2x32xf32>
    %52 = vector.extract_strided_slice %48 {offsets = [0, 0], sizes = [2, 32], strides = [1, 1]} : vector<2x128xf32> to vector<2x32xf32>
    %53 = vector.extract_strided_slice %49 {offsets = [0, 64], sizes = [2, 32], strides = [1, 1]} : vector<2x128xf32> to vector<2x32xf32>
    %54 = arith.mulf %52, %53 : vector<2x32xf32>
    %55 = arith.addf %51, %54 : vector<2x32xf32>
    %56 = vector.extract_strided_slice %48 {offsets = [0, 96], sizes = [2, 32], strides = [1, 1]} : vector<2x128xf32> to vector<2x32xf32>
    %57 = math.tanh %55 : vector<2x32xf32>
    %58 = arith.mulf %56, %57 : vector<2x32xf32>
    %59 = arith.index_cast %c0_i32 : i32 to index
    %c0_20 = arith.constant 0 : index
    %c0_21 = arith.constant 0 : index
    %60 = vector.load %arg23[%59, %c0_20, %c0_21] : memref<8x2x64xf32, #tpu.memory_space<vmem>>, vector<1x2x32xf32>
    %61 = vector.shape_cast %60 : vector<1x2x32xf32> to vector<2x32xf32>
    %62 = vector.shape_cast %43 : vector<2x32xf32> to vector<1x2x32xf32>
    tpu.vector_store %arg23[%59, %c0_20, %c0_21], %62 {strides = array<i32>} : memref<8x2x64xf32, #tpu.memory_space<vmem>>, vector<1x2x32xf32>,
    %63 = arith.index_cast %16 : i32 to index
    %c0_22 = arith.constant 0 : index
    %c32 = arith.constant 32 : index
    %64 = vector.load %arg23[%63, %c0_22, %c32] : memref<8x2x64xf32, #tpu.memory_space<vmem>>, vector<1x2x32xf32>
    %65 = vector.shape_cast %64 : vector<1x2x32xf32> to vector<2x32xf32>
    %66 = vector.shape_cast %58 : vector<2x32xf32> to vector<1x2x32xf32>
    tpu.vector_store %arg23[%63, %c0_22, %c32], %66 {strides = array<i32>} : memref<8x2x64xf32, #tpu.memory_space<vmem>>, vector<1x2x32xf32>,
    %67 = tpu.concatenate %43, %58 in 1 : vector<2x32xf32>, vector<2x32xf32> -> vector<2x64xf32>
    %c1_i32 = arith.constant 1 : i32
    %68 = arith.truncf %67 : vector<2x64xf32> to vector<2x64xbf16>
    %cst_23 = arith.constant dense<0.000000e+00> : vector<2x256xf32>
    %69 = tpu.matmul %68, %11, %cst_23 {dimension_numbers = #tpu.dot_dimension_numbers<[1], [0], [0], [1], [0, 0, 1, 1], [], []>} : vector<2x64xbf16>, vector<64x256xbf16>, vector<2x256xf32> -> vector<2x256xf32>
    %c7_i32_24 = arith.constant 7 : i32
    %70 = arith.subi %c7_i32_24, %c1_i32 : i32
    %71 = arith.index_cast %c1_i32 : i32 to index
    %c0_25 = arith.constant 0 : index
    %c0_26 = arith.constant 0 : index
    %72 = vector.load %arg22[%71, %c0_25, %c0_26] : memref<8x2x256xf32, #tpu.memory_space<vmem>>, vector<1x2x256xf32>
    %73 = vector.shape_cast %72 : vector<1x2x256xf32> to vector<2x256xf32>
    %74 = vector.extract_strided_slice %73 {offsets = [0, 0], sizes = [2, 128], strides = [1, 1]} : vector<2x256xf32> to vector<2x128xf32>
    %75 = vector.extract_strided_slice %69 {offsets = [0, 0], sizes = [2, 128], strides = [1, 1]} : vector<2x256xf32> to vector<2x128xf32>
    %76 = arith.addf %74, %75 : vector<2x128xf32>
    %77 = arith.index_cast %70 : i32 to index
    %c0_27 = arith.constant 0 : index
    %c0_28 = arith.constant 0 : index
    %78 = vector.load %arg22[%77, %c0_27, %c0_28] : memref<8x2x256xf32, #tpu.memory_space<vmem>>, vector<1x2x256xf32>
    %79 = vector.shape_cast %78 : vector<1x2x256xf32> to vector<2x256xf32>
    %80 = vector.extract_strided_slice %79 {offsets = [0, 128], sizes = [2, 128], strides = [1, 1]} : vector<2x256xf32> to vector<2x128xf32>
    %81 = vector.extract_strided_slice %69 {offsets = [0, 128], sizes = [2, 128], strides = [1, 1]} : vector<2x256xf32> to vector<2x128xf32>
    %82 = arith.addf %80, %81 : vector<2x128xf32>
    %83 = arith.negf %76 : vector<2x128xf32>
    %84 = math.exp %83 : vector<2x128xf32>
    %cst_29 = arith.constant 1.000000e+00 : f32
    %85 = vector.broadcast %cst_29 : f32 to vector<2x128xf32>
    %86 = arith.addf %85, %84 : vector<2x128xf32>
    %87 = arith.divf %85, %86 : vector<2x128xf32>
    %88 = math.tanh %76 : vector<2x128xf32>
    %89 = vector.extract_strided_slice %87 {offsets = [0, 32], sizes = [2, 32], strides = [1, 1]} : vector<2x128xf32> to vector<2x32xf32>
    %90 = arith.mulf %89, %40 : vector<2x32xf32>
    %91 = vector.extract_strided_slice %87 {offsets = [0, 0], sizes = [2, 32], strides = [1, 1]} : vector<2x128xf32> to vector<2x32xf32>
    %92 = vector.extract_strided_slice %88 {offsets = [0, 64], sizes = [2, 32], strides = [1, 1]} : vector<2x128xf32> to vector<2x32xf32>
    %93 = arith.mulf %91, %92 : vector<2x32xf32>
    %94 = arith.addf %90, %93 : vector<2x32xf32>
    %95 = vector.extract_strided_slice %87 {offsets = [0, 96], sizes = [2, 32], strides = [1, 1]} : vector<2x128xf32> to vector<2x32xf32>
    %96 = math.tanh %94 : vector<2x32xf32>
    %97 = arith.mulf %95, %96 : vector<2x32xf32>
    %98 = arith.negf %82 : vector<2x128xf32>
    %99 = math.exp %98 : vector<2x128xf32>
    %cst_30 = arith.constant 1.000000e+00 : f32
    %100 = vector.broadcast %cst_30 : f32 to vector<2x128xf32>
    %101 = arith.addf %100, %99 : vector<2x128xf32>
    %102 = arith.divf %100, %101 : vector<2x128xf32>
    %103 = math.tanh %82 : vector<2x128xf32>
    %104 = vector.extract_strided_slice %102 {offsets = [0, 32], sizes = [2, 32], strides = [1, 1]} : vector<2x128xf32> to vector<2x32xf32>
    %105 = arith.mulf %104, %55 : vector<2x32xf32>
    %106 = vector.extract_strided_slice %102 {offsets = [0, 0], sizes = [2, 32], strides = [1, 1]} : vector<2x128xf32> to vector<2x32xf32>
    %107 = vector.extract_strided_slice %103 {offsets = [0, 64], sizes = [2, 32], strides = [1, 1]} : vector<2x128xf32> to vector<2x32xf32>
    %108 = arith.mulf %106, %107 : vector<2x32xf32>
    %109 = arith.addf %105, %108 : vector<2x32xf32>
    %110 = vector.extract_strided_slice %102 {offsets = [0, 96], sizes = [2, 32], strides = [1, 1]} : vector<2x128xf32> to vector<2x32xf32>
    %111 = math.tanh %109 : vector<2x32xf32>
    %112 = arith.mulf %110, %111 : vector<2x32xf32>
    %113 = arith.index_cast %c1_i32 : i32 to index
    %c0_31 = arith.constant 0 : index
    %c0_32 = arith.constant 0 : index
    %114 = vector.load %arg23[%113, %c0_31, %c0_32] : memref<8x2x64xf32, #tpu.memory_space<vmem>>, vector<1x2x32xf32>
    %115 = vector.shape_cast %114 : vector<1x2x32xf32> to vector<2x32xf32>
    %116 = vector.shape_cast %97 : vector<2x32xf32> to vector<1x2x32xf32>
    tpu.vector_store %arg23[%113, %c0_31, %c0_32], %116 {strides = array<i32>} : memref<8x2x64xf32, #tpu.memory_space<vmem>>, vector<1x2x32xf32>,
    %117 = arith.index_cast %70 : i32 to index
    %c0_33 = arith.constant 0 : index
    %c32_34 = arith.constant 32 : index
    %118 = vector.load %arg23[%117, %c0_33, %c32_34] : memref<8x2x64xf32, #tpu.memory_space<vmem>>, vector<1x2x32xf32>
    %119 = vector.shape_cast %118 : vector<1x2x32xf32> to vector<2x32xf32>
    %120 = vector.shape_cast %112 : vector<2x32xf32> to vector<1x2x32xf32>
    tpu.vector_store %arg23[%117, %c0_33, %c32_34], %120 {strides = array<i32>} : memref<8x2x64xf32, #tpu.memory_space<vmem>>, vector<1x2x32xf32>,
    %121 = tpu.concatenate %97, %112 in 1 : vector<2x32xf32>, vector<2x32xf32> -> vector<2x64xf32>
    %c2_i32 = arith.constant 2 : i32
    %122 = arith.truncf %121 : vector<2x64xf32> to vector<2x64xbf16>
    %cst_35 = arith.constant dense<0.000000e+00> : vector<2x256xf32>
    %123 = tpu.matmul %122, %11, %cst_35 {dimension_numbers = #tpu.dot_dimension_numbers<[1], [0], [0], [1], [0, 0, 1, 1], [], []>} : vector<2x64xbf16>, vector<64x256xbf16>, vector<2x256xf32> -> vector<2x256xf32>
    %c7_i32_36 = arith.constant 7 : i32
    %124 = arith.subi %c7_i32_36, %c2_i32 : i32
    %125 = arith.index_cast %c2_i32 : i32 to index
    %c0_37 = arith.constant 0 : index
    %c0_38 = arith.constant 0 : index
    %126 = vector.load %arg22[%125, %c0_37, %c0_38] : memref<8x2x256xf32, #tpu.memory_space<vmem>>, vector<1x2x256xf32>
    %127 = vector.shape_cast %126 : vector<1x2x256xf32> to vector<2x256xf32>
    %128 = vector.extract_strided_slice %127 {offsets = [0, 0], sizes = [2, 128], strides = [1, 1]} : vector<2x256xf32> to vector<2x128xf32>
    %129 = vector.extract_strided_slice %123 {offsets = [0, 0], sizes = [2, 128], strides = [1, 1]} : vector<2x256xf32> to vector<2x128xf32>
    %130 = arith.addf %128, %129 : vector<2x128xf32>
    %131 = arith.index_cast %124 : i32 to index
    %c0_39 = arith.constant 0 : index
    %c0_40 = arith.constant 0 : index
    %132 = vector.load %arg22[%131, %c0_39, %c0_40] : memref<8x2x256xf32, #tpu.memory_space<vmem>>, vector<1x2x256xf32>
    %133 = vector.shape_cast %132 : vector<1x2x256xf32> to vector<2x256xf32>
    %134 = vector.extract_strided_slice %133 {offsets = [0, 128], sizes = [2, 128], strides = [1, 1]} : vector<2x256xf32> to vector<2x128xf32>
    %135 = vector.extract_strided_slice %123 {offsets = [0, 128], sizes = [2, 128], strides = [1, 1]} : vector<2x256xf32> to vector<2x128xf32>
    %136 = arith.addf %134, %135 : vector<2x128xf32>
    %137 = arith.negf %130 : vector<2x128xf32>
    %138 = math.exp %137 : vector<2x128xf32>
    %cst_41 = arith.constant 1.000000e+00 : f32
    %139 = vector.broadcast %cst_41 : f32 to vector<2x128xf32>
    %140 = arith.addf %139, %138 : vector<2x128xf32>
    %141 = arith.divf %139, %140 : vector<2x128xf32>
    %142 = math.tanh %130 : vector<2x128xf32>
    %143 = vector.extract_strided_slice %141 {offsets = [0, 32], sizes = [2, 32], strides = [1, 1]} : vector<2x128xf32> to vector<2x32xf32>
    %144 = arith.mulf %143, %94 : vector<2x32xf32>
    %145 = vector.extract_strided_slice %141 {offsets = [0, 0], sizes = [2, 32], strides = [1, 1]} : vector<2x128xf32> to vector<2x32xf32>
    %146 = vector.extract_strided_slice %142 {offsets = [0, 64], sizes = [2, 32], strides = [1, 1]} : vector<2x128xf32> to vector<2x32xf32>
    %147 = arith.mulf %145, %146 : vector<2x32xf32>
    %148 = arith.addf %144, %147 : vector<2x32xf32>
    %149 = vector.extract_strided_slice %141 {offsets = [0, 96], sizes = [2, 32], strides = [1, 1]} : vector<2x128xf32> to vector<2x32xf32>
    %150 = math.tanh %148 : vector<2x32xf32>
    %151 = arith.mulf %149, %150 : vector<2x32xf32>
    %152 = arith.negf %136 : vector<2x128xf32>
    %153 = math.exp %152 : vector<2x128xf32>
    %cst_42 = arith.constant 1.000000e+00 : f32
    %154 = vector.broadcast %cst_42 : f32 to vector<2x128xf32>
    %155 = arith.addf %154, %153 : vector<2x128xf32>
    %156 = arith.divf %154, %155 : vector<2x128xf32>
    %157 = math.tanh %136 : vector<2x128xf32>
    %158 = vector.extract_strided_slice %156 {offsets = [0, 32], sizes = [2, 32], strides = [1, 1]} : vector<2x128xf32> to vector<2x32xf32>
    %159 = arith.mulf %158, %109 : vector<2x32xf32>
    %160 = vector.extract_strided_slice %156 {offsets = [0, 0], sizes = [2, 32], strides = [1, 1]} : vector<2x128xf32> to vector<2x32xf32>
    %161 = vector.extract_strided_slice %157 {offsets = [0, 64], sizes = [2, 32], strides = [1, 1]} : vector<2x128xf32> to vector<2x32xf32>
    %162 = arith.mulf %160, %161 : vector<2x32xf32>
    %163 = arith.addf %159, %162 : vector<2x32xf32>
    %164 = vector.extract_strided_slice %156 {offsets = [0, 96], sizes = [2, 32], strides = [1, 1]} : vector<2x128xf32> to vector<2x32xf32>
    %165 = math.tanh %163 : vector<2x32xf32>
    %166 = arith.mulf %164, %165 : vector<2x32xf32>
    %167 = arith.index_cast %c2_i32 : i32 to index
    %c0_43 = arith.constant 0 : index
    %c0_44 = arith.constant 0 : index
    %168 = vector.load %arg23[%167, %c0_43, %c0_44] : memref<8x2x64xf32, #tpu.memory_space<vmem>>, vector<1x2x32xf32>
    %169 = vector.shape_cast %168 : vector<1x2x32xf32> to vector<2x32xf32>
    %170 = vector.shape_cast %151 : vector<2x32xf32> to vector<1x2x32xf32>
    tpu.vector_store %arg23[%167, %c0_43, %c0_44], %170 {strides = array<i32>} : memref<8x2x64xf32, #tpu.memory_space<vmem>>, vector<1x2x32xf32>,
    %171 = arith.index_cast %124 : i32 to index
    %c0_45 = arith.constant 0 : index
    %c32_46 = arith.constant 32 : index
    %172 = vector.load %arg23[%171, %c0_45, %c32_46] : memref<8x2x64xf32, #tpu.memory_space<vmem>>, vector<1x2x32xf32>
    %173 = vector.shape_cast %172 : vector<1x2x32xf32> to vector<2x32xf32>
    %174 = vector.shape_cast %166 : vector<2x32xf32> to vector<1x2x32xf32>
    tpu.vector_store %arg23[%171, %c0_45, %c32_46], %174 {strides = array<i32>} : memref<8x2x64xf32, #tpu.memory_space<vmem>>, vector<1x2x32xf32>,
    %175 = tpu.concatenate %151, %166 in 1 : vector<2x32xf32>, vector<2x32xf32> -> vector<2x64xf32>
    %c3_i32 = arith.constant 3 : i32
    %176 = arith.truncf %175 : vector<2x64xf32> to vector<2x64xbf16>
    %cst_47 = arith.constant dense<0.000000e+00> : vector<2x256xf32>
    %177 = tpu.matmul %176, %11, %cst_47 {dimension_numbers = #tpu.dot_dimension_numbers<[1], [0], [0], [1], [0, 0, 1, 1], [], []>} : vector<2x64xbf16>, vector<64x256xbf16>, vector<2x256xf32> -> vector<2x256xf32>
    %c7_i32_48 = arith.constant 7 : i32
    %178 = arith.subi %c7_i32_48, %c3_i32 : i32
    %179 = arith.index_cast %c3_i32 : i32 to index
    %c0_49 = arith.constant 0 : index
    %c0_50 = arith.constant 0 : index
    %180 = vector.load %arg22[%179, %c0_49, %c0_50] : memref<8x2x256xf32, #tpu.memory_space<vmem>>, vector<1x2x256xf32>
    %181 = vector.shape_cast %180 : vector<1x2x256xf32> to vector<2x256xf32>
    %182 = vector.extract_strided_slice %181 {offsets = [0, 0], sizes = [2, 128], strides = [1, 1]} : vector<2x256xf32> to vector<2x128xf32>
    %183 = vector.extract_strided_slice %177 {offsets = [0, 0], sizes = [2, 128], strides = [1, 1]} : vector<2x256xf32> to vector<2x128xf32>
    %184 = arith.addf %182, %183 : vector<2x128xf32>
    %185 = arith.index_cast %178 : i32 to index
    %c0_51 = arith.constant 0 : index
    %c0_52 = arith.constant 0 : index
    %186 = vector.load %arg22[%185, %c0_51, %c0_52] : memref<8x2x256xf32, #tpu.memory_space<vmem>>, vector<1x2x256xf32>
    %187 = vector.shape_cast %186 : vector<1x2x256xf32> to vector<2x256xf32>
    %188 = vector.extract_strided_slice %187 {offsets = [0, 128], sizes = [2, 128], strides = [1, 1]} : vector<2x256xf32> to vector<2x128xf32>
    %189 = vector.extract_strided_slice %177 {offsets = [0, 128], sizes = [2, 128], strides = [1, 1]} : vector<2x256xf32> to vector<2x128xf32>
    %190 = arith.addf %188, %189 : vector<2x128xf32>
    %191 = arith.negf %184 : vector<2x128xf32>
    %192 = math.exp %191 : vector<2x128xf32>
    %cst_53 = arith.constant 1.000000e+00 : f32
    %193 = vector.broadcast %cst_53 : f32 to vector<2x128xf32>
    %194 = arith.addf %193, %192 : vector<2x128xf32>
    %195 = arith.divf %193, %194 : vector<2x128xf32>
    %196 = math.tanh %184 : vector<2x128xf32>
    %197 = vector.extract_strided_slice %195 {offsets = [0, 32], sizes = [2, 32], strides = [1, 1]} : vector<2x128xf32> to vector<2x32xf32>
    %198 = arith.mulf %197, %148 : vector<2x32xf32>
    %199 = vector.extract_strided_slice %195 {offsets = [0, 0], sizes = [2, 32], strides = [1, 1]} : vector<2x128xf32> to vector<2x32xf32>
    %200 = vector.extract_strided_slice %196 {offsets = [0, 64], sizes = [2, 32], strides = [1, 1]} : vector<2x128xf32> to vector<2x32xf32>
    %201 = arith.mulf %199, %200 : vector<2x32xf32>
    %202 = arith.addf %198, %201 : vector<2x32xf32>
    %203 = vector.extract_strided_slice %195 {offsets = [0, 96], sizes = [2, 32], strides = [1, 1]} : vector<2x128xf32> to vector<2x32xf32>
    %204 = math.tanh %202 : vector<2x32xf32>
    %205 = arith.mulf %203, %204 : vector<2x32xf32>
    %206 = arith.negf %190 : vector<2x128xf32>
    %207 = math.exp %206 : vector<2x128xf32>
    %cst_54 = arith.constant 1.000000e+00 : f32
    %208 = vector.broadcast %cst_54 : f32 to vector<2x128xf32>
    %209 = arith.addf %208, %207 : vector<2x128xf32>
    %210 = arith.divf %208, %209 : vector<2x128xf32>
    %211 = math.tanh %190 : vector<2x128xf32>
    %212 = vector.extract_strided_slice %210 {offsets = [0, 32], sizes = [2, 32], strides = [1, 1]} : vector<2x128xf32> to vector<2x32xf32>
    %213 = arith.mulf %212, %163 : vector<2x32xf32>
    %214 = vector.extract_strided_slice %210 {offsets = [0, 0], sizes = [2, 32], strides = [1, 1]} : vector<2x128xf32> to vector<2x32xf32>
    %215 = vector.extract_strided_slice %211 {offsets = [0, 64], sizes = [2, 32], strides = [1, 1]} : vector<2x128xf32> to vector<2x32xf32>
    %216 = arith.mulf %214, %215 : vector<2x32xf32>
    %217 = arith.addf %213, %216 : vector<2x32xf32>
    %218 = vector.extract_strided_slice %210 {offsets = [0, 96], sizes = [2, 32], strides = [1, 1]} : vector<2x128xf32> to vector<2x32xf32>
    %219 = math.tanh %217 : vector<2x32xf32>
    %220 = arith.mulf %218, %219 : vector<2x32xf32>
    %221 = arith.index_cast %c3_i32 : i32 to index
    %c0_55 = arith.constant 0 : index
    %c0_56 = arith.constant 0 : index
    %222 = vector.load %arg23[%221, %c0_55, %c0_56] : memref<8x2x64xf32, #tpu.memory_space<vmem>>, vector<1x2x32xf32>
    %223 = vector.shape_cast %222 : vector<1x2x32xf32> to vector<2x32xf32>
    %224 = vector.shape_cast %205 : vector<2x32xf32> to vector<1x2x32xf32>
    tpu.vector_store %arg23[%221, %c0_55, %c0_56], %224 {strides = array<i32>} : memref<8x2x64xf32, #tpu.memory_space<vmem>>, vector<1x2x32xf32>,
    %225 = arith.index_cast %178 : i32 to index
    %c0_57 = arith.constant 0 : index
    %c32_58 = arith.constant 32 : index
    %226 = vector.load %arg23[%225, %c0_57, %c32_58] : memref<8x2x64xf32, #tpu.memory_space<vmem>>, vector<1x2x32xf32>
    %227 = vector.shape_cast %226 : vector<1x2x32xf32> to vector<2x32xf32>
    %228 = vector.shape_cast %220 : vector<2x32xf32> to vector<1x2x32xf32>
    tpu.vector_store %arg23[%225, %c0_57, %c32_58], %228 {strides = array<i32>} : memref<8x2x64xf32, #tpu.memory_space<vmem>>, vector<1x2x32xf32>,
    %229 = tpu.concatenate %205, %220 in 1 : vector<2x32xf32>, vector<2x32xf32> -> vector<2x64xf32>
    %c4_i32 = arith.constant 4 : i32
    %230 = arith.truncf %229 : vector<2x64xf32> to vector<2x64xbf16>
    %cst_59 = arith.constant dense<0.000000e+00> : vector<2x256xf32>
    %231 = tpu.matmul %230, %11, %cst_59 {dimension_numbers = #tpu.dot_dimension_numbers<[1], [0], [0], [1], [0, 0, 1, 1], [], []>} : vector<2x64xbf16>, vector<64x256xbf16>, vector<2x256xf32> -> vector<2x256xf32>
    %c7_i32_60 = arith.constant 7 : i32
    %232 = arith.subi %c7_i32_60, %c4_i32 : i32
    %233 = arith.index_cast %c4_i32 : i32 to index
    %c0_61 = arith.constant 0 : index
    %c0_62 = arith.constant 0 : index
    %234 = vector.load %arg22[%233, %c0_61, %c0_62] : memref<8x2x256xf32, #tpu.memory_space<vmem>>, vector<1x2x256xf32>
    %235 = vector.shape_cast %234 : vector<1x2x256xf32> to vector<2x256xf32>
    %236 = vector.extract_strided_slice %235 {offsets = [0, 0], sizes = [2, 128], strides = [1, 1]} : vector<2x256xf32> to vector<2x128xf32>
    %237 = vector.extract_strided_slice %231 {offsets = [0, 0], sizes = [2, 128], strides = [1, 1]} : vector<2x256xf32> to vector<2x128xf32>
    %238 = arith.addf %236, %237 : vector<2x128xf32>
    %239 = arith.index_cast %232 : i32 to index
    %c0_63 = arith.constant 0 : index
    %c0_64 = arith.constant 0 : index
    %240 = vector.load %arg22[%239, %c0_63, %c0_64] : memref<8x2x256xf32, #tpu.memory_space<vmem>>, vector<1x2x256xf32>
    %241 = vector.shape_cast %240 : vector<1x2x256xf32> to vector<2x256xf32>
    %242 = vector.extract_strided_slice %241 {offsets = [0, 128], sizes = [2, 128], strides = [1, 1]} : vector<2x256xf32> to vector<2x128xf32>
    %243 = vector.extract_strided_slice %231 {offsets = [0, 128], sizes = [2, 128], strides = [1, 1]} : vector<2x256xf32> to vector<2x128xf32>
    %244 = arith.addf %242, %243 : vector<2x128xf32>
    %245 = arith.negf %238 : vector<2x128xf32>
    %246 = math.exp %245 : vector<2x128xf32>
    %cst_65 = arith.constant 1.000000e+00 : f32
    %247 = vector.broadcast %cst_65 : f32 to vector<2x128xf32>
    %248 = arith.addf %247, %246 : vector<2x128xf32>
    %249 = arith.divf %247, %248 : vector<2x128xf32>
    %250 = math.tanh %238 : vector<2x128xf32>
    %251 = vector.extract_strided_slice %249 {offsets = [0, 32], sizes = [2, 32], strides = [1, 1]} : vector<2x128xf32> to vector<2x32xf32>
    %252 = arith.mulf %251, %202 : vector<2x32xf32>
    %253 = vector.extract_strided_slice %249 {offsets = [0, 0], sizes = [2, 32], strides = [1, 1]} : vector<2x128xf32> to vector<2x32xf32>
    %254 = vector.extract_strided_slice %250 {offsets = [0, 64], sizes = [2, 32], strides = [1, 1]} : vector<2x128xf32> to vector<2x32xf32>
    %255 = arith.mulf %253, %254 : vector<2x32xf32>
    %256 = arith.addf %252, %255 : vector<2x32xf32>
    %257 = vector.extract_strided_slice %249 {offsets = [0, 96], sizes = [2, 32], strides = [1, 1]} : vector<2x128xf32> to vector<2x32xf32>
    %258 = math.tanh %256 : vector<2x32xf32>
    %259 = arith.mulf %257, %258 : vector<2x32xf32>
    %260 = arith.negf %244 : vector<2x128xf32>
    %261 = math.exp %260 : vector<2x128xf32>
    %cst_66 = arith.constant 1.000000e+00 : f32
    %262 = vector.broadcast %cst_66 : f32 to vector<2x128xf32>
    %263 = arith.addf %262, %261 : vector<2x128xf32>
    %264 = arith.divf %262, %263 : vector<2x128xf32>
    %265 = math.tanh %244 : vector<2x128xf32>
    %266 = vector.extract_strided_slice %264 {offsets = [0, 32], sizes = [2, 32], strides = [1, 1]} : vector<2x128xf32> to vector<2x32xf32>
    %267 = arith.mulf %266, %217 : vector<2x32xf32>
    %268 = vector.extract_strided_slice %264 {offsets = [0, 0], sizes = [2, 32], strides = [1, 1]} : vector<2x128xf32> to vector<2x32xf32>
    %269 = vector.extract_strided_slice %265 {offsets = [0, 64], sizes = [2, 32], strides = [1, 1]} : vector<2x128xf32> to vector<2x32xf32>
    %270 = arith.mulf %268, %269 : vector<2x32xf32>
    %271 = arith.addf %267, %270 : vector<2x32xf32>
    %272 = vector.extract_strided_slice %264 {offsets = [0, 96], sizes = [2, 32], strides = [1, 1]} : vector<2x128xf32> to vector<2x32xf32>
    %273 = math.tanh %271 : vector<2x32xf32>
    %274 = arith.mulf %272, %273 : vector<2x32xf32>
    %275 = arith.index_cast %c4_i32 : i32 to index
    %c0_67 = arith.constant 0 : index
    %c0_68 = arith.constant 0 : index
    %276 = vector.load %arg23[%275, %c0_67, %c0_68] : memref<8x2x64xf32, #tpu.memory_space<vmem>>, vector<1x2x32xf32>
    %277 = vector.shape_cast %276 : vector<1x2x32xf32> to vector<2x32xf32>
    %278 = vector.shape_cast %259 : vector<2x32xf32> to vector<1x2x32xf32>
    tpu.vector_store %arg23[%275, %c0_67, %c0_68], %278 {strides = array<i32>} : memref<8x2x64xf32, #tpu.memory_space<vmem>>, vector<1x2x32xf32>,
    %279 = arith.index_cast %232 : i32 to index
    %c0_69 = arith.constant 0 : index
    %c32_70 = arith.constant 32 : index
    %280 = vector.load %arg23[%279, %c0_69, %c32_70] : memref<8x2x64xf32, #tpu.memory_space<vmem>>, vector<1x2x32xf32>
    %281 = vector.shape_cast %280 : vector<1x2x32xf32> to vector<2x32xf32>
    %282 = vector.shape_cast %274 : vector<2x32xf32> to vector<1x2x32xf32>
    tpu.vector_store %arg23[%279, %c0_69, %c32_70], %282 {strides = array<i32>} : memref<8x2x64xf32, #tpu.memory_space<vmem>>, vector<1x2x32xf32>,
    %283 = tpu.concatenate %259, %274 in 1 : vector<2x32xf32>, vector<2x32xf32> -> vector<2x64xf32>
    %c5_i32 = arith.constant 5 : i32
    %284 = arith.truncf %283 : vector<2x64xf32> to vector<2x64xbf16>
    %cst_71 = arith.constant dense<0.000000e+00> : vector<2x256xf32>
    %285 = tpu.matmul %284, %11, %cst_71 {dimension_numbers = #tpu.dot_dimension_numbers<[1], [0], [0], [1], [0, 0, 1, 1], [], []>} : vector<2x64xbf16>, vector<64x256xbf16>, vector<2x256xf32> -> vector<2x256xf32>
    %c7_i32_72 = arith.constant 7 : i32
    %286 = arith.subi %c7_i32_72, %c5_i32 : i32
    %287 = arith.index_cast %c5_i32 : i32 to index
    %c0_73 = arith.constant 0 : index
    %c0_74 = arith.constant 0 : index
    %288 = vector.load %arg22[%287, %c0_73, %c0_74] : memref<8x2x256xf32, #tpu.memory_space<vmem>>, vector<1x2x256xf32>
    %289 = vector.shape_cast %288 : vector<1x2x256xf32> to vector<2x256xf32>
    %290 = vector.extract_strided_slice %289 {offsets = [0, 0], sizes = [2, 128], strides = [1, 1]} : vector<2x256xf32> to vector<2x128xf32>
    %291 = vector.extract_strided_slice %285 {offsets = [0, 0], sizes = [2, 128], strides = [1, 1]} : vector<2x256xf32> to vector<2x128xf32>
    %292 = arith.addf %290, %291 : vector<2x128xf32>
    %293 = arith.index_cast %286 : i32 to index
    %c0_75 = arith.constant 0 : index
    %c0_76 = arith.constant 0 : index
    %294 = vector.load %arg22[%293, %c0_75, %c0_76] : memref<8x2x256xf32, #tpu.memory_space<vmem>>, vector<1x2x256xf32>
    %295 = vector.shape_cast %294 : vector<1x2x256xf32> to vector<2x256xf32>
    %296 = vector.extract_strided_slice %295 {offsets = [0, 128], sizes = [2, 128], strides = [1, 1]} : vector<2x256xf32> to vector<2x128xf32>
    %297 = vector.extract_strided_slice %285 {offsets = [0, 128], sizes = [2, 128], strides = [1, 1]} : vector<2x256xf32> to vector<2x128xf32>
    %298 = arith.addf %296, %297 : vector<2x128xf32>
    %299 = arith.negf %292 : vector<2x128xf32>
    %300 = math.exp %299 : vector<2x128xf32>
    %cst_77 = arith.constant 1.000000e+00 : f32
    %301 = vector.broadcast %cst_77 : f32 to vector<2x128xf32>
    %302 = arith.addf %301, %300 : vector<2x128xf32>
    %303 = arith.divf %301, %302 : vector<2x128xf32>
    %304 = math.tanh %292 : vector<2x128xf32>
    %305 = vector.extract_strided_slice %303 {offsets = [0, 32], sizes = [2, 32], strides = [1, 1]} : vector<2x128xf32> to vector<2x32xf32>
    %306 = arith.mulf %305, %256 : vector<2x32xf32>
    %307 = vector.extract_strided_slice %303 {offsets = [0, 0], sizes = [2, 32], strides = [1, 1]} : vector<2x128xf32> to vector<2x32xf32>
    %308 = vector.extract_strided_slice %304 {offsets = [0, 64], sizes = [2, 32], strides = [1, 1]} : vector<2x128xf32> to vector<2x32xf32>
    %309 = arith.mulf %307, %308 : vector<2x32xf32>
    %310 = arith.addf %306, %309 : vector<2x32xf32>
    %311 = vector.extract_strided_slice %303 {offsets = [0, 96], sizes = [2, 32], strides = [1, 1]} : vector<2x128xf32> to vector<2x32xf32>
    %312 = math.tanh %310 : vector<2x32xf32>
    %313 = arith.mulf %311, %312 : vector<2x32xf32>
    %314 = arith.negf %298 : vector<2x128xf32>
    %315 = math.exp %314 : vector<2x128xf32>
    %cst_78 = arith.constant 1.000000e+00 : f32
    %316 = vector.broadcast %cst_78 : f32 to vector<2x128xf32>
    %317 = arith.addf %316, %315 : vector<2x128xf32>
    %318 = arith.divf %316, %317 : vector<2x128xf32>
    %319 = math.tanh %298 : vector<2x128xf32>
    %320 = vector.extract_strided_slice %318 {offsets = [0, 32], sizes = [2, 32], strides = [1, 1]} : vector<2x128xf32> to vector<2x32xf32>
    %321 = arith.mulf %320, %271 : vector<2x32xf32>
    %322 = vector.extract_strided_slice %318 {offsets = [0, 0], sizes = [2, 32], strides = [1, 1]} : vector<2x128xf32> to vector<2x32xf32>
    %323 = vector.extract_strided_slice %319 {offsets = [0, 64], sizes = [2, 32], strides = [1, 1]} : vector<2x128xf32> to vector<2x32xf32>
    %324 = arith.mulf %322, %323 : vector<2x32xf32>
    %325 = arith.addf %321, %324 : vector<2x32xf32>
    %326 = vector.extract_strided_slice %318 {offsets = [0, 96], sizes = [2, 32], strides = [1, 1]} : vector<2x128xf32> to vector<2x32xf32>
    %327 = math.tanh %325 : vector<2x32xf32>
    %328 = arith.mulf %326, %327 : vector<2x32xf32>
    %329 = arith.index_cast %c5_i32 : i32 to index
    %c0_79 = arith.constant 0 : index
    %c0_80 = arith.constant 0 : index
    %330 = vector.load %arg23[%329, %c0_79, %c0_80] : memref<8x2x64xf32, #tpu.memory_space<vmem>>, vector<1x2x32xf32>
    %331 = vector.shape_cast %330 : vector<1x2x32xf32> to vector<2x32xf32>
    %332 = vector.shape_cast %313 : vector<2x32xf32> to vector<1x2x32xf32>
    tpu.vector_store %arg23[%329, %c0_79, %c0_80], %332 {strides = array<i32>} : memref<8x2x64xf32, #tpu.memory_space<vmem>>, vector<1x2x32xf32>,
    %333 = arith.index_cast %286 : i32 to index
    %c0_81 = arith.constant 0 : index
    %c32_82 = arith.constant 32 : index
    %334 = vector.load %arg23[%333, %c0_81, %c32_82] : memref<8x2x64xf32, #tpu.memory_space<vmem>>, vector<1x2x32xf32>
    %335 = vector.shape_cast %334 : vector<1x2x32xf32> to vector<2x32xf32>
    %336 = vector.shape_cast %328 : vector<2x32xf32> to vector<1x2x32xf32>
    tpu.vector_store %arg23[%333, %c0_81, %c32_82], %336 {strides = array<i32>} : memref<8x2x64xf32, #tpu.memory_space<vmem>>, vector<1x2x32xf32>,
    %337 = tpu.concatenate %313, %328 in 1 : vector<2x32xf32>, vector<2x32xf32> -> vector<2x64xf32>
    %c6_i32 = arith.constant 6 : i32
    %338 = arith.truncf %337 : vector<2x64xf32> to vector<2x64xbf16>
    %cst_83 = arith.constant dense<0.000000e+00> : vector<2x256xf32>
    %339 = tpu.matmul %338, %11, %cst_83 {dimension_numbers = #tpu.dot_dimension_numbers<[1], [0], [0], [1], [0, 0, 1, 1], [], []>} : vector<2x64xbf16>, vector<64x256xbf16>, vector<2x256xf32> -> vector<2x256xf32>
    %c7_i32_84 = arith.constant 7 : i32
    %340 = arith.subi %c7_i32_84, %c6_i32 : i32
    %341 = arith.index_cast %c6_i32 : i32 to index
    %c0_85 = arith.constant 0 : index
    %c0_86 = arith.constant 0 : index
    %342 = vector.load %arg22[%341, %c0_85, %c0_86] : memref<8x2x256xf32, #tpu.memory_space<vmem>>, vector<1x2x256xf32>
    %343 = vector.shape_cast %342 : vector<1x2x256xf32> to vector<2x256xf32>
    %344 = vector.extract_strided_slice %343 {offsets = [0, 0], sizes = [2, 128], strides = [1, 1]} : vector<2x256xf32> to vector<2x128xf32>
    %345 = vector.extract_strided_slice %339 {offsets = [0, 0], sizes = [2, 128], strides = [1, 1]} : vector<2x256xf32> to vector<2x128xf32>
    %346 = arith.addf %344, %345 : vector<2x128xf32>
    %347 = arith.index_cast %340 : i32 to index
    %c0_87 = arith.constant 0 : index
    %c0_88 = arith.constant 0 : index
    %348 = vector.load %arg22[%347, %c0_87, %c0_88] : memref<8x2x256xf32, #tpu.memory_space<vmem>>, vector<1x2x256xf32>
    %349 = vector.shape_cast %348 : vector<1x2x256xf32> to vector<2x256xf32>
    %350 = vector.extract_strided_slice %349 {offsets = [0, 128], sizes = [2, 128], strides = [1, 1]} : vector<2x256xf32> to vector<2x128xf32>
    %351 = vector.extract_strided_slice %339 {offsets = [0, 128], sizes = [2, 128], strides = [1, 1]} : vector<2x256xf32> to vector<2x128xf32>
    %352 = arith.addf %350, %351 : vector<2x128xf32>
    %353 = arith.negf %346 : vector<2x128xf32>
    %354 = math.exp %353 : vector<2x128xf32>
    %cst_89 = arith.constant 1.000000e+00 : f32
    %355 = vector.broadcast %cst_89 : f32 to vector<2x128xf32>
    %356 = arith.addf %355, %354 : vector<2x128xf32>
    %357 = arith.divf %355, %356 : vector<2x128xf32>
    %358 = math.tanh %346 : vector<2x128xf32>
    %359 = vector.extract_strided_slice %357 {offsets = [0, 32], sizes = [2, 32], strides = [1, 1]} : vector<2x128xf32> to vector<2x32xf32>
    %360 = arith.mulf %359, %310 : vector<2x32xf32>
    %361 = vector.extract_strided_slice %357 {offsets = [0, 0], sizes = [2, 32], strides = [1, 1]} : vector<2x128xf32> to vector<2x32xf32>
    %362 = vector.extract_strided_slice %358 {offsets = [0, 64], sizes = [2, 32], strides = [1, 1]} : vector<2x128xf32> to vector<2x32xf32>
    %363 = arith.mulf %361, %362 : vector<2x32xf32>
    %364 = arith.addf %360, %363 : vector<2x32xf32>
    %365 = vector.extract_strided_slice %357 {offsets = [0, 96], sizes = [2, 32], strides = [1, 1]} : vector<2x128xf32> to vector<2x32xf32>
    %366 = math.tanh %364 : vector<2x32xf32>
    %367 = arith.mulf %365, %366 : vector<2x32xf32>
    %368 = arith.negf %352 : vector<2x128xf32>
    %369 = math.exp %368 : vector<2x128xf32>
    %cst_90 = arith.constant 1.000000e+00 : f32
    %370 = vector.broadcast %cst_90 : f32 to vector<2x128xf32>
    %371 = arith.addf %370, %369 : vector<2x128xf32>
    %372 = arith.divf %370, %371 : vector<2x128xf32>
    %373 = math.tanh %352 : vector<2x128xf32>
    %374 = vector.extract_strided_slice %372 {offsets = [0, 32], sizes = [2, 32], strides = [1, 1]} : vector<2x128xf32> to vector<2x32xf32>
    %375 = arith.mulf %374, %325 : vector<2x32xf32>
    %376 = vector.extract_strided_slice %372 {offsets = [0, 0], sizes = [2, 32], strides = [1, 1]} : vector<2x128xf32> to vector<2x32xf32>
    %377 = vector.extract_strided_slice %373 {offsets = [0, 64], sizes = [2, 32], strides = [1, 1]} : vector<2x128xf32> to vector<2x32xf32>
    %378 = arith.mulf %376, %377 : vector<2x32xf32>
    %379 = arith.addf %375, %378 : vector<2x32xf32>
    %380 = vector.extract_strided_slice %372 {offsets = [0, 96], sizes = [2, 32], strides = [1, 1]} : vector<2x128xf32> to vector<2x32xf32>
    %381 = math.tanh %379 : vector<2x32xf32>
    %382 = arith.mulf %380, %381 : vector<2x32xf32>
    %383 = arith.index_cast %c6_i32 : i32 to index
    %c0_91 = arith.constant 0 : index
    %c0_92 = arith.constant 0 : index
    %384 = vector.load %arg23[%383, %c0_91, %c0_92] : memref<8x2x64xf32, #tpu.memory_space<vmem>>, vector<1x2x32xf32>
    %385 = vector.shape_cast %384 : vector<1x2x32xf32> to vector<2x32xf32>
    %386 = vector.shape_cast %367 : vector<2x32xf32> to vector<1x2x32xf32>
    tpu.vector_store %arg23[%383, %c0_91, %c0_92], %386 {strides = array<i32>} : memref<8x2x64xf32, #tpu.memory_space<vmem>>, vector<1x2x32xf32>,
    %387 = arith.index_cast %340 : i32 to index
    %c0_93 = arith.constant 0 : index
    %c32_94 = arith.constant 32 : index
    %388 = vector.load %arg23[%387, %c0_93, %c32_94] : memref<8x2x64xf32, #tpu.memory_space<vmem>>, vector<1x2x32xf32>
    %389 = vector.shape_cast %388 : vector<1x2x32xf32> to vector<2x32xf32>
    %390 = vector.shape_cast %382 : vector<2x32xf32> to vector<1x2x32xf32>
    tpu.vector_store %arg23[%387, %c0_93, %c32_94], %390 {strides = array<i32>} : memref<8x2x64xf32, #tpu.memory_space<vmem>>, vector<1x2x32xf32>,
    %391 = tpu.concatenate %367, %382 in 1 : vector<2x32xf32>, vector<2x32xf32> -> vector<2x64xf32>
    %c7_i32_95 = arith.constant 7 : i32
    %392 = arith.truncf %391 : vector<2x64xf32> to vector<2x64xbf16>
    %cst_96 = arith.constant dense<0.000000e+00> : vector<2x256xf32>
    %393 = tpu.matmul %392, %11, %cst_96 {dimension_numbers = #tpu.dot_dimension_numbers<[1], [0], [0], [1], [0, 0, 1, 1], [], []>} : vector<2x64xbf16>, vector<64x256xbf16>, vector<2x256xf32> -> vector<2x256xf32>
    %c7_i32_97 = arith.constant 7 : i32
    %394 = arith.subi %c7_i32_97, %c7_i32_95 : i32
    %395 = arith.index_cast %c7_i32_95 : i32 to index
    %c0_98 = arith.constant 0 : index
    %c0_99 = arith.constant 0 : index
    %396 = vector.load %arg22[%395, %c0_98, %c0_99] : memref<8x2x256xf32, #tpu.memory_space<vmem>>, vector<1x2x256xf32>
    %397 = vector.shape_cast %396 : vector<1x2x256xf32> to vector<2x256xf32>
    %398 = vector.extract_strided_slice %397 {offsets = [0, 0], sizes = [2, 128], strides = [1, 1]} : vector<2x256xf32> to vector<2x128xf32>
    %399 = vector.extract_strided_slice %393 {offsets = [0, 0], sizes = [2, 128], strides = [1, 1]} : vector<2x256xf32> to vector<2x128xf32>
    %400 = arith.addf %398, %399 : vector<2x128xf32>
    %401 = arith.index_cast %394 : i32 to index
    %c0_100 = arith.constant 0 : index
    %c0_101 = arith.constant 0 : index
    %402 = vector.load %arg22[%401, %c0_100, %c0_101] : memref<8x2x256xf32, #tpu.memory_space<vmem>>, vector<1x2x256xf32>
    %403 = vector.shape_cast %402 : vector<1x2x256xf32> to vector<2x256xf32>
    %404 = vector.extract_strided_slice %403 {offsets = [0, 128], sizes = [2, 128], strides = [1, 1]} : vector<2x256xf32> to vector<2x128xf32>
    %405 = vector.extract_strided_slice %393 {offsets = [0, 128], sizes = [2, 128], strides = [1, 1]} : vector<2x256xf32> to vector<2x128xf32>
    %406 = arith.addf %404, %405 : vector<2x128xf32>
    %407 = arith.negf %400 : vector<2x128xf32>
    %408 = math.exp %407 : vector<2x128xf32>
    %cst_102 = arith.constant 1.000000e+00 : f32
    %409 = vector.broadcast %cst_102 : f32 to vector<2x128xf32>
    %410 = arith.addf %409, %408 : vector<2x128xf32>
    %411 = arith.divf %409, %410 : vector<2x128xf32>
    %412 = math.tanh %400 : vector<2x128xf32>
    %413 = vector.extract_strided_slice %411 {offsets = [0, 32], sizes = [2, 32], strides = [1, 1]} : vector<2x128xf32> to vector<2x32xf32>
    %414 = arith.mulf %413, %364 : vector<2x32xf32>
    %415 = vector.extract_strided_slice %411 {offsets = [0, 0], sizes = [2, 32], strides = [1, 1]} : vector<2x128xf32> to vector<2x32xf32>
    %416 = vector.extract_strided_slice %412 {offsets = [0, 64], sizes = [2, 32], strides = [1, 1]} : vector<2x128xf32> to vector<2x32xf32>
    %417 = arith.mulf %415, %416 : vector<2x32xf32>
    %418 = arith.addf %414, %417 : vector<2x32xf32>
    %419 = vector.extract_strided_slice %411 {offsets = [0, 96], sizes = [2, 32], strides = [1, 1]} : vector<2x128xf32> to vector<2x32xf32>
    %420 = math.tanh %418 : vector<2x32xf32>
    %421 = arith.mulf %419, %420 : vector<2x32xf32>
    %422 = arith.negf %406 : vector<2x128xf32>
    %423 = math.exp %422 : vector<2x128xf32>
    %cst_103 = arith.constant 1.000000e+00 : f32
    %424 = vector.broadcast %cst_103 : f32 to vector<2x128xf32>
    %425 = arith.addf %424, %423 : vector<2x128xf32>
    %426 = arith.divf %424, %425 : vector<2x128xf32>
    %427 = math.tanh %406 : vector<2x128xf32>
    %428 = vector.extract_strided_slice %426 {offsets = [0, 32], sizes = [2, 32], strides = [1, 1]} : vector<2x128xf32> to vector<2x32xf32>
    %429 = arith.mulf %428, %379 : vector<2x32xf32>
    %430 = vector.extract_strided_slice %426 {offsets = [0, 0], sizes = [2, 32], strides = [1, 1]} : vector<2x128xf32> to vector<2x32xf32>
    %431 = vector.extract_strided_slice %427 {offsets = [0, 64], sizes = [2, 32], strides = [1, 1]} : vector<2x128xf32> to vector<2x32xf32>
    %432 = arith.mulf %430, %431 : vector<2x32xf32>
    %433 = arith.addf %429, %432 : vector<2x32xf32>
    %434 = vector.extract_strided_slice %426 {offsets = [0, 96], sizes = [2, 32], strides = [1, 1]} : vector<2x128xf32> to vector<2x32xf32>
    %435 = math.tanh %433 : vector<2x32xf32>
    %436 = arith.mulf %434, %435 : vector<2x32xf32>
    %437 = arith.index_cast %c7_i32_95 : i32 to index
    %c0_104 = arith.constant 0 : index
    %c0_105 = arith.constant 0 : index
    %438 = vector.load %arg23[%437, %c0_104, %c0_105] : memref<8x2x64xf32, #tpu.memory_space<vmem>>, vector<1x2x32xf32>
    %439 = vector.shape_cast %438 : vector<1x2x32xf32> to vector<2x32xf32>
    %440 = vector.shape_cast %421 : vector<2x32xf32> to vector<1x2x32xf32>
    tpu.vector_store %arg23[%437, %c0_104, %c0_105], %440 {strides = array<i32>} : memref<8x2x64xf32, #tpu.memory_space<vmem>>, vector<1x2x32xf32>,
    %441 = arith.index_cast %394 : i32 to index
    %c0_106 = arith.constant 0 : index
    %c32_107 = arith.constant 32 : index
    %442 = vector.load %arg23[%441, %c0_106, %c32_107] : memref<8x2x64xf32, #tpu.memory_space<vmem>>, vector<1x2x32xf32>
    %443 = vector.shape_cast %442 : vector<1x2x32xf32> to vector<2x32xf32>
    %444 = vector.shape_cast %436 : vector<2x32xf32> to vector<1x2x32xf32>
    tpu.vector_store %arg23[%441, %c0_106, %c32_107], %444 {strides = array<i32>} : memref<8x2x64xf32, #tpu.memory_space<vmem>>, vector<1x2x32xf32>,
    %445 = tpu.concatenate %421, %436 in 1 : vector<2x32xf32>, vector<2x32xf32> -> vector<2x64xf32>
    %c8_i32 = arith.constant 8 : i32
    %c0_108 = arith.constant 0 : index
    %c0_109 = arith.constant 0 : index
    %c0_110 = arith.constant 0 : index
    %446 = vector.load %arg23[%c0_108, %c0_109, %c0_110] : memref<8x2x64xf32, #tpu.memory_space<vmem>>, vector<8x2x64xf32>
    %447 = vector.shape_cast %446 : vector<8x2x64xf32> to vector<16x64xf32>
    %448 = arith.truncf %447 : vector<16x64xf32> to vector<16x64xbf16>
    %c0_111 = arith.constant 0 : index
    %c0_112 = arith.constant 0 : index
    %449 = vector.load %arg4[%c0_111, %c0_112] : memref<64x256xbf16, #tpu.memory_space<vmem>>, vector<64x256xbf16>
    %cst_113 = arith.constant dense<0.000000e+00> : vector<16x256xf32>
    %450 = tpu.matmul %448, %449, %cst_113 {dimension_numbers = #tpu.dot_dimension_numbers<[1], [0], [0], [1], [0, 0, 1, 1], [], []>} : vector<16x64xbf16>, vector<64x256xbf16>, vector<16x256xf32> -> vector<16x256xf32>
    %c0_114 = arith.constant 0 : index
    %c0_115 = arith.constant 0 : index
    %451 = vector.load %arg5[%c0_114, %c0_115] : memref<1x256xf32, #tpu.memory_space<vmem>>, vector<1x256xf32>
    %452 = vector.broadcast %451 : vector<1x256xf32> to vector<16x256xf32>
    %453 = arith.addf %450, %452 : vector<16x256xf32>
    %454 = vector.shape_cast %453 : vector<16x256xf32> to vector<8x2x256xf32>
    %c0_116 = arith.constant 0 : index
    %c0_117 = arith.constant 0 : index
    %c0_118 = arith.constant 0 : index
    %455 = vector.load %arg22[%c0_116, %c0_117, %c0_118] : memref<8x2x256xf32, #tpu.memory_space<vmem>>, vector<8x2x256xf32>
    tpu.vector_store %arg22[%c0_116, %c0_117, %c0_118], %454 {strides = array<i32>} : memref<8x2x256xf32, #tpu.memory_space<vmem>>, vector<8x2x256xf32>,
    %c0_119 = arith.constant 0 : index
    %c0_120 = arith.constant 0 : index
    %456 = vector.load %arg6[%c0_119, %c0_120] : memref<64x256xbf16, #tpu.memory_space<vmem>>, vector<64x256xbf16>
    %cst_121 = arith.constant 0.000000e+00 : f32
    %457 = vector.broadcast %cst_121 : f32 to vector<2x64xf32>
    %cst_122 = arith.constant 0.000000e+00 : f32
    %458 = vector.broadcast %cst_122 : f32 to vector<2x32xf32>
    %c0_i32_123 = arith.constant 0 : i32
    %459 = arith.truncf %457 : vector<2x64xf32> to vector<2x64xbf16>
    %cst_124 = arith.constant dense<0.000000e+00> : vector<2x256xf32>
    %460 = tpu.matmul %459, %456, %cst_124 {dimension_numbers = #tpu.dot_dimension_numbers<[1], [0], [0], [1], [0, 0, 1, 1], [], []>} : vector<2x64xbf16>, vector<64x256xbf16>, vector<2x256xf32> -> vector<2x256xf32>
    %c7_i32_125 = arith.constant 7 : i32
    %461 = arith.subi %c7_i32_125, %c0_i32_123 : i32
    %462 = arith.index_cast %c0_i32_123 : i32 to index
    %c0_126 = arith.constant 0 : index
    %c0_127 = arith.constant 0 : index
    %463 = vector.load %arg22[%462, %c0_126, %c0_127] : memref<8x2x256xf32, #tpu.memory_space<vmem>>, vector<1x2x256xf32>
    %464 = vector.shape_cast %463 : vector<1x2x256xf32> to vector<2x256xf32>
    %465 = vector.extract_strided_slice %464 {offsets = [0, 0], sizes = [2, 128], strides = [1, 1]} : vector<2x256xf32> to vector<2x128xf32>
    %466 = vector.extract_strided_slice %460 {offsets = [0, 0], sizes = [2, 128], strides = [1, 1]} : vector<2x256xf32> to vector<2x128xf32>
    %467 = arith.addf %465, %466 : vector<2x128xf32>
    %468 = arith.index_cast %461 : i32 to index
    %c0_128 = arith.constant 0 : index
    %c0_129 = arith.constant 0 : index
    %469 = vector.load %arg22[%468, %c0_128, %c0_129] : memref<8x2x256xf32, #tpu.memory_space<vmem>>, vector<1x2x256xf32>
    %470 = vector.shape_cast %469 : vector<1x2x256xf32> to vector<2x256xf32>
    %471 = vector.extract_strided_slice %470 {offsets = [0, 128], sizes = [2, 128], strides = [1, 1]} : vector<2x256xf32> to vector<2x128xf32>
    %472 = vector.extract_strided_slice %460 {offsets = [0, 128], sizes = [2, 128], strides = [1, 1]} : vector<2x256xf32> to vector<2x128xf32>
    %473 = arith.addf %471, %472 : vector<2x128xf32>
    %474 = arith.negf %467 : vector<2x128xf32>
    %475 = math.exp %474 : vector<2x128xf32>
    %cst_130 = arith.constant 1.000000e+00 : f32
    %476 = vector.broadcast %cst_130 : f32 to vector<2x128xf32>
    %477 = arith.addf %476, %475 : vector<2x128xf32>
    %478 = arith.divf %476, %477 : vector<2x128xf32>
    %479 = math.tanh %467 : vector<2x128xf32>
    %480 = vector.extract_strided_slice %478 {offsets = [0, 32], sizes = [2, 32], strides = [1, 1]} : vector<2x128xf32> to vector<2x32xf32>
    %481 = arith.mulf %480, %458 : vector<2x32xf32>
    %482 = vector.extract_strided_slice %478 {offsets = [0, 0], sizes = [2, 32], strides = [1, 1]} : vector<2x128xf32> to vector<2x32xf32>
    %483 = vector.extract_strided_slice %479 {offsets = [0, 64], sizes = [2, 32], strides = [1, 1]} : vector<2x128xf32> to vector<2x32xf32>
    %484 = arith.mulf %482, %483 : vector<2x32xf32>
    %485 = arith.addf %481, %484 : vector<2x32xf32>
    %486 = vector.extract_strided_slice %478 {offsets = [0, 96], sizes = [2, 32], strides = [1, 1]} : vector<2x128xf32> to vector<2x32xf32>
    %487 = math.tanh %485 : vector<2x32xf32>
    %488 = arith.mulf %486, %487 : vector<2x32xf32>
    %489 = arith.negf %473 : vector<2x128xf32>
    %490 = math.exp %489 : vector<2x128xf32>
    %cst_131 = arith.constant 1.000000e+00 : f32
    %491 = vector.broadcast %cst_131 : f32 to vector<2x128xf32>
    %492 = arith.addf %491, %490 : vector<2x128xf32>
    %493 = arith.divf %491, %492 : vector<2x128xf32>
    %494 = math.tanh %473 : vector<2x128xf32>
    %495 = vector.extract_strided_slice %493 {offsets = [0, 32], sizes = [2, 32], strides = [1, 1]} : vector<2x128xf32> to vector<2x32xf32>
    %496 = arith.mulf %495, %458 : vector<2x32xf32>
    %497 = vector.extract_strided_slice %493 {offsets = [0, 0], sizes = [2, 32], strides = [1, 1]} : vector<2x128xf32> to vector<2x32xf32>
    %498 = vector.extract_strided_slice %494 {offsets = [0, 64], sizes = [2, 32], strides = [1, 1]} : vector<2x128xf32> to vector<2x32xf32>
    %499 = arith.mulf %497, %498 : vector<2x32xf32>
    %500 = arith.addf %496, %499 : vector<2x32xf32>
    %501 = vector.extract_strided_slice %493 {offsets = [0, 96], sizes = [2, 32], strides = [1, 1]} : vector<2x128xf32> to vector<2x32xf32>
    %502 = math.tanh %500 : vector<2x32xf32>
    %503 = arith.mulf %501, %502 : vector<2x32xf32>
    %504 = arith.index_cast %c0_i32_123 : i32 to index
    %c0_132 = arith.constant 0 : index
    %c0_133 = arith.constant 0 : index
    %505 = vector.load %arg23[%504, %c0_132, %c0_133] : memref<8x2x64xf32, #tpu.memory_space<vmem>>, vector<1x2x32xf32>
    %506 = vector.shape_cast %505 : vector<1x2x32xf32> to vector<2x32xf32>
    %507 = vector.shape_cast %488 : vector<2x32xf32> to vector<1x2x32xf32>
    tpu.vector_store %arg23[%504, %c0_132, %c0_133], %507 {strides = array<i32>} : memref<8x2x64xf32, #tpu.memory_space<vmem>>, vector<1x2x32xf32>,
    %508 = arith.index_cast %461 : i32 to index
    %c0_134 = arith.constant 0 : index
    %c32_135 = arith.constant 32 : index
    %509 = vector.load %arg23[%508, %c0_134, %c32_135] : memref<8x2x64xf32, #tpu.memory_space<vmem>>, vector<1x2x32xf32>
    %510 = vector.shape_cast %509 : vector<1x2x32xf32> to vector<2x32xf32>
    %511 = vector.shape_cast %503 : vector<2x32xf32> to vector<1x2x32xf32>
    tpu.vector_store %arg23[%508, %c0_134, %c32_135], %511 {strides = array<i32>} : memref<8x2x64xf32, #tpu.memory_space<vmem>>, vector<1x2x32xf32>,
    %512 = tpu.concatenate %488, %503 in 1 : vector<2x32xf32>, vector<2x32xf32> -> vector<2x64xf32>
    %c1_i32_136 = arith.constant 1 : i32
    %513 = arith.truncf %512 : vector<2x64xf32> to vector<2x64xbf16>
    %cst_137 = arith.constant dense<0.000000e+00> : vector<2x256xf32>
    %514 = tpu.matmul %513, %456, %cst_137 {dimension_numbers = #tpu.dot_dimension_numbers<[1], [0], [0], [1], [0, 0, 1, 1], [], []>} : vector<2x64xbf16>, vector<64x256xbf16>, vector<2x256xf32> -> vector<2x256xf32>
    %c7_i32_138 = arith.constant 7 : i32
    %515 = arith.subi %c7_i32_138, %c1_i32_136 : i32
    %516 = arith.index_cast %c1_i32_136 : i32 to index
    %c0_139 = arith.constant 0 : index
    %c0_140 = arith.constant 0 : index
    %517 = vector.load %arg22[%516, %c0_139, %c0_140] : memref<8x2x256xf32, #tpu.memory_space<vmem>>, vector<1x2x256xf32>
    %518 = vector.shape_cast %517 : vector<1x2x256xf32> to vector<2x256xf32>
    %519 = vector.extract_strided_slice %518 {offsets = [0, 0], sizes = [2, 128], strides = [1, 1]} : vector<2x256xf32> to vector<2x128xf32>
    %520 = vector.extract_strided_slice %514 {offsets = [0, 0], sizes = [2, 128], strides = [1, 1]} : vector<2x256xf32> to vector<2x128xf32>
    %521 = arith.addf %519, %520 : vector<2x128xf32>
    %522 = arith.index_cast %515 : i32 to index
    %c0_141 = arith.constant 0 : index
    %c0_142 = arith.constant 0 : index
    %523 = vector.load %arg22[%522, %c0_141, %c0_142] : memref<8x2x256xf32, #tpu.memory_space<vmem>>, vector<1x2x256xf32>
    %524 = vector.shape_cast %523 : vector<1x2x256xf32> to vector<2x256xf32>
    %525 = vector.extract_strided_slice %524 {offsets = [0, 128], sizes = [2, 128], strides = [1, 1]} : vector<2x256xf32> to vector<2x128xf32>
    %526 = vector.extract_strided_slice %514 {offsets = [0, 128], sizes = [2, 128], strides = [1, 1]} : vector<2x256xf32> to vector<2x128xf32>
    %527 = arith.addf %525, %526 : vector<2x128xf32>
    %528 = arith.negf %521 : vector<2x128xf32>
    %529 = math.exp %528 : vector<2x128xf32>
    %cst_143 = arith.constant 1.000000e+00 : f32
    %530 = vector.broadcast %cst_143 : f32 to vector<2x128xf32>
    %531 = arith.addf %530, %529 : vector<2x128xf32>
    %532 = arith.divf %530, %531 : vector<2x128xf32>
    %533 = math.tanh %521 : vector<2x128xf32>
    %534 = vector.extract_strided_slice %532 {offsets = [0, 32], sizes = [2, 32], strides = [1, 1]} : vector<2x128xf32> to vector<2x32xf32>
    %535 = arith.mulf %534, %485 : vector<2x32xf32>
    %536 = vector.extract_strided_slice %532 {offsets = [0, 0], sizes = [2, 32], strides = [1, 1]} : vector<2x128xf32> to vector<2x32xf32>
    %537 = vector.extract_strided_slice %533 {offsets = [0, 64], sizes = [2, 32], strides = [1, 1]} : vector<2x128xf32> to vector<2x32xf32>
    %538 = arith.mulf %536, %537 : vector<2x32xf32>
    %539 = arith.addf %535, %538 : vector<2x32xf32>
    %540 = vector.extract_strided_slice %532 {offsets = [0, 96], sizes = [2, 32], strides = [1, 1]} : vector<2x128xf32> to vector<2x32xf32>
    %541 = math.tanh %539 : vector<2x32xf32>
    %542 = arith.mulf %540, %541 : vector<2x32xf32>
    %543 = arith.negf %527 : vector<2x128xf32>
    %544 = math.exp %543 : vector<2x128xf32>
    %cst_144 = arith.constant 1.000000e+00 : f32
    %545 = vector.broadcast %cst_144 : f32 to vector<2x128xf32>
    %546 = arith.addf %545, %544 : vector<2x128xf32>
    %547 = arith.divf %545, %546 : vector<2x128xf32>
    %548 = math.tanh %527 : vector<2x128xf32>
    %549 = vector.extract_strided_slice %547 {offsets = [0, 32], sizes = [2, 32], strides = [1, 1]} : vector<2x128xf32> to vector<2x32xf32>
    %550 = arith.mulf %549, %500 : vector<2x32xf32>
    %551 = vector.extract_strided_slice %547 {offsets = [0, 0], sizes = [2, 32], strides = [1, 1]} : vector<2x128xf32> to vector<2x32xf32>
    %552 = vector.extract_strided_slice %548 {offsets = [0, 64], sizes = [2, 32], strides = [1, 1]} : vector<2x128xf32> to vector<2x32xf32>
    %553 = arith.mulf %551, %552 : vector<2x32xf32>
    %554 = arith.addf %550, %553 : vector<2x32xf32>
    %555 = vector.extract_strided_slice %547 {offsets = [0, 96], sizes = [2, 32], strides = [1, 1]} : vector<2x128xf32> to vector<2x32xf32>
    %556 = math.tanh %554 : vector<2x32xf32>
    %557 = arith.mulf %555, %556 : vector<2x32xf32>
    %558 = arith.index_cast %c1_i32_136 : i32 to index
    %c0_145 = arith.constant 0 : index
    %c0_146 = arith.constant 0 : index
    %559 = vector.load %arg23[%558, %c0_145, %c0_146] : memref<8x2x64xf32, #tpu.memory_space<vmem>>, vector<1x2x32xf32>
    %560 = vector.shape_cast %559 : vector<1x2x32xf32> to vector<2x32xf32>
    %561 = vector.shape_cast %542 : vector<2x32xf32> to vector<1x2x32xf32>
    tpu.vector_store %arg23[%558, %c0_145, %c0_146], %561 {strides = array<i32>} : memref<8x2x64xf32, #tpu.memory_space<vmem>>, vector<1x2x32xf32>,
    %562 = arith.index_cast %515 : i32 to index
    %c0_147 = arith.constant 0 : index
    %c32_148 = arith.constant 32 : index
    %563 = vector.load %arg23[%562, %c0_147, %c32_148] : memref<8x2x64xf32, #tpu.memory_space<vmem>>, vector<1x2x32xf32>
    %564 = vector.shape_cast %563 : vector<1x2x32xf32> to vector<2x32xf32>
    %565 = vector.shape_cast %557 : vector<2x32xf32> to vector<1x2x32xf32>
    tpu.vector_store %arg23[%562, %c0_147, %c32_148], %565 {strides = array<i32>} : memref<8x2x64xf32, #tpu.memory_space<vmem>>, vector<1x2x32xf32>,
    %566 = tpu.concatenate %542, %557 in 1 : vector<2x32xf32>, vector<2x32xf32> -> vector<2x64xf32>
    %c2_i32_149 = arith.constant 2 : i32
    %567 = arith.truncf %566 : vector<2x64xf32> to vector<2x64xbf16>
    %cst_150 = arith.constant dense<0.000000e+00> : vector<2x256xf32>
    %568 = tpu.matmul %567, %456, %cst_150 {dimension_numbers = #tpu.dot_dimension_numbers<[1], [0], [0], [1], [0, 0, 1, 1], [], []>} : vector<2x64xbf16>, vector<64x256xbf16>, vector<2x256xf32> -> vector<2x256xf32>
    %c7_i32_151 = arith.constant 7 : i32
    %569 = arith.subi %c7_i32_151, %c2_i32_149 : i32
    %570 = arith.index_cast %c2_i32_149 : i32 to index
    %c0_152 = arith.constant 0 : index
    %c0_153 = arith.constant 0 : index
    %571 = vector.load %arg22[%570, %c0_152, %c0_153] : memref<8x2x256xf32, #tpu.memory_space<vmem>>, vector<1x2x256xf32>
    %572 = vector.shape_cast %571 : vector<1x2x256xf32> to vector<2x256xf32>
    %573 = vector.extract_strided_slice %572 {offsets = [0, 0], sizes = [2, 128], strides = [1, 1]} : vector<2x256xf32> to vector<2x128xf32>
    %574 = vector.extract_strided_slice %568 {offsets = [0, 0], sizes = [2, 128], strides = [1, 1]} : vector<2x256xf32> to vector<2x128xf32>
    %575 = arith.addf %573, %574 : vector<2x128xf32>
    %576 = arith.index_cast %569 : i32 to index
    %c0_154 = arith.constant 0 : index
    %c0_155 = arith.constant 0 : index
    %577 = vector.load %arg22[%576, %c0_154, %c0_155] : memref<8x2x256xf32, #tpu.memory_space<vmem>>, vector<1x2x256xf32>
    %578 = vector.shape_cast %577 : vector<1x2x256xf32> to vector<2x256xf32>
    %579 = vector.extract_strided_slice %578 {offsets = [0, 128], sizes = [2, 128], strides = [1, 1]} : vector<2x256xf32> to vector<2x128xf32>
    %580 = vector.extract_strided_slice %568 {offsets = [0, 128], sizes = [2, 128], strides = [1, 1]} : vector<2x256xf32> to vector<2x128xf32>
    %581 = arith.addf %579, %580 : vector<2x128xf32>
    %582 = arith.negf %575 : vector<2x128xf32>
    %583 = math.exp %582 : vector<2x128xf32>
    %cst_156 = arith.constant 1.000000e+00 : f32
    %584 = vector.broadcast %cst_156 : f32 to vector<2x128xf32>
    %585 = arith.addf %584, %583 : vector<2x128xf32>
    %586 = arith.divf %584, %585 : vector<2x128xf32>
    %587 = math.tanh %575 : vector<2x128xf32>
    %588 = vector.extract_strided_slice %586 {offsets = [0, 32], sizes = [2, 32], strides = [1, 1]} : vector<2x128xf32> to vector<2x32xf32>
    %589 = arith.mulf %588, %539 : vector<2x32xf32>
    %590 = vector.extract_strided_slice %586 {offsets = [0, 0], sizes = [2, 32], strides = [1, 1]} : vector<2x128xf32> to vector<2x32xf32>
    %591 = vector.extract_strided_slice %587 {offsets = [0, 64], sizes = [2, 32], strides = [1, 1]} : vector<2x128xf32> to vector<2x32xf32>
    %592 = arith.mulf %590, %591 : vector<2x32xf32>
    %593 = arith.addf %589, %592 : vector<2x32xf32>
    %594 = vector.extract_strided_slice %586 {offsets = [0, 96], sizes = [2, 32], strides = [1, 1]} : vector<2x128xf32> to vector<2x32xf32>
    %595 = math.tanh %593 : vector<2x32xf32>
    %596 = arith.mulf %594, %595 : vector<2x32xf32>
    %597 = arith.negf %581 : vector<2x128xf32>
    %598 = math.exp %597 : vector<2x128xf32>
    %cst_157 = arith.constant 1.000000e+00 : f32
    %599 = vector.broadcast %cst_157 : f32 to vector<2x128xf32>
    %600 = arith.addf %599, %598 : vector<2x128xf32>
    %601 = arith.divf %599, %600 : vector<2x128xf32>
    %602 = math.tanh %581 : vector<2x128xf32>
    %603 = vector.extract_strided_slice %601 {offsets = [0, 32], sizes = [2, 32], strides = [1, 1]} : vector<2x128xf32> to vector<2x32xf32>
    %604 = arith.mulf %603, %554 : vector<2x32xf32>
    %605 = vector.extract_strided_slice %601 {offsets = [0, 0], sizes = [2, 32], strides = [1, 1]} : vector<2x128xf32> to vector<2x32xf32>
    %606 = vector.extract_strided_slice %602 {offsets = [0, 64], sizes = [2, 32], strides = [1, 1]} : vector<2x128xf32> to vector<2x32xf32>
    %607 = arith.mulf %605, %606 : vector<2x32xf32>
    %608 = arith.addf %604, %607 : vector<2x32xf32>
    %609 = vector.extract_strided_slice %601 {offsets = [0, 96], sizes = [2, 32], strides = [1, 1]} : vector<2x128xf32> to vector<2x32xf32>
    %610 = math.tanh %608 : vector<2x32xf32>
    %611 = arith.mulf %609, %610 : vector<2x32xf32>
    %612 = arith.index_cast %c2_i32_149 : i32 to index
    %c0_158 = arith.constant 0 : index
    %c0_159 = arith.constant 0 : index
    %613 = vector.load %arg23[%612, %c0_158, %c0_159] : memref<8x2x64xf32, #tpu.memory_space<vmem>>, vector<1x2x32xf32>
    %614 = vector.shape_cast %613 : vector<1x2x32xf32> to vector<2x32xf32>
    %615 = vector.shape_cast %596 : vector<2x32xf32> to vector<1x2x32xf32>
    tpu.vector_store %arg23[%612, %c0_158, %c0_159], %615 {strides = array<i32>} : memref<8x2x64xf32, #tpu.memory_space<vmem>>, vector<1x2x32xf32>,
    %616 = arith.index_cast %569 : i32 to index
    %c0_160 = arith.constant 0 : index
    %c32_161 = arith.constant 32 : index
    %617 = vector.load %arg23[%616, %c0_160, %c32_161] : memref<8x2x64xf32, #tpu.memory_space<vmem>>, vector<1x2x32xf32>
    %618 = vector.shape_cast %617 : vector<1x2x32xf32> to vector<2x32xf32>
    %619 = vector.shape_cast %611 : vector<2x32xf32> to vector<1x2x32xf32>
    tpu.vector_store %arg23[%616, %c0_160, %c32_161], %619 {strides = array<i32>} : memref<8x2x64xf32, #tpu.memory_space<vmem>>, vector<1x2x32xf32>,
    %620 = tpu.concatenate %596, %611 in 1 : vector<2x32xf32>, vector<2x32xf32> -> vector<2x64xf32>
    %c3_i32_162 = arith.constant 3 : i32
    %621 = arith.truncf %620 : vector<2x64xf32> to vector<2x64xbf16>
    %cst_163 = arith.constant dense<0.000000e+00> : vector<2x256xf32>
    %622 = tpu.matmul %621, %456, %cst_163 {dimension_numbers = #tpu.dot_dimension_numbers<[1], [0], [0], [1], [0, 0, 1, 1], [], []>} : vector<2x64xbf16>, vector<64x256xbf16>, vector<2x256xf32> -> vector<2x256xf32>
    %c7_i32_164 = arith.constant 7 : i32
    %623 = arith.subi %c7_i32_164, %c3_i32_162 : i32
    %624 = arith.index_cast %c3_i32_162 : i32 to index
    %c0_165 = arith.constant 0 : index
    %c0_166 = arith.constant 0 : index
    %625 = vector.load %arg22[%624, %c0_165, %c0_166] : memref<8x2x256xf32, #tpu.memory_space<vmem>>, vector<1x2x256xf32>
    %626 = vector.shape_cast %625 : vector<1x2x256xf32> to vector<2x256xf32>
    %627 = vector.extract_strided_slice %626 {offsets = [0, 0], sizes = [2, 128], strides = [1, 1]} : vector<2x256xf32> to vector<2x128xf32>
    %628 = vector.extract_strided_slice %622 {offsets = [0, 0], sizes = [2, 128], strides = [1, 1]} : vector<2x256xf32> to vector<2x128xf32>
    %629 = arith.addf %627, %628 : vector<2x128xf32>
    %630 = arith.index_cast %623 : i32 to index
    %c0_167 = arith.constant 0 : index
    %c0_168 = arith.constant 0 : index
    %631 = vector.load %arg22[%630, %c0_167, %c0_168] : memref<8x2x256xf32, #tpu.memory_space<vmem>>, vector<1x2x256xf32>
    %632 = vector.shape_cast %631 : vector<1x2x256xf32> to vector<2x256xf32>
    %633 = vector.extract_strided_slice %632 {offsets = [0, 128], sizes = [2, 128], strides = [1, 1]} : vector<2x256xf32> to vector<2x128xf32>
    %634 = vector.extract_strided_slice %622 {offsets = [0, 128], sizes = [2, 128], strides = [1, 1]} : vector<2x256xf32> to vector<2x128xf32>
    %635 = arith.addf %633, %634 : vector<2x128xf32>
    %636 = arith.negf %629 : vector<2x128xf32>
    %637 = math.exp %636 : vector<2x128xf32>
    %cst_169 = arith.constant 1.000000e+00 : f32
    %638 = vector.broadcast %cst_169 : f32 to vector<2x128xf32>
    %639 = arith.addf %638, %637 : vector<2x128xf32>
    %640 = arith.divf %638, %639 : vector<2x128xf32>
    %641 = math.tanh %629 : vector<2x128xf32>
    %642 = vector.extract_strided_slice %640 {offsets = [0, 32], sizes = [2, 32], strides = [1, 1]} : vector<2x128xf32> to vector<2x32xf32>
    %643 = arith.mulf %642, %593 : vector<2x32xf32>
    %644 = vector.extract_strided_slice %640 {offsets = [0, 0], sizes = [2, 32], strides = [1, 1]} : vector<2x128xf32> to vector<2x32xf32>
    %645 = vector.extract_strided_slice %641 {offsets = [0, 64], sizes = [2, 32], strides = [1, 1]} : vector<2x128xf32> to vector<2x32xf32>
    %646 = arith.mulf %644, %645 : vector<2x32xf32>
    %647 = arith.addf %643, %646 : vector<2x32xf32>
    %648 = vector.extract_strided_slice %640 {offsets = [0, 96], sizes = [2, 32], strides = [1, 1]} : vector<2x128xf32> to vector<2x32xf32>
    %649 = math.tanh %647 : vector<2x32xf32>
    %650 = arith.mulf %648, %649 : vector<2x32xf32>
    %651 = arith.negf %635 : vector<2x128xf32>
    %652 = math.exp %651 : vector<2x128xf32>
    %cst_170 = arith.constant 1.000000e+00 : f32
    %653 = vector.broadcast %cst_170 : f32 to vector<2x128xf32>
    %654 = arith.addf %653, %652 : vector<2x128xf32>
    %655 = arith.divf %653, %654 : vector<2x128xf32>
    %656 = math.tanh %635 : vector<2x128xf32>
    %657 = vector.extract_strided_slice %655 {offsets = [0, 32], sizes = [2, 32], strides = [1, 1]} : vector<2x128xf32> to vector<2x32xf32>
    %658 = arith.mulf %657, %608 : vector<2x32xf32>
    %659 = vector.extract_strided_slice %655 {offsets = [0, 0], sizes = [2, 32], strides = [1, 1]} : vector<2x128xf32> to vector<2x32xf32>
    %660 = vector.extract_strided_slice %656 {offsets = [0, 64], sizes = [2, 32], strides = [1, 1]} : vector<2x128xf32> to vector<2x32xf32>
    %661 = arith.mulf %659, %660 : vector<2x32xf32>
    %662 = arith.addf %658, %661 : vector<2x32xf32>
    %663 = vector.extract_strided_slice %655 {offsets = [0, 96], sizes = [2, 32], strides = [1, 1]} : vector<2x128xf32> to vector<2x32xf32>
    %664 = math.tanh %662 : vector<2x32xf32>
    %665 = arith.mulf %663, %664 : vector<2x32xf32>
    %666 = arith.index_cast %c3_i32_162 : i32 to index
    %c0_171 = arith.constant 0 : index
    %c0_172 = arith.constant 0 : index
    %667 = vector.load %arg23[%666, %c0_171, %c0_172] : memref<8x2x64xf32, #tpu.memory_space<vmem>>, vector<1x2x32xf32>
    %668 = vector.shape_cast %667 : vector<1x2x32xf32> to vector<2x32xf32>
    %669 = vector.shape_cast %650 : vector<2x32xf32> to vector<1x2x32xf32>
    tpu.vector_store %arg23[%666, %c0_171, %c0_172], %669 {strides = array<i32>} : memref<8x2x64xf32, #tpu.memory_space<vmem>>, vector<1x2x32xf32>,
    %670 = arith.index_cast %623 : i32 to index
    %c0_173 = arith.constant 0 : index
    %c32_174 = arith.constant 32 : index
    %671 = vector.load %arg23[%670, %c0_173, %c32_174] : memref<8x2x64xf32, #tpu.memory_space<vmem>>, vector<1x2x32xf32>
    %672 = vector.shape_cast %671 : vector<1x2x32xf32> to vector<2x32xf32>
    %673 = vector.shape_cast %665 : vector<2x32xf32> to vector<1x2x32xf32>
    tpu.vector_store %arg23[%670, %c0_173, %c32_174], %673 {strides = array<i32>} : memref<8x2x64xf32, #tpu.memory_space<vmem>>, vector<1x2x32xf32>,
    %674 = tpu.concatenate %650, %665 in 1 : vector<2x32xf32>, vector<2x32xf32> -> vector<2x64xf32>
    %c4_i32_175 = arith.constant 4 : i32
    %675 = arith.truncf %674 : vector<2x64xf32> to vector<2x64xbf16>
    %cst_176 = arith.constant dense<0.000000e+00> : vector<2x256xf32>
    %676 = tpu.matmul %675, %456, %cst_176 {dimension_numbers = #tpu.dot_dimension_numbers<[1], [0], [0], [1], [0, 0, 1, 1], [], []>} : vector<2x64xbf16>, vector<64x256xbf16>, vector<2x256xf32> -> vector<2x256xf32>
    %c7_i32_177 = arith.constant 7 : i32
    %677 = arith.subi %c7_i32_177, %c4_i32_175 : i32
    %678 = arith.index_cast %c4_i32_175 : i32 to index
    %c0_178 = arith.constant 0 : index
    %c0_179 = arith.constant 0 : index
    %679 = vector.load %arg22[%678, %c0_178, %c0_179] : memref<8x2x256xf32, #tpu.memory_space<vmem>>, vector<1x2x256xf32>
    %680 = vector.shape_cast %679 : vector<1x2x256xf32> to vector<2x256xf32>
    %681 = vector.extract_strided_slice %680 {offsets = [0, 0], sizes = [2, 128], strides = [1, 1]} : vector<2x256xf32> to vector<2x128xf32>
    %682 = vector.extract_strided_slice %676 {offsets = [0, 0], sizes = [2, 128], strides = [1, 1]} : vector<2x256xf32> to vector<2x128xf32>
    %683 = arith.addf %681, %682 : vector<2x128xf32>
    %684 = arith.index_cast %677 : i32 to index
    %c0_180 = arith.constant 0 : index
    %c0_181 = arith.constant 0 : index
    %685 = vector.load %arg22[%684, %c0_180, %c0_181] : memref<8x2x256xf32, #tpu.memory_space<vmem>>, vector<1x2x256xf32>
    %686 = vector.shape_cast %685 : vector<1x2x256xf32> to vector<2x256xf32>
    %687 = vector.extract_strided_slice %686 {offsets = [0, 128], sizes = [2, 128], strides = [1, 1]} : vector<2x256xf32> to vector<2x128xf32>
    %688 = vector.extract_strided_slice %676 {offsets = [0, 128], sizes = [2, 128], strides = [1, 1]} : vector<2x256xf32> to vector<2x128xf32>
    %689 = arith.addf %687, %688 : vector<2x128xf32>
    %690 = arith.negf %683 : vector<2x128xf32>
    %691 = math.exp %690 : vector<2x128xf32>
    %cst_182 = arith.constant 1.000000e+00 : f32
    %692 = vector.broadcast %cst_182 : f32 to vector<2x128xf32>
    %693 = arith.addf %692, %691 : vector<2x128xf32>
    %694 = arith.divf %692, %693 : vector<2x128xf32>
    %695 = math.tanh %683 : vector<2x128xf32>
    %696 = vector.extract_strided_slice %694 {offsets = [0, 32], sizes = [2, 32], strides = [1, 1]} : vector<2x128xf32> to vector<2x32xf32>
    %697 = arith.mulf %696, %647 : vector<2x32xf32>
    %698 = vector.extract_strided_slice %694 {offsets = [0, 0], sizes = [2, 32], strides = [1, 1]} : vector<2x128xf32> to vector<2x32xf32>
    %699 = vector.extract_strided_slice %695 {offsets = [0, 64], sizes = [2, 32], strides = [1, 1]} : vector<2x128xf32> to vector<2x32xf32>
    %700 = arith.mulf %698, %699 : vector<2x32xf32>
    %701 = arith.addf %697, %700 : vector<2x32xf32>
    %702 = vector.extract_strided_slice %694 {offsets = [0, 96], sizes = [2, 32], strides = [1, 1]} : vector<2x128xf32> to vector<2x32xf32>
    %703 = math.tanh %701 : vector<2x32xf32>
    %704 = arith.mulf %702, %703 : vector<2x32xf32>
    %705 = arith.negf %689 : vector<2x128xf32>
    %706 = math.exp %705 : vector<2x128xf32>
    %cst_183 = arith.constant 1.000000e+00 : f32
    %707 = vector.broadcast %cst_183 : f32 to vector<2x128xf32>
    %708 = arith.addf %707, %706 : vector<2x128xf32>
    %709 = arith.divf %707, %708 : vector<2x128xf32>
    %710 = math.tanh %689 : vector<2x128xf32>
    %711 = vector.extract_strided_slice %709 {offsets = [0, 32], sizes = [2, 32], strides = [1, 1]} : vector<2x128xf32> to vector<2x32xf32>
    %712 = arith.mulf %711, %662 : vector<2x32xf32>
    %713 = vector.extract_strided_slice %709 {offsets = [0, 0], sizes = [2, 32], strides = [1, 1]} : vector<2x128xf32> to vector<2x32xf32>
    %714 = vector.extract_strided_slice %710 {offsets = [0, 64], sizes = [2, 32], strides = [1, 1]} : vector<2x128xf32> to vector<2x32xf32>
    %715 = arith.mulf %713, %714 : vector<2x32xf32>
    %716 = arith.addf %712, %715 : vector<2x32xf32>
    %717 = vector.extract_strided_slice %709 {offsets = [0, 96], sizes = [2, 32], strides = [1, 1]} : vector<2x128xf32> to vector<2x32xf32>
    %718 = math.tanh %716 : vector<2x32xf32>
    %719 = arith.mulf %717, %718 : vector<2x32xf32>
    %720 = arith.index_cast %c4_i32_175 : i32 to index
    %c0_184 = arith.constant 0 : index
    %c0_185 = arith.constant 0 : index
    %721 = vector.load %arg23[%720, %c0_184, %c0_185] : memref<8x2x64xf32, #tpu.memory_space<vmem>>, vector<1x2x32xf32>
    %722 = vector.shape_cast %721 : vector<1x2x32xf32> to vector<2x32xf32>
    %723 = vector.shape_cast %704 : vector<2x32xf32> to vector<1x2x32xf32>
    tpu.vector_store %arg23[%720, %c0_184, %c0_185], %723 {strides = array<i32>} : memref<8x2x64xf32, #tpu.memory_space<vmem>>, vector<1x2x32xf32>,
    %724 = arith.index_cast %677 : i32 to index
    %c0_186 = arith.constant 0 : index
    %c32_187 = arith.constant 32 : index
    %725 = vector.load %arg23[%724, %c0_186, %c32_187] : memref<8x2x64xf32, #tpu.memory_space<vmem>>, vector<1x2x32xf32>
    %726 = vector.shape_cast %725 : vector<1x2x32xf32> to vector<2x32xf32>
    %727 = vector.shape_cast %719 : vector<2x32xf32> to vector<1x2x32xf32>
    tpu.vector_store %arg23[%724, %c0_186, %c32_187], %727 {strides = array<i32>} : memref<8x2x64xf32, #tpu.memory_space<vmem>>, vector<1x2x32xf32>,
    %728 = tpu.concatenate %704, %719 in 1 : vector<2x32xf32>, vector<2x32xf32> -> vector<2x64xf32>
    %c5_i32_188 = arith.constant 5 : i32
    %729 = arith.truncf %728 : vector<2x64xf32> to vector<2x64xbf16>
    %cst_189 = arith.constant dense<0.000000e+00> : vector<2x256xf32>
    %730 = tpu.matmul %729, %456, %cst_189 {dimension_numbers = #tpu.dot_dimension_numbers<[1], [0], [0], [1], [0, 0, 1, 1], [], []>} : vector<2x64xbf16>, vector<64x256xbf16>, vector<2x256xf32> -> vector<2x256xf32>
    %c7_i32_190 = arith.constant 7 : i32
    %731 = arith.subi %c7_i32_190, %c5_i32_188 : i32
    %732 = arith.index_cast %c5_i32_188 : i32 to index
    %c0_191 = arith.constant 0 : index
    %c0_192 = arith.constant 0 : index
    %733 = vector.load %arg22[%732, %c0_191, %c0_192] : memref<8x2x256xf32, #tpu.memory_space<vmem>>, vector<1x2x256xf32>
    %734 = vector.shape_cast %733 : vector<1x2x256xf32> to vector<2x256xf32>
    %735 = vector.extract_strided_slice %734 {offsets = [0, 0], sizes = [2, 128], strides = [1, 1]} : vector<2x256xf32> to vector<2x128xf32>
    %736 = vector.extract_strided_slice %730 {offsets = [0, 0], sizes = [2, 128], strides = [1, 1]} : vector<2x256xf32> to vector<2x128xf32>
    %737 = arith.addf %735, %736 : vector<2x128xf32>
    %738 = arith.index_cast %731 : i32 to index
    %c0_193 = arith.constant 0 : index
    %c0_194 = arith.constant 0 : index
    %739 = vector.load %arg22[%738, %c0_193, %c0_194] : memref<8x2x256xf32, #tpu.memory_space<vmem>>, vector<1x2x256xf32>
    %740 = vector.shape_cast %739 : vector<1x2x256xf32> to vector<2x256xf32>
    %741 = vector.extract_strided_slice %740 {offsets = [0, 128], sizes = [2, 128], strides = [1, 1]} : vector<2x256xf32> to vector<2x128xf32>
    %742 = vector.extract_strided_slice %730 {offsets = [0, 128], sizes = [2, 128], strides = [1, 1]} : vector<2x256xf32> to vector<2x128xf32>
    %743 = arith.addf %741, %742 : vector<2x128xf32>
    %744 = arith.negf %737 : vector<2x128xf32>
    %745 = math.exp %744 : vector<2x128xf32>
    %cst_195 = arith.constant 1.000000e+00 : f32
    %746 = vector.broadcast %cst_195 : f32 to vector<2x128xf32>
    %747 = arith.addf %746, %745 : vector<2x128xf32>
    %748 = arith.divf %746, %747 : vector<2x128xf32>
    %749 = math.tanh %737 : vector<2x128xf32>
    %750 = vector.extract_strided_slice %748 {offsets = [0, 32], sizes = [2, 32], strides = [1, 1]} : vector<2x128xf32> to vector<2x32xf32>
    %751 = arith.mulf %750, %701 : vector<2x32xf32>
    %752 = vector.extract_strided_slice %748 {offsets = [0, 0], sizes = [2, 32], strides = [1, 1]} : vector<2x128xf32> to vector<2x32xf32>
    %753 = vector.extract_strided_slice %749 {offsets = [0, 64], sizes = [2, 32], strides = [1, 1]} : vector<2x128xf32> to vector<2x32xf32>
    %754 = arith.mulf %752, %753 : vector<2x32xf32>
    %755 = arith.addf %751, %754 : vector<2x32xf32>
    %756 = vector.extract_strided_slice %748 {offsets = [0, 96], sizes = [2, 32], strides = [1, 1]} : vector<2x128xf32> to vector<2x32xf32>
    %757 = math.tanh %755 : vector<2x32xf32>
    %758 = arith.mulf %756, %757 : vector<2x32xf32>
    %759 = arith.negf %743 : vector<2x128xf32>
    %760 = math.exp %759 : vector<2x128xf32>
    %cst_196 = arith.constant 1.000000e+00 : f32
    %761 = vector.broadcast %cst_196 : f32 to vector<2x128xf32>
    %762 = arith.addf %761, %760 : vector<2x128xf32>
    %763 = arith.divf %761, %762 : vector<2x128xf32>
    %764 = math.tanh %743 : vector<2x128xf32>
    %765 = vector.extract_strided_slice %763 {offsets = [0, 32], sizes = [2, 32], strides = [1, 1]} : vector<2x128xf32> to vector<2x32xf32>
    %766 = arith.mulf %765, %716 : vector<2x32xf32>
    %767 = vector.extract_strided_slice %763 {offsets = [0, 0], sizes = [2, 32], strides = [1, 1]} : vector<2x128xf32> to vector<2x32xf32>
    %768 = vector.extract_strided_slice %764 {offsets = [0, 64], sizes = [2, 32], strides = [1, 1]} : vector<2x128xf32> to vector<2x32xf32>
    %769 = arith.mulf %767, %768 : vector<2x32xf32>
    %770 = arith.addf %766, %769 : vector<2x32xf32>
    %771 = vector.extract_strided_slice %763 {offsets = [0, 96], sizes = [2, 32], strides = [1, 1]} : vector<2x128xf32> to vector<2x32xf32>
    %772 = math.tanh %770 : vector<2x32xf32>
    %773 = arith.mulf %771, %772 : vector<2x32xf32>
    %774 = arith.index_cast %c5_i32_188 : i32 to index
    %c0_197 = arith.constant 0 : index
    %c0_198 = arith.constant 0 : index
    %775 = vector.load %arg23[%774, %c0_197, %c0_198] : memref<8x2x64xf32, #tpu.memory_space<vmem>>, vector<1x2x32xf32>
    %776 = vector.shape_cast %775 : vector<1x2x32xf32> to vector<2x32xf32>
    %777 = vector.shape_cast %758 : vector<2x32xf32> to vector<1x2x32xf32>
    tpu.vector_store %arg23[%774, %c0_197, %c0_198], %777 {strides = array<i32>} : memref<8x2x64xf32, #tpu.memory_space<vmem>>, vector<1x2x32xf32>,
    %778 = arith.index_cast %731 : i32 to index
    %c0_199 = arith.constant 0 : index
    %c32_200 = arith.constant 32 : index
    %779 = vector.load %arg23[%778, %c0_199, %c32_200] : memref<8x2x64xf32, #tpu.memory_space<vmem>>, vector<1x2x32xf32>
    %780 = vector.shape_cast %779 : vector<1x2x32xf32> to vector<2x32xf32>
    %781 = vector.shape_cast %773 : vector<2x32xf32> to vector<1x2x32xf32>
    tpu.vector_store %arg23[%778, %c0_199, %c32_200], %781 {strides = array<i32>} : memref<8x2x64xf32, #tpu.memory_space<vmem>>, vector<1x2x32xf32>,
    %782 = tpu.concatenate %758, %773 in 1 : vector<2x32xf32>, vector<2x32xf32> -> vector<2x64xf32>
    %c6_i32_201 = arith.constant 6 : i32
    %783 = arith.truncf %782 : vector<2x64xf32> to vector<2x64xbf16>
    %cst_202 = arith.constant dense<0.000000e+00> : vector<2x256xf32>
    %784 = tpu.matmul %783, %456, %cst_202 {dimension_numbers = #tpu.dot_dimension_numbers<[1], [0], [0], [1], [0, 0, 1, 1], [], []>} : vector<2x64xbf16>, vector<64x256xbf16>, vector<2x256xf32> -> vector<2x256xf32>
    %c7_i32_203 = arith.constant 7 : i32
    %785 = arith.subi %c7_i32_203, %c6_i32_201 : i32
    %786 = arith.index_cast %c6_i32_201 : i32 to index
    %c0_204 = arith.constant 0 : index
    %c0_205 = arith.constant 0 : index
    %787 = vector.load %arg22[%786, %c0_204, %c0_205] : memref<8x2x256xf32, #tpu.memory_space<vmem>>, vector<1x2x256xf32>
    %788 = vector.shape_cast %787 : vector<1x2x256xf32> to vector<2x256xf32>
    %789 = vector.extract_strided_slice %788 {offsets = [0, 0], sizes = [2, 128], strides = [1, 1]} : vector<2x256xf32> to vector<2x128xf32>
    %790 = vector.extract_strided_slice %784 {offsets = [0, 0], sizes = [2, 128], strides = [1, 1]} : vector<2x256xf32> to vector<2x128xf32>
    %791 = arith.addf %789, %790 : vector<2x128xf32>
    %792 = arith.index_cast %785 : i32 to index
    %c0_206 = arith.constant 0 : index
    %c0_207 = arith.constant 0 : index
    %793 = vector.load %arg22[%792, %c0_206, %c0_207] : memref<8x2x256xf32, #tpu.memory_space<vmem>>, vector<1x2x256xf32>
    %794 = vector.shape_cast %793 : vector<1x2x256xf32> to vector<2x256xf32>
    %795 = vector.extract_strided_slice %794 {offsets = [0, 128], sizes = [2, 128], strides = [1, 1]} : vector<2x256xf32> to vector<2x128xf32>
    %796 = vector.extract_strided_slice %784 {offsets = [0, 128], sizes = [2, 128], strides = [1, 1]} : vector<2x256xf32> to vector<2x128xf32>
    %797 = arith.addf %795, %796 : vector<2x128xf32>
    %798 = arith.negf %791 : vector<2x128xf32>
    %799 = math.exp %798 : vector<2x128xf32>
    %cst_208 = arith.constant 1.000000e+00 : f32
    %800 = vector.broadcast %cst_208 : f32 to vector<2x128xf32>
    %801 = arith.addf %800, %799 : vector<2x128xf32>
    %802 = arith.divf %800, %801 : vector<2x128xf32>
    %803 = math.tanh %791 : vector<2x128xf32>
    %804 = vector.extract_strided_slice %802 {offsets = [0, 32], sizes = [2, 32], strides = [1, 1]} : vector<2x128xf32> to vector<2x32xf32>
    %805 = arith.mulf %804, %755 : vector<2x32xf32>
    %806 = vector.extract_strided_slice %802 {offsets = [0, 0], sizes = [2, 32], strides = [1, 1]} : vector<2x128xf32> to vector<2x32xf32>
    %807 = vector.extract_strided_slice %803 {offsets = [0, 64], sizes = [2, 32], strides = [1, 1]} : vector<2x128xf32> to vector<2x32xf32>
    %808 = arith.mulf %806, %807 : vector<2x32xf32>
    %809 = arith.addf %805, %808 : vector<2x32xf32>
    %810 = vector.extract_strided_slice %802 {offsets = [0, 96], sizes = [2, 32], strides = [1, 1]} : vector<2x128xf32> to vector<2x32xf32>
    %811 = math.tanh %809 : vector<2x32xf32>
    %812 = arith.mulf %810, %811 : vector<2x32xf32>
    %813 = arith.negf %797 : vector<2x128xf32>
    %814 = math.exp %813 : vector<2x128xf32>
    %cst_209 = arith.constant 1.000000e+00 : f32
    %815 = vector.broadcast %cst_209 : f32 to vector<2x128xf32>
    %816 = arith.addf %815, %814 : vector<2x128xf32>
    %817 = arith.divf %815, %816 : vector<2x128xf32>
    %818 = math.tanh %797 : vector<2x128xf32>
    %819 = vector.extract_strided_slice %817 {offsets = [0, 32], sizes = [2, 32], strides = [1, 1]} : vector<2x128xf32> to vector<2x32xf32>
    %820 = arith.mulf %819, %770 : vector<2x32xf32>
    %821 = vector.extract_strided_slice %817 {offsets = [0, 0], sizes = [2, 32], strides = [1, 1]} : vector<2x128xf32> to vector<2x32xf32>
    %822 = vector.extract_strided_slice %818 {offsets = [0, 64], sizes = [2, 32], strides = [1, 1]} : vector<2x128xf32> to vector<2x32xf32>
    %823 = arith.mulf %821, %822 : vector<2x32xf32>
    %824 = arith.addf %820, %823 : vector<2x32xf32>
    %825 = vector.extract_strided_slice %817 {offsets = [0, 96], sizes = [2, 32], strides = [1, 1]} : vector<2x128xf32> to vector<2x32xf32>
    %826 = math.tanh %824 : vector<2x32xf32>
    %827 = arith.mulf %825, %826 : vector<2x32xf32>
    %828 = arith.index_cast %c6_i32_201 : i32 to index
    %c0_210 = arith.constant 0 : index
    %c0_211 = arith.constant 0 : index
    %829 = vector.load %arg23[%828, %c0_210, %c0_211] : memref<8x2x64xf32, #tpu.memory_space<vmem>>, vector<1x2x32xf32>
    %830 = vector.shape_cast %829 : vector<1x2x32xf32> to vector<2x32xf32>
    %831 = vector.shape_cast %812 : vector<2x32xf32> to vector<1x2x32xf32>
    tpu.vector_store %arg23[%828, %c0_210, %c0_211], %831 {strides = array<i32>} : memref<8x2x64xf32, #tpu.memory_space<vmem>>, vector<1x2x32xf32>,
    %832 = arith.index_cast %785 : i32 to index
    %c0_212 = arith.constant 0 : index
    %c32_213 = arith.constant 32 : index
    %833 = vector.load %arg23[%832, %c0_212, %c32_213] : memref<8x2x64xf32, #tpu.memory_space<vmem>>, vector<1x2x32xf32>
    %834 = vector.shape_cast %833 : vector<1x2x32xf32> to vector<2x32xf32>
    %835 = vector.shape_cast %827 : vector<2x32xf32> to vector<1x2x32xf32>
    tpu.vector_store %arg23[%832, %c0_212, %c32_213], %835 {strides = array<i32>} : memref<8x2x64xf32, #tpu.memory_space<vmem>>, vector<1x2x32xf32>,
    %836 = tpu.concatenate %812, %827 in 1 : vector<2x32xf32>, vector<2x32xf32> -> vector<2x64xf32>
    %c7_i32_214 = arith.constant 7 : i32
    %837 = arith.truncf %836 : vector<2x64xf32> to vector<2x64xbf16>
    %cst_215 = arith.constant dense<0.000000e+00> : vector<2x256xf32>
    %838 = tpu.matmul %837, %456, %cst_215 {dimension_numbers = #tpu.dot_dimension_numbers<[1], [0], [0], [1], [0, 0, 1, 1], [], []>} : vector<2x64xbf16>, vector<64x256xbf16>, vector<2x256xf32> -> vector<2x256xf32>
    %c7_i32_216 = arith.constant 7 : i32
    %839 = arith.subi %c7_i32_216, %c7_i32_214 : i32
    %840 = arith.index_cast %c7_i32_214 : i32 to index
    %c0_217 = arith.constant 0 : index
    %c0_218 = arith.constant 0 : index
    %841 = vector.load %arg22[%840, %c0_217, %c0_218] : memref<8x2x256xf32, #tpu.memory_space<vmem>>, vector<1x2x256xf32>
    %842 = vector.shape_cast %841 : vector<1x2x256xf32> to vector<2x256xf32>
    %843 = vector.extract_strided_slice %842 {offsets = [0, 0], sizes = [2, 128], strides = [1, 1]} : vector<2x256xf32> to vector<2x128xf32>
    %844 = vector.extract_strided_slice %838 {offsets = [0, 0], sizes = [2, 128], strides = [1, 1]} : vector<2x256xf32> to vector<2x128xf32>
    %845 = arith.addf %843, %844 : vector<2x128xf32>
    %846 = arith.index_cast %839 : i32 to index
    %c0_219 = arith.constant 0 : index
    %c0_220 = arith.constant 0 : index
    %847 = vector.load %arg22[%846, %c0_219, %c0_220] : memref<8x2x256xf32, #tpu.memory_space<vmem>>, vector<1x2x256xf32>
    %848 = vector.shape_cast %847 : vector<1x2x256xf32> to vector<2x256xf32>
    %849 = vector.extract_strided_slice %848 {offsets = [0, 128], sizes = [2, 128], strides = [1, 1]} : vector<2x256xf32> to vector<2x128xf32>
    %850 = vector.extract_strided_slice %838 {offsets = [0, 128], sizes = [2, 128], strides = [1, 1]} : vector<2x256xf32> to vector<2x128xf32>
    %851 = arith.addf %849, %850 : vector<2x128xf32>
    %852 = arith.negf %845 : vector<2x128xf32>
    %853 = math.exp %852 : vector<2x128xf32>
    %cst_221 = arith.constant 1.000000e+00 : f32
    %854 = vector.broadcast %cst_221 : f32 to vector<2x128xf32>
    %855 = arith.addf %854, %853 : vector<2x128xf32>
    %856 = arith.divf %854, %855 : vector<2x128xf32>
    %857 = math.tanh %845 : vector<2x128xf32>
    %858 = vector.extract_strided_slice %856 {offsets = [0, 32], sizes = [2, 32], strides = [1, 1]} : vector<2x128xf32> to vector<2x32xf32>
    %859 = arith.mulf %858, %809 : vector<2x32xf32>
    %860 = vector.extract_strided_slice %856 {offsets = [0, 0], sizes = [2, 32], strides = [1, 1]} : vector<2x128xf32> to vector<2x32xf32>
    %861 = vector.extract_strided_slice %857 {offsets = [0, 64], sizes = [2, 32], strides = [1, 1]} : vector<2x128xf32> to vector<2x32xf32>
    %862 = arith.mulf %860, %861 : vector<2x32xf32>
    %863 = arith.addf %859, %862 : vector<2x32xf32>
    %864 = vector.extract_strided_slice %856 {offsets = [0, 96], sizes = [2, 32], strides = [1, 1]} : vector<2x128xf32> to vector<2x32xf32>
    %865 = math.tanh %863 : vector<2x32xf32>
    %866 = arith.mulf %864, %865 : vector<2x32xf32>
    %867 = arith.negf %851 : vector<2x128xf32>
    %868 = math.exp %867 : vector<2x128xf32>
    %cst_222 = arith.constant 1.000000e+00 : f32
    %869 = vector.broadcast %cst_222 : f32 to vector<2x128xf32>
    %870 = arith.addf %869, %868 : vector<2x128xf32>
    %871 = arith.divf %869, %870 : vector<2x128xf32>
    %872 = math.tanh %851 : vector<2x128xf32>
    %873 = vector.extract_strided_slice %871 {offsets = [0, 32], sizes = [2, 32], strides = [1, 1]} : vector<2x128xf32> to vector<2x32xf32>
    %874 = arith.mulf %873, %824 : vector<2x32xf32>
    %875 = vector.extract_strided_slice %871 {offsets = [0, 0], sizes = [2, 32], strides = [1, 1]} : vector<2x128xf32> to vector<2x32xf32>
    %876 = vector.extract_strided_slice %872 {offsets = [0, 64], sizes = [2, 32], strides = [1, 1]} : vector<2x128xf32> to vector<2x32xf32>
    %877 = arith.mulf %875, %876 : vector<2x32xf32>
    %878 = arith.addf %874, %877 : vector<2x32xf32>
    %879 = vector.extract_strided_slice %871 {offsets = [0, 96], sizes = [2, 32], strides = [1, 1]} : vector<2x128xf32> to vector<2x32xf32>
    %880 = math.tanh %878 : vector<2x32xf32>
    %881 = arith.mulf %879, %880 : vector<2x32xf32>
    %882 = arith.index_cast %c7_i32_214 : i32 to index
    %c0_223 = arith.constant 0 : index
    %c0_224 = arith.constant 0 : index
    %883 = vector.load %arg23[%882, %c0_223, %c0_224] : memref<8x2x64xf32, #tpu.memory_space<vmem>>, vector<1x2x32xf32>
    %884 = vector.shape_cast %883 : vector<1x2x32xf32> to vector<2x32xf32>
    %885 = vector.shape_cast %866 : vector<2x32xf32> to vector<1x2x32xf32>
    tpu.vector_store %arg23[%882, %c0_223, %c0_224], %885 {strides = array<i32>} : memref<8x2x64xf32, #tpu.memory_space<vmem>>, vector<1x2x32xf32>,
    %886 = arith.index_cast %839 : i32 to index
    %c0_225 = arith.constant 0 : index
    %c32_226 = arith.constant 32 : index
    %887 = vector.load %arg23[%886, %c0_225, %c32_226] : memref<8x2x64xf32, #tpu.memory_space<vmem>>, vector<1x2x32xf32>
    %888 = vector.shape_cast %887 : vector<1x2x32xf32> to vector<2x32xf32>
    %889 = vector.shape_cast %881 : vector<2x32xf32> to vector<1x2x32xf32>
    tpu.vector_store %arg23[%886, %c0_225, %c32_226], %889 {strides = array<i32>} : memref<8x2x64xf32, #tpu.memory_space<vmem>>, vector<1x2x32xf32>,
    %890 = tpu.concatenate %866, %881 in 1 : vector<2x32xf32>, vector<2x32xf32> -> vector<2x64xf32>
    %c8_i32_227 = arith.constant 8 : i32
    %c0_228 = arith.constant 0 : index
    %c0_229 = arith.constant 0 : index
    %c0_230 = arith.constant 0 : index
    %891 = vector.load %arg23[%c0_228, %c0_229, %c0_230] : memref<8x2x64xf32, #tpu.memory_space<vmem>>, vector<8x2x64xf32>
    %892 = tpu.transpose %891, [1, 0, 2] : vector<8x2x64xf32> -> vector<2x8x64xf32>
    %893 = vector.shape_cast %892 : vector<2x8x64xf32> to vector<16x64xf32>
    %894 = arith.truncf %893 : vector<16x64xf32> to vector<16x64xbf16>
    %c0_231 = arith.constant 0 : index
    %c0_232 = arith.constant 0 : index
    %895 = vector.load %arg7[%c0_231, %c0_232] : memref<64x64xbf16, #tpu.memory_space<vmem>>, vector<64x64xbf16>
    %cst_233 = arith.constant dense<0.000000e+00> : vector<16x64xf32>
    %896 = tpu.matmul %894, %895, %cst_233 {dimension_numbers = #tpu.dot_dimension_numbers<[1], [0], [0], [1], [0, 0, 1, 1], [], []>} : vector<16x64xbf16>, vector<64x64xbf16>, vector<16x64xf32> -> vector<16x64xf32>
    %c0_234 = arith.constant 0 : index
    %c0_235 = arith.constant 0 : index
    %897 = vector.load %arg8[%c0_234, %c0_235] : memref<1x64xf32, #tpu.memory_space<vmem>>, vector<1x64xf32>
    %898 = vector.broadcast %897 : vector<1x64xf32> to vector<16x64xf32>
    %899 = arith.addf %896, %898 : vector<16x64xf32>
    %900 = vector.shape_cast %899 : vector<16x64xf32> to vector<2x8x64xf32>
    %901 = arith.truncf %900 : vector<2x8x64xf32> to vector<2x8x64xbf16>
    %c0_236 = arith.constant 0 : index
    %c0_237 = arith.constant 0 : index
    %902 = vector.load %arg9[%c0_236, %c0_237] : memref<64x64xbf16, #tpu.memory_space<vmem>>, vector<64x64xbf16>
    %cst_238 = arith.constant dense<0.000000e+00> : vector<16x64xf32>
    %903 = tpu.matmul %894, %902, %cst_238 {dimension_numbers = #tpu.dot_dimension_numbers<[1], [0], [0], [1], [0, 0, 1, 1], [], []>} : vector<16x64xbf16>, vector<64x64xbf16>, vector<16x64xf32> -> vector<16x64xf32>
    %c0_239 = arith.constant 0 : index
    %c0_240 = arith.constant 0 : index
    %904 = vector.load %arg10[%c0_239, %c0_240] : memref<1x64xf32, #tpu.memory_space<vmem>>, vector<1x64xf32>
    %905 = vector.broadcast %904 : vector<1x64xf32> to vector<16x64xf32>
    %906 = arith.addf %903, %905 : vector<16x64xf32>
    %907 = vector.shape_cast %906 : vector<16x64xf32> to vector<2x8x64xf32>
    %908 = arith.truncf %907 : vector<2x8x64xf32> to vector<2x8x64xbf16>
    %c0_241 = arith.constant 0 : index
    %c0_242 = arith.constant 0 : index
    %909 = vector.load %arg11[%c0_241, %c0_242] : memref<64x64xbf16, #tpu.memory_space<vmem>>, vector<64x64xbf16>
    %cst_243 = arith.constant dense<0.000000e+00> : vector<16x64xf32>
    %910 = tpu.matmul %894, %909, %cst_243 {dimension_numbers = #tpu.dot_dimension_numbers<[1], [0], [0], [1], [0, 0, 1, 1], [], []>} : vector<16x64xbf16>, vector<64x64xbf16>, vector<16x64xf32> -> vector<16x64xf32>
    %c0_244 = arith.constant 0 : index
    %c0_245 = arith.constant 0 : index
    %911 = vector.load %arg12[%c0_244, %c0_245] : memref<1x64xf32, #tpu.memory_space<vmem>>, vector<1x64xf32>
    %912 = vector.broadcast %911 : vector<1x64xf32> to vector<16x64xf32>
    %913 = arith.addf %910, %912 : vector<16x64xf32>
    %914 = vector.shape_cast %913 : vector<16x64xf32> to vector<2x8x64xf32>
    %915 = arith.truncf %914 : vector<2x8x64xf32> to vector<2x8x64xbf16>
    %cst_246 = arith.constant 0.000000e+00 : f32
    %916 = vector.broadcast %cst_246 : f32 to vector<16x64xf32>
    %917 = vector.extract_strided_slice %901 {offsets = [0, 0, 0], sizes = [2, 8, 8], strides = [1, 1, 1]} : vector<2x8x64xbf16> to vector<2x8x8xbf16>
    %918 = vector.extract_strided_slice %908 {offsets = [0, 0, 0], sizes = [2, 8, 8], strides = [1, 1, 1]} : vector<2x8x64xbf16> to vector<2x8x8xbf16>
    "tpu.trace_start"() <{level = 10 : i32, message = "btd,bud->btu"}> : () -> ()
    %cst_247 = arith.constant dense<0.000000e+00> : vector<2x8x8xf32>
    %919 = tpu.matmul %917, %918, %cst_247 {dimension_numbers = #tpu.dot_dimension_numbers<[2], [2], [1], [1], [0, 0, 0, 1, 1, 1], [0], [0]>} : vector<2x8x8xbf16>, vector<2x8x8xbf16>, vector<2x8x8xf32> -> vector<2x8x8xf32>
    "tpu.trace_stop"() : () -> ()
    %cst_248 = arith.constant 0.353553385 : f32
    %920 = vector.broadcast %cst_248 : f32 to vector<2x8x8xf32>
    %921 = arith.mulf %919, %920 : vector<2x8x8xf32>
    %cst_249 = arith.constant dense<0xFF800000> : vector<2x8xf32>
    %922 = vector.multi_reduction <maximumf>, %921, %cst_249 [2] : vector<2x8x8xf32> to vector<2x8xf32>
    %cst_250 = arith.constant 0xFF800000 : f32
    %923 = vector.broadcast %cst_250 : f32 to vector<2x8xf32>
    %924 = arith.maximumf %923, %922 : vector<2x8xf32>
    %925 = vector.shape_cast %924 : vector<2x8xf32> to vector<2x8x1xf32>
    %926 = vector.broadcast %925 : vector<2x8x1xf32> to vector<2x8x8xf32>
    %927 = arith.subf %921, %926 : vector<2x8x8xf32>
    %928 = math.exp %927 : vector<2x8x8xf32>
    %cst_251 = arith.constant dense<0.000000e+00> : vector<2x8xf32>
    %929 = vector.multi_reduction <add>, %928, %cst_251 [2] : vector<2x8x8xf32> to vector<2x8xf32>
    %930 = vector.shape_cast %929 : vector<2x8xf32> to vector<2x8x1xf32>
    %931 = vector.broadcast %930 : vector<2x8x1xf32> to vector<2x8x8xf32>
    %932 = arith.divf %928, %931 : vector<2x8x8xf32>
    %933 = arith.truncf %932 : vector<2x8x8xf32> to vector<2x8x8xbf16>
    %934 = vector.extract_strided_slice %915 {offsets = [0, 0, 0], sizes = [2, 8, 8], strides = [1, 1, 1]} : vector<2x8x64xbf16> to vector<2x8x8xbf16>
    "tpu.trace_start"() <{level = 10 : i32, message = "btu,bud->btd"}> : () -> ()
    %cst_252 = arith.constant dense<0.000000e+00> : vector<2x8x8xf32>
    %935 = tpu.matmul %933, %934, %cst_252 {dimension_numbers = #tpu.dot_dimension_numbers<[2], [1], [1], [2], [0, 0, 0, 1, 1, 2], [0], [0]>} : vector<2x8x8xbf16>, vector<2x8x8xbf16>, vector<2x8x8xf32> -> vector<2x8x8xf32>
    "tpu.trace_stop"() : () -> ()
    %936 = vector.shape_cast %935 : vector<2x8x8xf32> to vector<16x8xf32>
    %937 = arith.truncf %936 : vector<16x8xf32> to vector<16x8xbf16>
    %c0_253 = arith.constant 0 : index
    %c0_254 = arith.constant 0 : index
    %c0_255 = arith.constant 0 : index
    %938 = vector.load %arg13[%c0_253, %c0_254, %c0_255] : memref<8x8x64xbf16, #tpu.memory_space<vmem>>, vector<1x8x64xbf16>
    %939 = vector.shape_cast %938 : vector<1x8x64xbf16> to vector<8x64xbf16>
    %cst_256 = arith.constant dense<0.000000e+00> : vector<16x64xf32>
    %940 = tpu.matmul %937, %939, %cst_256 {dimension_numbers = #tpu.dot_dimension_numbers<[1], [0], [0], [1], [0, 0, 1, 1], [], []>} : vector<16x8xbf16>, vector<8x64xbf16>, vector<16x64xf32> -> vector<16x64xf32>
    %941 = arith.addf %916, %940 : vector<16x64xf32>
    %942 = vector.extract_strided_slice %901 {offsets = [0, 0, 8], sizes = [2, 8, 8], strides = [1, 1, 1]} : vector<2x8x64xbf16> to vector<2x8x8xbf16>
    %943 = vector.extract_strided_slice %908 {offsets = [0, 0, 8], sizes = [2, 8, 8], strides = [1, 1, 1]} : vector<2x8x64xbf16> to vector<2x8x8xbf16>
    "tpu.trace_start"() <{level = 10 : i32, message = "btd,bud->btu"}> : () -> ()
    %cst_257 = arith.constant dense<0.000000e+00> : vector<2x8x8xf32>
    %944 = tpu.matmul %942, %943, %cst_257 {dimension_numbers = #tpu.dot_dimension_numbers<[2], [2], [1], [1], [0, 0, 0, 1, 1, 1], [0], [0]>} : vector<2x8x8xbf16>, vector<2x8x8xbf16>, vector<2x8x8xf32> -> vector<2x8x8xf32>
    "tpu.trace_stop"() : () -> ()
    %cst_258 = arith.constant 0.353553385 : f32
    %945 = vector.broadcast %cst_258 : f32 to vector<2x8x8xf32>
    %946 = arith.mulf %944, %945 : vector<2x8x8xf32>
    %cst_259 = arith.constant dense<0xFF800000> : vector<2x8xf32>
    %947 = vector.multi_reduction <maximumf>, %946, %cst_259 [2] : vector<2x8x8xf32> to vector<2x8xf32>
    %cst_260 = arith.constant 0xFF800000 : f32
    %948 = vector.broadcast %cst_260 : f32 to vector<2x8xf32>
    %949 = arith.maximumf %948, %947 : vector<2x8xf32>
    %950 = vector.shape_cast %949 : vector<2x8xf32> to vector<2x8x1xf32>
    %951 = vector.broadcast %950 : vector<2x8x1xf32> to vector<2x8x8xf32>
    %952 = arith.subf %946, %951 : vector<2x8x8xf32>
    %953 = math.exp %952 : vector<2x8x8xf32>
    %cst_261 = arith.constant dense<0.000000e+00> : vector<2x8xf32>
    %954 = vector.multi_reduction <add>, %953, %cst_261 [2] : vector<2x8x8xf32> to vector<2x8xf32>
    %955 = vector.shape_cast %954 : vector<2x8xf32> to vector<2x8x1xf32>
    %956 = vector.broadcast %955 : vector<2x8x1xf32> to vector<2x8x8xf32>
    %957 = arith.divf %953, %956 : vector<2x8x8xf32>
    %958 = arith.truncf %957 : vector<2x8x8xf32> to vector<2x8x8xbf16>
    %959 = vector.extract_strided_slice %915 {offsets = [0, 0, 8], sizes = [2, 8, 8], strides = [1, 1, 1]} : vector<2x8x64xbf16> to vector<2x8x8xbf16>
    "tpu.trace_start"() <{level = 10 : i32, message = "btu,bud->btd"}> : () -> ()
    %cst_262 = arith.constant dense<0.000000e+00> : vector<2x8x8xf32>
    %960 = tpu.matmul %958, %959, %cst_262 {dimension_numbers = #tpu.dot_dimension_numbers<[2], [1], [1], [2], [0, 0, 0, 1, 1, 2], [0], [0]>} : vector<2x8x8xbf16>, vector<2x8x8xbf16>, vector<2x8x8xf32> -> vector<2x8x8xf32>
    "tpu.trace_stop"() : () -> ()
    %961 = vector.shape_cast %960 : vector<2x8x8xf32> to vector<16x8xf32>
    %962 = arith.truncf %961 : vector<16x8xf32> to vector<16x8xbf16>
    %c1 = arith.constant 1 : index
    %c0_263 = arith.constant 0 : index
    %c0_264 = arith.constant 0 : index
    %963 = vector.load %arg13[%c1, %c0_263, %c0_264] : memref<8x8x64xbf16, #tpu.memory_space<vmem>>, vector<1x8x64xbf16>
    %964 = vector.shape_cast %963 : vector<1x8x64xbf16> to vector<8x64xbf16>
    %cst_265 = arith.constant dense<0.000000e+00> : vector<16x64xf32>
    %965 = tpu.matmul %962, %964, %cst_265 {dimension_numbers = #tpu.dot_dimension_numbers<[1], [0], [0], [1], [0, 0, 1, 1], [], []>} : vector<16x8xbf16>, vector<8x64xbf16>, vector<16x64xf32> -> vector<16x64xf32>
    %966 = arith.addf %941, %965 : vector<16x64xf32>
    %967 = vector.extract_strided_slice %901 {offsets = [0, 0, 16], sizes = [2, 8, 8], strides = [1, 1, 1]} : vector<2x8x64xbf16> to vector<2x8x8xbf16>
    %968 = vector.extract_strided_slice %908 {offsets = [0, 0, 16], sizes = [2, 8, 8], strides = [1, 1, 1]} : vector<2x8x64xbf16> to vector<2x8x8xbf16>
    "tpu.trace_start"() <{level = 10 : i32, message = "btd,bud->btu"}> : () -> ()
    %cst_266 = arith.constant dense<0.000000e+00> : vector<2x8x8xf32>
    %969 = tpu.matmul %967, %968, %cst_266 {dimension_numbers = #tpu.dot_dimension_numbers<[2], [2], [1], [1], [0, 0, 0, 1, 1, 1], [0], [0]>} : vector<2x8x8xbf16>, vector<2x8x8xbf16>, vector<2x8x8xf32> -> vector<2x8x8xf32>
    "tpu.trace_stop"() : () -> ()
    %cst_267 = arith.constant 0.353553385 : f32
    %970 = vector.broadcast %cst_267 : f32 to vector<2x8x8xf32>
    %971 = arith.mulf %969, %970 : vector<2x8x8xf32>
    %cst_268 = arith.constant dense<0xFF800000> : vector<2x8xf32>
    %972 = vector.multi_reduction <maximumf>, %971, %cst_268 [2] : vector<2x8x8xf32> to vector<2x8xf32>
    %cst_269 = arith.constant 0xFF800000 : f32
    %973 = vector.broadcast %cst_269 : f32 to vector<2x8xf32>
    %974 = arith.maximumf %973, %972 : vector<2x8xf32>
    %975 = vector.shape_cast %974 : vector<2x8xf32> to vector<2x8x1xf32>
    %976 = vector.broadcast %975 : vector<2x8x1xf32> to vector<2x8x8xf32>
    %977 = arith.subf %971, %976 : vector<2x8x8xf32>
    %978 = math.exp %977 : vector<2x8x8xf32>
    %cst_270 = arith.constant dense<0.000000e+00> : vector<2x8xf32>
    %979 = vector.multi_reduction <add>, %978, %cst_270 [2] : vector<2x8x8xf32> to vector<2x8xf32>
    %980 = vector.shape_cast %979 : vector<2x8xf32> to vector<2x8x1xf32>
    %981 = vector.broadcast %980 : vector<2x8x1xf32> to vector<2x8x8xf32>
    %982 = arith.divf %978, %981 : vector<2x8x8xf32>
    %983 = arith.truncf %982 : vector<2x8x8xf32> to vector<2x8x8xbf16>
    %984 = vector.extract_strided_slice %915 {offsets = [0, 0, 16], sizes = [2, 8, 8], strides = [1, 1, 1]} : vector<2x8x64xbf16> to vector<2x8x8xbf16>
    "tpu.trace_start"() <{level = 10 : i32, message = "btu,bud->btd"}> : () -> ()
    %cst_271 = arith.constant dense<0.000000e+00> : vector<2x8x8xf32>
    %985 = tpu.matmul %983, %984, %cst_271 {dimension_numbers = #tpu.dot_dimension_numbers<[2], [1], [1], [2], [0, 0, 0, 1, 1, 2], [0], [0]>} : vector<2x8x8xbf16>, vector<2x8x8xbf16>, vector<2x8x8xf32> -> vector<2x8x8xf32>
    "tpu.trace_stop"() : () -> ()
    %986 = vector.shape_cast %985 : vector<2x8x8xf32> to vector<16x8xf32>
    %987 = arith.truncf %986 : vector<16x8xf32> to vector<16x8xbf16>
    %c2 = arith.constant 2 : index
    %c0_272 = arith.constant 0 : index
    %c0_273 = arith.constant 0 : index
    %988 = vector.load %arg13[%c2, %c0_272, %c0_273] : memref<8x8x64xbf16, #tpu.memory_space<vmem>>, vector<1x8x64xbf16>
    %989 = vector.shape_cast %988 : vector<1x8x64xbf16> to vector<8x64xbf16>
    %cst_274 = arith.constant dense<0.000000e+00> : vector<16x64xf32>
    %990 = tpu.matmul %987, %989, %cst_274 {dimension_numbers = #tpu.dot_dimension_numbers<[1], [0], [0], [1], [0, 0, 1, 1], [], []>} : vector<16x8xbf16>, vector<8x64xbf16>, vector<16x64xf32> -> vector<16x64xf32>
    %991 = arith.addf %966, %990 : vector<16x64xf32>
    %992 = vector.extract_strided_slice %901 {offsets = [0, 0, 24], sizes = [2, 8, 8], strides = [1, 1, 1]} : vector<2x8x64xbf16> to vector<2x8x8xbf16>
    %993 = vector.extract_strided_slice %908 {offsets = [0, 0, 24], sizes = [2, 8, 8], strides = [1, 1, 1]} : vector<2x8x64xbf16> to vector<2x8x8xbf16>
    "tpu.trace_start"() <{level = 10 : i32, message = "btd,bud->btu"}> : () -> ()
    %cst_275 = arith.constant dense<0.000000e+00> : vector<2x8x8xf32>
    %994 = tpu.matmul %992, %993, %cst_275 {dimension_numbers = #tpu.dot_dimension_numbers<[2], [2], [1], [1], [0, 0, 0, 1, 1, 1], [0], [0]>} : vector<2x8x8xbf16>, vector<2x8x8xbf16>, vector<2x8x8xf32> -> vector<2x8x8xf32>
    "tpu.trace_stop"() : () -> ()
    %cst_276 = arith.constant 0.353553385 : f32
    %995 = vector.broadcast %cst_276 : f32 to vector<2x8x8xf32>
    %996 = arith.mulf %994, %995 : vector<2x8x8xf32>
    %cst_277 = arith.constant dense<0xFF800000> : vector<2x8xf32>
    %997 = vector.multi_reduction <maximumf>, %996, %cst_277 [2] : vector<2x8x8xf32> to vector<2x8xf32>
    %cst_278 = arith.constant 0xFF800000 : f32
    %998 = vector.broadcast %cst_278 : f32 to vector<2x8xf32>
    %999 = arith.maximumf %998, %997 : vector<2x8xf32>
    %1000 = vector.shape_cast %999 : vector<2x8xf32> to vector<2x8x1xf32>
    %1001 = vector.broadcast %1000 : vector<2x8x1xf32> to vector<2x8x8xf32>
    %1002 = arith.subf %996, %1001 : vector<2x8x8xf32>
    %1003 = math.exp %1002 : vector<2x8x8xf32>
    %cst_279 = arith.constant dense<0.000000e+00> : vector<2x8xf32>
    %1004 = vector.multi_reduction <add>, %1003, %cst_279 [2] : vector<2x8x8xf32> to vector<2x8xf32>
    %1005 = vector.shape_cast %1004 : vector<2x8xf32> to vector<2x8x1xf32>
    %1006 = vector.broadcast %1005 : vector<2x8x1xf32> to vector<2x8x8xf32>
    %1007 = arith.divf %1003, %1006 : vector<2x8x8xf32>
    %1008 = arith.truncf %1007 : vector<2x8x8xf32> to vector<2x8x8xbf16>
    %1009 = vector.extract_strided_slice %915 {offsets = [0, 0, 24], sizes = [2, 8, 8], strides = [1, 1, 1]} : vector<2x8x64xbf16> to vector<2x8x8xbf16>
    "tpu.trace_start"() <{level = 10 : i32, message = "btu,bud->btd"}> : () -> ()
    %cst_280 = arith.constant dense<0.000000e+00> : vector<2x8x8xf32>
    %1010 = tpu.matmul %1008, %1009, %cst_280 {dimension_numbers = #tpu.dot_dimension_numbers<[2], [1], [1], [2], [0, 0, 0, 1, 1, 2], [0], [0]>} : vector<2x8x8xbf16>, vector<2x8x8xbf16>, vector<2x8x8xf32> -> vector<2x8x8xf32>
    "tpu.trace_stop"() : () -> ()
    %1011 = vector.shape_cast %1010 : vector<2x8x8xf32> to vector<16x8xf32>
    %1012 = arith.truncf %1011 : vector<16x8xf32> to vector<16x8xbf16>
    %c3 = arith.constant 3 : index
    %c0_281 = arith.constant 0 : index
    %c0_282 = arith.constant 0 : index
    %1013 = vector.load %arg13[%c3, %c0_281, %c0_282] : memref<8x8x64xbf16, #tpu.memory_space<vmem>>, vector<1x8x64xbf16>
    %1014 = vector.shape_cast %1013 : vector<1x8x64xbf16> to vector<8x64xbf16>
    %cst_283 = arith.constant dense<0.000000e+00> : vector<16x64xf32>
    %1015 = tpu.matmul %1012, %1014, %cst_283 {dimension_numbers = #tpu.dot_dimension_numbers<[1], [0], [0], [1], [0, 0, 1, 1], [], []>} : vector<16x8xbf16>, vector<8x64xbf16>, vector<16x64xf32> -> vector<16x64xf32>
    %1016 = arith.addf %991, %1015 : vector<16x64xf32>
    %1017 = vector.extract_strided_slice %901 {offsets = [0, 0, 32], sizes = [2, 8, 8], strides = [1, 1, 1]} : vector<2x8x64xbf16> to vector<2x8x8xbf16>
    %1018 = vector.extract_strided_slice %908 {offsets = [0, 0, 32], sizes = [2, 8, 8], strides = [1, 1, 1]} : vector<2x8x64xbf16> to vector<2x8x8xbf16>
    "tpu.trace_start"() <{level = 10 : i32, message = "btd,bud->btu"}> : () -> ()
    %cst_284 = arith.constant dense<0.000000e+00> : vector<2x8x8xf32>
    %1019 = tpu.matmul %1017, %1018, %cst_284 {dimension_numbers = #tpu.dot_dimension_numbers<[2], [2], [1], [1], [0, 0, 0, 1, 1, 1], [0], [0]>} : vector<2x8x8xbf16>, vector<2x8x8xbf16>, vector<2x8x8xf32> -> vector<2x8x8xf32>
    "tpu.trace_stop"() : () -> ()
    %cst_285 = arith.constant 0.353553385 : f32
    %1020 = vector.broadcast %cst_285 : f32 to vector<2x8x8xf32>
    %1021 = arith.mulf %1019, %1020 : vector<2x8x8xf32>
    %cst_286 = arith.constant dense<0xFF800000> : vector<2x8xf32>
    %1022 = vector.multi_reduction <maximumf>, %1021, %cst_286 [2] : vector<2x8x8xf32> to vector<2x8xf32>
    %cst_287 = arith.constant 0xFF800000 : f32
    %1023 = vector.broadcast %cst_287 : f32 to vector<2x8xf32>
    %1024 = arith.maximumf %1023, %1022 : vector<2x8xf32>
    %1025 = vector.shape_cast %1024 : vector<2x8xf32> to vector<2x8x1xf32>
    %1026 = vector.broadcast %1025 : vector<2x8x1xf32> to vector<2x8x8xf32>
    %1027 = arith.subf %1021, %1026 : vector<2x8x8xf32>
    %1028 = math.exp %1027 : vector<2x8x8xf32>
    %cst_288 = arith.constant dense<0.000000e+00> : vector<2x8xf32>
    %1029 = vector.multi_reduction <add>, %1028, %cst_288 [2] : vector<2x8x8xf32> to vector<2x8xf32>
    %1030 = vector.shape_cast %1029 : vector<2x8xf32> to vector<2x8x1xf32>
    %1031 = vector.broadcast %1030 : vector<2x8x1xf32> to vector<2x8x8xf32>
    %1032 = arith.divf %1028, %1031 : vector<2x8x8xf32>
    %1033 = arith.truncf %1032 : vector<2x8x8xf32> to vector<2x8x8xbf16>
    %1034 = vector.extract_strided_slice %915 {offsets = [0, 0, 32], sizes = [2, 8, 8], strides = [1, 1, 1]} : vector<2x8x64xbf16> to vector<2x8x8xbf16>
    "tpu.trace_start"() <{level = 10 : i32, message = "btu,bud->btd"}> : () -> ()
    %cst_289 = arith.constant dense<0.000000e+00> : vector<2x8x8xf32>
    %1035 = tpu.matmul %1033, %1034, %cst_289 {dimension_numbers = #tpu.dot_dimension_numbers<[2], [1], [1], [2], [0, 0, 0, 1, 1, 2], [0], [0]>} : vector<2x8x8xbf16>, vector<2x8x8xbf16>, vector<2x8x8xf32> -> vector<2x8x8xf32>
    "tpu.trace_stop"() : () -> ()
    %1036 = vector.shape_cast %1035 : vector<2x8x8xf32> to vector<16x8xf32>
    %1037 = arith.truncf %1036 : vector<16x8xf32> to vector<16x8xbf16>
    %c4 = arith.constant 4 : index
    %c0_290 = arith.constant 0 : index
    %c0_291 = arith.constant 0 : index
    %1038 = vector.load %arg13[%c4, %c0_290, %c0_291] : memref<8x8x64xbf16, #tpu.memory_space<vmem>>, vector<1x8x64xbf16>
    %1039 = vector.shape_cast %1038 : vector<1x8x64xbf16> to vector<8x64xbf16>
    %cst_292 = arith.constant dense<0.000000e+00> : vector<16x64xf32>
    %1040 = tpu.matmul %1037, %1039, %cst_292 {dimension_numbers = #tpu.dot_dimension_numbers<[1], [0], [0], [1], [0, 0, 1, 1], [], []>} : vector<16x8xbf16>, vector<8x64xbf16>, vector<16x64xf32> -> vector<16x64xf32>
    %1041 = arith.addf %1016, %1040 : vector<16x64xf32>
    %1042 = vector.extract_strided_slice %901 {offsets = [0, 0, 40], sizes = [2, 8, 8], strides = [1, 1, 1]} : vector<2x8x64xbf16> to vector<2x8x8xbf16>
    %1043 = vector.extract_strided_slice %908 {offsets = [0, 0, 40], sizes = [2, 8, 8], strides = [1, 1, 1]} : vector<2x8x64xbf16> to vector<2x8x8xbf16>
    "tpu.trace_start"() <{level = 10 : i32, message = "btd,bud->btu"}> : () -> ()
    %cst_293 = arith.constant dense<0.000000e+00> : vector<2x8x8xf32>
    %1044 = tpu.matmul %1042, %1043, %cst_293 {dimension_numbers = #tpu.dot_dimension_numbers<[2], [2], [1], [1], [0, 0, 0, 1, 1, 1], [0], [0]>} : vector<2x8x8xbf16>, vector<2x8x8xbf16>, vector<2x8x8xf32> -> vector<2x8x8xf32>
    "tpu.trace_stop"() : () -> ()
    %cst_294 = arith.constant 0.353553385 : f32
    %1045 = vector.broadcast %cst_294 : f32 to vector<2x8x8xf32>
    %1046 = arith.mulf %1044, %1045 : vector<2x8x8xf32>
    %cst_295 = arith.constant dense<0xFF800000> : vector<2x8xf32>
    %1047 = vector.multi_reduction <maximumf>, %1046, %cst_295 [2] : vector<2x8x8xf32> to vector<2x8xf32>
    %cst_296 = arith.constant 0xFF800000 : f32
    %1048 = vector.broadcast %cst_296 : f32 to vector<2x8xf32>
    %1049 = arith.maximumf %1048, %1047 : vector<2x8xf32>
    %1050 = vector.shape_cast %1049 : vector<2x8xf32> to vector<2x8x1xf32>
    %1051 = vector.broadcast %1050 : vector<2x8x1xf32> to vector<2x8x8xf32>
    %1052 = arith.subf %1046, %1051 : vector<2x8x8xf32>
    %1053 = math.exp %1052 : vector<2x8x8xf32>
    %cst_297 = arith.constant dense<0.000000e+00> : vector<2x8xf32>
    %1054 = vector.multi_reduction <add>, %1053, %cst_297 [2] : vector<2x8x8xf32> to vector<2x8xf32>
    %1055 = vector.shape_cast %1054 : vector<2x8xf32> to vector<2x8x1xf32>
    %1056 = vector.broadcast %1055 : vector<2x8x1xf32> to vector<2x8x8xf32>
    %1057 = arith.divf %1053, %1056 : vector<2x8x8xf32>
    %1058 = arith.truncf %1057 : vector<2x8x8xf32> to vector<2x8x8xbf16>
    %1059 = vector.extract_strided_slice %915 {offsets = [0, 0, 40], sizes = [2, 8, 8], strides = [1, 1, 1]} : vector<2x8x64xbf16> to vector<2x8x8xbf16>
    "tpu.trace_start"() <{level = 10 : i32, message = "btu,bud->btd"}> : () -> ()
    %cst_298 = arith.constant dense<0.000000e+00> : vector<2x8x8xf32>
    %1060 = tpu.matmul %1058, %1059, %cst_298 {dimension_numbers = #tpu.dot_dimension_numbers<[2], [1], [1], [2], [0, 0, 0, 1, 1, 2], [0], [0]>} : vector<2x8x8xbf16>, vector<2x8x8xbf16>, vector<2x8x8xf32> -> vector<2x8x8xf32>
    "tpu.trace_stop"() : () -> ()
    %1061 = vector.shape_cast %1060 : vector<2x8x8xf32> to vector<16x8xf32>
    %1062 = arith.truncf %1061 : vector<16x8xf32> to vector<16x8xbf16>
    %c5 = arith.constant 5 : index
    %c0_299 = arith.constant 0 : index
    %c0_300 = arith.constant 0 : index
    %1063 = vector.load %arg13[%c5, %c0_299, %c0_300] : memref<8x8x64xbf16, #tpu.memory_space<vmem>>, vector<1x8x64xbf16>
    %1064 = vector.shape_cast %1063 : vector<1x8x64xbf16> to vector<8x64xbf16>
    %cst_301 = arith.constant dense<0.000000e+00> : vector<16x64xf32>
    %1065 = tpu.matmul %1062, %1064, %cst_301 {dimension_numbers = #tpu.dot_dimension_numbers<[1], [0], [0], [1], [0, 0, 1, 1], [], []>} : vector<16x8xbf16>, vector<8x64xbf16>, vector<16x64xf32> -> vector<16x64xf32>
    %1066 = arith.addf %1041, %1065 : vector<16x64xf32>
    %1067 = vector.extract_strided_slice %901 {offsets = [0, 0, 48], sizes = [2, 8, 8], strides = [1, 1, 1]} : vector<2x8x64xbf16> to vector<2x8x8xbf16>
    %1068 = vector.extract_strided_slice %908 {offsets = [0, 0, 48], sizes = [2, 8, 8], strides = [1, 1, 1]} : vector<2x8x64xbf16> to vector<2x8x8xbf16>
    "tpu.trace_start"() <{level = 10 : i32, message = "btd,bud->btu"}> : () -> ()
    %cst_302 = arith.constant dense<0.000000e+00> : vector<2x8x8xf32>
    %1069 = tpu.matmul %1067, %1068, %cst_302 {dimension_numbers = #tpu.dot_dimension_numbers<[2], [2], [1], [1], [0, 0, 0, 1, 1, 1], [0], [0]>} : vector<2x8x8xbf16>, vector<2x8x8xbf16>, vector<2x8x8xf32> -> vector<2x8x8xf32>
    "tpu.trace_stop"() : () -> ()
    %cst_303 = arith.constant 0.353553385 : f32
    %1070 = vector.broadcast %cst_303 : f32 to vector<2x8x8xf32>
    %1071 = arith.mulf %1069, %1070 : vector<2x8x8xf32>
    %cst_304 = arith.constant dense<0xFF800000> : vector<2x8xf32>
    %1072 = vector.multi_reduction <maximumf>, %1071, %cst_304 [2] : vector<2x8x8xf32> to vector<2x8xf32>
    %cst_305 = arith.constant 0xFF800000 : f32
    %1073 = vector.broadcast %cst_305 : f32 to vector<2x8xf32>
    %1074 = arith.maximumf %1073, %1072 : vector<2x8xf32>
    %1075 = vector.shape_cast %1074 : vector<2x8xf32> to vector<2x8x1xf32>
    %1076 = vector.broadcast %1075 : vector<2x8x1xf32> to vector<2x8x8xf32>
    %1077 = arith.subf %1071, %1076 : vector<2x8x8xf32>
    %1078 = math.exp %1077 : vector<2x8x8xf32>
    %cst_306 = arith.constant dense<0.000000e+00> : vector<2x8xf32>
    %1079 = vector.multi_reduction <add>, %1078, %cst_306 [2] : vector<2x8x8xf32> to vector<2x8xf32>
    %1080 = vector.shape_cast %1079 : vector<2x8xf32> to vector<2x8x1xf32>
    %1081 = vector.broadcast %1080 : vector<2x8x1xf32> to vector<2x8x8xf32>
    %1082 = arith.divf %1078, %1081 : vector<2x8x8xf32>
    %1083 = arith.truncf %1082 : vector<2x8x8xf32> to vector<2x8x8xbf16>
    %1084 = vector.extract_strided_slice %915 {offsets = [0, 0, 48], sizes = [2, 8, 8], strides = [1, 1, 1]} : vector<2x8x64xbf16> to vector<2x8x8xbf16>
    "tpu.trace_start"() <{level = 10 : i32, message = "btu,bud->btd"}> : () -> ()
    %cst_307 = arith.constant dense<0.000000e+00> : vector<2x8x8xf32>
    %1085 = tpu.matmul %1083, %1084, %cst_307 {dimension_numbers = #tpu.dot_dimension_numbers<[2], [1], [1], [2], [0, 0, 0, 1, 1, 2], [0], [0]>} : vector<2x8x8xbf16>, vector<2x8x8xbf16>, vector<2x8x8xf32> -> vector<2x8x8xf32>
    "tpu.trace_stop"() : () -> ()
    %1086 = vector.shape_cast %1085 : vector<2x8x8xf32> to vector<16x8xf32>
    %1087 = arith.truncf %1086 : vector<16x8xf32> to vector<16x8xbf16>
    %c6 = arith.constant 6 : index
    %c0_308 = arith.constant 0 : index
    %c0_309 = arith.constant 0 : index
    %1088 = vector.load %arg13[%c6, %c0_308, %c0_309] : memref<8x8x64xbf16, #tpu.memory_space<vmem>>, vector<1x8x64xbf16>
    %1089 = vector.shape_cast %1088 : vector<1x8x64xbf16> to vector<8x64xbf16>
    %cst_310 = arith.constant dense<0.000000e+00> : vector<16x64xf32>
    %1090 = tpu.matmul %1087, %1089, %cst_310 {dimension_numbers = #tpu.dot_dimension_numbers<[1], [0], [0], [1], [0, 0, 1, 1], [], []>} : vector<16x8xbf16>, vector<8x64xbf16>, vector<16x64xf32> -> vector<16x64xf32>
    %1091 = arith.addf %1066, %1090 : vector<16x64xf32>
    %1092 = vector.extract_strided_slice %901 {offsets = [0, 0, 56], sizes = [2, 8, 8], strides = [1, 1, 1]} : vector<2x8x64xbf16> to vector<2x8x8xbf16>
    %1093 = vector.extract_strided_slice %908 {offsets = [0, 0, 56], sizes = [2, 8, 8], strides = [1, 1, 1]} : vector<2x8x64xbf16> to vector<2x8x8xbf16>
    "tpu.trace_start"() <{level = 10 : i32, message = "btd,bud->btu"}> : () -> ()
    %cst_311 = arith.constant dense<0.000000e+00> : vector<2x8x8xf32>
    %1094 = tpu.matmul %1092, %1093, %cst_311 {dimension_numbers = #tpu.dot_dimension_numbers<[2], [2], [1], [1], [0, 0, 0, 1, 1, 1], [0], [0]>} : vector<2x8x8xbf16>, vector<2x8x8xbf16>, vector<2x8x8xf32> -> vector<2x8x8xf32>
    "tpu.trace_stop"() : () -> ()
    %cst_312 = arith.constant 0.353553385 : f32
    %1095 = vector.broadcast %cst_312 : f32 to vector<2x8x8xf32>
    %1096 = arith.mulf %1094, %1095 : vector<2x8x8xf32>
    %cst_313 = arith.constant dense<0xFF800000> : vector<2x8xf32>
    %1097 = vector.multi_reduction <maximumf>, %1096, %cst_313 [2] : vector<2x8x8xf32> to vector<2x8xf32>
    %cst_314 = arith.constant 0xFF800000 : f32
    %1098 = vector.broadcast %cst_314 : f32 to vector<2x8xf32>
    %1099 = arith.maximumf %1098, %1097 : vector<2x8xf32>
    %1100 = vector.shape_cast %1099 : vector<2x8xf32> to vector<2x8x1xf32>
    %1101 = vector.broadcast %1100 : vector<2x8x1xf32> to vector<2x8x8xf32>
    %1102 = arith.subf %1096, %1101 : vector<2x8x8xf32>
    %1103 = math.exp %1102 : vector<2x8x8xf32>
    %cst_315 = arith.constant dense<0.000000e+00> : vector<2x8xf32>
    %1104 = vector.multi_reduction <add>, %1103, %cst_315 [2] : vector<2x8x8xf32> to vector<2x8xf32>
    %1105 = vector.shape_cast %1104 : vector<2x8xf32> to vector<2x8x1xf32>
    %1106 = vector.broadcast %1105 : vector<2x8x1xf32> to vector<2x8x8xf32>
    %1107 = arith.divf %1103, %1106 : vector<2x8x8xf32>
    %1108 = arith.truncf %1107 : vector<2x8x8xf32> to vector<2x8x8xbf16>
    %1109 = vector.extract_strided_slice %915 {offsets = [0, 0, 56], sizes = [2, 8, 8], strides = [1, 1, 1]} : vector<2x8x64xbf16> to vector<2x8x8xbf16>
    "tpu.trace_start"() <{level = 10 : i32, message = "btu,bud->btd"}> : () -> ()
    %cst_316 = arith.constant dense<0.000000e+00> : vector<2x8x8xf32>
    %1110 = tpu.matmul %1108, %1109, %cst_316 {dimension_numbers = #tpu.dot_dimension_numbers<[2], [1], [1], [2], [0, 0, 0, 1, 1, 2], [0], [0]>} : vector<2x8x8xbf16>, vector<2x8x8xbf16>, vector<2x8x8xf32> -> vector<2x8x8xf32>
    "tpu.trace_stop"() : () -> ()
    %1111 = vector.shape_cast %1110 : vector<2x8x8xf32> to vector<16x8xf32>
    %1112 = arith.truncf %1111 : vector<16x8xf32> to vector<16x8xbf16>
    %c7 = arith.constant 7 : index
    %c0_317 = arith.constant 0 : index
    %c0_318 = arith.constant 0 : index
    %1113 = vector.load %arg13[%c7, %c0_317, %c0_318] : memref<8x8x64xbf16, #tpu.memory_space<vmem>>, vector<1x8x64xbf16>
    %1114 = vector.shape_cast %1113 : vector<1x8x64xbf16> to vector<8x64xbf16>
    %cst_319 = arith.constant dense<0.000000e+00> : vector<16x64xf32>
    %1115 = tpu.matmul %1112, %1114, %cst_319 {dimension_numbers = #tpu.dot_dimension_numbers<[1], [0], [0], [1], [0, 0, 1, 1], [], []>} : vector<16x8xbf16>, vector<8x64xbf16>, vector<16x64xf32> -> vector<16x64xf32>
    %1116 = arith.addf %1091, %1115 : vector<16x64xf32>
    %c0_320 = arith.constant 0 : index
    %c0_321 = arith.constant 0 : index
    %1117 = vector.load %arg14[%c0_320, %c0_321] : memref<1x64xf32, #tpu.memory_space<vmem>>, vector<1x64xf32>
    %1118 = vector.broadcast %1117 : vector<1x64xf32> to vector<16x64xf32>
    %1119 = arith.addf %1116, %1118 : vector<16x64xf32>
    %1120 = vector.shape_cast %1119 : vector<16x64xf32> to vector<2x8x64xf32>
    %cst_322 = arith.constant dense<0.000000e+00> : vector<2x64xf32>
    %1121 = vector.multi_reduction <add>, %1120, %cst_322 [1] : vector<2x8x64xf32> to vector<2x64xf32>
    %cst_323 = arith.constant 8.000000e+00 : f32
    %1122 = vector.broadcast %cst_323 : f32 to vector<2x64xf32>
    %1123 = arith.divf %1121, %1122 : vector<2x64xf32>
    %1124 = arith.truncf %1123 : vector<2x64xf32> to vector<2x64xbf16>
    %c0_324 = arith.constant 0 : index
    %c0_325 = arith.constant 0 : index
    %1125 = vector.load %arg15[%c0_324, %c0_325] : memref<64x32xbf16, #tpu.memory_space<vmem>>, vector<64x32xbf16>
    %cst_326 = arith.constant dense<0.000000e+00> : vector<2x32xf32>
    %1126 = tpu.matmul %1124, %1125, %cst_326 {dimension_numbers = #tpu.dot_dimension_numbers<[1], [0], [0], [1], [0, 0, 1, 1], [], []>} : vector<2x64xbf16>, vector<64x32xbf16>, vector<2x32xf32> -> vector<2x32xf32>
    %c0_327 = arith.constant 0 : index
    %c0_328 = arith.constant 0 : index
    %1127 = vector.load %arg16[%c0_327, %c0_328] : memref<1x32xf32, #tpu.memory_space<vmem>>, vector<1x32xf32>
    %1128 = vector.broadcast %1127 : vector<1x32xf32> to vector<2x32xf32>
    %1129 = arith.addf %1126, %1128 : vector<2x32xf32>
    %cst_329 = arith.constant 0.000000e+00 : f32
    %1130 = vector.broadcast %cst_329 : f32 to vector<2x32xf32>
    %1131 = arith.maximumf %1129, %1130 : vector<2x32xf32>
    %1132 = arith.truncf %1131 : vector<2x32xf32> to vector<2x32xbf16>
    %c0_330 = arith.constant 0 : index
    %c0_331 = arith.constant 0 : index
    %1133 = vector.load %arg17[%c0_330, %c0_331] : memref<32x32xbf16, #tpu.memory_space<vmem>>, vector<32x32xbf16>
    %cst_332 = arith.constant dense<0.000000e+00> : vector<2x32xf32>
    %1134 = tpu.matmul %1132, %1133, %cst_332 {dimension_numbers = #tpu.dot_dimension_numbers<[1], [0], [0], [1], [0, 0, 1, 1], [], []>} : vector<2x32xbf16>, vector<32x32xbf16>, vector<2x32xf32> -> vector<2x32xf32>
    %c0_333 = arith.constant 0 : index
    %c0_334 = arith.constant 0 : index
    %1135 = vector.load %arg18[%c0_333, %c0_334] : memref<1x32xf32, #tpu.memory_space<vmem>>, vector<1x32xf32>
    %1136 = vector.broadcast %1135 : vector<1x32xf32> to vector<2x32xf32>
    %1137 = arith.addf %1134, %1136 : vector<2x32xf32>
    %cst_335 = arith.constant 0.000000e+00 : f32
    %1138 = vector.broadcast %cst_335 : f32 to vector<2x32xf32>
    %1139 = arith.maximumf %1137, %1138 : vector<2x32xf32>
    %1140 = arith.truncf %1139 : vector<2x32xf32> to vector<2x32xbf16>
    %c0_336 = arith.constant 0 : index
    %c0_337 = arith.constant 0 : index
    %1141 = vector.load %arg19[%c0_336, %c0_337] : memref<32x1xbf16, #tpu.memory_space<vmem>>, vector<32x1xbf16>
    %cst_338 = arith.constant dense<0.000000e+00> : vector<2x1xf32>
    %1142 = tpu.matmul %1140, %1141, %cst_338 {dimension_numbers = #tpu.dot_dimension_numbers<[1], [0], [0], [1], [0, 0, 1, 1], [], []>} : vector<2x32xbf16>, vector<32x1xbf16>, vector<2x1xf32> -> vector<2x1xf32>
    %c0_339 = arith.constant 0 : index
    %c0_340 = arith.constant 0 : index
    %1143 = vector.load %arg20[%c0_339, %c0_340] : memref<1x1xf32, #tpu.memory_space<vmem>>, vector<1x1xf32>
    %1144 = vector.broadcast %1143 : vector<1x1xf32> to vector<2x1xf32>
    %1145 = arith.addf %1142, %1144 : vector<2x1xf32>
    %c0_341 = arith.constant 0 : index
    %c0_342 = arith.constant 0 : index
    %1146 = vector.load %arg21[%c0_341, %c0_342] : memref<2x1xf32, #tpu.memory_space<vmem>>, vector<2x1xf32>
    tpu.vector_store %arg21[%c0_341, %c0_342], %1145 {strides = array<i32>} : memref<2x1xf32, #tpu.memory_space<vmem>>, vector<2x1xf32>,
    return
  }
}

</mosaic_0001>

<bundles_post_ra>
// kernel: forward.1
= control target key start
LH: loop header
LB: loop body
LE: loop exit
PB: predicated region body
PF: predicated region fallthrough
CT: control target
= control target key end

     0   :  { %s6568_s0 = inlined_call_operand.vmem [shape: f32[2,8,16], index: 0, kind: input, shape index: {}]   ;;  %s6569_s1 = inlined_call_operand.hbm [shape: bf16[16,256], index: 1, kind: input, shape index: {}]   ;;  %s6570_s2 = inlined_call_operand.vmem [shape: f32[1,256], index: 2, kind: input, shape index: {}]   ;;  %s6571_s3 = inlined_call_operand.hbm [shape: bf16[64,256], index: 3, kind: input, shape index: {}]   ;;  %s6572_s4 = inlined_call_operand.hbm [shape: bf16[64,256], index: 4, kind: input, shape index: {}]   ;;  %s6573_s5 = inlined_call_operand.vmem [shape: f32[1,256], index: 5, kind: input, shape index: {}]   ;;  %s6574_s6 = inlined_call_operand.hbm [shape: bf16[64,256], index: 6, kind: input, shape index: {}]   ;;  %s6575_s7 = inlined_call_operand.vmem [shape: bf16[64,64], index: 7, kind: input, shape index: {}]   ;;  %s6576_s8 = inlined_call_operand.vmem [shape: f32[1,64], index: 8, kind: input, shape index: {}]   ;;  %s6577_s9 = inlined_call_operand.hbm [shape: bf16[64,64], index: 9, kind: input, shape index: {}]   ;;  %s6578_s10 = inlined_call_operand.vmem [shape: f32[1,64], index: 10, kind: input, shape index: {}]   ;;  %s6579_s11 = inlined_call_operand.hbm [shape: bf16[64,64], index: 11, kind: input, shape index: {}]   ;;  %s6580_s12 = inlined_call_operand.vmem [shape: f32[1,64], index: 12, kind: input, shape index: {}]   ;;  %s6581_s13 = inlined_call_operand.hbm [shape: bf16[8,8,64], index: 13, kind: input, shape index: {}]   ;;  %s6582_s14 = inlined_call_operand.vmem [shape: f32[1,64], index: 14, kind: input, shape index: {}]   ;;  %s6583_s15 = inlined_call_operand.vmem [shape: bf16[64,32], index: 15, kind: input, shape index: {}]   ;;  %s6584_s16 = inlined_call_operand.vmem [shape: f32[1,32], index: 16, kind: input, shape index: {}]   ;;  %s6585_s17 = inlined_call_operand.hbm [shape: bf16[32,32], index: 17, kind: input, shape index: {}]   ;;  %s6586_s18 = inlined_call_operand.vmem [shape: f32[1,32], index: 18, kind: input, shape index: {}]   ;;  %s6587_s19 = inlined_call_operand.vmem [shape: bf16[32,1], index: 19, kind: input, shape index: {}]   ;;  %s6588_s20 = inlined_call_operand.<no memory space> [shape: f32[1,1], index: 20, kind: input, shape index: {}]   ;;  %s6589_s21 = inlined_call_operand.vmem [shape: f32[2,1], index: 21, kind: output, shape index: {}]  }
   0x1   :  { %6591 = sst [smem:[#allocation23_spill]] %s6568_s0  ;;  %v26_v0 = vstv %s6588_s20 }
   0x2   :  { %6592 = sst [smem:[#allocation24_spill]] %s6569_s1  ;;  %27 = vst [vmem:[#allocation4] sm:$0x1] %v26_v0 }
   0x3   :  { %6593 = sst [smem:[#allocation25_spill]] %s6570_s2 }
   0x4   :  { %6594 = sst [smem:[#allocation26_spill]] %s6571_s3 }
   0x5   :  { %6595 = sst [smem:[#allocation27_spill]] %s6572_s4 }
   0x6   :  { %6596 = sst [smem:[#allocation28_spill]] %s6573_s5 }
   0x7   :  { %28 = vsyncpa [#allocation6], 0 }
   0x8   :  { %29 = vsyncpa [#allocation8], 0 }
   0x9   :  { %30 = vsyncpa [#allocation11], 0 }
   0xa   :  { %31 = vsyncpa [#allocation14], 0 }
   0xb   :  { %32 = vsyncpa [#allocation17], 0  ;;  %s6597_s3 = sld [smem:[#allocation26_spill]]  ;;  %s5392_s29 = smov [#allocation7]  }
   0xc   :  { %s56_s0 = sshll.u32 %s5392_s29, 4  ;;  %s82_s5 = sshll.u32 %s6574_s6, 4  ;;  %s57_s0 = int_to_ptr.vmem [resolvable:$true] %s56_s0  ;;  %s83_s5 = int_to_ptr.hbm [resolvable:$true] %s82_s5 }
   0xd   :  { %s5393_s22 = smov 128   ;;  %s5394_s20 = smov 8  }
   0xe   :  { %s5395_s23 = smov [#allocation10]   ;;  %s114_s25 = sshll.u32 %s6579_s11, 4  ;;  %s115_s25 = int_to_ptr.hbm [resolvable:$true] %s114_s25 }
   0xf   :  { %s84_s1 = sshll.u32 %s5395_s23, 4  ;;  %s5396_s6 = smov [#allocation13]   ;;  %s85_s1 = int_to_ptr.vmem [resolvable:$true] %s84_s1 }
  0x10   :  { %90 = dma.hbm_to_vmem [thread:$0]  %s83_s5, 1024, %s85_s1, [#allocation11], %s5393_s22, %s5393_s22, %s5394_s20  }
  0x11   :  { %s54_s28 = sshll.u32 %s6597_s3, 4  ;;  %s116_s26 = sshll.u32 %s5396_s6, 4  ;;  %s55_s28 = int_to_ptr.hbm [resolvable:$true] %s54_s28  ;;  %s117_s26 = int_to_ptr.vmem [resolvable:$true] %s116_s26 }
  0x12   :  { %62 = dma.hbm_to_vmem [thread:$0]  %s55_s28, 1024, %s57_s0, [#allocation8], %s5393_s22, %s5393_s22, %s5394_s20  }
  0x13   :  { %s6598_s29 = sld [smem:[#allocation24_spill]]  ;;  %s5397_s0 = smov 64  }
  0x14   :  { %s5398_s4 = smov 4   ;;  %s5399_s30 = smov [#allocation5]  }
  0x15   :  { %122 = dma.hbm_to_vmem [thread:$0]  %s115_s25, 512, %s117_s26, [#allocation14], %s5397_s0, %s5397_s0, %s5398_s4  }
  0x16   :  { %s41_s5 = sshll.u32 %s5399_s30, 4  ;;  %s6599_s11 = sld [smem:[#allocation27_spill]]  ;;  %s42_s5 = int_to_ptr.vmem [resolvable:$true] %s41_s5 }
  0x17   :  { %s99_s27 = sshll.u32 %s6577_s9, 4  ;;  %s5400_s3 = smov [#allocation9]   ;;  %s100_s27 = int_to_ptr.hbm [resolvable:$true] %s99_s27 }
  0x18   :  { %s5401_s25 = smov [#allocation12]   ;;  %s129_s1 = sshll.u32 %s6581_s13, 4  ;;  %s130_s1 = int_to_ptr.hbm [resolvable:$true] %s129_s1 }
  0x19   :  { %s39_s28 = sshll.u32 %s6598_s29, 4  ;;  %s69_s29 = sshll.u32 %s5400_s3, 4  ;;  %s40_s28 = int_to_ptr.hbm [resolvable:$true] %s39_s28  ;;  %s70_s29 = int_to_ptr.vmem [resolvable:$true] %s69_s29 }
  0x1a   :  { %47 = dma.hbm_to_vmem [thread:$0]  %s40_s28, 256, %s42_s5, [#allocation6], %s5393_s22, %s5393_s22, %s5394_s20  }
  0x1b   :  { %s101_s26 = sshll.u32 %s5401_s25, 4  ;;  %s148_s5 = sshll.u32 %s6585_s17, 4  ;;  %s102_s26 = int_to_ptr.vmem [resolvable:$true] %s101_s26  ;;  %s149_s5 = int_to_ptr.hbm [resolvable:$true] %s148_s5 }
  0x1c   :  { %s67_s24 = sshll.u32 %s6599_s11, 4  ;;  %s5402_s11 = smov [#allocation15]   ;;  %s68_s24 = int_to_ptr.hbm [resolvable:$true] %s67_s24 }
  0x1d   :  { %75 = dma.hbm_to_vmem [thread:$0]  %s68_s24, 1024, %s70_s29, [#allocation8], %s5393_s22, %s5393_s22, %s5394_s20  }
  0x1e   :  { %107 = dma.hbm_to_vmem [thread:$0]  %s100_s27, 512, %s102_s26, [#allocation11], %s5397_s0, %s5397_s0, %s5398_s4  }
  0x1f   :  { %s131_s2 = sshll.u32 %s5402_s11, 4  ;;  %s5403_s22 = smov [#allocation16]   ;;  %s132_s2 = int_to_ptr.vmem [resolvable:$true] %s131_s2 }
  0x20   :  { %137 = dma.hbm_to_vmem [thread:$0]  %s130_s1, 512, %s132_s2, [#allocation14], %s5397_s0, %s5397_s0, %s5398_s4  }
  0x21   :  { %s150_s13 = sshll.u32 %s5403_s22, 4  ;;  %s151_s13 = int_to_ptr.vmem [resolvable:$true] %s150_s13 }
  0x22   :  { %156 = dma.hbm_to_vmem [thread:$0]  %s149_s5, 256, %s151_s13, [#allocation17], %s5397_s0, %s5397_s0, %s5398_s4  }
  0x23   :  { %5382 = dma.done.wait [#allocation6], 256  }
  0x24   :  { %5383 = vsyncadd [#allocation6], 4294967040 }
  0x25   :  { %5384 = dma.done.wait [#allocation8], 2048  }
  0x26   :  { %5385 = vsyncadd [#allocation8], 4294965248 }
  0x27   :  { %5386 = dma.done.wait [#allocation11], 1536  }
  0x28   :  { %5387 = vsyncadd [#allocation11], 4294965760 }
  0x29   :  { %5388 = dma.done.wait [#allocation14], 1024  }
  0x2a   :  { %5389 = vsyncadd [#allocation14], 4294966272 }
  0x2b   :  { %5390 = dma.done.wait [#allocation17], 256  }
  0x2c   :  { %5391 = vsyncadd [#allocation17], 4294967040  ;;  %v5404_v1 = vmov 1983009808   ;;  %v4533_v3 = vld [vmem:[#allocation7 + $0x30] sm:$0xf] }
  0x2d   :  { %v202_v2 = vunpack.c.l.s4 %v5404_v1  ;;  %v4800_v4 = vld [vmem:[#allocation7 + $0x34] sm:$0xf0]  ;;  %v4525_v5 = vld [vmem:[#allocation7 + $0x20] sm:$0xf]  ;;  %v4798_v7 = vld [vmem:[#allocation7 + $0x24] sm:$0xf0] }
  0x2e   :  { %v5577_v6 = vor.u32 %v4800_v4, %v4533_v3  ;;  %v4517_v8 = vld [vmem:[#allocation7 + $0x10] sm:$0xf]  ;;  %v4796_v9 = vld [vmem:[#allocation7 + $0x14] sm:$0xf0]  ;;  %v4799_v11 = vld [vmem:[#allocation7 + $0x34] sm:$0xf]  ;;  %v5582_v16 = vor.u32 %v4798_v7, %v4525_v5 }
  0x2f   :  { %v5579_v10 = vunpack.c.0.s8 %v202_v2  ;;  %v4535_v12 = vld [vmem:[#allocation7 + $0x38] sm:$0xf0]  ;;  %v4499_v13 = vld [vmem:[#allocation5] sm:$0xf]  ;;  %v5405_v14 = vmov 1934713408   ;;  %v5595_v30 = vor.u32 %v4796_v9, %v4517_v8 }
  0x30   :  { %v224_v15 = vunpack.c.l.s4 %v5405_v14  ;;  %425 = vmatpush.bf16.msra.mxu2 %v5577_v6  ;;  %v5584_v17 = vor.u32 %v4799_v11, %v4535_v12  ;;  %v4792_v18 = vld [vmem:[#allocation5 + $0x4] sm:$0xf0]  ;;  %v4791_v19 = vld [vmem:[#allocation5 + $0x4] sm:$0xf]  ;;  %v4501_v20 = vld [vmem:[#allocation5 + $0x8] sm:$0xf0] }
  0x31   :  { %v4500_v21 = vor.u32 %v4792_v18, %v4499_v13  ;;  %v4504_v22 = vor.u32 %v4791_v19, %v4501_v20  ;;  %s6600_s4 = sld [smem:[#allocation23_spill]]  ;;  %vm199_vm0 = vcmask 1047556   ;;  %v4797_v29 = vld [vmem:[#allocation7 + $0x24] sm:$0xf]  ;;  %v4527_v32 = vld [vmem:[#allocation7 + $0x28] sm:$0xf0] }
  0x32   :  { %438 = vmatpush.bf16.msra.mxu3 %v5584_v17  ;;  %v5597_v31 = vunpack.c.0.s8 %v224_v15  ;;  %v4795_v33 = vld [vmem:[#allocation7 + $0x14] sm:$0xf]  ;;  %v4519_v34 = vld [vmem:[#allocation7 + $0x18] sm:$0xf0]  ;;  %v4509_v41 = vld [vmem:[#allocation7] sm:$0xf]  ;;  %v5605_v43 = vor.u32 %v4797_v29, %v4527_v32 }
  0x33   :  { %308 = vmatpush.bf16.msra.mxu0 %v4500_v21  ;;  %322 = vmatpush.bf16.msra.mxu1 %v4504_v22  ;;  %v4794_v42 = vld [vmem:[#allocation7 + $0x4] sm:$0xf0]  ;;  %v5610_v46 = vor.u32 %v4795_v33, %v4519_v34  ;;  %v4793_v47 = vld [vmem:[#allocation7 + $0x4] sm:$0xf]  ;;  %v4511_v53 = vld [vmem:[#allocation7 + $0x8] sm:$0xf0] }
  0x34   :  { %426 = vmatpush.bf16.msra.mxu2 %v5582_v16  ;;  %v5616_v52 = vor.u32 %v4794_v42, %v4509_v41  ;;  %v5627_v62 = vor.u32 %v4793_v47, %v4511_v53  ;;  %v5406_v3 = vmov 0   ;;  %vm297_vm1 = vcmask 130048   ;;  %s6601_s29 = sld [smem:[#allocation25_spill]]  ;;  %s5407_s25 = smov 32  }
  0x35   :  { %vm335_vm2 = vcmask 1041408   ;;  %vm337_vm3 = vcmask 1043458   ;;  %vm340_vm4 = vcmask 1045508   ;;  %vm343_vm5 = vcmask 1045504   ;;  %s6602_s23 = sld [smem:[#allocation28_spill]]  ;;  %s5411_s6 = smov 96  }
  0x36   :  { %439 = vmatpush.bf16.msra.mxu3 %v5605_v43  ;;  %vm556_vm14 = vcmask 261120   ;;  %vm417_vm15 = vcmask 523264   ;;  %s5412_s27 = smov 88   ;;  %s5413_s3 = smov 80  }
  0x37   :  { %v196_v23 = vld [vmem:[%s6600_s4] sm:$0xff]  ;;  %v197_v24 = vld [vmem:[%s6600_s4 + $0x8] sm:$0xff]  ;;  %566 = vmatpush.bf16.msrb.mxu0 %v5577_v6  ;;  %579 = vmatpush.bf16.msrb.mxu1 %v5584_v17 }
  0x38   :  { %v198_v25 = vrot.slane %v196_v23, 4  ;;  %v204_v26 = vperm.slane %v196_v23, %v5579_v10  ;;  %v209_v27 = vrot.slane %v197_v24, 4  ;;  %v214_v28 = vperm.slane %v197_v24, %v5579_v10  ;;  %427 = vmatpush.bf16.msra.mxu2 %v5595_v30 }
  0x3a   :  { %v200_v35 = vsel %vm199_vm0, 0.0, %v198_v25  ;;  %v210_v36 = vsel %vm199_vm0, 0.0, %v209_v27  ;;  %v219_v37 = vrot.slane %v214_v28, 4  ;;  %v221_v38 = vrot.slane %v204_v26, 4  ;;  %440 = vmatpush.bf16.msra.mxu3 %v5610_v46  ;;  %v281_v8 = vld [vmem:[%s6601_s29] sm:$0x3] }
  0x3b   :  { %v208_v39 = vperm.slane %v200_v35, %v5579_v10  ;;  %v218_v40 = vperm.slane %v210_v36, %v5579_v10  ;;  %567 = vmatpush.bf16.msrb.mxu0 %v5582_v16  ;;  %580 = vmatpush.bf16.msrb.mxu1 %v5605_v43  ;;  %v283_v11 = vperm.slane %v281_v8, 0  ;;  %v284_v12 = vperm.slane %v281_v8, 1  ;;  %s5414_s29 = smov 72  }
  0x3c   :  { %v220_v44 = vsel %vm199_vm0, %v219_v37, %v204_v26  ;;  %v222_v45 = vsel %vm199_vm0, %v214_v28, %v221_v38  ;;  %428 = vmatpush.bf16.msra.mxu2 %v5616_v52 }
  0x3d   :  { %v226_v48 = vperm.slane %v220_v44, %v5597_v31  ;;  %v230_v49 = vperm.slane %v222_v45, %v5597_v31  ;;  %v231_v50 = vrot.slane %v218_v40, 4  ;;  %v233_v51 = vrot.slane %v208_v39, 4 }
  0x3e   :  { %441 = vmatpush.bf16.msra.mxu3 %v5627_v62 }
  0x3f   :  { %v232_v54 = vsel %vm199_vm0, %v231_v50, %v208_v39  ;;  %v234_v55 = vsel %vm199_vm0, %v218_v40, %v233_v51  ;;  %v243_v56 = vrot.slane %v226_v48, 4  ;;  %v245_v57 = vrot.slane %v230_v49, 4  ;;  %259 = vst [vmem:[#allocation1] ss:$4 sm:$0xff] %v226_v48  ;;  %568 = vmatpush.bf16.msrb.mxu0 %v5595_v30  ;;  %581 = vmatpush.bf16.msrb.mxu1 %v5610_v46 }
  0x40   :  { %v238_v58 = vperm.slane %v232_v54, %v5597_v31  ;;  %v242_v59 = vperm.slane %v234_v55, %v5597_v31  ;;  %263 = vst [vmem:[#allocation1 + $0x2] ss:$4 sm:$0xff] %v230_v49  ;;  %706 = vmatpush.bf16.msrb.mxu2 %v5577_v6 }
  0x41   :  { %v244_v60 = vsel %vm199_vm0, 0.0, %v243_v56  ;;  %v246_v61 = vsel %vm199_vm0, 0.0, %v245_v57  ;;  %429 = vmatmul.bf16.vlgmr.msra.gmra.mxu2 %v5406_v3  ;;  %442 = vmatmul.bf16.vlgmr.msra.gmra.mxu3 %v5406_v3 }
  0x42   :  { %v247_v63 = vrot.slane %v238_v58, 4  ;;  %v249_v0 = vrot.slane %v242_v59, 4  ;;  %261 = vst [vmem:[#allocation1 + $0x1] ss:$4 sm:$0xff] %v244_v60  ;;  %719 = vmatpush.bf16.msrb.mxu3 %v5584_v17 }
  0x43   :  { %265 = vst [vmem:[#allocation1 + $0x3] ss:$4 sm:$0xff] %v246_v61  ;;  %569 = vmatpush.bf16.msrb.mxu0 %v5616_v52  ;;  %582 = vmatpush.bf16.msrb.mxu1 %v5627_v62 }
  0x44   :  { %v248_v1 = vsel %vm199_vm0, 0.0, %v247_v63  ;;  %v250_v2 = vsel %vm199_vm0, 0.0, %v249_v0  ;;  %267 = vst [vmem:[#allocation1 + $0x20] ss:$4 sm:$0xff] %v238_v58  ;;  %707 = vmatpush.bf16.msrb.mxu2 %v5582_v16 }
  0x45   :  { %269 = vst [vmem:[#allocation1 + $0x21] ss:$4 sm:$0xff] %v248_v1 }
  0x46   :  { %271 = vst [vmem:[#allocation1 + $0x22] ss:$4 sm:$0xff] %v242_v59  ;;  %720 = vmatpush.bf16.msrb.mxu3 %v5605_v43 }
  0x47   :  { %273 = vst [vmem:[#allocation1 + $0x23] ss:$4 sm:$0xff] %v250_v2 }
  0x48   :  { %708 = vmatpush.bf16.msrb.mxu2 %v5595_v30 }
  0x4a   :  { %v274_v4 = vld.sshfl [vmem:[#allocation1] sm:$0xff pattern:$0x73625140]  ;;  %721 = vmatpush.bf16.msrb.mxu3 %v5610_v46 }
  0x4c   :  { %709 = vmatpush.bf16.msrb.mxu2 %v5616_v52 }
  0x4e   :  { %v275_v5 = vld.sshfl [vmem:[#allocation1 + $0x20] sm:$0xff pattern:$0x73625140]  ;;  %722 = vmatpush.bf16.msrb.mxu3 %v5627_v62 }
  0x4f   :  { %v278_v7 = vpack.c.bf16 %v275_v5, %v274_v4 }
  0x50   :  { %986 = vmatpush.bf16.msra.mxu2 %v5577_v6 }
  0x51   :  { %4505 = vmatmul.msk.bf16.vlgmr.msra.gmra.mxu0 %vm297_vm1, %v278_v7  ;;  %4506 = vmatmul.msk.bf16.vlgmr.msra.gmra.mxu1 %vm297_vm1, %v278_v7 }
  0x52   :  { %846 = vmatpush.bf16.msra.mxu0 %v5577_v6  ;;  %859 = vmatpush.bf16.msra.mxu1 %v5584_v17 }
  0x53   :  { %999 = vmatpush.bf16.msra.mxu3 %v5584_v17 }
  0x54   :  { %987 = vmatpush.bf16.msra.mxu2 %v5582_v16 }
  0x56   :  { %847 = vmatpush.bf16.msra.mxu0 %v5582_v16  ;;  %860 = vmatpush.bf16.msra.mxu1 %v5605_v43 }
  0x57   :  { %1000 = vmatpush.bf16.msra.mxu3 %v5605_v43 }
  0x58   :  { %988 = vmatpush.bf16.msra.mxu2 %v5595_v30 }
  0x5a   :  { %848 = vmatpush.bf16.msra.mxu0 %v5595_v30  ;;  %861 = vmatpush.bf16.msra.mxu1 %v5610_v46 }
  0x5b   :  { %1001 = vmatpush.bf16.msra.mxu3 %v5610_v46 }
  0x5c   :  { %989 = vmatpush.bf16.msra.mxu2 %v5616_v52 }
  0x5e   :  { %849 = vmatpush.bf16.msra.mxu0 %v5616_v52  ;;  %862 = vmatpush.bf16.msra.mxu1 %v5627_v62 }
  0x5f   :  { %1002 = vmatpush.bf16.msra.mxu3 %v5627_v62 }
  0xc4   :  { %v430_v9 = vpop.f32.mrf.mxu2  ;;  %v443_v13 = vpop.f32.mrf.mxu3 }
  0xcc   :  { %v432_v20 = vpop.f32.mrf.mxu2  ;;  %v445_v26 = vpop.f32.mrf.mxu3 }
  0xce   :  { %v310_v14 = vpop.f32.mrf.mxu0  ;;  %v324_v15 = vpop.f32.mrf.mxu1 }
  0xcf   :  { %v311_v18 = vadd.f32 %v310_v14, %v283_v11  ;;  %v325_v19 = vadd.f32 %v324_v15, %v284_v12 }
  0xd1   :  { %v333_v21 = vrot.slane %v325_v19, 6 }
  0xd3   :  { %v336_v22 = vsel %vm335_vm2, %v311_v18, %v333_v21  ;;  %v338_v23 = vsel %vm337_vm3, %v311_v18, %v333_v21  ;;  %v341_v24 = vsel %vm340_vm4, %v311_v18, %v333_v21  ;;  %v344_v25 = vsel %vm343_vm5, %v333_v21, %v311_v18 }
  0xd4   :  { %v339_v27 = vrot.slane %v338_v23, 2  ;;  %v342_v28 = vrot.slane %v341_v24, 4  ;;  %v345_v29 = vrot.slane %v344_v25, 6  ;;  %361 = vst [vmem:[#allocation2] sm:$0xf] %v336_v22 }
  0xd6   :  { %362 = vst [vmem:[#allocation2 + $0x4] sm:$0xf] %v339_v27  ;;  %v312_v32 = vpop.f32.mrf.mxu0  ;;  %v326_v33 = vpop.f32.mrf.mxu1 }
  0xd7   :  { %363 = vst [vmem:[#allocation2 + $0x8] sm:$0xf] %v342_v28  ;;  %v327_v34 = vadd.f32 %v326_v33, %v284_v12  ;;  %v313_v35 = vadd.f32 %v312_v32, %v283_v11 }
  0xd8   :  { %364 = vst [vmem:[#allocation2 + $0xc] sm:$0xf] %v345_v29 }
  0xd9   :  { %v334_v36 = vrot.slane %v327_v34, 6 }
  0xdb   :  { %v346_v37 = vsel %vm335_vm2, %v313_v35, %v334_v36  ;;  %v347_v38 = vsel %vm337_vm3, %v313_v35, %v334_v36  ;;  %v349_v39 = vsel %vm340_vm4, %v313_v35, %v334_v36  ;;  %v351_v40 = vsel %vm343_vm5, %v334_v36, %v313_v35  ;;  %v447_v41 = vld [vmem:[#allocation2] sm:$0xf] }
  0xdc   :  { %v348_v42 = vrot.slane %v347_v38, 2  ;;  %v350_v44 = vrot.slane %v349_v39, 4  ;;  %v352_v45 = vrot.slane %v351_v40, 6  ;;  %365 = vst [vmem:[#allocation2 + $0x10] sm:$0xf] %v346_v37  ;;  %v448_v47 = vadd.f32 %v447_v41, %v430_v9 }
  0xde   :  { %366 = vst [vmem:[#allocation2 + $0x14] sm:$0xf] %v348_v42  ;;  %4868 = vtanh.f32 %v448_v47  ;;  %v4539_v54 = vmul.f32 -1.442695, %v448_v47 }
  0xdf   :  { %367 = vst [vmem:[#allocation2 + $0x18] sm:$0xf] %v350_v44 }
  0xe0   :  { %368 = vst [vmem:[#allocation2 + $0x1c] sm:$0xf] %v352_v45 }
  0xe4   :  { %v4869_v48 = vpop.eup %4868 }
  0xe5   :  { %477 = vrot.lane.b32.xlu0 %v4869_v48, %s5397_s0 }
  0xe7   :  { %v450_v49 = vld [vmem:[#allocation2 + $0x1c] sm:$0xf] }
  0xe8   :  { %v452_v50 = vrot.slane %v450_v49, 2 }
  0xea   :  { %v454_v51 = vadd.f32 %v452_v50, %v443_v13  ;;  %v592_v50 = vld [vmem:[#allocation2 + $0x18] sm:$0xf] }
  0xec   :  { %4870 = vtanh.f32 %v454_v51  ;;  %v4540_v57 = vmul.f32 -1.442695, %v454_v51  ;;  %v594_v51 = vrot.slane %v592_v50, 2 }
  0xed   :  { %4872 = vpow2.f32 %v4539_v54  ;;  %v589_v54 = vld [vmem:[#allocation2 + $0x4] sm:$0xf] }
  0xf2   :  { %v4871_v53 = vpop.eup %4870 }
  0xf3   :  { %514 = vrot.lane.b32.xlu0 %v4871_v53, %s5397_s0  ;;  %v4873_v55 = vpop.eup %4872 }
  0xf4   :  { %v458_v56 = vadd.f32 1.0, %v4873_v55 }
  0xf6   :  { %4874 = vrcp.f32 %v458_v56  ;;  %v470_v4 = vand.u32 2147483648, %v458_v56  ;;  %vm464_vm7 = vweird.f32 %v458_v56  ;;  %v468_v5 = vand.u32 2147483647, %v458_v56 }
  0xf7   :  { %4876 = vpow2.f32 %v4540_v57 }
  0xf8   :  { %v471_v9 = vor.u32 1.1754944e-38, %v470_v4  ;;  %vm469_vm9 = vcmp.eq.f32.partialorder %v468_v5, 8.507059e+37 }
  0xfc   :  { %v4875_v58 = vpop.eup %4874 }
  0xfd   :  { %v4877_v59 = vpop.eup %4876  ;;  %v460_v60 = vmul.f32 %v4875_v58, %v458_v56  ;;  %vm465_vm6 = vweird.f32 %v4875_v58 }
  0xfe   :  { %v495_v61 = vadd.f32 1.0, %v4877_v59  ;;  %vm466_vm8 = vmor %vm464_vm7, %vm465_vm6 }
  0xff   :  { %v461_v63 = vsub.f32 1.0, %v460_v60 }
 0x100   :  { %4878 = vrcp.f32 %v495_v61  ;;  %v507_v19 = vand.u32 2147483648, %v495_v61  ;;  %vm501_vm11 = vweird.f32 %v495_v61  ;;  %v505_v20 = vand.u32 2147483647, %v495_v61 }
 0x101   :  { %v462_v0 = vmul.f32 %v4875_v58, %v461_v63 }
 0x102   :  { %v508_v22 = vor.u32 1.1754944e-38, %v507_v19  ;;  %vm506_vm13 = vcmp.eq.f32.partialorder %v505_v20, 8.507059e+37 }
 0x103   :  { %v463_v2 = vadd.f32 %v4875_v58, %v462_v0 }
 0x105   :  { %v467_v8 = vsel %vm466_vm8, %v4875_v58, %v463_v2 }
 0x106   :  { %v4879_v1 = vpop.eup %4878  ;;  %v472_v13 = vsel %vm469_vm9, %v471_v9, %v467_v8 }
 0x107   :  { %v497_v7 = vmul.f32 %v4879_v1, %v495_v61  ;;  %vm502_vm10 = vweird.f32 %v4879_v1  ;;  %v475_v26 = vmul.f32 0.0, %v472_v13 }
 0x108   :  { %vm503_vm12 = vmor %vm501_vm11, %vm502_vm10 }
 0x109   :  { %v498_v11 = vsub.f32 1.0, %v497_v7 }
 0x10b   :  { %v499_v15 = vmul.f32 %v4879_v1, %v498_v11 }
 0x10d   :  { %v500_v18 = vadd.f32 %v4879_v1, %v499_v15 }
 0x10f   :  { %v504_v21 = vsel %vm503_vm12, %v4879_v1, %v500_v18 }
 0x110   :  { %v509_v23 = vsel %vm506_vm13, %v508_v22, %v504_v21 }
 0x111   :  { %v512_v32 = vmul.f32 0.0, %v509_v23 }
 0x157   :  { %v478_v12 = vpop.permute.xlu0 %477 }
 0x158   :  { %v480_v14 = vmul.f32 %v478_v12, %v472_v13 }
 0x15a   :  { %482 = vrot.lane.b32.xlu1 %v480_v14, %s5407_s25 }
 0x165   :  { %v515_v24 = vpop.permute.xlu0 %514 }
 0x166   :  { %v517_v25 = vmul.f32 %v515_v24, %v509_v23 }
 0x168   :  { %519 = vrot.lane.b32.xlu1 %v517_v25, %s5407_s25 }
 0x1cc   :  { %v483_v27 = vpop.permute.xlu1 %482 }
 0x1cd   :  { %v5678_v28 = vadd.f32 %v483_v27, %v475_v26 }
 0x1cf   :  { %4880 = vtanh.f32 %v5678_v28 }
 0x1d5   :  { %v4881_v29 = vpop.eup %4880 }
 0x1d6   :  { %488 = vrot.lane.b32.xlu2 %v4881_v29, %s5397_s0 }
 0x1da   :  { %v520_v33 = vpop.permute.xlu1 %519 }
 0x1db   :  { %v5682_v34 = vadd.f32 %v520_v33, %v512_v32 }
 0x1dd   :  { %4882 = vtanh.f32 %v5682_v34 }
 0x1e3   :  { %v4883_v35 = vpop.eup %4882 }
 0x1e4   :  { %525 = vrot.lane.b32.xlu2 %v4883_v35, %s5397_s0 }
 0x230   :  { %v489_v36 = vpop.permute.xlu2 %488 }
 0x231   :  { %v491_v37 = vmul.f32 %v489_v36, %v472_v13 }
 0x233   :  { %530 = vst [vmem:[#allocation1] ss:$4 sm:$0xff] %v491_v37 }
 0x23a   :  { %v5686_v40 = vld.sshfl [vmem:[#allocation1] sm:$0xff pattern:$0x73625140] }
 0x23e   :  { %v526_v38 = vpop.permute.xlu2 %525 }
 0x23f   :  { %v528_v39 = vmul.f32 %v526_v38, %v509_v23 }
 0x241   :  { %538 = vst [vmem:[#allocation1] ss:$4 sm:$0xff] %v528_v39 }
 0x248   :  { %v5688_v41 = vld.sshfl [vmem:[#allocation1] sm:$0xff pattern:$0x73625140] }
 0x249   :  { %546 = vst [vmem:[#allocation1] ss:$4 sm:$0xff] %v491_v37 }
 0x250   :  { %v547_v42 = vld.sshfl [vmem:[#allocation1] sm:$0xff pattern:$0x73625140] }
 0x251   :  { %551 = vst [vmem:[#allocation1] ss:$4 sm:$0xff] %v528_v39  ;;  %548 = vrot.lane.b32.xlu0 %v547_v42, %s5407_s25 }
 0x258   :  { %v552_v44 = vld.sshfl [vmem:[#allocation1] sm:$0xff pattern:$0x73625140] }
 0x259   :  { %553 = vrot.lane.b32.xlu1 %v552_v44, %s5397_s0 }
 0x2c3   :  { %v549_v45 = vpop.permute.xlu0 %548 }
 0x2cb   :  { %v554_v47 = vpop.permute.xlu1 %553 }
 0x2cc   :  { %v557_v48 = vsel %vm556_vm14, %v549_v45, %v554_v47 }
 0x2cd   :  { %v558_v49 = vpack.c.bf16 %v557_v48, %v557_v48 }
 0x2cf   :  { %4541 = vmatmul.msk.bf16.vlgmr.msrb.gmra.mxu0 %vm417_vm15, %v558_v49  ;;  %4542 = vmatmul.msk.bf16.vlgmr.msrb.gmra.mxu1 %vm417_vm15, %v558_v49 }
 0x2d0   :  { %1122 = vmatpush.bf16.msrb.mxu0 %v5577_v6  ;;  %1135 = vmatpush.bf16.msrb.mxu1 %v5584_v17 }
 0x2d4   :  { %1123 = vmatpush.bf16.msrb.mxu0 %v5582_v16  ;;  %1136 = vmatpush.bf16.msrb.mxu1 %v5605_v43 }
 0x2d8   :  { %1124 = vmatpush.bf16.msrb.mxu0 %v5595_v30  ;;  %1137 = vmatpush.bf16.msrb.mxu1 %v5610_v46 }
 0x2dc   :  { %1125 = vmatpush.bf16.msrb.mxu0 %v5616_v52  ;;  %1138 = vmatpush.bf16.msrb.mxu1 %v5627_v62 }
 0x34c   :  { %v571_v53 = vpop.f32.mrf.mxu0  ;;  %v584_v55 = vpop.f32.mrf.mxu1 }
 0x34d   :  { %v590_v56 = vadd.f32 %v589_v54, %v571_v53  ;;  %v596_v57 = vadd.f32 %v594_v51, %v584_v55 }
 0x34f   :  { %4884 = vtanh.f32 %v590_v56  ;;  %v4543_v63 = vmul.f32 -1.442695, %v590_v56  ;;  %v4544_v4 = vmul.f32 -1.442695, %v596_v57 }
 0x350   :  { %4886 = vtanh.f32 %v596_v57 }
 0x351   :  { %4888 = vpow2.f32 %v4543_v63 }
 0x354   :  { %v573_v58 = vpop.f32.mrf.mxu0  ;;  %v586_v59 = vpop.f32.mrf.mxu1 }
 0x355   :  { %v4885_v60 = vpop.eup %4884 }
 0x356   :  { %v4887_v61 = vpop.eup %4886  ;;  %619 = vrot.lane.b32.xlu2 %v4885_v60, %s5397_s0 }
 0x357   :  { %656 = vrot.lane.b32.xlu0 %v4887_v61, %s5397_s0  ;;  %v4889_v0 = vpop.eup %4888  ;;  %v732_v61 = vld [vmem:[#allocation2 + $0x14] sm:$0xf] }
 0x358   :  { %v600_v1 = vadd.f32 1.0, %v4889_v0  ;;  %v734_v63 = vrot.slane %v732_v61, 2 }
 0x35a   :  { %4890 = vrcp.f32 %v600_v1  ;;  %v612_v13 = vand.u32 2147483648, %v600_v1  ;;  %vm606_vm6 = vweird.f32 %v600_v1  ;;  %v610_v14 = vand.u32 2147483647, %v600_v1 }
 0x35b   :  { %4892 = vpow2.f32 %v4544_v4 }
 0x35c   :  { %v613_v18 = vor.u32 1.1754944e-38, %v612_v13  ;;  %vm611_vm8 = vcmp.eq.f32.partialorder %v610_v14, 8.507059e+37 }
 0x360   :  { %v4891_v2 = vpop.eup %4890 }
 0x361   :  { %v602_v5 = vmul.f32 %v4891_v2, %v600_v1  ;;  %v4893_v9 = vpop.eup %4892  ;;  %vm607_vm1 = vweird.f32 %v4891_v2  ;;  %v729_v1 = vld [vmem:[#allocation2 + $0x8] sm:$0xf] }
 0x362   :  { %v637_v11 = vadd.f32 1.0, %v4893_v9  ;;  %vm608_vm7 = vmor %vm606_vm6, %vm607_vm1 }
 0x363   :  { %v603_v7 = vsub.f32 1.0, %v602_v5 }
 0x364   :  { %4894 = vrcp.f32 %v637_v11  ;;  %v649_v27 = vand.u32 2147483648, %v637_v11  ;;  %vm643_vm10 = vweird.f32 %v637_v11  ;;  %v647_v29 = vand.u32 2147483647, %v637_v11 }
 0x365   :  { %v604_v8 = vmul.f32 %v4891_v2, %v603_v7 }
 0x366   :  { %v650_v33 = vor.u32 1.1754944e-38, %v649_v27  ;;  %vm648_vm12 = vcmp.eq.f32.partialorder %v647_v29, 8.507059e+37 }
 0x367   :  { %v605_v12 = vadd.f32 %v4891_v2, %v604_v8 }
 0x369   :  { %v609_v15 = vsel %vm608_vm7, %v4891_v2, %v605_v12 }
 0x36a   :  { %v614_v20 = vsel %vm611_vm8, %v613_v18, %v609_v15  ;;  %v4895_v22 = vpop.eup %4894 }
 0x36b   :  { %v639_v23 = vmul.f32 %v4895_v22, %v637_v11  ;;  %vm644_vm9 = vweird.f32 %v4895_v22  ;;  %v617_v38 = vmul.f32 %v614_v20, %v5678_v28 }
 0x36c   :  { %vm645_vm11 = vmor %vm643_vm10, %vm644_vm9 }
 0x36d   :  { %v640_v24 = vsub.f32 1.0, %v639_v23 }
 0x36f   :  { %v641_v25 = vmul.f32 %v4895_v22, %v640_v24 }
 0x371   :  { %v642_v26 = vadd.f32 %v4895_v22, %v641_v25 }
 0x373   :  { %v646_v32 = vsel %vm645_vm11, %v4895_v22, %v642_v26 }
 0x374   :  { %v651_v36 = vsel %vm648_vm12, %v650_v33, %v646_v32 }
 0x375   :  { %v654_v39 = vmul.f32 %v651_v36, %v5682_v34 }
 0x3b0   :  { %v620_v19 = vpop.permute.xlu2 %619 }
 0x3b1   :  { %v622_v21 = vmul.f32 %v620_v19, %v614_v20 }
 0x3b3   :  { %624 = vrot.lane.b32.xlu1 %v622_v21, %s5407_s25 }
 0x3c9   :  { %v657_v35 = vpop.permute.xlu0 %656 }
 0x3ca   :  { %v659_v37 = vmul.f32 %v657_v35, %v651_v36 }
 0x3cc   :  { %661 = vrot.lane.b32.xlu2 %v659_v37, %s5407_s25 }
 0x425   :  { %v625_v42 = vpop.permute.xlu1 %624 }
 0x426   :  { %v662_v44 = vpop.permute.xlu2 %661  ;;  %v5709_v45 = vadd.f32 %v625_v42, %v617_v38 }
 0x427   :  { %v5711_v47 = vadd.f32 %v662_v44, %v654_v39 }
 0x428   :  { %4896 = vtanh.f32 %v5709_v45 }
 0x429   :  { %4898 = vtanh.f32 %v5711_v47 }
 0x42e   :  { %v4897_v48 = vpop.eup %4896 }
 0x42f   :  { %v4899_v49 = vpop.eup %4898  ;;  %630 = vrot.lane.b32.xlu0 %v4897_v48, %s5397_s0 }
 0x430   :  { %667 = vrot.lane.b32.xlu1 %v4899_v49, %s5397_s0 }
 0x4a1   :  { %v631_v50 = vpop.permute.xlu0 %630 }
 0x4a2   :  { %v633_v28 = vmul.f32 %v631_v50, %v614_v20  ;;  %v668_v34 = vpop.permute.xlu1 %667 }
 0x4a3   :  { %v670_v51 = vmul.f32 %v668_v34, %v651_v36 }
 0x4a4   :  { %672 = vst [vmem:[#allocation1] ss:$4 sm:$0xff] %v633_v28 }
 0x4ab   :  { %v5717_v53 = vld.sshfl [vmem:[#allocation1] sm:$0xff pattern:$0x73625140] }
 0x4ac   :  { %680 = vst [vmem:[#allocation1] ss:$4 sm:$0xff] %v670_v51 }
 0x4b3   :  { %v5719_v54 = vld.sshfl [vmem:[#allocation1] sm:$0xff pattern:$0x73625140] }
 0x4b4   :  { %687 = vst [vmem:[#allocation1] ss:$4 sm:$0xff] %v633_v28 }
 0x4bb   :  { %v688_v55 = vld.sshfl [vmem:[#allocation1] sm:$0xff pattern:$0x73625140] }
 0x4bc   :  { %692 = vst [vmem:[#allocation1] ss:$4 sm:$0xff] %v670_v51  ;;  %689 = vrot.lane.b32.xlu2 %v688_v55, %s5407_s25 }
 0x4c3   :  { %v693_v56 = vld.sshfl [vmem:[#allocation1] sm:$0xff pattern:$0x73625140] }
 0x4c4   :  { %694 = vrot.lane.b32.xlu0 %v693_v56, %s5397_s0 }
 0x516   :  { %v690_v57 = vpop.permute.xlu2 %689 }
 0x536   :  { %v695_v58 = vpop.permute.xlu0 %694 }
 0x537   :  { %v697_v59 = vsel %vm556_vm14, %v690_v57, %v695_v58 }
 0x538   :  { %v698_v60 = vpack.c.bf16 %v697_v59, %v697_v59 }
 0x53a   :  { %4545 = vmatmul.msk.bf16.vlgmr.msrb.gmra.mxu2 %vm417_vm15, %v698_v60  ;;  %4546 = vmatmul.msk.bf16.vlgmr.msrb.gmra.mxu3 %vm417_vm15, %v698_v60 }
 0x53b   :  { %1258 = vmatpush.bf16.msrb.mxu2 %v5577_v6  ;;  %1271 = vmatpush.bf16.msrb.mxu3 %v5584_v17 }
 0x53f   :  { %1259 = vmatpush.bf16.msrb.mxu2 %v5582_v16  ;;  %1272 = vmatpush.bf16.msrb.mxu3 %v5605_v43 }
 0x543   :  { %1260 = vmatpush.bf16.msrb.mxu2 %v5595_v30  ;;  %1273 = vmatpush.bf16.msrb.mxu3 %v5610_v46 }
 0x547   :  { %1261 = vmatpush.bf16.msrb.mxu2 %v5616_v52  ;;  %1274 = vmatpush.bf16.msrb.mxu3 %v5627_v62 }
 0x5bd   :  { %v711_v0 = vpop.f32.mrf.mxu2  ;;  %v724_v2 = vpop.f32.mrf.mxu3 }
 0x5be   :  { %v730_v4 = vadd.f32 %v729_v1, %v711_v0  ;;  %v736_v5 = vadd.f32 %v734_v63, %v724_v2 }
 0x5c0   :  { %4900 = vtanh.f32 %v730_v4  ;;  %v4548_v12 = vmul.f32 -1.442695, %v736_v5  ;;  %v4547_v18 = vmul.f32 -1.442695, %v730_v4 }
 0x5c1   :  { %4902 = vtanh.f32 %v736_v5 }
 0x5c2   :  { %4904 = vpow2.f32 %v4548_v12 }
 0x5c5   :  { %v713_v7 = vpop.f32.mrf.mxu2  ;;  %v726_v8 = vpop.f32.mrf.mxu3 }
 0x5c6   :  { %v4901_v9 = vpop.eup %4900 }
 0x5c7   :  { %v4903_v11 = vpop.eup %4902  ;;  %759 = vrot.lane.b32.xlu1 %v4901_v9, %s5397_s0 }
 0x5c8   :  { %796 = vrot.lane.b32.xlu2 %v4903_v11, %s5397_s0  ;;  %v4905_v13 = vpop.eup %4904 }
 0x5c9   :  { %v777_v14 = vadd.f32 1.0, %v4905_v13  ;;  %v872_v13 = vld [vmem:[#allocation2 + $0x10] sm:$0xf] }
 0x5cb   :  { %4906 = vrcp.f32 %v777_v14  ;;  %v789_v25 = vand.u32 2147483648, %v777_v14  ;;  %vm783_vm1 = vweird.f32 %v777_v14  ;;  %v787_v26 = vand.u32 2147483647, %v777_v14 }
 0x5cc   :  { %4908 = vpow2.f32 %v4547_v18  ;;  %v869_v18 = vld [vmem:[#allocation2 + $0xc] sm:$0xf] }
 0x5cd   :  { %v790_v29 = vor.u32 1.1754944e-38, %v789_v25  ;;  %vm788_vm7 = vcmp.eq.f32.partialorder %v787_v26, 8.507059e+37 }
 0x5d1   :  { %v4907_v15 = vpop.eup %4906 }
 0x5d2   :  { %v779_v19 = vmul.f32 %v4907_v15, %v777_v14  ;;  %v4909_v21 = vpop.eup %4908  ;;  %vm784_vm13 = vweird.f32 %v4907_v15  ;;  %v874_v14 = vrot.slane %v872_v13, 2 }
 0x5d3   :  { %v740_v23 = vadd.f32 1.0, %v4909_v21  ;;  %vm785_vm6 = vmor %vm783_vm1, %vm784_vm13 }
 0x5d4   :  { %v780_v20 = vsub.f32 1.0, %v779_v19 }
 0x5d5   :  { %4910 = vrcp.f32 %v740_v23  ;;  %v752_v44 = vand.u32 2147483648, %v740_v23  ;;  %vm746_vm9 = vweird.f32 %v740_v23  ;;  %v750_v48 = vand.u32 2147483647, %v740_v23 }
 0x5d6   :  { %v781_v22 = vmul.f32 %v4907_v15, %v780_v20 }
 0x5d7   :  { %v753_v50 = vor.u32 1.1754944e-38, %v752_v44  ;;  %vm751_vm11 = vcmp.eq.f32.partialorder %v750_v48, 8.507059e+37 }
 0x5d8   :  { %v782_v24 = vadd.f32 %v4907_v15, %v781_v22 }
 0x5da   :  { %v786_v27 = vsel %vm785_vm6, %v4907_v15, %v782_v24 }
 0x5db   :  { %v791_v33 = vsel %vm788_vm7, %v790_v29, %v786_v27  ;;  %v4911_v35 = vpop.eup %4910 }
 0x5dc   :  { %v742_v37 = vmul.f32 %v4911_v35, %v740_v23  ;;  %vm747_vm8 = vweird.f32 %v4911_v35  ;;  %v794_v55 = vmul.f32 %v791_v33, %v5711_v47 }
 0x5dd   :  { %vm748_vm10 = vmor %vm746_vm9, %vm747_vm8 }
 0x5de   :  { %v743_v38 = vsub.f32 1.0, %v742_v37 }
 0x5e0   :  { %v744_v39 = vmul.f32 %v4911_v35, %v743_v38 }
 0x5e2   :  { %v745_v42 = vadd.f32 %v4911_v35, %v744_v39 }
 0x5e4   :  { %v749_v49 = vsel %vm748_vm10, %v4911_v35, %v745_v42 }
 0x5e5   :  { %v754_v34 = vsel %vm751_vm11, %v753_v50, %v749_v49 }
 0x5e6   :  { %v757_v59 = vmul.f32 %v754_v34, %v5709_v45 }
 0x622   :  { %v797_v32 = vpop.permute.xlu2 %796 }
 0x623   :  { %v799_v36 = vmul.f32 %v797_v32, %v791_v33 }
 0x625   :  { %801 = vrot.lane.b32.xlu1 %v799_v36, %s5407_s25 }
 0x639   :  { %v760_v28 = vpop.permute.xlu1 %759 }
 0x63a   :  { %v762_v51 = vmul.f32 %v760_v28, %v754_v34 }
 0x63c   :  { %764 = vrot.lane.b32.xlu0 %v762_v51, %s5407_s25 }
 0x697   :  { %v802_v56 = vpop.permute.xlu1 %801 }
 0x698   :  { %v5739_v57 = vadd.f32 %v802_v56, %v794_v55 }
 0x69a   :  { %4912 = vtanh.f32 %v5739_v57 }
 0x6a0   :  { %v4913_v58 = vpop.eup %4912 }
 0x6a1   :  { %807 = vrot.lane.b32.xlu0 %v4913_v58, %s5397_s0 }
 0x6ae   :  { %v765_v60 = vpop.permute.xlu0 %764 }
 0x6af   :  { %v5744_v61 = vadd.f32 %v765_v60, %v757_v59 }
 0x6b1   :  { %4914 = vtanh.f32 %v5744_v61 }
 0x6b7   :  { %v4915_v63 = vpop.eup %4914 }
 0x6b8   :  { %770 = vrot.lane.b32.xlu2 %v4915_v63, %s5397_s0 }
 0x712   :  { %v771_v0 = vpop.permute.xlu2 %770 }
 0x713   :  { %v773_v47 = vmul.f32 %v771_v0, %v754_v34  ;;  %v808_v1 = vpop.permute.xlu0 %807 }
 0x714   :  { %v810_v2 = vmul.f32 %v808_v1, %v791_v33 }
 0x715   :  { %812 = vst [vmem:[#allocation1] ss:$4 sm:$0xff] %v773_v47 }
 0x71c   :  { %v5748_v4 = vld.sshfl [vmem:[#allocation1] sm:$0xff pattern:$0x73625140] }
 0x71d   :  { %820 = vst [vmem:[#allocation1] ss:$4 sm:$0xff] %v810_v2 }
 0x724   :  { %v5750_v5 = vld.sshfl [vmem:[#allocation1] sm:$0xff pattern:$0x73625140] }
 0x725   :  { %827 = vst [vmem:[#allocation1] ss:$4 sm:$0xff] %v773_v47 }
 0x72c   :  { %v828_v45 = vld.sshfl [vmem:[#allocation1] sm:$0xff pattern:$0x73625140] }
 0x72d   :  { %832 = vst [vmem:[#allocation1] ss:$4 sm:$0xff] %v810_v2  ;;  %829 = vrot.lane.b32.xlu1 %v828_v45, %s5407_s25 }
 0x734   :  { %v833_v7 = vld.sshfl [vmem:[#allocation1] sm:$0xff pattern:$0x73625140] }
 0x735   :  { %834 = vrot.lane.b32.xlu2 %v833_v7, %s5397_s0 }
 0x78f   :  { %v835_v8 = vpop.permute.xlu2 %834 }
 0x79f   :  { %v830_v9 = vpop.permute.xlu1 %829 }
 0x7a0   :  { %v837_v11 = vsel %vm556_vm14, %v830_v9, %v835_v8 }
 0x7a1   :  { %v838_v12 = vpack.c.bf16 %v837_v11, %v837_v11 }
 0x7a3   :  { %4549 = vmatmul.msk.bf16.vlgmr.msra.gmra.mxu0 %vm417_vm15, %v838_v12  ;;  %4550 = vmatmul.msk.bf16.vlgmr.msra.gmra.mxu1 %vm417_vm15, %v838_v12 }
 0x7a4   :  { %1394 = vmatpush.bf16.msra.mxu0 %v5577_v6  ;;  %1407 = vmatpush.bf16.msra.mxu1 %v5584_v17 }
 0x7a8   :  { %1395 = vmatpush.bf16.msra.mxu0 %v5582_v16  ;;  %1408 = vmatpush.bf16.msra.mxu1 %v5605_v43 }
 0x7ac   :  { %1396 = vmatpush.bf16.msra.mxu0 %v5595_v30  ;;  %1409 = vmatpush.bf16.msra.mxu1 %v5610_v46 }
 0x7b0   :  { %1397 = vmatpush.bf16.msra.mxu0 %v5616_v52  ;;  %1410 = vmatpush.bf16.msra.mxu1 %v5627_v62 }
 0x820   :  { %v851_v15 = vpop.f32.mrf.mxu0  ;;  %v864_v19 = vpop.f32.mrf.mxu1 }
 0x821   :  { %v870_v6 = vadd.f32 %v869_v18, %v851_v15  ;;  %v876_v20 = vadd.f32 %v874_v14, %v864_v19 }
 0x823   :  { %4916 = vtanh.f32 %v870_v6  ;;  %v4551_v30 = vmul.f32 -1.442695, %v870_v6  ;;  %v4552_v46 = vmul.f32 -1.442695, %v876_v20 }
 0x824   :  { %4918 = vtanh.f32 %v876_v20  ;;  %v1010_v20 = vld [vmem:[#allocation2 + $0xc] sm:$0xf] }
 0x825   :  { %4920 = vpow2.f32 %v4551_v30 }
 0x826   :  { %4922 = vpow2.f32 %v4552_v46 }
 0x828   :  { %v853_v16 = vpop.f32.mrf.mxu0  ;;  %v866_v17 = vpop.f32.mrf.mxu1 }
 0x829   :  { %v4917_v43 = vpop.eup %4916  ;;  %v1012_v16 = vrot.slane %v1010_v20, 2 }
 0x82a   :  { %v4919_v21 = vpop.eup %4918  ;;  %899 = vrot.lane.b32.xlu0 %v4917_v43, %s5397_s0  ;;  %v1008_v43 = vld [vmem:[#allocation2 + $0x10] sm:$0xf] }
 0x82b   :  { %936 = vrot.lane.b32.xlu1 %v4919_v21, %s5397_s0  ;;  %v4921_v52 = vpop.eup %4920 }
 0x82c   :  { %v4923_v62 = vpop.eup %4922  ;;  %v880_v22 = vadd.f32 1.0, %v4921_v52 }
 0x82d   :  { %v917_v23 = vadd.f32 1.0, %v4923_v62 }
 0x82e   :  { %4924 = vrcp.f32 %v880_v22  ;;  %v892_v38 = vand.u32 2147483648, %v880_v22  ;;  %vm886_vm1 = vweird.f32 %v880_v22  ;;  %v890_v42 = vand.u32 2147483647, %v880_v22 }
 0x82f   :  { %4926 = vrcp.f32 %v917_v23  ;;  %v929_v39 = vand.u32 2147483648, %v917_v23  ;;  %vm923_vm6 = vweird.f32 %v917_v23  ;;  %v927_v44 = vand.u32 2147483647, %v917_v23 }
 0x830   :  { %v893_v50 = vor.u32 1.1754944e-38, %v892_v38  ;;  %vm891_vm9 = vcmp.eq.f32.partialorder %v890_v42, 8.507059e+37 }
 0x831   :  { %v930_v28 = vor.u32 1.1754944e-38, %v929_v39  ;;  %vm928_vm10 = vcmp.eq.f32.partialorder %v927_v44, 8.507059e+37 }
 0x834   :  { %v4925_v24 = vpop.eup %4924 }
 0x835   :  { %v4927_v25 = vpop.eup %4926  ;;  %v882_v26 = vmul.f32 %v4925_v24, %v880_v22  ;;  %vm887_vm12 = vweird.f32 %v4925_v24 }
 0x836   :  { %v919_v27 = vmul.f32 %v4927_v25, %v917_v23  ;;  %vm924_vm13 = vweird.f32 %v4927_v25  ;;  %vm888_vm7 = vmor %vm886_vm1, %vm887_vm12 }
 0x837   :  { %v883_v29 = vsub.f32 1.0, %v882_v26  ;;  %vm925_vm8 = vmor %vm923_vm6, %vm924_vm13 }
 0x838   :  { %v920_v32 = vsub.f32 1.0, %v919_v27 }
 0x839   :  { %v884_v33 = vmul.f32 %v4925_v24, %v883_v29 }
 0x83a   :  { %v921_v35 = vmul.f32 %v4927_v25, %v920_v32 }
 0x83b   :  { %v885_v36 = vadd.f32 %v4925_v24, %v884_v33 }
 0x83c   :  { %v922_v37 = vadd.f32 %v4927_v25, %v921_v35 }
 0x83d   :  { %v889_v48 = vsel %vm888_vm7, %v4925_v24, %v885_v36 }
 0x83e   :  { %v926_v49 = vsel %vm925_vm8, %v4927_v25, %v922_v37  ;;  %v894_v51 = vsel %vm891_vm9, %v893_v50, %v889_v48 }
 0x83f   :  { %v931_v56 = vsel %vm928_vm10, %v930_v28, %v926_v49  ;;  %v897_v60 = vmul.f32 %v894_v51, %v5744_v61 }
 0x840   :  { %v934_v1 = vmul.f32 %v931_v56, %v5739_v57 }
 0x89c   :  { %v900_v34 = vpop.permute.xlu0 %899 }
 0x89d   :  { %v937_v55 = vpop.permute.xlu1 %936  ;;  %v902_v58 = vmul.f32 %v900_v34, %v894_v51 }
 0x89e   :  { %v939_v59 = vmul.f32 %v937_v55, %v931_v56 }
 0x89f   :  { %904 = vrot.lane.b32.xlu2 %v902_v58, %s5407_s25 }
 0x8a0   :  { %941 = vrot.lane.b32.xlu0 %v939_v59, %s5407_s25 }
 0x8f9   :  { %v905_v63 = vpop.permute.xlu2 %904 }
 0x8fa   :  { %v5770_v0 = vadd.f32 %v905_v63, %v897_v60 }
 0x8fc   :  { %4928 = vtanh.f32 %v5770_v0 }
 0x902   :  { %v4929_v47 = vpop.eup %4928 }
 0x903   :  { %910 = vrot.lane.b32.xlu1 %v4929_v47, %s5397_s0 }
 0x912   :  { %v942_v2 = vpop.permute.xlu0 %941 }
 0x913   :  { %v5775_v45 = vadd.f32 %v942_v2, %v934_v1 }
 0x915   :  { %4930 = vtanh.f32 %v5775_v45 }
 0x91b   :  { %v4931_v7 = vpop.eup %4930 }
 0x91c   :  { %947 = vrot.lane.b32.xlu2 %v4931_v7, %s5397_s0 }
 0x975   :  { %v911_v8 = vpop.permute.xlu1 %910 }
 0x976   :  { %v913_v61 = vmul.f32 %v911_v8, %v894_v51  ;;  %v948_v9 = vpop.permute.xlu2 %947 }
 0x977   :  { %v950_v11 = vmul.f32 %v948_v9, %v931_v56 }
 0x978   :  { %952 = vst [vmem:[#allocation1] ss:$4 sm:$0xff] %v913_v61 }
 0x97f   :  { %v5779_v12 = vld.sshfl [vmem:[#allocation1] sm:$0xff pattern:$0x73625140] }
 0x980   :  { %960 = vst [vmem:[#allocation1] ss:$4 sm:$0xff] %v950_v11 }
 0x987   :  { %v5781_v13 = vld.sshfl [vmem:[#allocation1] sm:$0xff pattern:$0x73625140] }
 0x988   :  { %967 = vst [vmem:[#allocation1] ss:$4 sm:$0xff] %v913_v61 }
 0x98f   :  { %v968_v57 = vld.sshfl [vmem:[#allocation1] sm:$0xff pattern:$0x73625140] }
 0x990   :  { %972 = vst [vmem:[#allocation1] ss:$4 sm:$0xff] %v950_v11  ;;  %969 = vrot.lane.b32.xlu0 %v968_v57, %s5407_s25 }
 0x997   :  { %v973_v14 = vld.sshfl [vmem:[#allocation1] sm:$0xff pattern:$0x73625140] }
 0x998   :  { %974 = vrot.lane.b32.xlu1 %v973_v14, %s5397_s0 }
 0xa02   :  { %v970_v15 = vpop.permute.xlu0 %969 }
 0xa0a   :  { %v975_v18 = vpop.permute.xlu1 %974 }
 0xa0b   :  { %v977_v19 = vsel %vm556_vm14, %v970_v15, %v975_v18 }
 0xa0c   :  { %v978_v6 = vpack.c.bf16 %v977_v19, %v977_v19 }
 0xa0e   :  { %4553 = vmatmul.msk.bf16.vlgmr.msra.gmra.mxu2 %vm417_vm15, %v978_v6  ;;  %4554 = vmatmul.msk.bf16.vlgmr.msra.gmra.mxu3 %vm417_vm15, %v978_v6 }
 0xa91   :  { %v991_v17 = vpop.f32.mrf.mxu2  ;;  %v1004_v21 = vpop.f32.mrf.mxu3 }
 0xa92   :  { %v1009_v30 = vadd.f32 %v1008_v43, %v991_v17  ;;  %v1014_v46 = vadd.f32 %v1012_v16, %v1004_v21 }
 0xa94   :  { %4932 = vtanh.f32 %v1009_v30  ;;  %v4555_v24 = vmul.f32 -1.442695, %v1009_v30  ;;  %v4556_v29 = vmul.f32 -1.442695, %v1014_v46 }
 0xa95   :  { %4934 = vtanh.f32 %v1014_v46 }
 0xa96   :  { %4936 = vpow2.f32 %v4555_v24  ;;  %v1144_v24 = vld [vmem:[#allocation2 + $0x14] sm:$0xf] }
 0xa99   :  { %v993_v52 = vpop.f32.mrf.mxu2  ;;  %v1006_v62 = vpop.f32.mrf.mxu3 }
 0xa9a   :  { %v4933_v22 = vpop.eup %4932  ;;  %v1146_v62 = vld [vmem:[#allocation2 + $0x8] sm:$0xf] }
 0xa9b   :  { %v4935_v23 = vpop.eup %4934  ;;  %1037 = vrot.lane.b32.xlu2 %v4933_v22, %s5397_s0  ;;  %v1148_v22 = vrot.slane %v1146_v62, 2 }
 0xa9c   :  { %1074 = vrot.lane.b32.xlu0 %v4935_v23, %s5397_s0  ;;  %v4937_v25 = vpop.eup %4936 }
 0xa9d   :  { %v1018_v26 = vadd.f32 1.0, %v4937_v25 }
 0xa9f   :  { %4938 = vrcp.f32 %v1018_v26  ;;  %v1030_v39 = vand.u32 2147483648, %v1018_v26  ;;  %vm1024_vm12 = vweird.f32 %v1018_v26  ;;  %v1028_v42 = vand.u32 2147483647, %v1018_v26 }
 0xaa0   :  { %4940 = vpow2.f32 %v4556_v29 }
 0xaa1   :  { %v1031_v48 = vor.u32 1.1754944e-38, %v1030_v39  ;;  %vm1029_vm1 = vcmp.eq.f32.partialorder %v1028_v42, 8.507059e+37 }
 0xaa5   :  { %v4939_v27 = vpop.eup %4938 }
 0xaa6   :  { %v1020_v32 = vmul.f32 %v4939_v27, %v1018_v26  ;;  %v4941_v36 = vpop.eup %4940  ;;  %vm1025_vm11 = vweird.f32 %v4939_v27 }
 0xaa7   :  { %v1055_v37 = vadd.f32 1.0, %v4941_v36  ;;  %vm1026_vm13 = vmor %vm1024_vm12, %vm1025_vm11 }
 0xaa8   :  { %v1021_v33 = vsub.f32 1.0, %v1020_v32 }
 0xaa9   :  { %4942 = vrcp.f32 %v1055_v37  ;;  %v1067_v59 = vand.u32 2147483648, %v1055_v37  ;;  %vm1061_vm7 = vweird.f32 %v1055_v37  ;;  %v1065_v60 = vand.u32 2147483647, %v1055_v37 }
 0xaaa   :  { %v1022_v35 = vmul.f32 %v4939_v27, %v1021_v33 }
 0xaab   :  { %v1068_v47 = vor.u32 1.1754944e-38, %v1067_v59  ;;  %vm1066_vm9 = vcmp.eq.f32.partialorder %v1065_v60, 8.507059e+37 }
 0xaac   :  { %v1023_v38 = vadd.f32 %v4939_v27, %v1022_v35 }
 0xaae   :  { %v1027_v44 = vsel %vm1026_vm13, %v4939_v27, %v1023_v38 }
 0xaaf   :  { %v1032_v50 = vsel %vm1029_vm1, %v1031_v48, %v1027_v44  ;;  %v4943_v34 = vpop.eup %4942 }
 0xab0   :  { %v1057_v51 = vmul.f32 %v4943_v34, %v1055_v37  ;;  %vm1062_vm6 = vweird.f32 %v4943_v34  ;;  %v1035_v8 = vmul.f32 %v1032_v50, %v5770_v0 }
 0xab1   :  { %vm1063_vm8 = vmor %vm1061_vm7, %vm1062_vm6 }
 0xab2   :  { %v1058_v55 = vsub.f32 1.0, %v1057_v51 }
 0xab4   :  { %v1059_v56 = vmul.f32 %v4943_v34, %v1058_v55 }
 0xab6   :  { %v1060_v58 = vadd.f32 %v4943_v34, %v1059_v56 }
 0xab8   :  { %v1064_v63 = vsel %vm1063_vm8, %v4943_v34, %v1060_v58 }
 0xab9   :  { %v1069_v2 = vsel %vm1066_vm9, %v1068_v47, %v1064_v63 }
 0xaba   :  { %v1072_v61 = vmul.f32 %v1069_v2, %v5775_v45 }
 0xaf5   :  { %v1038_v49 = vpop.permute.xlu2 %1037 }
 0xaf6   :  { %v1040_v28 = vmul.f32 %v1038_v49, %v1032_v50 }
 0xaf8   :  { %1042 = vrot.lane.b32.xlu1 %v1040_v28, %s5407_s25 }
 0xb0e   :  { %v1075_v1 = vpop.permute.xlu0 %1074 }
 0xb0f   :  { %v1077_v7 = vmul.f32 %v1075_v1, %v1069_v2 }
 0xb11   :  { %1079 = vrot.lane.b32.xlu2 %v1077_v7, %s5407_s25 }
 0xb6a   :  { %v1043_v9 = vpop.permute.xlu1 %1042 }
 0xb6b   :  { %v1080_v11 = vpop.permute.xlu2 %1079  ;;  %v5794_v57 = vadd.f32 %v1043_v9, %v1035_v8 }
 0xb6c   :  { %v5796_v14 = vadd.f32 %v1080_v11, %v1072_v61 }
 0xb6d   :  { %4944 = vtanh.f32 %v5794_v57 }
 0xb6e   :  { %4946 = vtanh.f32 %v5796_v14 }
 0xb73   :  { %v4945_v15 = vpop.eup %4944 }
 0xb74   :  { %v4947_v18 = vpop.eup %4946  ;;  %1048 = vrot.lane.b32.xlu0 %v4945_v15, %s5397_s0 }
 0xb75   :  { %1085 = vrot.lane.b32.xlu1 %v4947_v18, %s5397_s0 }
 0xbe6   :  { %v1049_v19 = vpop.permute.xlu0 %1048 }
 0xbe7   :  { %v1051_v0 = vmul.f32 %v1049_v19, %v1032_v50  ;;  %v1086_v45 = vpop.permute.xlu1 %1085 }
 0xbe8   :  { %v1088_v6 = vmul.f32 %v1086_v45, %v1069_v2 }
 0xbe9   :  { %1090 = vst [vmem:[#allocation1] ss:$4 sm:$0xff] %v1051_v0 }
 0xbf0   :  { %v5802_v20 = vld.sshfl [vmem:[#allocation1] sm:$0xff pattern:$0x73625140] }
 0xbf1   :  { %1097 = vst [vmem:[#allocation1] ss:$4 sm:$0xff] %v1088_v6 }
 0xbf8   :  { %v5804_v16 = vld.sshfl [vmem:[#allocation1] sm:$0xff pattern:$0x73625140] }
 0xbf9   :  { %1103 = vst [vmem:[#allocation1] ss:$4 sm:$0xff] %v1051_v0 }
 0xc00   :  { %v1104_v17 = vld.sshfl [vmem:[#allocation1] sm:$0xff pattern:$0x73625140] }
 0xc01   :  { %1108 = vst [vmem:[#allocation1] ss:$4 sm:$0xff] %v1088_v6  ;;  %1105 = vrot.lane.b32.xlu2 %v1104_v17, %s5407_s25 }
 0xc08   :  { %v1109_v43 = vld.sshfl [vmem:[#allocation1] sm:$0xff pattern:$0x73625140] }
 0xc09   :  { %1110 = vrot.lane.b32.xlu0 %v1109_v43, %s5397_s0 }
 0xc5b   :  { %v1106_v21 = vpop.permute.xlu2 %1105 }
 0xc7b   :  { %v1111_v30 = vpop.permute.xlu0 %1110 }
 0xc7c   :  { %v1113_v46 = vsel %vm556_vm14, %v1106_v21, %v1111_v30 }
 0xc7d   :  { %v1114_v52 = vpack.c.bf16 %v1113_v46, %v1113_v46 }
 0xc7f   :  { %4557 = vmatmul.msk.bf16.vlgmr.msrb.gmra.mxu0 %vm417_vm15, %v1114_v52  ;;  %4558 = vmatmul.msk.bf16.vlgmr.msrb.gmra.mxu1 %vm417_vm15, %v1114_v52 }
 0xcfc   :  { %v1127_v23 = vpop.f32.mrf.mxu0  ;;  %v1140_v25 = vpop.f32.mrf.mxu1 }
 0xcfd   :  { %v1145_v26 = vadd.f32 %v1144_v24, %v1127_v23  ;;  %v1150_v27 = vadd.f32 %v1148_v22, %v1140_v25 }
 0xcff   :  { %4948 = vtanh.f32 %v1145_v26  ;;  %v4560_v36 = vmul.f32 -1.442695, %v1150_v27  ;;  %v4559_v42 = vmul.f32 -1.442695, %v1145_v26 }
 0xd00   :  { %4950 = vtanh.f32 %v1150_v27 }
 0xd01   :  { %4952 = vpow2.f32 %v4560_v36 }
 0xd04   :  { %v1129_v29 = vpop.f32.mrf.mxu0  ;;  %v1142_v32 = vpop.f32.mrf.mxu1 }
 0xd05   :  { %v4949_v33 = vpop.eup %4948 }
 0xd06   :  { %v4951_v35 = vpop.eup %4950  ;;  %1173 = vrot.lane.b32.xlu1 %v4949_v33, %s5397_s0 }
 0xd07   :  { %1210 = vrot.lane.b32.xlu2 %v4951_v35, %s5397_s0  ;;  %v4953_v37 = vpop.eup %4952  ;;  %v1282_v35 = vld [vmem:[#allocation2 + $0x4] sm:$0xf] }
 0xd08   :  { %v1191_v38 = vadd.f32 1.0, %v4953_v37  ;;  %v1284_v36 = vrot.slane %v1282_v35, 2 }
 0xd0a   :  { %4954 = vrcp.f32 %v1191_v38  ;;  %v1203_v51 = vand.u32 2147483648, %v1191_v38  ;;  %vm1197_vm11 = vweird.f32 %v1191_v38  ;;  %v1201_v55 = vand.u32 2147483647, %v1191_v38 }
 0xd0b   :  { %4956 = vpow2.f32 %v4559_v42 }
 0xd0c   :  { %v1204_v58 = vor.u32 1.1754944e-38, %v1203_v51  ;;  %vm1202_vm13 = vcmp.eq.f32.partialorder %v1201_v55, 8.507059e+37 }
 0xd10   :  { %v4955_v39 = vpop.eup %4954 }
 0xd11   :  { %v1193_v44 = vmul.f32 %v4955_v39, %v1191_v38  ;;  %v4957_v49 = vpop.eup %4956  ;;  %vm1198_vm10 = vweird.f32 %v4955_v39  ;;  %v1280_v38 = vld [vmem:[#allocation2 + $0x18] sm:$0xf] }
 0xd12   :  { %v1154_v28 = vadd.f32 1.0, %v4957_v49  ;;  %vm1199_vm12 = vmor %vm1197_vm11, %vm1198_vm10 }
 0xd13   :  { %v1194_v48 = vsub.f32 1.0, %v1193_v44 }
 0xd14   :  { %4958 = vrcp.f32 %v1154_v28  ;;  %v1166_v61 = vand.u32 2147483648, %v1154_v28  ;;  %vm1160_vm6 = vweird.f32 %v1154_v28  ;;  %v1164_v9 = vand.u32 2147483647, %v1154_v28 }
 0xd15   :  { %v1195_v50 = vmul.f32 %v4955_v39, %v1194_v48 }
 0xd16   :  { %v1167_v15 = vor.u32 1.1754944e-38, %v1166_v61  ;;  %vm1165_vm8 = vcmp.eq.f32.partialorder %v1164_v9, 8.507059e+37 }
 0xd17   :  { %v1196_v34 = vadd.f32 %v4955_v39, %v1195_v50 }
 0xd19   :  { %v1200_v56 = vsel %vm1199_vm12, %v4955_v39, %v1196_v34 }
 0xd1a   :  { %v1205_v60 = vsel %vm1202_vm13, %v1204_v58, %v1200_v56  ;;  %v4959_v63 = vpop.eup %4958 }
 0xd1b   :  { %v1156_v1 = vmul.f32 %v4959_v63, %v1154_v28  ;;  %vm1161_vm1 = vweird.f32 %v4959_v63  ;;  %v1208_v45 = vmul.f32 %v1205_v60, %v5796_v14 }
 0xd1c   :  { %vm1162_vm7 = vmor %vm1160_vm6, %vm1161_vm1 }
 0xd1d   :  { %v1157_v2 = vsub.f32 1.0, %v1156_v1 }
 0xd1f   :  { %v1158_v7 = vmul.f32 %v4959_v63, %v1157_v2 }
 0xd21   :  { %v1159_v8 = vadd.f32 %v4959_v63, %v1158_v7 }
 0xd23   :  { %v1163_v11 = vsel %vm1162_vm7, %v4959_v63, %v1159_v8 }
 0xd24   :  { %v1168_v19 = vsel %vm1165_vm8, %v1167_v15, %v1163_v11 }
 0xd25   :  { %v1171_v21 = vmul.f32 %v1168_v19, %v5794_v57 }
 0xd61   :  { %v1211_v59 = vpop.permute.xlu2 %1210 }
 0xd62   :  { %v1213_v47 = vmul.f32 %v1211_v59, %v1205_v60 }
 0xd64   :  { %1215 = vrot.lane.b32.xlu1 %v1213_v47, %s5407_s25 }
 0xd78   :  { %v1174_v18 = vpop.permute.xlu1 %1173 }
 0xd79   :  { %v1176_v0 = vmul.f32 %v1174_v18, %v1168_v19 }
 0xd7b   :  { %1178 = vrot.lane.b32.xlu0 %v1176_v0, %s5407_s25 }
 0xdd6   :  { %v1216_v6 = vpop.permute.xlu1 %1215 }
 0xdd7   :  { %v5816_v17 = vadd.f32 %v1216_v6, %v1208_v45 }
 0xdd9   :  { %4960 = vtanh.f32 %v5816_v17 }
 0xddf   :  { %v4961_v43 = vpop.eup %4960 }
 0xde0   :  { %1221 = vrot.lane.b32.xlu0 %v4961_v43, %s5397_s0 }
 0xded   :  { %v1179_v30 = vpop.permute.xlu0 %1178 }
 0xdee   :  { %v5821_v46 = vadd.f32 %v1179_v30, %v1171_v21 }
 0xdf0   :  { %4962 = vtanh.f32 %v5821_v46 }
 0xdf6   :  { %v4963_v52 = vpop.eup %4962 }
 0xdf7   :  { %1184 = vrot.lane.b32.xlu2 %v4963_v52, %s5397_s0 }
 0xe51   :  { %v1185_v62 = vpop.permute.xlu2 %1184 }
 0xe52   :  { %v1187_v14 = vmul.f32 %v1185_v62, %v1168_v19  ;;  %v1222_v22 = vpop.permute.xlu0 %1221 }
 0xe53   :  { %v1224_v23 = vmul.f32 %v1222_v22, %v1205_v60 }
 0xe54   :  { %1226 = vst [vmem:[#allocation1] ss:$4 sm:$0xff] %v1187_v14 }
 0xe5b   :  { %v5825_v24 = vld.sshfl [vmem:[#allocation1] sm:$0xff pattern:$0x73625140] }
 0xe5c   :  { %1233 = vst [vmem:[#allocation1] ss:$4 sm:$0xff] %v1224_v23 }
 0xe63   :  { %v5827_v25 = vld.sshfl [vmem:[#allocation1] sm:$0xff pattern:$0x73625140] }
 0xe64   :  { %1239 = vst [vmem:[#allocation1] ss:$4 sm:$0xff] %v1187_v14 }
 0xe6b   :  { %v1240_v57 = vld.sshfl [vmem:[#allocation1] sm:$0xff pattern:$0x73625140] }
 0xe6c   :  { %1244 = vst [vmem:[#allocation1] ss:$4 sm:$0xff] %v1224_v23  ;;  %1241 = vrot.lane.b32.xlu1 %v1240_v57, %s5407_s25 }
 0xe73   :  { %v1245_v26 = vld.sshfl [vmem:[#allocation1] sm:$0xff pattern:$0x73625140] }
 0xe74   :  { %1246 = vrot.lane.b32.xlu2 %v1245_v26, %s5397_s0 }
 0xece   :  { %v1247_v27 = vpop.permute.xlu2 %1246 }
 0xede   :  { %v1242_v29 = vpop.permute.xlu1 %1241 }
 0xedf   :  { %v1249_v32 = vsel %vm556_vm14, %v1242_v29, %v1247_v27 }
 0xee0   :  { %v1250_v33 = vpack.c.bf16 %v1249_v32, %v1249_v32 }
 0xee2   :  { %4561 = vmatmul.msk.bf16.vlgmr.msrb.gmra.mxu2 %vm417_vm15, %v1250_v33  ;;  %4562 = vmatmul.msk.bf16.vlgmr.msrb.gmra.mxu3 %vm417_vm15, %v1250_v33 }
 0xf65   :  { %v1263_v37 = vpop.f32.mrf.mxu2  ;;  %v1276_v39 = vpop.f32.mrf.mxu3 }
 0xf66   :  { %v1281_v42 = vadd.f32 %v1280_v38, %v1263_v37  ;;  %v1286_v44 = vadd.f32 %v1284_v36, %v1276_v39 }
 0xf68   :  { %4964 = vtanh.f32 %v1281_v42  ;;  %v4563_v34 = vmul.f32 -1.442695, %v1281_v42  ;;  %v4564_v51 = vmul.f32 -1.442695, %v1286_v44 }
 0xf69   :  { %4966 = vtanh.f32 %v1286_v44 }
 0xf6a   :  { %4968 = vpow2.f32 %v4563_v34 }
 0xf6b   :  { %4970 = vpow2.f32 %v4564_v51  ;;  %v1418_v51 = vld [vmem:[#allocation2] sm:$0xf] }
 0xf6d   :  { %v1265_v48 = vpop.f32.mrf.mxu2  ;;  %v1278_v49 = vpop.f32.mrf.mxu3 }
 0xf6e   :  { %v4965_v50 = vpop.eup %4964 }
 0xf6f   :  { %v4967_v28 = vpop.eup %4966  ;;  %1309 = vrot.lane.b32.xlu0 %v4965_v50, %s5397_s0 }
 0xf70   :  { %1346 = vrot.lane.b32.xlu1 %v4967_v28, %s5397_s0  ;;  %v4969_v55 = vpop.eup %4968 }
 0xf71   :  { %v4971_v56 = vpop.eup %4970  ;;  %v1290_v58 = vadd.f32 1.0, %v4969_v55  ;;  %v1420_v55 = vrot.slane %v1418_v51, 2 }
 0xf72   :  { %v1327_v59 = vadd.f32 1.0, %v4971_v56 }
 0xf73   :  { %4972 = vrcp.f32 %v1290_v58  ;;  %v1302_v15 = vand.u32 2147483648, %v1290_v58  ;;  %vm1296_vm11 = vweird.f32 %v1290_v58  ;;  %v1300_v19 = vand.u32 2147483647, %v1290_v58 }
 0xf74   :  { %4974 = vrcp.f32 %v1327_v59  ;;  %v1339_v18 = vand.u32 2147483648, %v1327_v59  ;;  %vm1333_vm12 = vweird.f32 %v1327_v59  ;;  %v1337_v0 = vand.u32 2147483647, %v1327_v59 }
 0xf75   :  { %v1303_v43 = vor.u32 1.1754944e-38, %v1302_v15  ;;  %vm1301_vm6 = vcmp.eq.f32.partialorder %v1300_v19, 8.507059e+37 }
 0xf76   :  { %v1340_v21 = vor.u32 1.1754944e-38, %v1339_v18  ;;  %vm1338_vm7 = vcmp.eq.f32.partialorder %v1337_v0, 8.507059e+37 }
 0xf79   :  { %v4973_v60 = vpop.eup %4972 }
 0xf7a   :  { %v4975_v63 = vpop.eup %4974  ;;  %v1292_v47 = vmul.f32 %v4973_v60, %v1290_v58  ;;  %vm1297_vm9 = vweird.f32 %v4973_v60  ;;  %v1416_v58 = vld [vmem:[#allocation2 + $0x1c] sm:$0xf] }
 0xf7b   :  { %v1329_v1 = vmul.f32 %v4975_v63, %v1327_v59  ;;  %vm1334_vm10 = vweird.f32 %v4975_v63  ;;  %vm1298_vm13 = vmor %vm1296_vm11, %vm1297_vm9 }
 0xf7c   :  { %v1293_v2 = vsub.f32 1.0, %v1292_v47  ;;  %vm1335_vm1 = vmor %vm1333_vm12, %vm1334_vm10 }
 0xf7d   :  { %v1330_v7 = vsub.f32 1.0, %v1329_v1 }
 0xf7e   :  { %v1294_v8 = vmul.f32 %v4973_v60, %v1293_v2 }
 0xf7f   :  { %v1331_v61 = vmul.f32 %v4975_v63, %v1330_v7 }
 0xf80   :  { %v1295_v9 = vadd.f32 %v4973_v60, %v1294_v8 }
 0xf81   :  { %v1332_v11 = vadd.f32 %v4975_v63, %v1331_v61 }
 0xf82   :  { %v1299_v45 = vsel %vm1298_vm13, %v4973_v60, %v1295_v9 }
 0xf83   :  { %v1336_v6 = vsel %vm1335_vm1, %v4975_v63, %v1332_v11  ;;  %v1304_v52 = vsel %vm1301_vm6, %v1303_v43, %v1299_v45 }
 0xf84   :  { %v1341_v14 = vsel %vm1338_vm7, %v1340_v21, %v1336_v6  ;;  %v1307_v57 = vmul.f32 %v1304_v52, %v5821_v46  ;;  %vm535_vm7 = vcmask 254976  }
 0xf85   :  { %v1344_v32 = vmul.f32 %v1341_v14, %v5816_v17 }
 0xfe1   :  { %v1310_v30 = vpop.permute.xlu0 %1309 }
 0xfe2   :  { %v1347_v62 = vpop.permute.xlu1 %1346  ;;  %v1312_v22 = vmul.f32 %v1310_v30, %v1304_v52 }
 0xfe3   :  { %v1349_v23 = vmul.f32 %v1347_v62, %v1341_v14 }
 0xfe4   :  { %1314 = vrot.lane.b32.xlu2 %v1312_v22, %s5407_s25 }
 0xfe5   :  { %1351 = vrot.lane.b32.xlu0 %v1349_v23, %s5407_s25 }
0x103e   :  { %v1315_v26 = vpop.permute.xlu2 %1314 }
0x103f   :  { %v5839_v27 = vadd.f32 %v1315_v26, %v1307_v57 }
0x1041   :  { %4976 = vtanh.f32 %v5839_v27 }
0x1047   :  { %v4977_v29 = vpop.eup %4976 }
0x1048   :  { %1320 = vrot.lane.b32.xlu1 %v4977_v29, %s5397_s0 }
0x1057   :  { %v1352_v33 = vpop.permute.xlu0 %1351 }
0x1058   :  { %v5844_v35 = vadd.f32 %v1352_v33, %v1344_v32 }
0x105a   :  { %4978 = vtanh.f32 %v5844_v35 }
0x1060   :  { %v4979_v36 = vpop.eup %4978 }
0x1061   :  { %1357 = vrot.lane.b32.xlu2 %v4979_v36, %s5397_s0 }
0x10ba   :  { %v1321_v37 = vpop.permute.xlu1 %1320 }
0x10bb   :  { %v1323_v46 = vmul.f32 %v1321_v37, %v1304_v52  ;;  %v1358_v38 = vpop.permute.xlu2 %1357 }
0x10bc   :  { %v1360_v39 = vmul.f32 %v1358_v38, %v1341_v14 }
0x10bd   :  { %1362 = vst [vmem:[#allocation1] ss:$4 sm:$0xff] %v1323_v46 }
0x10c4   :  { %v5848_v42 = vld.sshfl [vmem:[#allocation1] sm:$0xff pattern:$0x73625140] }
0x10c5   :  { %1369 = vst [vmem:[#allocation1] ss:$4 sm:$0xff] %v1360_v39 }
0x10cc   :  { %v5850_v44 = vld.sshfl [vmem:[#allocation1] sm:$0xff pattern:$0x73625140] }
0x10cd   :  { %1375 = vst [vmem:[#allocation1] ss:$4 sm:$0xff] %v1323_v46 }
0x10d4   :  { %v1376_v17 = vld.sshfl [vmem:[#allocation1] sm:$0xff pattern:$0x73625140] }
0x10d5   :  { %1377 = vrot.lane.b32.xlu0 %v1376_v17, %s5407_s25  ;;  %1380 = vst [vmem:[#allocation1] ss:$4 sm:$0xff] %v1360_v39 }
0x10dc   :  { %v1381_v48 = vld.sshfl [vmem:[#allocation1] sm:$0xff pattern:$0x73625140] }
0x10dd   :  { %1382 = vrot.lane.b32.xlu1 %v1381_v48, %s5397_s0 }
0x1147   :  { %v1378_v49 = vpop.permute.xlu0 %1377 }
0x114f   :  { %v1383_v50 = vpop.permute.xlu1 %1382 }
0x1150   :  { %v1385_v28 = vsel %vm556_vm14, %v1378_v49, %v1383_v50 }
0x1151   :  { %v1386_v34 = vpack.c.bf16 %v1385_v28, %v1385_v28 }
0x1153   :  { %4565 = vmatmul.msk.bf16.vlgmr.msra.gmra.mxu0 %vm417_vm15, %v1386_v34  ;;  %4566 = vmatmul.msk.bf16.vlgmr.msra.gmra.mxu1 %vm417_vm15, %v1386_v34 }
0x11d0   :  { %v1399_v56 = vpop.f32.mrf.mxu0  ;;  %v1412_v59 = vpop.f32.mrf.mxu1 }
0x11d1   :  { %v1417_v60 = vadd.f32 %v1416_v58, %v1399_v56  ;;  %v1422_v63 = vadd.f32 %v1420_v55, %v1412_v59 }
0x11d3   :  { %4980 = vtanh.f32 %v1417_v60  ;;  %v4567_v8 = vmul.f32 -1.442695, %v1417_v60  ;;  %v4568_v15 = vmul.f32 -1.442695, %v1422_v63 }
0x11d4   :  { %4982 = vtanh.f32 %v1422_v63 }
0x11d5   :  { %4984 = vpow2.f32 %v4567_v8 }
0x11d8   :  { %v1401_v47 = vpop.f32.mrf.mxu0  ;;  %v1414_v1 = vpop.f32.mrf.mxu1 }
0x11d9   :  { %v4981_v2 = vpop.eup %4980 }
0x11da   :  { %v4983_v7 = vpop.eup %4982  ;;  %1445 = vrot.lane.b32.xlu2 %v4981_v2, %s5397_s0 }
0x11db   :  { %1482 = vrot.lane.b32.xlu0 %v4983_v7, %s5397_s0  ;;  %v4985_v61 = vpop.eup %4984 }
0x11dc   :  { %v1426_v9 = vadd.f32 1.0, %v4985_v61 }
0x11de   :  { %4986 = vrcp.f32 %v1426_v9  ;;  %v1438_v21 = vand.u32 2147483648, %v1426_v9  ;;  %vm1432_vm9 = vweird.f32 %v1426_v9  ;;  %v1436_v30 = vand.u32 2147483647, %v1426_v9 }
0x11df   :  { %4988 = vpow2.f32 %v4568_v15  ;;  %v4808_v15 = vld [vmem:[#allocation9 + $0x34] sm:$0xf0] }
0x11e0   :  { %v1439_v62 = vor.u32 1.1754944e-38, %v1438_v21  ;;  %vm1437_vm11 = vcmp.eq.f32.partialorder %v1436_v30, 8.507059e+37  ;;  %v4805_v21 = vld [vmem:[#allocation9 + $0x24] sm:$0xf] }
0x11e4   :  { %v4987_v11 = vpop.eup %4986 }
0x11e5   :  { %v1428_v18 = vmul.f32 %v4987_v11, %v1426_v9  ;;  %v4989_v45 = vpop.eup %4988  ;;  %vm1433_vm8 = vweird.f32 %v4987_v11 }
0x11e6   :  { %v1463_v6 = vadd.f32 1.0, %v4989_v45  ;;  %vm1434_vm10 = vmor %vm1432_vm9, %vm1433_vm8  ;;  %vm544_vm8 = vcmask 517376  }
0x11e7   :  { %v1429_v19 = vsub.f32 1.0, %v1428_v18  ;;  %v4807_v18 = vld [vmem:[#allocation9 + $0x34] sm:$0xf] }
0x11e8   :  { %4990 = vrcp.f32 %v1463_v6  ;;  %v1475_v36 = vand.u32 2147483648, %v1463_v6  ;;  %vm1469_vm13 = vweird.f32 %v1463_v6  ;;  %v1473_v37 = vand.u32 2147483647, %v1463_v6 }
0x11e9   :  { %v1430_v0 = vmul.f32 %v4987_v11, %v1429_v19 }
0x11ea   :  { %v1476_v38 = vor.u32 1.1754944e-38, %v1475_v36  ;;  %vm1474_vm6 = vcmp.eq.f32.partialorder %v1473_v37, 8.507059e+37  ;;  %v4801_v36 = vld [vmem:[#allocation9 + $0x4] sm:$0xf]  ;;  %v4573_v37 = vld [vmem:[#allocation9 + $0x8] sm:$0xf0] }
0x11eb   :  { %v1431_v43 = vadd.f32 %v4987_v11, %v1430_v0  ;;  %v4597_v0 = vld [vmem:[#allocation9 + $0x38] sm:$0xf0] }
0x11ec   :  { %v4600_v45 = vor.u32 %v4807_v18, %v4597_v0 }
0x11ed   :  { %v1435_v52 = vsel %vm1434_vm10, %v4987_v11, %v1431_v43  ;;  %v4595_v11 = vld [vmem:[#allocation9 + $0x30] sm:$0xf]  ;;  %v4806_v43 = vld [vmem:[#allocation9 + $0x24] sm:$0xf0] }
0x11ee   :  { %v1440_v22 = vsel %vm1437_vm11, %v1439_v62, %v1435_v52  ;;  %v4991_v57 = vpop.eup %4990  ;;  %v4596_v19 = vor.u32 %v4808_v15, %v4595_v11  ;;  %1622 = vmatpush.bf16.msra.mxu3 %v4600_v45  ;;  %v4589_v52 = vld [vmem:[#allocation9 + $0x28] sm:$0xf0] }
0x11ef   :  { %v1465_v26 = vmul.f32 %v4991_v57, %v1463_v6  ;;  %vm1470_vm12 = vweird.f32 %v4991_v57  ;;  %v1443_v49 = vmul.f32 %v1440_v22, %v5839_v27  ;;  %v4587_v6 = vld [vmem:[#allocation9 + $0x20] sm:$0xf]  ;;  %v4592_v62 = vor.u32 %v4805_v21, %v4589_v52 }
0x11f0   :  { %vm1471_vm1 = vmor %vm1469_vm13, %vm1470_vm12  ;;  %1608 = vmatpush.bf16.msra.mxu2 %v4596_v19  ;;  %v4588_v30 = vor.u32 %v4806_v43, %v4587_v6 }
0x11f1   :  { %v1466_v29 = vsub.f32 1.0, %v1465_v26  ;;  %v4581_v26 = vld [vmem:[#allocation9 + $0x18] sm:$0xf0] }
0x11f2   :  { %1623 = vmatpush.bf16.msra.mxu3 %v4592_v62 }
0x11f3   :  { %v1467_v32 = vmul.f32 %v4991_v57, %v1466_v29 }
0x11f4   :  { %1609 = vmatpush.bf16.msra.mxu2 %v4588_v30 }
0x11f5   :  { %v1468_v33 = vadd.f32 %v4991_v57, %v1467_v32  ;;  %v4571_v32 = vld [vmem:[#allocation9] sm:$0xf] }
0x11f7   :  { %v1472_v46 = vsel %vm1471_vm1, %v4991_v57, %v1468_v33  ;;  %v4802_v33 = vld [vmem:[#allocation9 + $0x4] sm:$0xf0] }
0x11f8   :  { %v1477_v17 = vsel %vm1474_vm6, %v1476_v38, %v1472_v46  ;;  %v4572_v46 = vor.u32 %v4802_v33, %v4571_v32  ;;  %v4576_v38 = vor.u32 %v4801_v36, %v4573_v37 }
0x11f9   :  { %v1480_v50 = vmul.f32 %v1477_v17, %v5844_v35 }
0x1234   :  { %v1446_v14 = vpop.permute.xlu2 %1445 }
0x1235   :  { %v1448_v23 = vmul.f32 %v1446_v14, %v1440_v22  ;;  %v4579_v14 = vld [vmem:[#allocation9 + $0x10] sm:$0xf] }
0x1237   :  { %1450 = vrot.lane.b32.xlu1 %v1448_v23, %s5407_s25  ;;  %v4803_v23 = vld [vmem:[#allocation9 + $0x14] sm:$0xf] }
0x1238   :  { %v4584_v29 = vor.u32 %v4803_v23, %v4581_v26 }
0x123a   :  { %1624 = vmatpush.bf16.msra.mxu3 %v4584_v29 }
0x123e   :  { %1625 = vmatpush.bf16.msra.mxu3 %v4576_v38 }
0x124d   :  { %v1483_v39 = vpop.permute.xlu0 %1482 }
0x124e   :  { %v1485_v48 = vmul.f32 %v1483_v39, %v1477_v17 }
0x1250   :  { %1487 = vrot.lane.b32.xlu2 %v1485_v48, %s5407_s25  ;;  %v4816_v48 = vld [vmem:[#allocation10 + $0x34] sm:$0xf0] }
0x1258   :  { %532 = vrot.lane.b32.xlu2 %v5686_v40, %s5407_s25 }
0x1260   :  { %682 = vrot.lane.b32.xlu2 %v5719_v54, %s5397_s0 }
0x1268   :  { %954 = vrot.lane.b32.xlu2 %v5779_v12, %s5407_s25 }
0x1270   :  { %1099 = vrot.lane.b32.xlu2 %v5804_v16, %s5397_s0 }
0x1278   :  { %1364 = vrot.lane.b32.xlu2 %v5848_v42, %s5407_s25 }
0x12a9   :  { %v1451_v28 = vpop.permute.xlu1 %1450 }
0x12aa   :  { %v1488_v34 = vpop.permute.xlu2 %1487  ;;  %v1453_v51 = vadd.f32 %v1451_v28, %v1443_v49  ;;  %v4814_v28 = vld [vmem:[#allocation10 + $0x24] sm:$0xf0] }
0x12ab   :  { %v1490_v40 = vadd.f32 %v1488_v34, %v1480_v50  ;;  %v4621_v50 = vld [vmem:[#allocation10 + $0x20] sm:$0xf]  ;;  %v4815_v34 = vld [vmem:[#allocation10 + $0x34] sm:$0xf] }
0x12ac   :  { %4992 = vtanh.f32 %v1453_v51  ;;  %v4631_v51 = vld [vmem:[#allocation10 + $0x38] sm:$0xf0] }
0x12ad   :  { %4994 = vtanh.f32 %v1490_v40  ;;  %v5913_v40 = vor.u32 %v4814_v28, %v4621_v50 }
0x12b2   :  { %v4993_v54 = vpop.eup %4992  ;;  %v533_v55 = vpop.permute.xlu2 %532 }
0x12b3   :  { %v4995_v12 = vpop.eup %4994  ;;  %536 = vst.msk [vmem:[#allocation3] sm:$0x3] %vm535_vm7, %v533_v55  ;;  %1456 = vrot.lane.b32.xlu0 %v4993_v54, %s5397_s0  ;;  %v5915_v54 = vor.u32 %v4815_v34, %v4631_v51  ;;  %v4813_v55 = vld [vmem:[#allocation10 + $0x24] sm:$0xf] }
0x12b4   :  { %1493 = vrot.lane.b32.xlu1 %v4995_v12, %s5397_s0  ;;  %v4613_v12 = vld [vmem:[#allocation10 + $0x10] sm:$0xf] }
0x12b5   :  { %1733 = vmatpush.bf16.msrb.mxu1 %v5915_v54  ;;  %1869 = vmatpush.bf16.msrb.mxu3 %v5915_v54 }
0x12ba   :  { %v683_v16 = vpop.permute.xlu2 %682 }
0x12bb   :  { %686 = vst.msk [vmem:[#allocation3 + $0xc] sm:$0x3] %vm544_vm8, %v683_v16  ;;  %540 = vrot.lane.b32.xlu0 %v5688_v41, %s5397_s0  ;;  %v4812_v16 = vld [vmem:[#allocation10 + $0x14] sm:$0xf0] }
0x12bc   :  { %674 = vrot.lane.b32.xlu1 %v5717_v53, %s5407_s25 }
0x12c2   :  { %v955_v27 = vpop.permute.xlu2 %954 }
0x12c3   :  { %958 = vst.msk [vmem:[#allocation3 + $0x6] sm:$0x3] %vm535_vm7, %v955_v27  ;;  %814 = vrot.lane.b32.xlu0 %v5748_v4, %s5407_s25  ;;  %v4623_v27 = vld [vmem:[#allocation10 + $0x28] sm:$0xf0] }
0x12c4   :  { %822 = vrot.lane.b32.xlu1 %v5750_v5, %s5397_s0 }
0x12ca   :  { %v1100_v35 = vpop.permute.xlu2 %1099 }
0x12cb   :  { %1102 = vst.msk [vmem:[#allocation3 + $0x6] sm:$0x3] %vm544_vm8, %v1100_v35  ;;  %962 = vrot.lane.b32.xlu0 %v5781_v13, %s5397_s0  ;;  %v5919_v35 = vor.u32 %v4813_v55, %v4623_v27 }
0x12cc   :  { %1092 = vrot.lane.b32.xlu1 %v5802_v20, %s5407_s25 }
0x12cd   :  { %1734 = vmatpush.bf16.msrb.mxu1 %v5919_v35  ;;  %1870 = vmatpush.bf16.msrb.mxu3 %v5919_v35 }
0x12d2   :  { %v1365_v41 = vpop.permute.xlu2 %1364  ;;  %v1514_v58 = vld [vmem:[#allocation3 + $0x6] sm:$0x3] }
0x12d3   :  { %1367 = vst.msk [vmem:[#allocation3 + $0xc] sm:$0x3] %vm535_vm7, %v1365_v41  ;;  %1228 = vrot.lane.b32.xlu0 %v5825_v24, %s5407_s25 }
0x12d4   :  { %1235 = vrot.lane.b32.xlu1 %v5827_v25, %s5397_s0 }
0x12da   :  { %v1517_v53 = vld [vmem:[#allocation3 + $0xc] sm:$0x3] }
0x12db   :  { %1539 = vst [vmem:[#allocation1 + $0x22] ss:$4 sm:$0xff] %v1517_v53  ;;  %1371 = vrot.lane.b32.xlu0 %v5850_v44, %s5397_s0  ;;  %v4811_v53 = vld [vmem:[#allocation10 + $0x14] sm:$0xf] }
0x1325   :  { %v1457_v4 = vpop.permute.xlu0 %1456 }
0x1326   :  { %v1494_v5 = vpop.permute.xlu1 %1493  ;;  %v1459_v13 = vmul.f32 %v1457_v4, %v1440_v22  ;;  %v4804_v22 = vld [vmem:[#allocation9 + $0x14] sm:$0xf0]  ;;  %v4615_v4 = vld [vmem:[#allocation10 + $0x18] sm:$0xf0] }
0x1327   :  { %v1496_v20 = vmul.f32 %v1494_v5, %v1477_v17  ;;  %v4580_v57 = vor.u32 %v4804_v22, %v4579_v14  ;;  %v4629_v17 = vld [vmem:[#allocation10 + $0x30] sm:$0xf]  ;;  %v5923_v5 = vor.u32 %v4812_v16, %v4613_v12 }
0x1328   :  { %1498 = vst [vmem:[#allocation1] ss:$4 sm:$0xff] %v1459_v13  ;;  %v5910_v49 = vor.u32 %v4816_v48, %v4629_v17  ;;  %v4605_v13 = vld [vmem:[#allocation10] sm:$0xf] }
0x1329   :  { %1610 = vmatpush.bf16.msra.mxu2 %v4580_v57 }
0x132a   :  { %1720 = vmatpush.bf16.msrb.mxu0 %v5910_v49 }
0x132d   :  { %v541_v42 = vpop.permute.xlu0 %540  ;;  %1611 = vmatpush.bf16.msra.mxu2 %v4572_v46 }
0x132e   :  { %v675_v56 = vpop.permute.xlu1 %674  ;;  %545 = vst.msk [vmem:[#allocation3 + $0xe] sm:$0x3] %vm544_vm8, %v541_v42  ;;  %1721 = vmatpush.bf16.msrb.mxu0 %v5913_v40  ;;  %v4810_v42 = vld [vmem:[#allocation10 + $0x4] sm:$0xf0] }
0x132f   :  { %678 = vst.msk [vmem:[#allocation3 + $0x2] sm:$0x3] %vm535_vm7, %v675_v56  ;;  %v1499_v24 = vld.sshfl [vmem:[#allocation1] sm:$0xff pattern:$0x73625140] }
0x1330   :  { %1500 = vrot.lane.b32.xlu1 %v1499_v24, %s5407_s25  ;;  %1505 = vst [vmem:[#allocation1] ss:$4 sm:$0xff] %v1496_v20  ;;  %v5927_v20 = vor.u32 %v4811_v53, %v4615_v4  ;;  %v4809_v56 = vld [vmem:[#allocation10 + $0x4] sm:$0xf]  ;;  %v4607_v24 = vld [vmem:[#allocation10 + $0x8] sm:$0xf0] }
0x1331   :  { %1856 = vmatpush.bf16.msrb.mxu2 %v5910_v49 }
0x1332   :  { %1722 = vmatpush.bf16.msrb.mxu0 %v5923_v5  ;;  %1735 = vmatpush.bf16.msrb.mxu1 %v5927_v20 }
0x1333   :  { %1871 = vmatpush.bf16.msrb.mxu3 %v5927_v20 }
0x1335   :  { %v815_v25 = vpop.permute.xlu0 %814  ;;  %1857 = vmatpush.bf16.msrb.mxu2 %v5913_v40 }
0x1336   :  { %v823_v59 = vpop.permute.xlu1 %822  ;;  %818 = vst.msk [vmem:[#allocation3 + $0x4] sm:$0x3] %vm535_vm7, %v815_v25  ;;  %v5931_v25 = vor.u32 %v4810_v42, %v4605_v13 }
0x1337   :  { %826 = vst.msk [vmem:[#allocation3 + $0xa] sm:$0x3] %vm544_vm8, %v823_v59  ;;  %v1506_v44 = vld.sshfl [vmem:[#allocation1] sm:$0xff pattern:$0x73625140] }
0x1338   :  { %1507 = vrot.lane.b32.xlu2 %v1506_v44, %s5397_s0  ;;  %1533 = vst [vmem:[#allocation1 + $0x3] ss:$4 sm:$0xff] %v1514_v58  ;;  %v5935_v58 = vor.u32 %v4809_v56, %v4607_v24  ;;  %1723 = vmatpush.bf16.msrb.mxu0 %v5931_v25 }
0x1339   :  { %1858 = vmatpush.bf16.msrb.mxu2 %v5923_v5 }
0x133a   :  { %1736 = vmatpush.bf16.msrb.mxu1 %v5935_v58  ;;  %1872 = vmatpush.bf16.msrb.mxu3 %v5935_v58 }
0x133b   :  { %1724 = vmatmul.bf16.vlgmr.msrb.gmra.mxu0 %v5406_v3 }
0x133c   :  { %1992 = vmatpush.bf16.msra.mxu0 %v5910_v49 }
0x133d   :  { %v963_v60 = vpop.permute.xlu0 %962  ;;  %1859 = vmatpush.bf16.msrb.mxu2 %v5931_v25  ;;  %1737 = vmatmul.bf16.vlgmr.msrb.gmra.mxu1 %v5406_v3 }
0x133e   :  { %v1093_v63 = vpop.permute.xlu1 %1092  ;;  %966 = vst.msk [vmem:[#allocation3 + $0x8] sm:$0x3] %vm544_vm8, %v963_v60  ;;  %2005 = vmatpush.bf16.msra.mxu1 %v5915_v54 }
0x133f   :  { %1095 = vst.msk [vmem:[#allocation3 + $0x8] sm:$0x3] %vm535_vm7, %v1093_v63 }
0x1340   :  { %1993 = vmatpush.bf16.msra.mxu0 %v5913_v40 }
0x1342   :  { %2006 = vmatpush.bf16.msra.mxu1 %v5919_v35 }
0x1344   :  { %1994 = vmatpush.bf16.msra.mxu0 %v5923_v5 }
0x1345   :  { %v1229_v47 = vpop.permute.xlu0 %1228 }
0x1346   :  { %v1515_v1 = vld [vmem:[#allocation3 + $0x8] sm:$0x3]  ;;  %v1236_v2 = vpop.permute.xlu1 %1235  ;;  %1231 = vst.msk [vmem:[#allocation3 + $0xa] sm:$0x3] %vm535_vm7, %v1229_v47  ;;  %2007 = vmatpush.bf16.msra.mxu1 %v5927_v20 }
0x1347   :  { %1535 = vst [vmem:[#allocation1 + $0x20] ss:$4 sm:$0xff] %v1515_v1 }
0x1348   :  { %1238 = vst.msk [vmem:[#allocation3 + $0x4] sm:$0x3] %vm544_vm8, %v1236_v2  ;;  %1995 = vmatpush.bf16.msra.mxu0 %v5931_v25 }
0x134a   :  { %2008 = vmatpush.bf16.msra.mxu1 %v5935_v58 }
0x134c   :  { %2264 = vmatpush.bf16.msrb.mxu0 %v5910_v49 }
0x134d   :  { %v1516_v7 = vld [vmem:[#allocation3 + $0xa] sm:$0x3]  ;;  %v1372_v8 = vpop.permute.xlu0 %1371 }
0x134e   :  { %1537 = vst [vmem:[#allocation1 + $0x21] ss:$4 sm:$0xff] %v1516_v7  ;;  %2277 = vmatpush.bf16.msrb.mxu1 %v5915_v54  ;;  %v1555_v7 = vld [vmem:[%s6602_s23] sm:$0x3] }
0x134f   :  { %v1513_v61 = vld [vmem:[#allocation3 + $0x4] sm:$0x3]  ;;  %1374 = vst.msk [vmem:[#allocation3 + $0x2] sm:$0x3] %vm544_vm8, %v1372_v8 }
0x1350   :  { %1531 = vst [vmem:[#allocation1 + $0x2] ss:$4 sm:$0xff] %v1513_v61  ;;  %2265 = vmatpush.bf16.msrb.mxu0 %v5913_v40  ;;  %v1558_v61 = vperm.slane %v1555_v7, 1 }
0x1352   :  { %2278 = vmatpush.bf16.msrb.mxu1 %v5919_v35 }
0x1354   :  { %2266 = vmatpush.bf16.msrb.mxu0 %v5923_v5 }
0x1356   :  { %v1512_v9 = vld [vmem:[#allocation3 + $0x2] sm:$0x3]  ;;  %2279 = vmatpush.bf16.msrb.mxu1 %v5927_v20 }
0x1357   :  { %1529 = vst [vmem:[#allocation1 + $0x1] ss:$4 sm:$0xff] %v1512_v9  ;;  %v1557_v9 = vperm.slane %v1555_v7, 0 }
0x1358   :  { %2267 = vmatpush.bf16.msrb.mxu0 %v5931_v25 }
0x135a   :  { %2280 = vmatpush.bf16.msrb.mxu1 %v5935_v58 }
0x1392   :  { %v1508_v39 = vpop.permute.xlu2 %1507 }
0x1393   :  { %1510 = vst.msk [vmem:[#allocation3] sm:$0x3] %vm544_vm8, %v1508_v39 }
0x139a   :  { %v1511_v41 = vld [vmem:[#allocation3] sm:$0x3] }
0x139b   :  { %1527 = vst [vmem:[#allocation1] ss:$4 sm:$0xff] %v1511_v41 }
0x13a2   :  { %v1501_v59 = vpop.permute.xlu1 %1500  ;;  %v1542_v60 = vld.sshfl [vmem:[#allocation1] sm:$0xff pattern:$0x73625140] }
0x13a3   :  { %1503 = vst.msk [vmem:[#allocation3 + $0xe] sm:$0x3] %vm535_vm7, %v1501_v59 }
0x13aa   :  { %v1518_v44 = vld [vmem:[#allocation3 + $0xe] sm:$0x3] }
0x13ab   :  { %1541 = vst [vmem:[#allocation1 + $0x23] ss:$4 sm:$0xff] %v1518_v44 }
0x13b2   :  { %v1543_v63 = vld.sshfl [vmem:[#allocation1 + $0x20] sm:$0xff pattern:$0x73625140] }
0x13b3   :  { %v1546_v47 = vpack.c.bf16 %v1543_v63, %v1542_v60 }
0x13b5   :  { %4601 = vmatmul.msk.bf16.vlgmr.msra.gmra.mxu2 %vm417_vm15, %v1546_v47  ;;  %4602 = vmatmul.msk.bf16.vlgmr.msra.gmra.mxu3 %vm417_vm15, %v1546_v47 }
0x13b6   :  { %2128 = vmatpush.bf16.msra.mxu2 %v5910_v49  ;;  %2141 = vmatpush.bf16.msra.mxu3 %v5915_v54 }
0x13b8   :  { %v1725_v3 = vpop.f32.mrf.mxu0 }
0x13ba   :  { %2129 = vmatpush.bf16.msra.mxu2 %v5913_v40  ;;  %2142 = vmatpush.bf16.msra.mxu3 %v5919_v35  ;;  %v1738_v2 = vpop.f32.mrf.mxu1 }
0x13be   :  { %2130 = vmatpush.bf16.msra.mxu2 %v5923_v5  ;;  %2143 = vmatpush.bf16.msra.mxu3 %v5927_v20 }
0x13c0   :  { %v1727_v1 = vpop.f32.mrf.mxu0 }
0x13c2   :  { %2131 = vmatpush.bf16.msra.mxu2 %v5931_v25  ;;  %2144 = vmatpush.bf16.msra.mxu3 %v5935_v58  ;;  %v1740_v8 = vpop.f32.mrf.mxu1 }
0x1438   :  { %v1613_v11 = vpop.f32.mrf.mxu2  ;;  %v1627_v15 = vpop.f32.mrf.mxu3 }
0x1439   :  { %v1628_v18 = vadd.f32 %v1627_v15, %v1558_v61  ;;  %v1614_v19 = vadd.f32 %v1613_v11, %v1557_v9 }
0x143b   :  { %v1636_v0 = vrot.slane %v1628_v18, 6 }
0x143d   :  { %v1638_v45 = vsel %vm335_vm2, %v1614_v19, %v1636_v0  ;;  %v1639_v6 = vsel %vm337_vm3, %v1614_v19, %v1636_v0  ;;  %v1641_v43 = vsel %vm340_vm4, %v1614_v19, %v1636_v0  ;;  %v1643_v21 = vsel %vm343_vm5, %v1636_v0, %v1614_v19 }
0x143e   :  { %v1640_v30 = vrot.slane %v1639_v6, 2  ;;  %v1642_v52 = vrot.slane %v1641_v43, 4  ;;  %v1644_v62 = vrot.slane %v1643_v21, 6  ;;  %1660 = vst [vmem:[#allocation2] sm:$0xf] %v1638_v45 }
0x1440   :  { %1661 = vst [vmem:[#allocation2 + $0x4] sm:$0xf] %v1640_v30  ;;  %v1615_v14 = vpop.f32.mrf.mxu2  ;;  %v1629_v22 = vpop.f32.mrf.mxu3 }
0x1441   :  { %1662 = vst [vmem:[#allocation2 + $0x8] sm:$0xf] %v1642_v52  ;;  %v1630_v23 = vadd.f32 %v1629_v22, %v1558_v61  ;;  %v1616_v57 = vadd.f32 %v1615_v14, %v1557_v9 }
0x1442   :  { %1663 = vst [vmem:[#allocation2 + $0xc] sm:$0xf] %v1644_v62 }
0x1443   :  { %v1637_v26 = vrot.slane %v1630_v23, 6 }
0x1445   :  { %v1645_v29 = vsel %vm335_vm2, %v1616_v57, %v1637_v26  ;;  %v1646_v32 = vsel %vm337_vm3, %v1616_v57, %v1637_v26  ;;  %v1648_v33 = vsel %vm340_vm4, %v1616_v57, %v1637_v26  ;;  %v1650_v36 = vsel %vm343_vm5, %v1637_v26, %v1616_v57  ;;  %v1742_v37 = vld [vmem:[#allocation2] sm:$0xf] }
0x1446   :  { %v1647_v46 = vrot.slane %v1646_v32, 2  ;;  %v1649_v38 = vrot.slane %v1648_v33, 4  ;;  %v1651_v39 = vrot.slane %v1650_v36, 6  ;;  %1664 = vst [vmem:[#allocation2 + $0x10] sm:$0xf] %v1645_v29  ;;  %v1743_v17 = vadd.f32 %v1742_v37, %v1725_v3 }
0x1448   :  { %1665 = vst [vmem:[#allocation2 + $0x14] sm:$0xf] %v1647_v46  ;;  %4996 = vtanh.f32 %v1743_v17  ;;  %v4635_v55 = vmul.f32 -1.442695, %v1743_v17 }
0x1449   :  { %1666 = vst [vmem:[#allocation2 + $0x18] sm:$0xf] %v1649_v38 }
0x144a   :  { %1667 = vst [vmem:[#allocation2 + $0x1c] sm:$0xf] %v1651_v39 }
0x144e   :  { %v4997_v48 = vpop.eup %4996 }
0x144f   :  { %1771 = vrot.lane.b32.xlu0 %v4997_v48, %s5397_s0 }
0x1451   :  { %v1744_v50 = vld [vmem:[#allocation2 + $0x1c] sm:$0xf] }
0x1452   :  { %v1746_v28 = vrot.slane %v1744_v50, 2  ;;  %v1880_v50 = vld [vmem:[#allocation2 + $0x18] sm:$0xf] }
0x1454   :  { %v1748_v34 = vadd.f32 %v1746_v28, %v1738_v2  ;;  %v1882_v28 = vrot.slane %v1880_v50, 2 }
0x1456   :  { %4998 = vtanh.f32 %v1748_v34  ;;  %v4636_v27 = vmul.f32 -1.442695, %v1748_v34 }
0x1457   :  { %5000 = vpow2.f32 %v4635_v55 }
0x145c   :  { %v4999_v51 = vpop.eup %4998 }
0x145d   :  { %1808 = vrot.lane.b32.xlu1 %v4999_v51, %s5397_s0  ;;  %v5001_v12 = vpop.eup %5000  ;;  %v1878_v51 = vld [vmem:[#allocation2 + $0x4] sm:$0xf] }
0x145e   :  { %v1752_v16 = vadd.f32 1.0, %v5001_v12 }
0x1460   :  { %5002 = vrcp.f32 %v1752_v16  ;;  %v1764_v44 = vand.u32 2147483648, %v1752_v16  ;;  %vm1758_vm3 = vweird.f32 %v1752_v16  ;;  %v1762_v60 = vand.u32 2147483647, %v1752_v16 }
0x1461   :  { %5004 = vpow2.f32 %v4636_v27 }
0x1462   :  { %v1765_v3 = vor.u32 1.1754944e-38, %v1764_v44  ;;  %vm1763_vm5 = vcmp.eq.f32.partialorder %v1762_v60, 8.507059e+37 }
0x1466   :  { %v5003_v41 = vpop.eup %5002 }
0x1467   :  { %v5005_v53 = vpop.eup %5004  ;;  %v1754_v4 = vmul.f32 %v5003_v41, %v1752_v16  ;;  %vm1759_vm2 = vweird.f32 %v5003_v41 }
0x1468   :  { %v1789_v13 = vadd.f32 1.0, %v5005_v53  ;;  %vm1760_vm4 = vmor %vm1758_vm3, %vm1759_vm2 }
0x1469   :  { %v1755_v42 = vsub.f32 1.0, %v1754_v4 }
0x146a   :  { %5006 = vrcp.f32 %v1789_v13  ;;  %v1801_v11 = vand.u32 2147483648, %v1789_v13  ;;  %vm1795_vm10 = vweird.f32 %v1789_v13  ;;  %v1799_v15 = vand.u32 2147483647, %v1789_v13 }
0x146b   :  { %v1756_v56 = vmul.f32 %v5003_v41, %v1755_v42 }
0x146c   :  { %v1802_v19 = vor.u32 1.1754944e-38, %v1801_v11  ;;  %vm1800_vm12 = vcmp.eq.f32.partialorder %v1799_v15, 8.507059e+37 }
0x146d   :  { %v1757_v59 = vadd.f32 %v5003_v41, %v1756_v56 }
0x146f   :  { %v1761_v47 = vsel %vm1760_vm4, %v5003_v41, %v1757_v59 }
0x1470   :  { %v5007_v24 = vpop.eup %5006  ;;  %v1766_v7 = vsel %vm1763_vm5, %v1765_v3, %v1761_v47 }
0x1471   :  { %v1791_v63 = vmul.f32 %v5007_v24, %v1789_v13  ;;  %vm1796_vm9 = vweird.f32 %v5007_v24  ;;  %v1769_v43 = vmul.f32 0.0, %v1766_v7 }
0x1472   :  { %vm1797_vm11 = vmor %vm1795_vm10, %vm1796_vm9 }
0x1473   :  { %v1792_v1 = vsub.f32 1.0, %v1791_v63 }
0x1475   :  { %v1793_v61 = vmul.f32 %v5007_v24, %v1792_v1 }
0x1477   :  { %v1794_v9 = vadd.f32 %v5007_v24, %v1793_v61 }
0x1479   :  { %v1798_v18 = vsel %vm1797_vm11, %v5007_v24, %v1794_v9 }
0x147a   :  { %v1803_v45 = vsel %vm1800_vm12, %v1802_v19, %v1798_v18 }
0x147b   :  { %v1806_v62 = vmul.f32 0.0, %v1803_v45 }
0x14c1   :  { %v1772_v2 = vpop.permute.xlu0 %1771 }
0x14c2   :  { %v1774_v8 = vmul.f32 %v1772_v2, %v1766_v7 }
0x14c4   :  { %1776 = vrot.lane.b32.xlu2 %v1774_v8, %s5407_s25 }
0x14cf   :  { %v1809_v0 = vpop.permute.xlu1 %1808 }
0x14d0   :  { %v1811_v6 = vmul.f32 %v1809_v0, %v1803_v45 }
0x14d2   :  { %1813 = vrot.lane.b32.xlu0 %v1811_v6, %s5407_s25 }
0x151e   :  { %v1777_v21 = vpop.permute.xlu2 %1776 }
0x151f   :  { %v5986_v30 = vadd.f32 %v1777_v21, %v1769_v43 }
0x1521   :  { %5008 = vtanh.f32 %v5986_v30 }
0x1527   :  { %v5009_v52 = vpop.eup %5008 }
0x1528   :  { %1782 = vrot.lane.b32.xlu1 %v5009_v52, %s5397_s0 }
0x1544   :  { %v1814_v14 = vpop.permute.xlu0 %1813 }
0x1545   :  { %v5990_v22 = vadd.f32 %v1814_v14, %v1806_v62 }
0x1547   :  { %5010 = vtanh.f32 %v5990_v22 }
0x154d   :  { %v5011_v23 = vpop.eup %5010 }
0x154e   :  { %1819 = vrot.lane.b32.xlu2 %v5011_v23, %s5397_s0 }
0x159a   :  { %v1783_v57 = vpop.permute.xlu1 %1782 }
0x159b   :  { %v1785_v26 = vmul.f32 %v1783_v57, %v1766_v7 }
0x159d   :  { %1824 = vst [vmem:[#allocation1] ss:$4 sm:$0xff] %v1785_v26 }
0x15a4   :  { %v5994_v33 = vld.sshfl [vmem:[#allocation1] sm:$0xff pattern:$0x73625140] }
0x15a8   :  { %v1820_v29 = vpop.permute.xlu2 %1819 }
0x15a9   :  { %v1822_v32 = vmul.f32 %v1820_v29, %v1803_v45 }
0x15ab   :  { %1831 = vst [vmem:[#allocation1] ss:$4 sm:$0xff] %v1822_v32 }
0x15b2   :  { %v5996_v36 = vld.sshfl [vmem:[#allocation1] sm:$0xff pattern:$0x73625140] }
0x15b3   :  { %1837 = vst [vmem:[#allocation1] ss:$4 sm:$0xff] %v1785_v26 }
0x15ba   :  { %v1838_v37 = vld.sshfl [vmem:[#allocation1] sm:$0xff pattern:$0x73625140] }
0x15bb   :  { %1839 = vrot.lane.b32.xlu0 %v1838_v37, %s5407_s25  ;;  %1842 = vst [vmem:[#allocation1] ss:$4 sm:$0xff] %v1822_v32 }
0x15c2   :  { %v1843_v46 = vld.sshfl [vmem:[#allocation1] sm:$0xff pattern:$0x73625140] }
0x15c3   :  { %1844 = vrot.lane.b32.xlu1 %v1843_v46, %s5397_s0 }
0x162d   :  { %v1840_v38 = vpop.permute.xlu0 %1839 }
0x1635   :  { %v1845_v39 = vpop.permute.xlu1 %1844 }
0x1636   :  { %v1847_v17 = vsel %vm556_vm14, %v1840_v38, %v1845_v39 }
0x1637   :  { %v1848_v48 = vpack.c.bf16 %v1847_v17, %v1847_v17 }
0x1639   :  { %4637 = vmatmul.msk.bf16.vlgmr.msrb.gmra.mxu2 %vm417_vm15, %v1848_v48  ;;  %4638 = vmatmul.msk.bf16.vlgmr.msrb.gmra.mxu3 %vm417_vm15, %v1848_v48 }
0x163a   :  { %2400 = vmatpush.bf16.msrb.mxu2 %v5910_v49  ;;  %2413 = vmatpush.bf16.msrb.mxu3 %v5915_v54 }
0x163e   :  { %2401 = vmatpush.bf16.msrb.mxu2 %v5913_v40  ;;  %2414 = vmatpush.bf16.msrb.mxu3 %v5919_v35 }
0x1642   :  { %2402 = vmatpush.bf16.msrb.mxu2 %v5923_v5  ;;  %2415 = vmatpush.bf16.msrb.mxu3 %v5927_v20 }
0x1646   :  { %2403 = vmatpush.bf16.msrb.mxu2 %v5931_v25  ;;  %2416 = vmatpush.bf16.msrb.mxu3 %v5935_v58 }
0x16bc   :  { %v1861_v34 = vpop.f32.mrf.mxu2  ;;  %v1874_v55 = vpop.f32.mrf.mxu3 }
0x16bd   :  { %v1879_v12 = vadd.f32 %v1878_v51, %v1861_v34  ;;  %v1884_v16 = vadd.f32 %v1882_v28, %v1874_v55 }
0x16bf   :  { %5012 = vtanh.f32 %v1879_v12  ;;  %v4639_v13 = vmul.f32 -1.442695, %v1879_v12  ;;  %v4640_v59 = vmul.f32 -1.442695, %v1884_v16 }
0x16c0   :  { %5014 = vtanh.f32 %v1884_v16 }
0x16c1   :  { %5016 = vpow2.f32 %v4639_v13 }
0x16c4   :  { %v1863_v27 = vpop.f32.mrf.mxu2  ;;  %v1876_v41 = vpop.f32.mrf.mxu3 }
0x16c5   :  { %v5013_v53 = vpop.eup %5012 }
0x16c6   :  { %v5015_v4 = vpop.eup %5014  ;;  %1907 = vrot.lane.b32.xlu2 %v5013_v53, %s5397_s0  ;;  %v2016_v53 = vld [vmem:[#allocation2 + $0x14] sm:$0xf] }
0x16c7   :  { %1944 = vrot.lane.b32.xlu0 %v5015_v4, %s5397_s0  ;;  %v5017_v42 = vpop.eup %5016  ;;  %v2018_v4 = vrot.slane %v2016_v53, 2 }
0x16c8   :  { %v1888_v56 = vadd.f32 1.0, %v5017_v42  ;;  %v2014_v42 = vld [vmem:[#allocation2 + $0x8] sm:$0xf] }
0x16ca   :  { %5018 = vrcp.f32 %v1888_v56  ;;  %v1900_v2 = vand.u32 2147483648, %v1888_v56  ;;  %vm1894_vm1 = vweird.f32 %v1888_v56  ;;  %v1898_v7 = vand.u32 2147483647, %v1888_v56 }
0x16cb   :  { %5020 = vpow2.f32 %v4640_v59 }
0x16cc   :  { %v1901_v61 = vor.u32 1.1754944e-38, %v1900_v2  ;;  %vm1899_vm2 = vcmp.eq.f32.partialorder %v1898_v7, 8.507059e+37 }
0x16d0   :  { %v5019_v24 = vpop.eup %5018 }
0x16d1   :  { %v1890_v44 = vmul.f32 %v5019_v24, %v1888_v56  ;;  %v5021_v47 = vpop.eup %5020  ;;  %vm1895_vm13 = vweird.f32 %v5019_v24 }
0x16d2   :  { %v1925_v3 = vadd.f32 1.0, %v5021_v47  ;;  %vm1896_vm6 = vmor %vm1894_vm1, %vm1895_vm13 }
0x16d3   :  { %v1891_v60 = vsub.f32 1.0, %v1890_v44 }
0x16d4   :  { %5022 = vrcp.f32 %v1925_v3  ;;  %v1937_v43 = vand.u32 2147483648, %v1925_v3  ;;  %vm1931_vm4 = vweird.f32 %v1925_v3  ;;  %v1935_v21 = vand.u32 2147483647, %v1925_v3 }
0x16d5   :  { %v1892_v63 = vmul.f32 %v5019_v24, %v1891_v60 }
0x16d6   :  { %v1938_v62 = vor.u32 1.1754944e-38, %v1937_v43  ;;  %vm1936_vm9 = vcmp.eq.f32.partialorder %v1935_v21, 8.507059e+37 }
0x16d7   :  { %v1893_v1 = vadd.f32 %v5019_v24, %v1892_v63 }
0x16d9   :  { %v1897_v8 = vsel %vm1896_vm6, %v5019_v24, %v1893_v1 }
0x16da   :  { %v1902_v11 = vsel %vm1899_vm2, %v1901_v61, %v1897_v8  ;;  %v5023_v18 = vpop.eup %5022 }
0x16db   :  { %v1927_v19 = vmul.f32 %v5023_v18, %v1925_v3  ;;  %vm1932_vm3 = vweird.f32 %v5023_v18  ;;  %v1905_v26 = vmul.f32 %v1902_v11, %v5986_v30 }
0x16dc   :  { %vm1933_vm5 = vmor %vm1931_vm4, %vm1932_vm3 }
0x16dd   :  { %v1928_v0 = vsub.f32 1.0, %v1927_v19 }
0x16df   :  { %v1929_v45 = vmul.f32 %v5023_v18, %v1928_v0 }
0x16e1   :  { %v1930_v6 = vadd.f32 %v5023_v18, %v1929_v45 }
0x16e3   :  { %v1934_v52 = vsel %vm1933_vm5, %v5023_v18, %v1930_v6 }
0x16e4   :  { %v1939_v23 = vsel %vm1936_vm9, %v1938_v62, %v1934_v52 }
0x16e5   :  { %v1942_v29 = vmul.f32 %v1939_v23, %v5990_v22 }
0x1720   :  { %v1908_v9 = vpop.permute.xlu2 %1907 }
0x1721   :  { %v1910_v15 = vmul.f32 %v1908_v9, %v1902_v11 }
0x1723   :  { %1912 = vrot.lane.b32.xlu1 %v1910_v15, %s5407_s25 }
0x1739   :  { %v1945_v14 = vpop.permute.xlu0 %1944 }
0x173a   :  { %v1947_v57 = vmul.f32 %v1945_v14, %v1939_v23 }
0x173c   :  { %1949 = vrot.lane.b32.xlu2 %v1947_v57, %s5407_s25 }
0x1795   :  { %v1913_v32 = vpop.permute.xlu1 %1912 }
0x1796   :  { %v1950_v37 = vpop.permute.xlu2 %1949  ;;  %v6017_v46 = vadd.f32 %v1913_v32, %v1905_v26 }
0x1797   :  { %v6019_v38 = vadd.f32 %v1950_v37, %v1942_v29 }
0x1798   :  { %5024 = vtanh.f32 %v6017_v46 }
0x1799   :  { %5026 = vtanh.f32 %v6019_v38 }
0x179e   :  { %v5025_v39 = vpop.eup %5024 }
0x179f   :  { %v5027_v17 = vpop.eup %5026  ;;  %1918 = vrot.lane.b32.xlu0 %v5025_v39, %s5397_s0 }
0x17a0   :  { %1955 = vrot.lane.b32.xlu1 %v5027_v17, %s5397_s0 }
0x1811   :  { %v1919_v48 = vpop.permute.xlu0 %1918 }
0x1812   :  { %v1921_v30 = vmul.f32 %v1919_v48, %v1902_v11  ;;  %v1956_v22 = vpop.permute.xlu1 %1955 }
0x1813   :  { %v1958_v50 = vmul.f32 %v1956_v22, %v1939_v23 }
0x1814   :  { %1960 = vst [vmem:[#allocation1] ss:$4 sm:$0xff] %v1921_v30 }
0x181b   :  { %v6025_v28 = vld.sshfl [vmem:[#allocation1] sm:$0xff pattern:$0x73625140] }
0x181c   :  { %1967 = vst [vmem:[#allocation1] ss:$4 sm:$0xff] %v1958_v50 }
0x1823   :  { %v6027_v34 = vld.sshfl [vmem:[#allocation1] sm:$0xff pattern:$0x73625140] }
0x1824   :  { %1973 = vst [vmem:[#allocation1] ss:$4 sm:$0xff] %v1921_v30 }
0x182b   :  { %v1974_v51 = vld.sshfl [vmem:[#allocation1] sm:$0xff pattern:$0x73625140] }
0x182c   :  { %1975 = vrot.lane.b32.xlu2 %v1974_v51, %s5407_s25  ;;  %1978 = vst [vmem:[#allocation1] ss:$4 sm:$0xff] %v1958_v50 }
0x1833   :  { %v1979_v55 = vld.sshfl [vmem:[#allocation1] sm:$0xff pattern:$0x73625140] }
0x1834   :  { %1980 = vrot.lane.b32.xlu0 %v1979_v55, %s5397_s0 }
0x1886   :  { %v1976_v12 = vpop.permute.xlu2 %1975 }
0x18a6   :  { %v1981_v16 = vpop.permute.xlu0 %1980 }
0x18a7   :  { %v1983_v27 = vsel %vm556_vm14, %v1976_v12, %v1981_v16 }
0x18a8   :  { %v1984_v41 = vpack.c.bf16 %v1983_v27, %v1983_v27 }
0x18aa   :  { %4641 = vmatmul.msk.bf16.vlgmr.msra.gmra.mxu0 %vm417_vm15, %v1984_v41  ;;  %4642 = vmatmul.msk.bf16.vlgmr.msra.gmra.mxu1 %vm417_vm15, %v1984_v41 }
0x18ab   :  { %2536 = vmatpush.bf16.msra.mxu0 %v5910_v49  ;;  %2549 = vmatpush.bf16.msra.mxu1 %v5915_v54 }
0x18af   :  { %2537 = vmatpush.bf16.msra.mxu0 %v5913_v40  ;;  %2550 = vmatpush.bf16.msra.mxu1 %v5919_v35 }
0x18b3   :  { %2538 = vmatpush.bf16.msra.mxu0 %v5923_v5  ;;  %2551 = vmatpush.bf16.msra.mxu1 %v5927_v20 }
0x18b7   :  { %2539 = vmatpush.bf16.msra.mxu0 %v5931_v25  ;;  %2552 = vmatpush.bf16.msra.mxu1 %v5935_v58 }
0x1927   :  { %v1997_v13 = vpop.f32.mrf.mxu0  ;;  %v2010_v56 = vpop.f32.mrf.mxu1 }
0x1928   :  { %v2015_v24 = vadd.f32 %v2014_v42, %v1997_v13  ;;  %v2020_v59 = vadd.f32 %v2018_v4, %v2010_v56 }
0x192a   :  { %5028 = vtanh.f32 %v2015_v24  ;;  %v4644_v3 = vmul.f32 -1.442695, %v2020_v59  ;;  %v4643_v8 = vmul.f32 -1.442695, %v2015_v24 }
0x192b   :  { %5030 = vtanh.f32 %v2020_v59 }
0x192c   :  { %5032 = vpow2.f32 %v4644_v3  ;;  %v2152_v3 = vld [vmem:[#allocation2 + $0x10] sm:$0xf] }
0x192f   :  { %v1999_v44 = vpop.f32.mrf.mxu0  ;;  %v2012_v60 = vpop.f32.mrf.mxu1 }
0x1930   :  { %v5029_v63 = vpop.eup %5028 }
0x1931   :  { %v5031_v47 = vpop.eup %5030  ;;  %2043 = vrot.lane.b32.xlu1 %v5029_v63, %s5397_s0 }
0x1932   :  { %2080 = vrot.lane.b32.xlu2 %v5031_v47, %s5397_s0  ;;  %v5033_v1 = vpop.eup %5032 }
0x1933   :  { %v2061_v2 = vadd.f32 1.0, %v5033_v1  ;;  %v2154_v1 = vrot.slane %v2152_v3, 2 }
0x1935   :  { %5034 = vrcp.f32 %v2061_v2  ;;  %v2073_v0 = vand.u32 2147483648, %v2061_v2  ;;  %vm2067_vm11 = vweird.f32 %v2061_v2  ;;  %v2071_v45 = vand.u32 2147483647, %v2061_v2 }
0x1936   :  { %5036 = vpow2.f32 %v4643_v8 }
0x1937   :  { %v2074_v43 = vor.u32 1.1754944e-38, %v2073_v0  ;;  %vm2072_vm13 = vcmp.eq.f32.partialorder %v2071_v45, 8.507059e+37 }
0x193b   :  { %v5035_v7 = vpop.eup %5034 }
0x193c   :  { %v2063_v61 = vmul.f32 %v5035_v7, %v2061_v2  ;;  %v5037_v11 = vpop.eup %5036  ;;  %vm2068_vm10 = vweird.f32 %v5035_v7 }
0x193d   :  { %v2024_v18 = vadd.f32 1.0, %v5037_v11  ;;  %vm2069_vm12 = vmor %vm2067_vm11, %vm2068_vm10 }
0x193e   :  { %v2064_v9 = vsub.f32 1.0, %v2063_v61 }
0x193f   :  { %5038 = vrcp.f32 %v2024_v18  ;;  %v2036_v32 = vand.u32 2147483648, %v2024_v18  ;;  %vm2030_vm6 = vweird.f32 %v2024_v18  ;;  %v2034_v37 = vand.u32 2147483647, %v2024_v18 }
0x1940   :  { %v2065_v15 = vmul.f32 %v5035_v7, %v2064_v9 }
0x1941   :  { %v2037_v17 = vor.u32 1.1754944e-38, %v2036_v32  ;;  %vm2035_vm3 = vcmp.eq.f32.partialorder %v2034_v37, 8.507059e+37 }
0x1942   :  { %v2066_v19 = vadd.f32 %v5035_v7, %v2065_v15 }
0x1944   :  { %v2070_v6 = vsel %vm2069_vm12, %v5035_v7, %v2066_v19  ;;  %v2150_v7 = vld [vmem:[#allocation2 + $0xc] sm:$0xf] }
0x1945   :  { %v2075_v52 = vsel %vm2072_vm13, %v2074_v43, %v2070_v6  ;;  %v5039_v62 = vpop.eup %5038 }
0x1946   :  { %v2026_v23 = vmul.f32 %v5039_v62, %v2024_v18  ;;  %vm2031_vm1 = vweird.f32 %v5039_v62  ;;  %v2078_v50 = vmul.f32 %v2075_v52, %v6019_v38 }
0x1947   :  { %vm2032_vm2 = vmor %vm2030_vm6, %vm2031_vm1 }
0x1948   :  { %v2027_v57 = vsub.f32 1.0, %v2026_v23 }
0x194a   :  { %v2028_v26 = vmul.f32 %v5039_v62, %v2027_v57 }
0x194c   :  { %v2029_v29 = vadd.f32 %v5039_v62, %v2028_v26 }
0x194e   :  { %v2033_v39 = vsel %vm2032_vm2, %v5039_v62, %v2029_v29 }
0x194f   :  { %v2038_v30 = vsel %vm2035_vm3, %v2037_v17, %v2033_v39 }
0x1950   :  { %v2041_v16 = vmul.f32 %v2038_v30, %v6017_v46 }
0x198c   :  { %v2081_v21 = vpop.permute.xlu2 %2080 }
0x198d   :  { %v2083_v14 = vmul.f32 %v2081_v21, %v2075_v52 }
0x198f   :  { %2085 = vrot.lane.b32.xlu1 %v2083_v14, %s5407_s25 }
0x19a3   :  { %v2044_v48 = vpop.permute.xlu1 %2043 }
0x19a4   :  { %v2046_v22 = vmul.f32 %v2044_v48, %v2038_v30 }
0x19a6   :  { %2048 = vrot.lane.b32.xlu0 %v2046_v22, %s5407_s25 }
0x1a01   :  { %v2086_v51 = vpop.permute.xlu1 %2085 }
0x1a02   :  { %v6047_v55 = vadd.f32 %v2086_v51, %v2078_v50 }
0x1a04   :  { %5040 = vtanh.f32 %v6047_v55 }
0x1a0a   :  { %v5041_v12 = vpop.eup %5040 }
0x1a0b   :  { %2091 = vrot.lane.b32.xlu0 %v5041_v12, %s5397_s0 }
0x1a18   :  { %v2049_v27 = vpop.permute.xlu0 %2048 }
0x1a19   :  { %v6052_v41 = vadd.f32 %v2049_v27, %v2041_v16 }
0x1a1b   :  { %5042 = vtanh.f32 %v6052_v41 }
0x1a21   :  { %v5043_v53 = vpop.eup %5042 }
0x1a22   :  { %2054 = vrot.lane.b32.xlu2 %v5043_v53, %s5397_s0 }
0x1a7c   :  { %v2055_v4 = vpop.permute.xlu2 %2054 }
0x1a7d   :  { %v2057_v38 = vmul.f32 %v2055_v4, %v2038_v30  ;;  %v2092_v13 = vpop.permute.xlu0 %2091 }
0x1a7e   :  { %v2094_v42 = vmul.f32 %v2092_v13, %v2075_v52 }
0x1a7f   :  { %2096 = vst [vmem:[#allocation1] ss:$4 sm:$0xff] %v2057_v38 }
0x1a86   :  { %v6056_v56 = vld.sshfl [vmem:[#allocation1] sm:$0xff pattern:$0x73625140] }
0x1a87   :  { %2103 = vst [vmem:[#allocation1] ss:$4 sm:$0xff] %v2094_v42 }
0x1a8e   :  { %v6058_v24 = vld.sshfl [vmem:[#allocation1] sm:$0xff pattern:$0x73625140] }
0x1a8f   :  { %2109 = vst [vmem:[#allocation1] ss:$4 sm:$0xff] %v2057_v38 }
0x1a96   :  { %v2110_v46 = vld.sshfl [vmem:[#allocation1] sm:$0xff pattern:$0x73625140] }
0x1a97   :  { %2111 = vrot.lane.b32.xlu1 %v2110_v46, %s5407_s25  ;;  %2114 = vst [vmem:[#allocation1] ss:$4 sm:$0xff] %v2094_v42 }
0x1a9e   :  { %v2115_v59 = vld.sshfl [vmem:[#allocation1] sm:$0xff pattern:$0x73625140] }
0x1a9f   :  { %2116 = vrot.lane.b32.xlu2 %v2115_v59, %s5397_s0 }
0x1af9   :  { %v2117_v44 = vpop.permute.xlu2 %2116 }
0x1b09   :  { %v2112_v60 = vpop.permute.xlu1 %2111 }
0x1b0a   :  { %v2119_v63 = vsel %vm556_vm14, %v2112_v60, %v2117_v44 }
0x1b0b   :  { %v2120_v47 = vpack.c.bf16 %v2119_v63, %v2119_v63 }
0x1b0d   :  { %4645 = vmatmul.msk.bf16.vlgmr.msra.gmra.mxu2 %vm417_vm15, %v2120_v47  ;;  %4646 = vmatmul.msk.bf16.vlgmr.msra.gmra.mxu3 %vm417_vm15, %v2120_v47 }
0x1b0e   :  { %2672 = vmatpush.bf16.msra.mxu2 %v5910_v49  ;;  %2685 = vmatpush.bf16.msra.mxu3 %v5915_v54 }
0x1b12   :  { %2673 = vmatpush.bf16.msra.mxu2 %v5913_v40  ;;  %2686 = vmatpush.bf16.msra.mxu3 %v5919_v35 }
0x1b16   :  { %2674 = vmatpush.bf16.msra.mxu2 %v5923_v5  ;;  %2687 = vmatpush.bf16.msra.mxu3 %v5927_v20 }
0x1b1a   :  { %2675 = vmatpush.bf16.msra.mxu2 %v5931_v25  ;;  %2688 = vmatpush.bf16.msra.mxu3 %v5935_v58 }
0x1b90   :  { %v2133_v2 = vpop.f32.mrf.mxu2  ;;  %v2146_v8 = vpop.f32.mrf.mxu3 }
0x1b91   :  { %v2151_v49 = vadd.f32 %v2150_v7, %v2133_v2  ;;  %v2156_v61 = vadd.f32 %v2154_v1, %v2146_v8 }
0x1b93   :  { %5044 = vtanh.f32 %v2151_v49  ;;  %v4647_v5 = vmul.f32 -1.442695, %v2151_v49  ;;  %v4648_v20 = vmul.f32 -1.442695, %v2156_v61  ;;  %v2288_v49 = vld [vmem:[#allocation2 + $0xc] sm:$0xf] }
0x1b94   :  { %5046 = vtanh.f32 %v2156_v61  ;;  %v2290_v61 = vrot.slane %v2288_v49, 2 }
0x1b95   :  { %5048 = vpow2.f32 %v4647_v5 }
0x1b96   :  { %5050 = vpow2.f32 %v4648_v20 }
0x1b98   :  { %v2135_v40 = vpop.f32.mrf.mxu2  ;;  %v2148_v54 = vpop.f32.mrf.mxu3 }
0x1b99   :  { %v5045_v35 = vpop.eup %5044  ;;  %v2286_v54 = vld [vmem:[#allocation2 + $0x10] sm:$0xf] }
0x1b9a   :  { %v5047_v9 = vpop.eup %5046  ;;  %2179 = vrot.lane.b32.xlu0 %v5045_v35, %s5397_s0 }
0x1b9b   :  { %2216 = vrot.lane.b32.xlu1 %v5047_v9, %s5397_s0  ;;  %v5049_v25 = vpop.eup %5048 }
0x1b9c   :  { %v5051_v58 = vpop.eup %5050  ;;  %v2160_v11 = vadd.f32 1.0, %v5049_v25 }
0x1b9d   :  { %v2197_v15 = vadd.f32 1.0, %v5051_v58 }
0x1b9e   :  { %5052 = vrcp.f32 %v2160_v11  ;;  %v2172_v23 = vand.u32 2147483648, %v2160_v11  ;;  %vm2166_vm9 = vweird.f32 %v2160_v11  ;;  %v2170_v26 = vand.u32 2147483647, %v2160_v11 }
0x1b9f   :  { %5054 = vrcp.f32 %v2197_v15  ;;  %v2209_v57 = vand.u32 2147483648, %v2197_v15  ;;  %vm2203_vm10 = vweird.f32 %v2197_v15  ;;  %v2207_v29 = vand.u32 2147483647, %v2197_v15 }
0x1ba0   :  { %v2173_v39 = vor.u32 1.1754944e-38, %v2172_v23  ;;  %vm2171_vm13 = vcmp.eq.f32.partialorder %v2170_v26, 8.507059e+37 }
0x1ba1   :  { %v2210_v17 = vor.u32 1.1754944e-38, %v2209_v57  ;;  %vm2208_vm1 = vcmp.eq.f32.partialorder %v2207_v29, 8.507059e+37 }
0x1ba4   :  { %v5053_v18 = vpop.eup %5052 }
0x1ba5   :  { %v5055_v19 = vpop.eup %5054  ;;  %v2162_v0 = vmul.f32 %v5053_v18, %v2160_v11  ;;  %vm2167_vm4 = vweird.f32 %v5053_v18 }
0x1ba6   :  { %v2199_v45 = vmul.f32 %v5055_v19, %v2197_v15  ;;  %vm2204_vm5 = vweird.f32 %v5055_v19  ;;  %vm2168_vm11 = vmor %vm2166_vm9, %vm2167_vm4 }
0x1ba7   :  { %v2163_v6 = vsub.f32 1.0, %v2162_v0  ;;  %vm2205_vm12 = vmor %vm2203_vm10, %vm2204_vm5 }
0x1ba8   :  { %v2200_v43 = vsub.f32 1.0, %v2199_v45 }
0x1ba9   :  { %v2164_v21 = vmul.f32 %v5053_v18, %v2163_v6 }
0x1baa   :  { %v2201_v52 = vmul.f32 %v5055_v19, %v2200_v43 }
0x1bab   :  { %v2165_v62 = vadd.f32 %v5053_v18, %v2164_v21 }
0x1bac   :  { %v2202_v14 = vadd.f32 %v5055_v19, %v2201_v52 }
0x1bad   :  { %v2169_v32 = vsel %vm2168_vm11, %v5053_v18, %v2165_v62 }
0x1bae   :  { %v2206_v37 = vsel %vm2205_vm12, %v5055_v19, %v2202_v14  ;;  %v2174_v30 = vsel %vm2171_vm13, %v2173_v39, %v2169_v32 }
0x1baf   :  { %v2211_v50 = vsel %vm2208_vm1, %v2210_v17, %v2206_v37  ;;  %v2177_v16 = vmul.f32 %v2174_v30, %v6052_v41 }
0x1bb0   :  { %v2214_v38 = vmul.f32 %v2211_v50, %v6047_v55 }
0x1c0c   :  { %v2180_v48 = vpop.permute.xlu0 %2179 }
0x1c0d   :  { %v2217_v22 = vpop.permute.xlu1 %2216  ;;  %v2182_v51 = vmul.f32 %v2180_v48, %v2174_v30 }
0x1c0e   :  { %v2219_v12 = vmul.f32 %v2217_v22, %v2211_v50 }
0x1c0f   :  { %2184 = vrot.lane.b32.xlu2 %v2182_v51, %s5407_s25 }
0x1c10   :  { %2221 = vrot.lane.b32.xlu0 %v2219_v12, %s5407_s25 }
0x1c69   :  { %v2185_v27 = vpop.permute.xlu2 %2184 }
0x1c6a   :  { %v6078_v53 = vadd.f32 %v2185_v27, %v2177_v16 }
0x1c6c   :  { %5056 = vtanh.f32 %v6078_v53 }
0x1c72   :  { %v5057_v4 = vpop.eup %5056 }
0x1c73   :  { %2190 = vrot.lane.b32.xlu1 %v5057_v4, %s5397_s0 }
0x1c82   :  { %v2222_v13 = vpop.permute.xlu0 %2221 }
0x1c83   :  { %v6083_v42 = vadd.f32 %v2222_v13, %v2214_v38 }
0x1c85   :  { %5058 = vtanh.f32 %v6083_v42 }
0x1c8b   :  { %v5059_v46 = vpop.eup %5058 }
0x1c8c   :  { %2227 = vrot.lane.b32.xlu2 %v5059_v46, %s5397_s0 }
0x1ce5   :  { %v2191_v59 = vpop.permute.xlu1 %2190 }
0x1ce6   :  { %v2193_v41 = vmul.f32 %v2191_v59, %v2174_v30  ;;  %v2228_v44 = vpop.permute.xlu2 %2227 }
0x1ce7   :  { %v2230_v60 = vmul.f32 %v2228_v44, %v2211_v50 }
0x1ce8   :  { %2232 = vst [vmem:[#allocation1] ss:$4 sm:$0xff] %v2193_v41 }
0x1cef   :  { %v6087_v63 = vld.sshfl [vmem:[#allocation1] sm:$0xff pattern:$0x73625140] }
0x1cf0   :  { %2239 = vst [vmem:[#allocation1] ss:$4 sm:$0xff] %v2230_v60 }
0x1cf7   :  { %v6089_v47 = vld.sshfl [vmem:[#allocation1] sm:$0xff pattern:$0x73625140] }
0x1cf8   :  { %2245 = vst [vmem:[#allocation1] ss:$4 sm:$0xff] %v2193_v41 }
0x1cff   :  { %v2246_v55 = vld.sshfl [vmem:[#allocation1] sm:$0xff pattern:$0x73625140] }
0x1d00   :  { %2247 = vrot.lane.b32.xlu0 %v2246_v55, %s5407_s25  ;;  %2250 = vst [vmem:[#allocation1] ss:$4 sm:$0xff] %v2230_v60 }
0x1d07   :  { %v2251_v3 = vld.sshfl [vmem:[#allocation1] sm:$0xff pattern:$0x73625140] }
0x1d08   :  { %2252 = vrot.lane.b32.xlu1 %v2251_v3, %s5397_s0 }
0x1d72   :  { %v2248_v1 = vpop.permute.xlu0 %2247 }
0x1d7a   :  { %v2253_v2 = vpop.permute.xlu1 %2252 }
0x1d7b   :  { %v2255_v7 = vsel %vm556_vm14, %v2248_v1, %v2253_v2 }
0x1d7c   :  { %v2256_v8 = vpack.c.bf16 %v2255_v7, %v2255_v7 }
0x1d7e   :  { %4649 = vmatmul.msk.bf16.vlgmr.msrb.gmra.mxu0 %vm417_vm15, %v2256_v8  ;;  %4650 = vmatmul.msk.bf16.vlgmr.msrb.gmra.mxu1 %vm417_vm15, %v2256_v8 }
0x1dfb   :  { %v2269_v40 = vpop.f32.mrf.mxu0  ;;  %v2282_v35 = vpop.f32.mrf.mxu1 }
0x1dfc   :  { %v2287_v9 = vadd.f32 %v2286_v54, %v2269_v40  ;;  %v2292_v5 = vadd.f32 %v2290_v61, %v2282_v35 }
0x1dfe   :  { %5060 = vtanh.f32 %v2287_v9  ;;  %v4651_v15 = vmul.f32 -1.442695, %v2287_v9  ;;  %v4652_v45 = vmul.f32 -1.442695, %v2292_v5 }
0x1dff   :  { %5062 = vtanh.f32 %v2292_v5 }
0x1e00   :  { %5064 = vpow2.f32 %v4651_v15 }
0x1e03   :  { %v2271_v20 = vpop.f32.mrf.mxu0  ;;  %v2284_v25 = vpop.f32.mrf.mxu1 }
0x1e04   :  { %v5061_v58 = vpop.eup %5060  ;;  %v2424_v20 = vld [vmem:[#allocation2 + $0x8] sm:$0xf] }
0x1e05   :  { %v5063_v11 = vpop.eup %5062  ;;  %2315 = vrot.lane.b32.xlu2 %v5061_v58, %s5397_s0  ;;  %v2426_v25 = vrot.slane %v2424_v20, 2 }
0x1e06   :  { %2352 = vrot.lane.b32.xlu0 %v5063_v11, %s5397_s0  ;;  %v5065_v18 = vpop.eup %5064  ;;  %v2422_v11 = vld [vmem:[#allocation2 + $0x14] sm:$0xf] }
0x1e07   :  { %v2296_v19 = vadd.f32 1.0, %v5065_v18 }
0x1e09   :  { %5066 = vrcp.f32 %v2296_v19  ;;  %v2308_v23 = vand.u32 2147483648, %v2296_v19  ;;  %vm2302_vm2 = vweird.f32 %v2296_v19  ;;  %v2306_v57 = vand.u32 2147483647, %v2296_v19 }
0x1e0a   :  { %5068 = vpow2.f32 %v4652_v45 }
0x1e0b   :  { %v2309_v29 = vor.u32 1.1754944e-38, %v2308_v23  ;;  %vm2307_vm4 = vcmp.eq.f32.partialorder %v2306_v57, 8.507059e+37 }
0x1e0f   :  { %v5067_v0 = vpop.eup %5066 }
0x1e10   :  { %v2298_v6 = vmul.f32 %v5067_v0, %v2296_v19  ;;  %v5069_v52 = vpop.eup %5068  ;;  %vm2303_vm6 = vweird.f32 %v5067_v0 }
0x1e11   :  { %v2333_v62 = vadd.f32 1.0, %v5069_v52  ;;  %vm2304_vm3 = vmor %vm2302_vm2, %vm2303_vm6 }
0x1e12   :  { %v2299_v43 = vsub.f32 1.0, %v2298_v6 }
0x1e13   :  { %5070 = vrcp.f32 %v2333_v62  ;;  %v2345_v51 = vand.u32 2147483648, %v2333_v62  ;;  %vm2339_vm9 = vweird.f32 %v2333_v62  ;;  %v2343_v12 = vand.u32 2147483647, %v2333_v62 }
0x1e14   :  { %v2300_v21 = vmul.f32 %v5067_v0, %v2299_v43 }
0x1e15   :  { %v2346_v27 = vor.u32 1.1754944e-38, %v2345_v51  ;;  %vm2344_vm11 = vcmp.eq.f32.partialorder %v2343_v12, 8.507059e+37 }
0x1e16   :  { %v2301_v14 = vadd.f32 %v5067_v0, %v2300_v21 }
0x1e18   :  { %v2305_v26 = vsel %vm2304_vm3, %v5067_v0, %v2301_v14 }
0x1e19   :  { %v2310_v37 = vsel %vm2307_vm4, %v2309_v29, %v2305_v26  ;;  %v5071_v17 = vpop.eup %5070 }
0x1e1a   :  { %v2335_v48 = vmul.f32 %v5071_v17, %v2333_v62  ;;  %vm2340_vm5 = vweird.f32 %v5071_v17  ;;  %v2313_v46 = vmul.f32 %v2310_v37, %v6078_v53 }
0x1e1b   :  { %vm2341_vm10 = vmor %vm2339_vm9, %vm2340_vm5 }
0x1e1c   :  { %v2336_v30 = vsub.f32 1.0, %v2335_v48 }
0x1e1e   :  { %v2337_v22 = vmul.f32 %v5071_v17, %v2336_v30 }
0x1e20   :  { %v2338_v50 = vadd.f32 %v5071_v17, %v2337_v22 }
0x1e22   :  { %v2342_v16 = vsel %vm2341_vm10, %v5071_v17, %v2338_v50 }
0x1e23   :  { %v2347_v38 = vsel %vm2344_vm11, %v2346_v27, %v2342_v16 }
0x1e24   :  { %v2350_v59 = vmul.f32 %v2347_v38, %v6083_v42 }
0x1e5f   :  { %v2316_v32 = vpop.permute.xlu2 %2315 }
0x1e60   :  { %v2318_v39 = vmul.f32 %v2316_v32, %v2310_v37 }
0x1e62   :  { %2320 = vrot.lane.b32.xlu1 %v2318_v39, %s5407_s25 }
0x1e78   :  { %v2353_v4 = vpop.permute.xlu0 %2352 }
0x1e79   :  { %v2355_v13 = vmul.f32 %v2353_v4, %v2347_v38 }
0x1e7b   :  { %2357 = vrot.lane.b32.xlu2 %v2355_v13, %s5407_s25 }
0x1ed4   :  { %v2321_v41 = vpop.permute.xlu1 %2320 }
0x1ed5   :  { %v2358_v44 = vpop.permute.xlu2 %2357  ;;  %v6102_v60 = vadd.f32 %v2321_v41, %v2313_v46 }
0x1ed6   :  { %v6104_v55 = vadd.f32 %v2358_v44, %v2350_v59 }
0x1ed7   :  { %5072 = vtanh.f32 %v6102_v60 }
0x1ed8   :  { %5074 = vtanh.f32 %v6104_v55 }
0x1edd   :  { %v5073_v3 = vpop.eup %5072 }
0x1ede   :  { %v5075_v1 = vpop.eup %5074  ;;  %2326 = vrot.lane.b32.xlu0 %v5073_v3, %s5397_s0 }
0x1edf   :  { %2363 = vrot.lane.b32.xlu1 %v5075_v1, %s5397_s0 }
0x1f50   :  { %v2327_v2 = vpop.permute.xlu0 %2326 }
0x1f51   :  { %v2329_v53 = vmul.f32 %v2327_v2, %v2310_v37  ;;  %v2364_v42 = vpop.permute.xlu1 %2363 }
0x1f52   :  { %v2366_v7 = vmul.f32 %v2364_v42, %v2347_v38 }
0x1f53   :  { %2368 = vst [vmem:[#allocation1] ss:$4 sm:$0xff] %v2329_v53 }
0x1f5a   :  { %v6110_v8 = vld.sshfl [vmem:[#allocation1] sm:$0xff pattern:$0x73625140] }
0x1f5b   :  { %2375 = vst [vmem:[#allocation1] ss:$4 sm:$0xff] %v2366_v7 }
0x1f62   :  { %v6112_v49 = vld.sshfl [vmem:[#allocation1] sm:$0xff pattern:$0x73625140] }
0x1f63   :  { %2381 = vst [vmem:[#allocation1] ss:$4 sm:$0xff] %v2329_v53 }
0x1f6a   :  { %v2382_v61 = vld.sshfl [vmem:[#allocation1] sm:$0xff pattern:$0x73625140] }
0x1f6b   :  { %2383 = vrot.lane.b32.xlu2 %v2382_v61, %s5407_s25  ;;  %2386 = vst [vmem:[#allocation1] ss:$4 sm:$0xff] %v2366_v7 }
0x1f72   :  { %v2387_v40 = vld.sshfl [vmem:[#allocation1] sm:$0xff pattern:$0x73625140] }
0x1f73   :  { %2388 = vrot.lane.b32.xlu0 %v2387_v40, %s5397_s0 }
0x1fc5   :  { %v2384_v54 = vpop.permute.xlu2 %2383 }
0x1fe5   :  { %v2389_v35 = vpop.permute.xlu0 %2388 }
0x1fe6   :  { %v2391_v9 = vsel %vm556_vm14, %v2384_v54, %v2389_v35 }
0x1fe7   :  { %v2392_v5 = vpack.c.bf16 %v2391_v9, %v2391_v9 }
0x1fe9   :  { %4653 = vmatmul.msk.bf16.vlgmr.msrb.gmra.mxu2 %vm417_vm15, %v2392_v5  ;;  %4654 = vmatmul.msk.bf16.vlgmr.msrb.gmra.mxu3 %vm417_vm15, %v2392_v5 }
0x206c   :  { %v2405_v58 = vpop.f32.mrf.mxu2  ;;  %v2418_v15 = vpop.f32.mrf.mxu3 }
0x206d   :  { %v2423_v18 = vadd.f32 %v2422_v11, %v2405_v58  ;;  %v2428_v19 = vadd.f32 %v2426_v25, %v2418_v15 }
0x206f   :  { %5076 = vtanh.f32 %v2423_v18  ;;  %v4656_v21 = vmul.f32 -1.442695, %v2428_v19  ;;  %v4655_v23 = vmul.f32 -1.442695, %v2423_v18 }
0x2070   :  { %5078 = vtanh.f32 %v2428_v19 }
0x2071   :  { %5080 = vpow2.f32 %v4656_v21 }
0x2074   :  { %v2407_v0 = vpop.f32.mrf.mxu2  ;;  %v2420_v45 = vpop.f32.mrf.mxu3 }
0x2075   :  { %v5077_v6 = vpop.eup %5076 }
0x2076   :  { %v5079_v43 = vpop.eup %5078  ;;  %2451 = vrot.lane.b32.xlu1 %v5077_v6, %s5397_s0  ;;  %v2560_v6 = vld [vmem:[#allocation2 + $0x4] sm:$0xf] }
0x2077   :  { %2488 = vrot.lane.b32.xlu2 %v5079_v43, %s5397_s0  ;;  %v5081_v52 = vpop.eup %5080  ;;  %v2562_v43 = vrot.slane %v2560_v6, 2 }
0x2078   :  { %v2469_v62 = vadd.f32 1.0, %v5081_v52  ;;  %v2558_v52 = vld [vmem:[#allocation2 + $0x18] sm:$0xf] }
0x207a   :  { %5082 = vrcp.f32 %v2469_v62  ;;  %v2481_v17 = vand.u32 2147483648, %v2469_v62  ;;  %vm2475_vm13 = vweird.f32 %v2469_v62  ;;  %v2479_v48 = vand.u32 2147483647, %v2469_v62 }
0x207b   :  { %5084 = vpow2.f32 %v4655_v23 }
0x207c   :  { %v2482_v22 = vor.u32 1.1754944e-38, %v2481_v17  ;;  %vm2480_vm6 = vcmp.eq.f32.partialorder %v2479_v48, 8.507059e+37 }
0x2080   :  { %v5083_v14 = vpop.eup %5082 }
0x2081   :  { %v2471_v57 = vmul.f32 %v5083_v14, %v2469_v62  ;;  %v5085_v29 = vpop.eup %5084  ;;  %vm2476_vm12 = vweird.f32 %v5083_v14 }
0x2082   :  { %v2432_v37 = vadd.f32 1.0, %v5085_v29  ;;  %vm2477_vm1 = vmor %vm2475_vm13, %vm2476_vm12 }
0x2083   :  { %v2472_v26 = vsub.f32 1.0, %v2471_v57 }
0x2084   :  { %5086 = vrcp.f32 %v2432_v37  ;;  %v2444_v46 = vand.u32 2147483648, %v2432_v37  ;;  %vm2438_vm3 = vweird.f32 %v2432_v37  ;;  %v2442_v59 = vand.u32 2147483647, %v2432_v37 }
0x2085   :  { %v2473_v32 = vmul.f32 %v5083_v14, %v2472_v26 }
0x2086   :  { %v2445_v44 = vor.u32 1.1754944e-38, %v2444_v46  ;;  %vm2443_vm5 = vcmp.eq.f32.partialorder %v2442_v59, 8.507059e+37 }
0x2087   :  { %v2474_v39 = vadd.f32 %v5083_v14, %v2473_v32 }
0x2089   :  { %v2478_v30 = vsel %vm2477_vm1, %v5083_v14, %v2474_v39 }
0x208a   :  { %v2483_v51 = vsel %vm2480_vm6, %v2482_v22, %v2478_v30  ;;  %v5087_v12 = vpop.eup %5086 }
0x208b   :  { %v2434_v27 = vmul.f32 %v5087_v12, %v2432_v37  ;;  %vm2439_vm2 = vweird.f32 %v5087_v12  ;;  %v2486_v53 = vmul.f32 %v2483_v51, %v6104_v55 }
0x208c   :  { %vm2440_vm4 = vmor %vm2438_vm3, %vm2439_vm2 }
0x208d   :  { %v2435_v4 = vsub.f32 1.0, %v2434_v27 }
0x208f   :  { %v2436_v38 = vmul.f32 %v5087_v12, %v2435_v4 }
0x2091   :  { %v2437_v13 = vadd.f32 %v5087_v12, %v2436_v38 }
0x2093   :  { %v2441_v41 = vsel %vm2440_vm4, %v5087_v12, %v2437_v13 }
0x2094   :  { %v2446_v1 = vsel %vm2443_vm5, %v2445_v44, %v2441_v41 }
0x2095   :  { %v2449_v40 = vmul.f32 %v2446_v1, %v6102_v60 }
0x20d1   :  { %v2489_v50 = vpop.permute.xlu2 %2488 }
0x20d2   :  { %v2491_v16 = vmul.f32 %v2489_v50, %v2483_v51 }
0x20d4   :  { %2493 = vrot.lane.b32.xlu1 %v2491_v16, %s5407_s25 }
0x20e8   :  { %v2452_v3 = vpop.permute.xlu1 %2451 }
0x20e9   :  { %v2454_v2 = vmul.f32 %v2452_v3, %v2446_v1 }
0x20eb   :  { %2456 = vrot.lane.b32.xlu0 %v2454_v2, %s5407_s25 }
0x2146   :  { %v2494_v42 = vpop.permute.xlu1 %2493 }
0x2147   :  { %v6124_v7 = vadd.f32 %v2494_v42, %v2486_v53 }
0x2149   :  { %5088 = vtanh.f32 %v6124_v7 }
0x214f   :  { %v5089_v61 = vpop.eup %5088 }
0x2150   :  { %2499 = vrot.lane.b32.xlu0 %v5089_v61, %s5397_s0 }
0x215d   :  { %v2457_v54 = vpop.permute.xlu0 %2456 }
0x215e   :  { %v6129_v35 = vadd.f32 %v2457_v54, %v2449_v40 }
0x2160   :  { %5090 = vtanh.f32 %v6129_v35 }
0x2166   :  { %v5091_v9 = vpop.eup %5090 }
0x2167   :  { %2462 = vrot.lane.b32.xlu2 %v5091_v9, %s5397_s0 }
0x21c1   :  { %v2463_v5 = vpop.permute.xlu2 %2462 }
0x21c2   :  { %v2465_v55 = vmul.f32 %v2463_v5, %v2446_v1  ;;  %v2500_v20 = vpop.permute.xlu0 %2499 }
0x21c3   :  { %v2502_v25 = vmul.f32 %v2500_v20, %v2483_v51 }
0x21c4   :  { %2504 = vst [vmem:[#allocation1] ss:$4 sm:$0xff] %v2465_v55 }
0x21cb   :  { %v6133_v58 = vld.sshfl [vmem:[#allocation1] sm:$0xff pattern:$0x73625140] }
0x21cc   :  { %2511 = vst [vmem:[#allocation1] ss:$4 sm:$0xff] %v2502_v25 }
0x21d3   :  { %v6135_v11 = vld.sshfl [vmem:[#allocation1] sm:$0xff pattern:$0x73625140] }
0x21d4   :  { %2517 = vst [vmem:[#allocation1] ss:$4 sm:$0xff] %v2465_v55 }
0x21db   :  { %v2518_v60 = vld.sshfl [vmem:[#allocation1] sm:$0xff pattern:$0x73625140] }
0x21dc   :  { %2519 = vrot.lane.b32.xlu1 %v2518_v60, %s5407_s25  ;;  %2522 = vst [vmem:[#allocation1] ss:$4 sm:$0xff] %v2502_v25 }
0x21e3   :  { %v2523_v15 = vld.sshfl [vmem:[#allocation1] sm:$0xff pattern:$0x73625140] }
0x21e4   :  { %2524 = vrot.lane.b32.xlu2 %v2523_v15, %s5397_s0 }
0x223e   :  { %v2525_v18 = vpop.permute.xlu2 %2524 }
0x224e   :  { %v2520_v19 = vpop.permute.xlu1 %2519 }
0x224f   :  { %v2527_v0 = vsel %vm556_vm14, %v2520_v19, %v2525_v18 }
0x2250   :  { %v2528_v45 = vpack.c.bf16 %v2527_v0, %v2527_v0 }
0x2252   :  { %4657 = vmatmul.msk.bf16.vlgmr.msra.gmra.mxu0 %vm417_vm15, %v2528_v45  ;;  %4658 = vmatmul.msk.bf16.vlgmr.msra.gmra.mxu1 %vm417_vm15, %v2528_v45 }
0x22cf   :  { %v2541_v21 = vpop.f32.mrf.mxu0  ;;  %v2554_v62 = vpop.f32.mrf.mxu1 }
0x22d0   :  { %v2559_v14 = vadd.f32 %v2558_v52, %v2541_v21  ;;  %v2564_v23 = vadd.f32 %v2562_v43, %v2554_v62 }
0x22d2   :  { %5092 = vtanh.f32 %v2559_v14  ;;  %v4659_v37 = vmul.f32 -1.442695, %v2559_v14  ;;  %v4660_v39 = vmul.f32 -1.442695, %v2564_v23 }
0x22d3   :  { %5094 = vtanh.f32 %v2564_v23 }
0x22d4   :  { %5096 = vpow2.f32 %v4659_v37  ;;  %v2696_v37 = vld [vmem:[#allocation2] sm:$0xf] }
0x22d5   :  { %5098 = vpow2.f32 %v4660_v39  ;;  %v2698_v39 = vrot.slane %v2696_v37, 2 }
0x22d7   :  { %v2543_v57 = vpop.f32.mrf.mxu0  ;;  %v2556_v26 = vpop.f32.mrf.mxu1 }
0x22d8   :  { %v5093_v29 = vpop.eup %5092 }
0x22d9   :  { %v5095_v32 = vpop.eup %5094  ;;  %2587 = vrot.lane.b32.xlu0 %v5093_v29, %s5397_s0 }
0x22da   :  { %2624 = vrot.lane.b32.xlu1 %v5095_v32, %s5397_s0  ;;  %v5097_v17 = vpop.eup %5096 }
0x22db   :  { %v5099_v48 = vpop.eup %5098  ;;  %v2568_v30 = vadd.f32 1.0, %v5097_v17 }
0x22dc   :  { %v2605_v22 = vadd.f32 1.0, %v5099_v48  ;;  %v2694_v48 = vld [vmem:[#allocation2 + $0x1c] sm:$0xf] }
0x22dd   :  { %5100 = vrcp.f32 %v2568_v30  ;;  %v2580_v41 = vand.u32 2147483648, %v2568_v30  ;;  %vm2574_vm11 = vweird.f32 %v2568_v30  ;;  %v2578_v3 = vand.u32 2147483647, %v2568_v30 }
0x22de   :  { %5102 = vrcp.f32 %v2605_v22  ;;  %v2617_v44 = vand.u32 2147483648, %v2605_v22  ;;  %vm2611_vm12 = vweird.f32 %v2605_v22  ;;  %v2615_v1 = vand.u32 2147483647, %v2605_v22 }
0x22df   :  { %v2581_v42 = vor.u32 1.1754944e-38, %v2580_v41  ;;  %vm2579_vm6 = vcmp.eq.f32.partialorder %v2578_v3, 8.507059e+37 }
0x22e0   :  { %v2618_v61 = vor.u32 1.1754944e-38, %v2617_v44  ;;  %vm2616_vm2 = vcmp.eq.f32.partialorder %v2615_v1, 8.507059e+37 }
0x22e3   :  { %v5101_v50 = vpop.eup %5100 }
0x22e4   :  { %v5103_v51 = vpop.eup %5102  ;;  %v2570_v12 = vmul.f32 %v5101_v50, %v2568_v30  ;;  %vm2575_vm9 = vweird.f32 %v5101_v50 }
0x22e5   :  { %v2607_v16 = vmul.f32 %v5103_v51, %v2605_v22  ;;  %vm2612_vm10 = vweird.f32 %v5103_v51  ;;  %vm2576_vm13 = vmor %vm2574_vm11, %vm2575_vm9 }
0x22e6   :  { %v2571_v27 = vsub.f32 1.0, %v2570_v12  ;;  %vm2613_vm1 = vmor %vm2611_vm12, %vm2612_vm10 }
0x22e7   :  { %v2608_v4 = vsub.f32 1.0, %v2607_v16 }
0x22e8   :  { %v2572_v38 = vmul.f32 %v5101_v50, %v2571_v27 }
0x22e9   :  { %v2609_v13 = vmul.f32 %v5103_v51, %v2608_v4 }
0x22ea   :  { %v2573_v46 = vadd.f32 %v5101_v50, %v2572_v38 }
0x22eb   :  { %v2610_v59 = vadd.f32 %v5103_v51, %v2609_v13 }
0x22ec   :  { %v2577_v2 = vsel %vm2576_vm13, %v5101_v50, %v2573_v46 }
0x22ed   :  { %v2614_v53 = vsel %vm2613_vm1, %v5103_v51, %v2610_v59  ;;  %v2582_v54 = vsel %vm2579_vm6, %v2581_v42, %v2577_v2 }
0x22ee   :  { %v2619_v5 = vsel %vm2616_vm2, %v2618_v61, %v2614_v53  ;;  %v2585_v25 = vmul.f32 %v2582_v54, %v6129_v35 }
0x22ef   :  { %v2622_v19 = vmul.f32 %v2619_v5, %v6124_v7 }
0x234b   :  { %v2588_v40 = vpop.permute.xlu0 %2587 }
0x234c   :  { %v2625_v9 = vpop.permute.xlu1 %2624  ;;  %v2590_v55 = vmul.f32 %v2588_v40, %v2582_v54 }
0x234d   :  { %v2627_v20 = vmul.f32 %v2625_v9, %v2619_v5 }
0x234e   :  { %2592 = vrot.lane.b32.xlu2 %v2590_v55, %s5407_s25 }
0x234f   :  { %2629 = vrot.lane.b32.xlu0 %v2627_v20, %s5407_s25 }
0x23a8   :  { %v2593_v60 = vpop.permute.xlu2 %2592 }
0x23a9   :  { %v6147_v15 = vadd.f32 %v2593_v60, %v2585_v25 }
0x23ab   :  { %5104 = vtanh.f32 %v6147_v15 }
0x23b1   :  { %v5105_v18 = vpop.eup %5104 }
0x23b2   :  { %2598 = vrot.lane.b32.xlu1 %v5105_v18, %s5397_s0 }
0x23c1   :  { %v2630_v0 = vpop.permute.xlu0 %2629 }
0x23c2   :  { %v6152_v45 = vadd.f32 %v2630_v0, %v2622_v19 }
0x23c4   :  { %5106 = vtanh.f32 %v6152_v45 }
0x23ca   :  { %v5107_v6 = vpop.eup %5106 }
0x23cb   :  { %2635 = vrot.lane.b32.xlu2 %v5107_v6, %s5397_s0 }
0x2424   :  { %v2599_v43 = vpop.permute.xlu1 %2598 }
0x2425   :  { %v2601_v35 = vmul.f32 %v2599_v43, %v2582_v54  ;;  %v2636_v21 = vpop.permute.xlu2 %2635 }
0x2426   :  { %v2638_v52 = vmul.f32 %v2636_v21, %v2619_v5 }
0x2427   :  { %2640 = vst [vmem:[#allocation1] ss:$4 sm:$0xff] %v2601_v35 }
0x242e   :  { %v6156_v62 = vld.sshfl [vmem:[#allocation1] sm:$0xff pattern:$0x73625140] }
0x242f   :  { %2647 = vst [vmem:[#allocation1] ss:$4 sm:$0xff] %v2638_v52 }
0x2436   :  { %v6158_v14 = vld.sshfl [vmem:[#allocation1] sm:$0xff pattern:$0x73625140] }
0x2437   :  { %2653 = vst [vmem:[#allocation1] ss:$4 sm:$0xff] %v2601_v35 }
0x243e   :  { %v2654_v7 = vld.sshfl [vmem:[#allocation1] sm:$0xff pattern:$0x73625140] }
0x243f   :  { %2655 = vrot.lane.b32.xlu0 %v2654_v7, %s5407_s25  ;;  %2658 = vst [vmem:[#allocation1] ss:$4 sm:$0xff] %v2638_v52 }
0x2446   :  { %v2659_v23 = vld.sshfl [vmem:[#allocation1] sm:$0xff pattern:$0x73625140] }
0x2447   :  { %2660 = vrot.lane.b32.xlu1 %v2659_v23, %s5397_s0 }
0x24b1   :  { %v2656_v57 = vpop.permute.xlu0 %2655 }
0x24b9   :  { %v2661_v26 = vpop.permute.xlu1 %2660 }
0x24ba   :  { %v2663_v29 = vsel %vm556_vm14, %v2656_v57, %v2661_v26 }
0x24bb   :  { %v2664_v32 = vpack.c.bf16 %v2663_v29, %v2663_v29 }
0x24bd   :  { %4661 = vmatmul.msk.bf16.vlgmr.msra.gmra.mxu2 %vm417_vm15, %v2664_v32  ;;  %4662 = vmatmul.msk.bf16.vlgmr.msra.gmra.mxu3 %vm417_vm15, %v2664_v32 }
0x2540   :  { %v2677_v17 = vpop.f32.mrf.mxu2  ;;  %v2690_v30 = vpop.f32.mrf.mxu3 }
0x2541   :  { %v2695_v22 = vadd.f32 %v2694_v48, %v2677_v17  ;;  %v2700_v50 = vadd.f32 %v2698_v39, %v2690_v30 }
0x2543   :  { %5108 = vtanh.f32 %v2695_v22  ;;  %v4663_v4 = vmul.f32 -1.442695, %v2695_v22  ;;  %v4664_v59 = vmul.f32 -1.442695, %v2700_v50 }
0x2544   :  { %5110 = vtanh.f32 %v2700_v50 }
0x2545   :  { %5112 = vpow2.f32 %v4663_v4  ;;  %v4823_v4 = vld [vmem:[#allocation12 + $0x10] sm:$0xff] }
0x2548   :  { %v2679_v51 = vpop.f32.mrf.mxu2  ;;  %v2692_v12 = vpop.f32.mrf.mxu3 }
0x2549   :  { %v5109_v16 = vpop.eup %5108  ;;  %v4820_v51 = vld [vmem:[%s6575_s7 + $0x18] sm:$0xff]  ;;  %v4824_v12 = vld [vmem:[#allocation12 + $0x18] sm:$0xff] }
0x254a   :  { %v5111_v27 = vpop.eup %5110  ;;  %2723 = vrot.lane.b32.xlu2 %v5109_v16, %s5397_s0  ;;  %v4828_v16 = vld [vmem:[#allocation13 + $0x18] sm:$0xff]  ;;  %2881 = vmatpush.bf16.msrb.mxu0 %v4820_v51 }
0x254b   :  { %2760 = vrot.lane.b32.xlu0 %v5111_v27, %s5397_s0  ;;  %v5113_v38 = vpop.eup %5112  ;;  %2933 = vmatpush.bf16.msrb.mxu1 %v4824_v12  ;;  %v4819_v27 = vld [vmem:[%s6575_s7 + $0x10] sm:$0xff] }
0x254c   :  { %v2704_v13 = vadd.f32 1.0, %v5113_v38  ;;  %2985 = vmatpush.bf16.msrb.mxu2 %v4828_v16  ;;  %v4827_v38 = vld [vmem:[#allocation13 + $0x10] sm:$0xff] }
0x254e   :  { %5114 = vrcp.f32 %v2704_v13  ;;  %v2716_v42 = vand.u32 2147483648, %v2704_v13  ;;  %vm2710_vm4 = vweird.f32 %v2704_v13  ;;  %v2714_v61 = vand.u32 2147483647, %v2704_v13  ;;  %2882 = vmatpush.bf16.msrb.mxu0 %v4819_v27 }
0x254f   :  { %5116 = vpow2.f32 %v4664_v59  ;;  %2934 = vmatpush.bf16.msrb.mxu1 %v4823_v4  ;;  %v4826_v59 = vld [vmem:[#allocation13 + $0x8] sm:$0xff] }
0x2550   :  { %v2717_v54 = vor.u32 1.1754944e-38, %v2716_v42  ;;  %vm2715_vm9 = vcmp.eq.f32.partialorder %v2714_v61, 8.507059e+37  ;;  %2986 = vmatpush.bf16.msrb.mxu2 %v4827_v38 }
0x2554   :  { %v5115_v46 = vpop.eup %5114  ;;  %2987 = vmatpush.bf16.msrb.mxu2 %v4826_v59 }
0x2555   :  { %v2706_v41 = vmul.f32 %v5115_v46, %v2704_v13  ;;  %v5117_v1 = vpop.eup %5116  ;;  %vm2711_vm3 = vweird.f32 %v5115_v46  ;;  %v4818_v13 = vld [vmem:[%s6575_s7 + $0x8] sm:$0xff] }
0x2556   :  { %v2741_v2 = vadd.f32 1.0, %v5117_v1  ;;  %vm2712_vm5 = vmor %vm2710_vm4, %vm2711_vm3  ;;  %2883 = vmatpush.bf16.msrb.mxu0 %v4818_v13 }
0x2557   :  { %v2707_v44 = vsub.f32 1.0, %v2706_v41  ;;  %v4817_v41 = vld [vmem:[%s6575_s7] sm:$0xff] }
0x2558   :  { %5118 = vrcp.f32 %v2741_v2  ;;  %v2753_v0 = vand.u32 2147483648, %v2741_v2  ;;  %vm2747_vm11 = vweird.f32 %v2741_v2  ;;  %v2751_v6 = vand.u32 2147483647, %v2741_v2 }
0x2559   :  { %v2708_v3 = vmul.f32 %v5115_v46, %v2707_v44  ;;  %v4821_v44 = vld [vmem:[#allocation12] sm:$0xff] }
0x255a   :  { %v2754_v35 = vor.u32 1.1754944e-38, %v2753_v0  ;;  %vm2752_vm13 = vcmp.eq.f32.partialorder %v2751_v6, 8.507059e+37  ;;  %2884 = vmatpush.bf16.msrb.mxu0 %v4817_v41 }
0x255b   :  { %v2709_v53 = vadd.f32 %v5115_v46, %v2708_v3  ;;  %v4825_v3 = vld [vmem:[#allocation13] sm:$0xff] }
0x255c   :  { %2988 = vmatpush.bf16.msrb.mxu2 %v4825_v3 }
0x255d   :  { %v2713_v40 = vsel %vm2712_vm5, %v5115_v46, %v2709_v53  ;;  %v4822_v46 = vld [vmem:[#allocation12 + $0x8] sm:$0xff] }
0x255e   :  { %v2718_v5 = vsel %vm2715_vm9, %v2717_v54, %v2713_v40  ;;  %v5119_v20 = vpop.eup %5118  ;;  %2935 = vmatpush.bf16.msrb.mxu1 %v4822_v46 }
0x255f   :  { %v2743_v25 = vmul.f32 %v5119_v20, %v2741_v2  ;;  %vm2748_vm10 = vweird.f32 %v5119_v20  ;;  %v2721_v23 = vmul.f32 %v2718_v5, %v6147_v15 }
0x2560   :  { %vm2749_vm12 = vmor %vm2747_vm11, %vm2748_vm10 }
0x2561   :  { %v2744_v60 = vsub.f32 1.0, %v2743_v25 }
0x2562   :  { %2936 = vmatpush.bf16.msrb.mxu1 %v4821_v44 }
0x2563   :  { %v2745_v18 = vmul.f32 %v5119_v20, %v2744_v60 }
0x2565   :  { %v2746_v19 = vadd.f32 %v5119_v20, %v2745_v18 }
0x2567   :  { %v2750_v43 = vsel %vm2749_vm12, %v5119_v20, %v2746_v19 }
0x2568   :  { %v2755_v52 = vsel %vm2752_vm13, %v2754_v35, %v2750_v43 }
0x2569   :  { %v2758_v57 = vmul.f32 %v2755_v52, %v6152_v45 }
0x25a4   :  { %v2724_v9 = vpop.permute.xlu2 %2723 }
0x25a5   :  { %v2726_v55 = vmul.f32 %v2724_v9, %v2718_v5 }
0x25a7   :  { %2728 = vrot.lane.b32.xlu1 %v2726_v55, %s5407_s25 }
0x25bd   :  { %v2761_v21 = vpop.permute.xlu0 %2760 }
0x25be   :  { %v2763_v7 = vmul.f32 %v2761_v21, %v2755_v52 }
0x25c0   :  { %2765 = vrot.lane.b32.xlu2 %v2763_v7, %s5407_s25 }
0x25c8   :  { %1833 = vrot.lane.b32.xlu2 %v5996_v36, %s5397_s0 }
0x25d0   :  { %2098 = vrot.lane.b32.xlu2 %v6056_v56, %s5407_s25 }
0x25d8   :  { %2513 = vrot.lane.b32.xlu2 %v6135_v11, %s5397_s0 }
0x25e0   :  { %1826 = vrot.lane.b32.xlu2 %v5994_v33, %s5407_s25 }
0x2619   :  { %v2729_v26 = vpop.permute.xlu1 %2728 }
0x261a   :  { %v2766_v29 = vpop.permute.xlu2 %2765  ;;  %v2731_v32 = vadd.f32 %v2729_v26, %v2721_v23 }
0x261b   :  { %v2768_v37 = vadd.f32 %v2766_v29, %v2758_v57 }
0x261c   :  { %5120 = vtanh.f32 %v2731_v32 }
0x261d   :  { %5122 = vtanh.f32 %v2768_v37 }
0x2622   :  { %v5121_v36 = vpop.eup %5120  ;;  %v1834_v39 = vpop.permute.xlu2 %1833 }
0x2623   :  { %v5123_v17 = vpop.eup %5122  ;;  %1836 = vst.msk [vmem:[#allocation3 + $0xe] sm:$0x3] %vm544_vm8, %v1834_v39  ;;  %2734 = vrot.lane.b32.xlu0 %v5121_v36, %s5397_s0 }
0x2624   :  { %2771 = vrot.lane.b32.xlu1 %v5123_v17, %s5397_s0 }
0x262a   :  { %v2099_v33 = vpop.permute.xlu2 %2098 }
0x262b   :  { %2101 = vst.msk [vmem:[#allocation3 + $0x4] sm:$0x3] %vm535_vm7, %v2099_v33  ;;  %2234 = vrot.lane.b32.xlu0 %v6087_v63, %s5407_s25 }
0x262c   :  { %2377 = vrot.lane.b32.xlu1 %v6112_v49, %s5397_s0 }
0x2632   :  { %v2514_v56 = vpop.permute.xlu2 %2513 }
0x2633   :  { %2516 = vst.msk [vmem:[#allocation3 + $0x4] sm:$0x3] %vm544_vm8, %v2514_v56  ;;  %1962 = vrot.lane.b32.xlu0 %v6025_v28, %s5407_s25 }
0x2634   :  { %1969 = vrot.lane.b32.xlu1 %v6027_v34, %s5397_s0 }
0x263a   :  { %v1827_v11 = vpop.permute.xlu2 %1826  ;;  %v2791_v19 = vld [vmem:[#allocation3 + $0x4] sm:$0x3] }
0x263b   :  { %1829 = vst.msk [vmem:[#allocation3] sm:$0x3] %vm535_vm7, %v1827_v11  ;;  %2105 = vrot.lane.b32.xlu0 %v6058_v24, %s5397_s0  ;;  %v2797_v21 = vrot.slane %v2791_v19, 4 }
0x263c   :  { %2506 = vrot.lane.b32.xlu1 %v6133_v58, %s5407_s25 }
0x2643   :  { %2642 = vrot.lane.b32.xlu0 %v6156_v62, %s5407_s25 }
0x2644   :  { %2649 = vrot.lane.b32.xlu1 %v6158_v14, %s5397_s0 }
0x264b   :  { %2241 = vrot.lane.b32.xlu0 %v6089_v47, %s5397_s0 }
0x264c   :  { %2370 = vrot.lane.b32.xlu1 %v6110_v8, %s5407_s25 }
0x2695   :  { %v2735_v28 = vpop.permute.xlu0 %2734 }
0x2696   :  { %v2772_v34 = vpop.permute.xlu1 %2771  ;;  %v2737_v63 = vmul.f32 %v2735_v28, %v2718_v5 }
0x2697   :  { %v2774_v49 = vmul.f32 %v2772_v34, %v2755_v52 }
0x2698   :  { %2776 = vst [vmem:[#allocation1] ss:$4 sm:$0xff] %v2737_v63 }
0x269d   :  { %v2235_v24 = vpop.permute.xlu0 %2234 }
0x269e   :  { %v2378_v15 = vpop.permute.xlu1 %2377  ;;  %2237 = vst.msk [vmem:[#allocation3 + $0x6] sm:$0x3] %vm535_vm7, %v2235_v24 }
0x269f   :  { %2380 = vst.msk [vmem:[#allocation3 + $0x6] sm:$0x3] %vm544_vm8, %v2378_v15  ;;  %v2777_v58 = vld.sshfl [vmem:[#allocation1] sm:$0xff pattern:$0x73625140] }
0x26a0   :  { %2778 = vrot.lane.b32.xlu2 %v2777_v58, %s5407_s25  ;;  %2783 = vst [vmem:[#allocation1] ss:$4 sm:$0xff] %v2774_v49  ;;  %v4863_v15 = vld [vmem:[%s6580_s12] ss:$0 sm:$0xff]  ;;  %s5410_s12 = smov 104  }
0x26a5   :  { %v1963_v45 = vpop.permute.xlu0 %1962 }
0x26a6   :  { %v1970_v47 = vpop.permute.xlu1 %1969  ;;  %1965 = vst.msk [vmem:[#allocation3 + $0x2] sm:$0x3] %vm535_vm7, %v1963_v45  ;;  %v2792_v2 = vld [vmem:[#allocation3 + $0x6] sm:$0x3] }
0x26a7   :  { %1972 = vst.msk [vmem:[#allocation3 + $0xc] sm:$0x3] %vm544_vm8, %v1970_v47  ;;  %v2784_v8 = vld.sshfl [vmem:[#allocation1] sm:$0xff pattern:$0x73625140]  ;;  %v2803_v9 = vrot.slane %v2792_v2, 4 }
0x26a8   :  { %2785 = vrot.lane.b32.xlu2 %v2784_v8, %s5397_s0 }
0x26ad   :  { %v2106_v62 = vpop.permute.xlu0 %2105 }
0x26ae   :  { %v2507_v14 = vpop.permute.xlu1 %2506  ;;  %2108 = vst.msk [vmem:[#allocation3 + $0xa] sm:$0x3] %vm544_vm8, %v2106_v62 }
0x26af   :  { %2509 = vst.msk [vmem:[#allocation3 + $0xa] sm:$0x3] %vm535_vm7, %v2507_v14 }
0x26b5   :  { %v2643_v48 = vpop.permute.xlu0 %2642 }
0x26b6   :  { %v2650_v30 = vpop.permute.xlu1 %2649  ;;  %2645 = vst.msk [vmem:[#allocation3 + $0xc] sm:$0x3] %vm535_vm7, %v2643_v48  ;;  %v2794_v20 = vld [vmem:[#allocation3 + $0xa] sm:$0x3] }
0x26b7   :  { %2652 = vst.msk [vmem:[#allocation3 + $0x2] sm:$0x3] %vm544_vm8, %v2650_v30 }
0x26bd   :  { %v2242_v22 = vpop.permute.xlu0 %2241  ;;  %v2795_v53 = vld [vmem:[#allocation3 + $0xc] sm:$0x3] }
0x26be   :  { %v2371_v50 = vpop.permute.xlu1 %2370  ;;  %2244 = vst.msk [vmem:[#allocation3 + $0x8] sm:$0x3] %vm544_vm8, %v2242_v22  ;;  %v2790_v61 = vld [vmem:[#allocation3 + $0x2] sm:$0x3]  ;;  %v2809_v5 = vrot.slane %v2795_v53, 4 }
0x26bf   :  { %2373 = vst.msk [vmem:[#allocation3 + $0x8] sm:$0x3] %vm535_vm7, %v2371_v50  ;;  %v2804_v25 = vsel %vm199_vm0, %v2803_v9, %v2790_v61 }
0x26c0   :  { %v2808_v6 = vperm.slane %v2804_v25, %v5579_v10 }
0x26c2   :  { %v2821_v26 = vrot.slane %v2808_v6, 4 }
0x26c6   :  { %v2793_v40 = vld [vmem:[#allocation3 + $0x8] sm:$0x3] }
0x26c7   :  { %v2810_v60 = vsel %vm199_vm0, %v2809_v5, %v2793_v40 }
0x26c8   :  { %v2814_v43 = vperm.slane %v2810_v60, %v5579_v10 }
0x26fa   :  { %v2779_v1 = vpop.permute.xlu2 %2778 }
0x26fb   :  { %2781 = vst.msk [vmem:[#allocation3 + $0xe] sm:$0x3] %vm535_vm7, %v2779_v1  ;;  %vm3091_vm7 = vcmask 1043456  }
0x2702   :  { %v2786_v42 = vpop.permute.xlu2 %2785  ;;  %v2796_v54 = vld [vmem:[#allocation3 + $0xe] sm:$0x3] }
0x2703   :  { %2788 = vst.msk [vmem:[#allocation3] sm:$0x3] %vm544_vm8, %v2786_v42  ;;  %v2815_v55 = vrot.slane %v2796_v54, 4 }
0x2705   :  { %v2816_v18 = vsel %vm199_vm0, %v2815_v55, %v2794_v20 }
0x2706   :  { %v2820_v0 = vperm.slane %v2816_v18, %v5579_v10 }
0x2708   :  { %v2827_v35 = vrot.slane %v2820_v0, 4 }
0x270a   :  { %v2789_v52 = vld [vmem:[#allocation3] sm:$0x3]  ;;  %v2828_v7 = vsel %vm199_vm0, %v2827_v35, %v2814_v43 }
0x270b   :  { %v2798_v23 = vsel %vm199_vm0, %v2797_v21, %v2789_v52  ;;  %v2832_v29 = vperm.slane %v2828_v7, %v5597_v31 }
0x270c   :  { %v2802_v57 = vperm.slane %v2798_v23, %v5579_v10  ;;  %v4861_v10 = vld [vmem:[%s6576_s8] ss:$0 sm:$0xff]  ;;  %s5408_s8 = smov 120  }
0x270d   :  { %v2833_v36 = vrot.slane %v2832_v29, 4 }
0x270e   :  { %v2822_v32 = vsel %vm199_vm0, %v2821_v26, %v2802_v57 }
0x270f   :  { %v2826_v37 = vperm.slane %v2822_v32, %v5597_v31  ;;  %v4862_v31 = vld [vmem:[%s6578_s10] ss:$0 sm:$0xff]  ;;  %s5409_s10 = smov 112  }
0x2711   :  { %v2835_v39 = vrot.slane %v2826_v37, 4  ;;  %v2834_v17 = vsel %vm199_vm0, %v2833_v36, %v2826_v37 }
0x2713   :  { %v2836_v33 = vsel %vm199_vm0, %v2832_v29, %v2835_v39  ;;  %vm2997_vm0 = vcmask 64512  }
0x2714   :  { %v2837_v56 = vpack.c.bf16 %v2836_v33, %v2834_v17 }
0x2716   :  { %4681 = vmatmul.msk.bf16.vlgmr.msrb.gmra.mxu0 %vm417_vm15, %v2837_v56  ;;  %4698 = vmatmul.msk.bf16.vlgmr.msrb.gmra.mxu1 %vm417_vm15, %v2837_v56 }
0x2717   :  { %4715 = vmatmul.msk.bf16.vlgmr.msrb.gmra.mxu2 %vm417_vm15, %v2837_v56 }
0x2793   :  { %v2886_v11 = vpop.f32.mrf.mxu0  ;;  %v2938_v28 = vpop.f32.mrf.mxu1 }
0x2794   :  { %v2887_v34 = vadd.f32 %v4861_v10, %v2886_v11  ;;  %v2939_v63 = vadd.f32 %v4862_v31, %v2938_v28 }
0x2796   :  { %v2891_v24 = vpack.c.bf16 %v2887_v34, %v2887_v34  ;;  %v2943_v49 = vpack.c.bf16 %v2939_v63, %v2939_v63 }
0x2798   :  { %v3130_v58 = vunpack.c.l.b16 %v2891_v24  ;;  %v3002_v45 = vsel %vm2997_vm0, %v2943_v49, 0  ;;  %v3135_v47 = vunpack.c.l.b16 %v2943_v49 }
0x2799   :  { %3011 = vmatpush.bf16.xpose.msrb.mxu3 %v3002_v45 }
0x279a   :  { %v6258_v8 = vpack.c.b16 %v3130_v58, %v3130_v58  ;;  %v6260_v62 = vpack.c.b16 %v3135_v47, %v3135_v47  ;;  %v2990_v14 = vpop.f32.mrf.mxu2 }
0x279b   :  { %v2991_v48 = vadd.f32 %v4863_v15, %v2990_v14  ;;  %v2888_v30 = vpop.f32.mrf.mxu0  ;;  %v2940_v22 = vpop.f32.mrf.mxu1 }
0x279c   :  { %v2889_v50 = vadd.f32 %v4861_v10, %v2888_v30  ;;  %v2941_v51 = vadd.f32 %v4862_v31, %v2940_v22  ;;  %3137 = vrot.lane.b32.xlu0 %v6260_v62, %s5408_s8  ;;  %3132 = vrot.lane.b32.xlu1 %v6258_v8, %s5408_s8 }
0x279d   :  { %v2995_v12 = vpack.c.bf16 %v2991_v48, %v2991_v48 }
0x279e   :  { %v2892_v16 = vpack.c.bf16 %v2889_v50, %v2889_v50  ;;  %v2944_v27 = vpack.c.bf16 %v2941_v51, %v2941_v51 }
0x279f   :  { %v3093_v4 = vsel %vm3091_vm7, %v2995_v12, 0  ;;  %v3240_v19 = vunpack.c.l.b16 %v2995_v12 }
0x27a0   :  { %v3159_v38 = vunpack.c.l.b16 %v2892_v16  ;;  %v3021_v13 = vsel %vm2997_vm0, %v2944_v27, 0  ;;  %v3164_v46 = vunpack.c.l.b16 %v2944_v27  ;;  %3102 = vmatpush.bf16.msra.mxu1 %v3093_v4  ;;  %4716 = vmatmul.msk.bf16.vlgmr.msrb.gmra.mxu3 %vm2997_vm0, %v2891_v24 }
0x27a1   :  { %3030 = vmatpush.bf16.xpose.msra.mxu0 %v3021_v13  ;;  %v6284_v0 = vpack.c.b16 %v3240_v19, %v3240_v19 }
0x27a2   :  { %v6269_v59 = vpack.c.b16 %v3159_v38, %v3159_v38  ;;  %v6271_v41 = vpack.c.b16 %v3164_v46, %v3164_v46  ;;  %v2992_v44 = vpop.f32.mrf.mxu2 }
0x27a3   :  { %v2993_v3 = vadd.f32 %v4863_v15, %v2992_v44 }
0x27a4   :  { %3166 = vrot.lane.b32.xlu2 %v6271_v41, %s5408_s8  ;;  %3161 = vrot.lane.b32.xlu0 %v6269_v59, %s5408_s8 }
0x27a5   :  { %v2996_v1 = vpack.c.bf16 %v2993_v3, %v2993_v3 }
0x27a7   :  { %v3112_v2 = vsel %vm3091_vm7, %v2996_v1, 0  ;;  %v3264_v10 = vunpack.c.l.b16 %v2996_v1 }
0x27a8   :  { %3121 = vmatpush.bf16.msra.mxu2 %v3112_v2  ;;  %4717 = vmatmul.msk.bf16.vlgmr.msra.gmra.mxu0 %vm2997_vm0, %v2892_v16 }
0x27a9   :  { %v6295_v31 = vpack.c.b16 %v3264_v10, %v3264_v10 }
0x27fe   :  { %v3167_v53 = vpop.permute.xlu2 %3166 }
0x27ff   :  { %v3172_v42 = vsel %vm2997_vm0, %v3167_v53, 0 }
0x2800   :  { %3181 = vmatpush.bf16.xpose.msrb.mxu0 %v3172_v42 }
0x280e   :  { %v3138_v61 = vpop.permute.xlu0 %3137  ;;  %v3133_v54 = vpop.permute.xlu1 %3132 }
0x280f   :  { %v3143_v40 = vsel %vm2997_vm0, %v3138_v61, 0 }
0x2810   :  { %3152 = vmatpush.bf16.xpose.msra.mxu3 %v3143_v40 }
0x2816   :  { %v3162_v9 = vpop.permute.xlu0 %3161 }
0x2817   :  { %4720 = vmatmul.msk.bf16.vlgmr.msra.gmra.mxu3 %vm2997_vm0, %v3133_v54  ;;  %4721 = vmatmul.msk.bf16.vlgmr.msrb.gmra.mxu0 %vm2997_vm0, %v3162_v9 }
0x2823   :  { %v3013_v5 = vpop.f32.mrf.mxu3 }
0x2824   :  { %v3036_v55 = vmul.f32 0.35355338, %v3013_v5 }
0x2825   :  { %v3032_v20 = vpop.f32.mrf.mxu0 }
0x2826   :  { %v3038_v25 = vsel %vm2997_vm0, %v3036_v55, -inf  ;;  %v3037_v6 = vmul.f32 0.35355338, %v3032_v20 }
0x2827   :  { %3039 = vmax.xlane.f32.xlu1 %v3038_v25 }
0x2828   :  { %v3041_v43 = vsel %vm2997_vm0, %v3037_v6, -inf }
0x282b   :  { %v3015_v60 = vpop.f32.mrf.mxu3 }
0x282d   :  { %v3034_v18 = vpop.f32.mrf.mxu0 }
0x2840   :  { %3242 = vrot.lane.b32.xlu1 %v6284_v0, %s5408_s8 }
0x286a   :  { %3042 = vmax.xlane.f32.xlu1 %v3041_v43 }
0x2894   :  { %v3183_v35 = vpop.f32.mrf.mxu0 }
0x2895   :  { %v3188_v33 = vmul.f32 0.35355338, %v3183_v35 }
0x2897   :  { %v3192_v56 = vsel %vm2997_vm0, %v3188_v33, -inf }
0x289a   :  { %v3040_v21 = vpop.xlane.xlu1 %3039  ;;  %v3154_v52 = vpop.f32.mrf.mxu3 }
0x289b   :  { %v3044_v7 = vsub.f32 %v3036_v55, %v3040_v21  ;;  %v3187_v23 = vmul.f32 0.35355338, %v3154_v52 }
0x289c   :  { %v3185_v57 = vpop.f32.mrf.mxu0 }
0x289d   :  { %v3046_v26 = vmul.f32 1.442695, %v3044_v7  ;;  %v3189_v29 = vsel %vm2997_vm0, %v3187_v23, -inf }
0x289e   :  { %3190 = vmax.xlane.f32.xlu2 %v3189_v29 }
0x289f   :  { %5124 = vpow2.f32 %v3046_v26  ;;  %v3289_v26 = vld [vmem:[#allocation15 + $0x4] sm:$0xf] }
0x28a0   :  { %v3294_v29 = vsel %vm3091_vm7, %v3289_v26, 0 }
0x28a1   :  { %3303 = vmatpush.bf16.msrb.mxu3 %v3294_v29 }
0x28a2   :  { %v3156_v32 = vpop.f32.mrf.mxu3 }
0x28a5   :  { %v5125_v37 = vpop.eup %5124 }
0x28a6   :  { %v3050_v36 = vsel %vm2997_vm0, %v5125_v37, 0.0 }
0x28a7   :  { %3051 = vadd.xlane.f32.xlu0 %v3050_v36 }
0x28b2   :  { %v3243_v39 = vpop.permute.xlu1 %3242 }
0x28b3   :  { %v3248_v17 = vsel %vm3091_vm7, %v3243_v39, 0 }
0x28b4   :  { %3257 = vmatpush.bf16.msrb.mxu1 %v3248_v17 }
0x28bb   :  { %3330 = vrot.lane.b32.xlu0 %v6258_v8, %s5409_s10 }
0x28dd   :  { %v3043_v27 = vpop.xlane.xlu1 %3042 }
0x28de   :  { %v3045_v4 = vsub.f32 %v3037_v6, %v3043_v27 }
0x28e0   :  { %v3048_v13 = vmul.f32 1.442695, %v3045_v4 }
0x28e5   :  { %3193 = vmax.xlane.f32.xlu0 %v3192_v56 }
0x28f9   :  { %3266 = vrot.lane.b32.xlu0 %v6295_v31, %s5408_s8 }
0x2901   :  { %3497 = vrot.lane.b32.xlu0 %v6260_v62, %s5410_s12 }
0x2911   :  { %v3191_v11 = vpop.xlane.xlu2 %3190 }
0x2912   :  { %v3195_v28 = vsub.f32 %v3187_v23, %v3191_v11 }
0x2914   :  { %v3197_v34 = vmul.f32 1.442695, %v3195_v28 }
0x2916   :  { %5126 = vpow2.f32 %v3197_v34 }
0x291a   :  { %v3052_v63 = vpop.xlane.xlu0 %3051 }
0x291b   :  { %5128 = vrcp.f32 %v3052_v63  ;;  %v3067_v47 = vand.u32 2147483648, %v3052_v63  ;;  %v3065_v48 = vand.u32 2147483647, %v3052_v63  ;;  %vm3061_vm1 = vweird.f32 %v3052_v63 }
0x291c   :  { %v6301_v24 = vpop.eup %5126  ;;  %5130 = vpow2.f32 %v3048_v13 }
0x291d   :  { %v3201_v49 = vsel %vm2997_vm0, %v6301_v24, 0.0  ;;  %v3068_v22 = vor.u32 1.1754944e-38, %v3067_v47  ;;  %vm3066_vm2 = vcmp.eq.f32.partialorder %v3065_v48, 8.507059e+37 }
0x291e   :  { %3202 = vadd.xlane.f32.xlu2 %v3201_v49 }
0x2921   :  { %v5129_v15 = vpop.eup %5128 }
0x2922   :  { %v3057_v58 = vmul.f32 %v5129_v15, %v3052_v63  ;;  %vm3062_vm8 = vweird.f32 %v5129_v15  ;;  %v6308_v3 = vpop.eup %5130 }
0x2923   :  { %vm3063_vm6 = vmor %vm3061_vm1, %vm3062_vm8  ;;  %v3053_v2 = vsel %vm2997_vm0, %v6308_v3, 0.0 }
0x2924   :  { %v3058_v45 = vsub.f32 1.0, %v3057_v58 }
0x2926   :  { %v3059_v14 = vmul.f32 %v5129_v15, %v3058_v45 }
0x2928   :  { %v3060_v30 = vadd.f32 %v5129_v15, %v3059_v14 }
0x292a   :  { %v3064_v50 = vsel %vm3063_vm6, %v5129_v15, %v3060_v30 }
0x292b   :  { %v3069_v51 = vsel %vm3066_vm2, %v3068_v22, %v3064_v50 }
0x292c   :  { %v3070_v12 = vmul.f32 %v5125_v37, %v3069_v51 }
0x292d   :  { %v3331_v38 = vpop.permute.xlu0 %3330 }
0x292e   :  { %v3086_v16 = vpack.c.bf16 %v3070_v12, %v3070_v12 }
0x2930   :  { %4718 = vmatmul.msk.bf16.vlgmr.msra.gmra.mxu1 %vm2997_vm0, %v3086_v16 }
0x2936   :  { %3332 = vrot.lane.b32.xlu2 %v6260_v62, %s5409_s10 }
0x2958   :  { %v3194_v46 = vpop.xlane.xlu0 %3193 }
0x2959   :  { %v3196_v44 = vsub.f32 %v3188_v33, %v3194_v46 }
0x295b   :  { %v3199_v1 = vmul.f32 1.442695, %v3196_v44 }
0x295d   :  { %5132 = vpow2.f32 %v3199_v1 }
0x295f   :  { %3054 = vadd.xlane.f32.xlu2 %v3053_v2 }
0x2963   :  { %v6312_v53 = vpop.eup %5132 }
0x2964   :  { %v3204_v42 = vsel %vm2997_vm0, %v6312_v53, 0.0 }
0x2965   :  { %3205 = vadd.xlane.f32.xlu1 %v3204_v42 }
0x296b   :  { %v3267_v61 = vpop.permute.xlu0 %3266 }
0x296c   :  { %v3272_v40 = vsel %vm3091_vm7, %v3267_v61, 0 }
0x296d   :  { %3281 = vmatpush.bf16.msrb.mxu2 %v3272_v40 }
0x2973   :  { %v3498_v46 = vpop.permute.xlu0 %3497 }
0x2977   :  { %3355 = vrot.lane.b32.xlu2 %v6271_v41, %s5409_s10 }
0x297e   :  { %3353 = vrot.lane.b32.xlu1 %v6269_v59, %s5409_s10 }
0x297f   :  { %3495 = vrot.lane.b32.xlu2 %v6258_v8, %s5410_s12 }
0x2987   :  { %3428 = vrot.lane.b32.xlu2 %v6284_v0, %s5409_s10 }
0x298f   :  { %3520 = vrot.lane.b32.xlu2 %v6271_v41, %s5410_s12 }
0x2991   :  { %v3203_v54 = vpop.xlane.xlu2 %3202 }
0x2992   :  { %5134 = vrcp.f32 %v3203_v54  ;;  %v3218_v60 = vand.u32 2147483648, %v3203_v54  ;;  %v3216_v19 = vand.u32 2147483647, %v3203_v54  ;;  %vm3212_vm4 = vweird.f32 %v3203_v54 }
0x2994   :  { %v3219_v43 = vor.u32 1.1754944e-38, %v3218_v60  ;;  %vm3217_vm9 = vcmp.eq.f32.partialorder %v3216_v19, 8.507059e+37 }
0x2997   :  { %3518 = vrot.lane.b32.xlu2 %v6269_v59, %s5410_s12 }
0x2998   :  { %v5135_v9 = vpop.eup %5134 }
0x2999   :  { %v3208_v5 = vmul.f32 %v5135_v9, %v3203_v54  ;;  %v3333_v55 = vpop.permute.xlu2 %3332  ;;  %vm3213_vm3 = vweird.f32 %v5135_v9 }
0x299a   :  { %v3338_v20 = vsel %vm2997_vm0, %v3333_v55, 0  ;;  %vm3214_vm5 = vmor %vm3212_vm4, %vm3213_vm3 }
0x299b   :  { %v3209_v25 = vsub.f32 1.0, %v3208_v5  ;;  %3347 = vmatpush.bf16.xpose.msra.mxu1 %v3338_v20 }
0x299d   :  { %v3210_v18 = vmul.f32 %v5135_v9, %v3209_v25 }
0x299f   :  { %v3211_v6 = vadd.f32 %v5135_v9, %v3210_v18  ;;  %3662 = vrot.lane.b32.xlu2 %v6260_v62, %s5411_s6 }
0x29a1   :  { %v3215_v35 = vsel %vm3214_vm5, %v5135_v9, %v3211_v6  ;;  %v3128_v9 = vld [vmem:[#allocation15] sm:$0xf] }
0x29a2   :  { %v3220_v21 = vsel %vm3217_vm9, %v3219_v43, %v3215_v35  ;;  %v3314_v5 = vsel %vm3091_vm7, %v3128_v9, 0 }
0x29a3   :  { %v3221_v52 = vmul.f32 %v6301_v24, %v3220_v21  ;;  %3323 = vmatpush.bf16.msra.mxu0 %v3314_v5 }
0x29a5   :  { %v3237_v7 = vpack.c.bf16 %v3221_v52, %v3221_v52 }
0x29a7   :  { %4722 = vmatmul.msk.bf16.vlgmr.msrb.gmra.mxu1 %vm2997_vm0, %v3237_v7 }
0x29ad   :  { %v6334_v23 = vpop.f32.mrf.mxu1 }
0x29b5   :  { %v3106_v57 = vpop.f32.mrf.mxu1 }
0x29b7   :  { %4726 = vmatmul.msk.bf16.vlgmr.msra.gmra.mxu1 %vm2997_vm0, %v3331_v38 }
0x29d2   :  { %v3055_v32 = vpop.xlane.xlu2 %3054 }
0x29d3   :  { %5136 = vrcp.f32 %v3055_v32  ;;  %v3082_v56 = vand.u32 2147483648, %v3055_v32  ;;  %v3080_v11 = vand.u32 2147483647, %v3055_v32  ;;  %vm3076_vm11 = vweird.f32 %v3055_v32 }
0x29d5   :  { %v3083_v24 = vor.u32 1.1754944e-38, %v3082_v56  ;;  %vm3081_vm13 = vcmp.eq.f32.partialorder %v3080_v11, 8.507059e+37 }
0x29d8   :  { %v3206_v37 = vpop.xlane.xlu1 %3205 }
0x29d9   :  { %v5137_v36 = vpop.eup %5136  ;;  %5138 = vrcp.f32 %v3206_v37  ;;  %v3233_v50 = vand.u32 2147483648, %v3206_v37  ;;  %vm3227_vm1 = vweird.f32 %v3206_v37  ;;  %v3231_v51 = vand.u32 2147483647, %v3206_v37 }
0x29da   :  { %v3072_v39 = vmul.f32 %v5137_v36, %v3055_v32  ;;  %v3356_v17 = vpop.permute.xlu2 %3355  ;;  %vm3077_vm10 = vweird.f32 %v5137_v36 }
0x29db   :  { %vm3078_vm12 = vmor %vm3076_vm11, %vm3077_vm10  ;;  %v3361_v22 = vsel %vm2997_vm0, %v3356_v17, 0  ;;  %v3234_v4 = vor.u32 1.1754944e-38, %v3233_v50  ;;  %vm3232_vm2 = vcmp.eq.f32.partialorder %v3231_v51, 8.507059e+37 }
0x29dc   :  { %v3073_v33 = vsub.f32 1.0, %v3072_v39 }
0x29de   :  { %v3074_v10 = vmul.f32 %v5137_v36, %v3073_v33 }
0x29df   :  { %v5139_v28 = vpop.eup %5138 }
0x29e0   :  { %v3075_v34 = vadd.f32 %v5137_v36, %v3074_v10  ;;  %v3223_v63 = vmul.f32 %v5139_v28, %v3206_v37  ;;  %vm3228_vm8 = vweird.f32 %v5139_v28 }
0x29e1   :  { %vm3229_vm6 = vmor %vm3227_vm1, %vm3228_vm8 }
0x29e2   :  { %v3079_v49 = vsel %vm3078_vm12, %v5137_v36, %v3075_v34  ;;  %v3224_v15 = vsub.f32 1.0, %v3223_v63  ;;  %v3496_v58 = vpop.permute.xlu2 %3495 }
0x29e3   :  { %v3084_v45 = vsel %vm3081_vm13, %v3083_v24, %v3079_v49 }
0x29e4   :  { %v3085_v47 = vmul.f32 %v6308_v3, %v3084_v45  ;;  %v3225_v14 = vmul.f32 %v5139_v28, %v3224_v15  ;;  %v3503_v3 = vsel %vm2997_vm0, %v3498_v46, 0 }
0x29e6   :  { %v3087_v48 = vpack.c.bf16 %v3085_v47, %v3085_v47  ;;  %v3226_v30 = vadd.f32 %v5139_v28, %v3225_v14 }
0x29e8   :  { %4719 = vmatmul.msk.bf16.vlgmr.msra.gmra.mxu2 %vm2997_vm0, %v3087_v48  ;;  %v3230_v27 = vsel %vm3229_vm6, %v5139_v28, %v3226_v30 }
0x29e9   :  { %3370 = vmatpush.bf16.xpose.msra.mxu2 %v3361_v22  ;;  %v3235_v38 = vsel %vm3232_vm2, %v3234_v4, %v3230_v27 }
0x29ea   :  { %v3429_v12 = vpop.permute.xlu2 %3428  ;;  %v3236_v13 = vmul.f32 %v6312_v53, %v3235_v38 }
0x29eb   :  { %v3434_v16 = vsel %vm3091_vm7, %v3429_v12, 0 }
0x29ec   :  { %3443 = vmatpush.bf16.msra.mxu3 %v3434_v16  ;;  %v3238_v44 = vpack.c.bf16 %v3236_v13, %v3236_v13 }
0x29f0   :  { %v3354_v1 = vpop.permute.xlu1 %3353 }
0x29f2   :  { %v3521_v60 = vpop.permute.xlu2 %3520 }
0x29f3   :  { %v3526_v6 = vsel %vm2997_vm0, %v3521_v60, 0 }
0x29f8   :  { %4723 = vmatmul.msk.bf16.vlgmr.msrb.gmra.mxu2 %vm2997_vm0, %v3238_v44 }
0x29f9   :  { %3512 = vmatpush.bf16.xpose.msrb.mxu2 %v3503_v3 }
0x29fa   :  { %v3519_v33 = vpop.permute.xlu2 %3518 }
0x2a02   :  { %v3663_v56 = vpop.permute.xlu2 %3662 }
0x2a08   :  { %4727 = vmatmul.msk.bf16.vlgmr.msra.gmra.mxu2 %vm2997_vm0, %v3354_v1  ;;  %v3668_v1 = vsel %vm2997_vm0, %v3663_v56, 0 }
0x2a18   :  { %4731 = vmatmul.msk.bf16.vlgmr.msrb.gmra.mxu2 %vm2997_vm0, %v3496_v58 }
0x2a24   :  { %v3259_v2 = vpop.f32.mrf.mxu1 }
0x2a2c   :  { %v3261_v42 = vpop.f32.mrf.mxu1 }
0x2a34   :  { %v3349_v61 = vpop.f32.mrf.mxu1 }
0x2a35   :  { %v3376_v40 = vmul.f32 0.35355338, %v3349_v61 }
0x2a37   :  { %v3378_v54 = vsel %vm2997_vm0, %v3376_v40, -inf }
0x2a38   :  { %3379 = vmax.xlane.f32.xlu0 %v3378_v54 }
0x2a3c   :  { %v3351_v53 = vpop.f32.mrf.mxu1 }
0x2a4c   :  { %3660 = vrot.lane.b32.xlu0 %v6258_v8, %s5411_s6 }
0x2a6b   :  { %v3123_v55 = vpop.f32.mrf.mxu2 }
0x2a6c   :  { %v3127_v20 = vpack.c.bf16 %v3123_v55, %v6334_v23 }
0x2a6e   :  { %4725 = vmatmul.msk.bf16.vlgmr.msra.gmra.mxu0 %vm2997_vm0, %v3127_v20 }
0x2a73   :  { %v3125_v25 = vpop.f32.mrf.mxu2 }
0x2a7b   :  { %v3283_v18 = vpop.f32.mrf.mxu2 }
0x2a7c   :  { %v3287_v19 = vpack.c.bf16 %v3283_v18, %v3259_v2 }
0x2a7e   :  { %4724 = vmatmul.msk.bf16.vlgmr.msrb.gmra.mxu3 %vm2997_vm0, %v3287_v19 }
0x2a7f   :  { %3535 = vmatpush.bf16.xpose.msrb.mxu3 %v3526_v6 }
0x2a83   :  { %v3285_v43 = vpop.f32.mrf.mxu2 }
0x2a8b   :  { %v3372_v35 = vpop.f32.mrf.mxu2 }
0x2a8c   :  { %v3377_v21 = vmul.f32 0.35355338, %v3372_v35 }
0x2a8e   :  { %v3381_v52 = vsel %vm2997_vm0, %v3377_v21, -inf }
0x2a8f   :  { %3382 = vmax.xlane.f32.xlu2 %v3381_v52 }
0x2a93   :  { %v3374_v7 = vpop.f32.mrf.mxu2 }
0x2a9b   :  { %v3514_v57 = vpop.f32.mrf.mxu2 }
0x2a9c   :  { %v3541_v39 = vmul.f32 0.35355338, %v3514_v57 }
0x2a9e   :  { %v3543_v17 = vsel %vm2997_vm0, %v3541_v39, -inf }
0x2aa3   :  { %v3516_v23 = vpop.f32.mrf.mxu2 }
0x2aa7   :  { %3593 = vrot.lane.b32.xlu2 %v6284_v0, %s5410_s12 }
0x2aab   :  { %v3380_v26 = vpop.xlane.xlu0 %3379 }
0x2aac   :  { %v3384_v29 = vsub.f32 %v3376_v40, %v3380_v26 }
0x2aae   :  { %v3386_v32 = vmul.f32 1.442695, %v3384_v29 }
0x2aaf   :  { %3827 = vrot.lane.b32.xlu2 %v6260_v62, %s5412_s27 }
0x2ab0   :  { %5140 = vpow2.f32 %v3386_v32 }
0x2ab6   :  { %v5141_v37 = vpop.eup %5140 }
0x2ab7   :  { %v3390_v36 = vsel %vm2997_vm0, %v5141_v37, 0.0 }
0x2ab8   :  { %3391 = vadd.xlane.f32.xlu1 %v3390_v36 }
0x2abe   :  { %v3661_v2 = vpop.permute.xlu0 %3660 }
0x2ac0   :  { %3544 = vmax.xlane.f32.xlu1 %v3543_v17 }
0x2aeb   :  { %v3325_v10 = vpop.f32.mrf.mxu0 }
0x2b01   :  { %v3305_v11 = vpop.f32.mrf.mxu3 }
0x2b02   :  { %v6362_v28 = vadd.f32 %v3325_v10, %v3305_v11  ;;  %v3383_v34 = vpop.xlane.xlu2 %3382 }
0x2b03   :  { %v3385_v63 = vsub.f32 %v3377_v21, %v3383_v34 }
0x2b05   :  { %v3388_v24 = vmul.f32 1.442695, %v3385_v63 }
0x2b07   :  { %5142 = vpow2.f32 %v3388_v24 }
0x2b09   :  { %v6382_v29 = vpop.f32.mrf.mxu3 }
0x2b0a   :  { %v3594_v18 = vpop.permute.xlu2 %3593 }
0x2b0b   :  { %v3599_v35 = vsel %vm3091_vm7, %v3594_v18, 0 }
0x2b0d   :  { %v5143_v49 = vpop.eup %5142 }
0x2b0e   :  { %v3393_v15 = vsel %vm2997_vm0, %v5143_v49, 0.0 }
0x2b0f   :  { %3394 = vadd.xlane.f32.xlu1 %v3393_v15 }
0x2b12   :  { %v3828_v63 = vpop.permute.xlu2 %3827 }
0x2b28   :  { %3449 = vrot.lane.b32.xlu1 %v6295_v31, %s5409_s10 }
0x2b2b   :  { %v3392_v58 = vpop.xlane.xlu1 %3391 }
0x2b2c   :  { %5144 = vrcp.f32 %v3392_v58  ;;  %v3407_v22 = vand.u32 2147483648, %v3392_v58  ;;  %v3405_v12 = vand.u32 2147483647, %v3392_v58  ;;  %vm3401_vm4 = vweird.f32 %v3392_v58 }
0x2b2e   :  { %v3408_v27 = vor.u32 1.1754944e-38, %v3407_v22  ;;  %vm3406_vm9 = vcmp.eq.f32.partialorder %v3405_v12, 8.507059e+37 }
0x2b30   :  { %3685 = vrot.lane.b32.xlu1 %v6271_v41, %s5411_s6 }
0x2b32   :  { %v5145_v45 = vpop.eup %5144 }
0x2b33   :  { %v3397_v47 = vmul.f32 %v5145_v45, %v3392_v58  ;;  %v3545_v14 = vpop.xlane.xlu1 %3544  ;;  %vm3402_vm3 = vweird.f32 %v5145_v45 }
0x2b34   :  { %v3549_v48 = vsub.f32 %v3541_v39, %v3545_v14  ;;  %vm3403_vm5 = vmor %vm3401_vm4, %vm3402_vm3 }
0x2b35   :  { %v3398_v30 = vsub.f32 1.0, %v3397_v47 }
0x2b36   :  { %v3551_v50 = vmul.f32 1.442695, %v3549_v48 }
0x2b37   :  { %v3399_v51 = vmul.f32 %v5145_v45, %v3398_v30 }
0x2b38   :  { %5146 = vpow2.f32 %v3551_v50  ;;  %3683 = vrot.lane.b32.xlu1 %v6269_v59, %s5411_s6 }
0x2b39   :  { %v3400_v16 = vadd.f32 %v5145_v45, %v3399_v51 }
0x2b3b   :  { %v3404_v4 = vsel %vm3403_vm5, %v5145_v45, %v3400_v16  ;;  %v3472_v16 = vld [vmem:[#allocation15 + $0x8] sm:$0xf] }
0x2b3c   :  { %v3409_v38 = vsel %vm3406_vm9, %v3408_v27, %v3404_v4  ;;  %v3477_v27 = vsel %vm3091_vm7, %v3472_v16, 0  ;;  %v6395_v4 = vpop.f32.mrf.mxu0 }
0x2b3d   :  { %v3410_v13 = vmul.f32 %v5141_v37, %v3409_v38  ;;  %3486 = vmatpush.bf16.msrb.mxu1 %v3477_v27 }
0x2b3e   :  { %v5147_v46 = vpop.eup %5146 }
0x2b3f   :  { %v3426_v44 = vpack.c.bf16 %v3410_v13, %v3410_v13  ;;  %v3555_v3 = vsel %vm2997_vm0, %v5147_v46, 0.0 }
0x2b40   :  { %3556 = vadd.xlane.f32.xlu0 %v3555_v3 }
0x2b41   :  { %4728 = vmatmul.msk.bf16.vlgmr.msra.gmra.mxu3 %vm2997_vm0, %v3426_v44 }
0x2b42   :  { %3677 = vmatpush.bf16.xpose.msra.mxu3 %v3668_v1 }
0x2b51   :  { %4732 = vmatmul.msk.bf16.vlgmr.msrb.gmra.mxu3 %vm2997_vm0, %v3519_v33 }
0x2b54   :  { %3825 = vrot.lane.b32.xlu0 %v6258_v8, %s5412_s27 }
0x2b61   :  { %4736 = vmatmul.msk.bf16.vlgmr.msra.gmra.mxu3 %vm2997_vm0, %v3661_v2 }
0x2b82   :  { %v3395_v42 = vpop.xlane.xlu1 %3394 }
0x2b83   :  { %5148 = vrcp.f32 %v3395_v42  ;;  %v3422_v5 = vand.u32 2147483648, %v3395_v42  ;;  %vm3416_vm11 = vweird.f32 %v3395_v42  ;;  %v3420_v55 = vand.u32 2147483647, %v3395_v42 }
0x2b85   :  { %v3423_v25 = vor.u32 1.1754944e-38, %v3422_v5  ;;  %vm3421_vm13 = vcmp.eq.f32.partialorder %v3420_v55, 8.507059e+37 }
0x2b89   :  { %v5149_v61 = vpop.eup %5148 }
0x2b8a   :  { %v3412_v40 = vmul.f32 %v5149_v61, %v3395_v42  ;;  %vm3417_vm10 = vweird.f32 %v5149_v61 }
0x2b8b   :  { %vm3418_vm12 = vmor %vm3416_vm11, %vm3417_vm10 }
0x2b8c   :  { %v3413_v54 = vsub.f32 1.0, %v3412_v40 }
0x2b8e   :  { %v3414_v53 = vmul.f32 %v5149_v61, %v3413_v54 }
0x2b90   :  { %v3415_v9 = vadd.f32 %v5149_v61, %v3414_v53 }
0x2b92   :  { %v3419_v20 = vsel %vm3418_vm12, %v5149_v61, %v3415_v9 }
0x2b93   :  { %v3424_v60 = vsel %vm3421_vm13, %v3423_v25, %v3419_v20 }
0x2b94   :  { %v3425_v19 = vmul.f32 %v5143_v49, %v3424_v60  ;;  %v3833_v49 = vsel %vm2997_vm0, %v3828_v63, 0 }
0x2b96   :  { %v3427_v21 = vpack.c.bf16 %v3425_v19, %v3425_v19 }
0x2b9a   :  { %v3450_v6 = vpop.permute.xlu1 %3449 }
0x2b9b   :  { %v3455_v43 = vsel %vm3091_vm7, %v3450_v6, 0 }
0x2b9c   :  { %3464 = vmatpush.bf16.msrb.mxu0 %v3455_v43 }
0x2b9f   :  { %4729 = vmatmul.msk.bf16.vlgmr.msrb.gmra.mxu0 %vm2997_vm0, %v3427_v21 }
0x2ba0   :  { %3608 = vmatpush.bf16.msra.mxu0 %v3599_v35 }
0x2ba2   :  { %v3686_v52 = vpop.permute.xlu1 %3685 }
0x2ba3   :  { %v3691_v7 = vsel %vm2997_vm0, %v3686_v52, 0 }
0x2ba4   :  { %3700 = vmatpush.bf16.xpose.msrb.mxu0 %v3691_v7 }
0x2baa   :  { %v3684_v14 = vpop.permute.xlu1 %3683 }
0x2bb3   :  { %v3557_v57 = vpop.xlane.xlu0 %3556 }
0x2bb4   :  { %5150 = vrcp.f32 %v3557_v57  ;;  %v3572_v37 = vand.u32 2147483648, %v3557_v57  ;;  %v3570_v39 = vand.u32 2147483647, %v3557_v57  ;;  %vm3566_vm1 = vweird.f32 %v3557_v57 }
0x2bb6   :  { %v3573_v33 = vor.u32 1.1754944e-38, %v3572_v37  ;;  %vm3571_vm2 = vcmp.eq.f32.partialorder %v3570_v39, 8.507059e+37 }
0x2bba   :  { %v5151_v23 = vpop.eup %5150 }
0x2bbb   :  { %v3562_v26 = vmul.f32 %v5151_v23, %v3557_v57  ;;  %vm3567_vm8 = vweird.f32 %v5151_v23 }
0x2bbc   :  { %vm3568_vm6 = vmor %vm3566_vm1, %vm3567_vm8 }
0x2bbd   :  { %v3563_v32 = vsub.f32 1.0, %v3562_v26  ;;  %v3637_v26 = vld [vmem:[#allocation15 + $0xc] sm:$0xf] }
0x2bbf   :  { %v3564_v36 = vmul.f32 %v5151_v23, %v3563_v32  ;;  %v3642_v32 = vsel %vm3091_vm7, %v3637_v26, 0 }
0x2bc0   :  { %3651 = vmatpush.bf16.msra.mxu2 %v3642_v32 }
0x2bc1   :  { %v3565_v17 = vadd.f32 %v5151_v23, %v3564_v36 }
0x2bc3   :  { %v3569_v56 = vsel %vm3568_vm6, %v5151_v23, %v3565_v17 }
0x2bc4   :  { %v3574_v10 = vsel %vm3571_vm2, %v3573_v33, %v3569_v56  ;;  %v3445_v11 = vpop.f32.mrf.mxu3 }
0x2bc5   :  { %v3575_v34 = vmul.f32 %v5147_v46, %v3574_v10 }
0x2bc6   :  { %v3826_v51 = vpop.permute.xlu0 %3825 }
0x2bc7   :  { %v3591_v24 = vpack.c.bf16 %v3575_v34, %v3575_v34 }
0x2bc9   :  { %4733 = vmatmul.msk.bf16.vlgmr.msra.gmra.mxu0 %vm2997_vm0, %v3591_v24 }
0x2bca   :  { %3842 = vmatpush.bf16.xpose.msra.mxu0 %v3833_v49 }
0x2bcc   :  { %v3447_v15 = vpop.f32.mrf.mxu3 }
0x2bd4   :  { %v3537_v58 = vpop.f32.mrf.mxu3 }
0x2bd5   :  { %v3542_v45 = vmul.f32 0.35355338, %v3537_v58 }
0x2bd7   :  { %v3546_v47 = vsel %vm2997_vm0, %v3542_v45, -inf }
0x2bd8   :  { %3547 = vmax.xlane.f32.xlu1 %v3546_v47 }
0x2bd9   :  { %4737 = vmatmul.msk.bf16.vlgmr.msrb.gmra.mxu0 %vm2997_vm0, %v3684_v14 }
0x2bdc   :  { %v3539_v48 = vpop.f32.mrf.mxu3 }
0x2be4   :  { %v3679_v30 = vpop.f32.mrf.mxu3 }
0x2be5   :  { %v3706_v22 = vmul.f32 0.35355338, %v3679_v30 }
0x2be7   :  { %v3708_v50 = vsel %vm2997_vm0, %v3706_v22, -inf }
0x2be8   :  { %3709 = vmax.xlane.f32.xlu2 %v3708_v50 }
0x2be9   :  { %4741 = vmatmul.msk.bf16.vlgmr.msra.gmra.mxu0 %vm2997_vm0, %v3826_v51 }
0x2bec   :  { %v3681_v12 = vpop.f32.mrf.mxu3 }
0x2bf1   :  { %3614 = vrot.lane.b32.xlu1 %v6295_v31, %s5410_s12 }
0x2bf9   :  { %3848 = vrot.lane.b32.xlu1 %v6269_v59, %s5412_s27 }
0x2c1c   :  { %v3466_v38 = vpop.f32.mrf.mxu0 }
0x2c1d   :  { %v3470_v13 = vpack.c.bf16 %v3466_v38, %v3445_v11 }
0x2c1f   :  { %4730 = vmatmul.msk.bf16.vlgmr.msrb.gmra.mxu1 %vm2997_vm0, %v3470_v13 }
0x2c24   :  { %v3468_v46 = vpop.f32.mrf.mxu0 }
0x2c46   :  { %v6398_v44 = vpop.f32.mrf.mxu0 }
0x2c4b   :  { %v3548_v3 = vpop.xlane.xlu1 %3547 }
0x2c4c   :  { %v3550_v1 = vsub.f32 %v3542_v45, %v3548_v3 }
0x2c4e   :  { %v3553_v2 = vmul.f32 1.442695, %v3550_v1  ;;  %v3612_v42 = vpop.f32.mrf.mxu0 }
0x2c50   :  { %5152 = vpow2.f32 %v3553_v2 }
0x2c56   :  { %v5153_v61 = vpop.eup %5152  ;;  %v3702_v40 = vpop.f32.mrf.mxu0 }
0x2c57   :  { %v3707_v54 = vmul.f32 0.35355338, %v3702_v40  ;;  %v3558_v53 = vsel %vm2997_vm0, %v5153_v61, 0.0 }
0x2c58   :  { %3559 = vadd.xlane.f32.xlu0 %v3558_v53 }
0x2c59   :  { %v3711_v9 = vsel %vm2997_vm0, %v3707_v54, -inf }
0x2c5a   :  { %3712 = vmax.xlane.f32.xlu1 %v3711_v9 }
0x2c5b   :  { %v3710_v5 = vpop.xlane.xlu2 %3709 }
0x2c5c   :  { %v3714_v55 = vsub.f32 %v3706_v22, %v3710_v5 }
0x2c5e   :  { %v3716_v20 = vmul.f32 1.442695, %v3714_v55  ;;  %v3704_v25 = vpop.f32.mrf.mxu0 }
0x2c60   :  { %5154 = vpow2.f32 %v3716_v20 }
0x2c63   :  { %v3615_v60 = vpop.permute.xlu1 %3614 }
0x2c64   :  { %v3620_v18 = vsel %vm3091_vm7, %v3615_v60, 0 }
0x2c65   :  { %3629 = vmatpush.bf16.msra.mxu1 %v3620_v18 }
0x2c66   :  { %v6403_v19 = vpop.eup %5154  ;;  %v3844_v6 = vpop.f32.mrf.mxu0 }
0x2c67   :  { %v3720_v43 = vsel %vm2997_vm0, %v6403_v19, 0.0  ;;  %v6422_v7 = vmul.f32 0.35355338, %v3844_v6 }
0x2c68   :  { %3721 = vadd.xlane.f32.xlu2 %v3720_v43 }
0x2c69   :  { %v3873_v57 = vsel %vm2997_vm0, %v6422_v7, -inf }
0x2c6b   :  { %v3849_v23 = vpop.permute.xlu1 %3848 }
0x2c6c   :  { %3850 = vrot.lane.b32.xlu0 %v6271_v41, %s5412_s27 }
0x2c6e   :  { %v3846_v35 = vpop.f32.mrf.mxu0 }
0x2c73   :  { %3779 = vrot.lane.b32.xlu1 %v6295_v31, %s5411_s6 }
0x2c74   :  { %3990 = vrot.lane.b32.xlu0 %v6258_v8, %s5413_s3 }
0x2c7b   :  { %4013 = vrot.lane.b32.xlu1 %v6269_v59, %s5413_s3 }
0x2c80   :  { %3758 = vrot.lane.b32.xlu2 %v6284_v0, %s5411_s6 }
0x2c88   :  { %3992 = vrot.lane.b32.xlu2 %v6260_v62, %s5413_s3 }
0x2c9c   :  { %v3488_v21 = vpop.f32.mrf.mxu1 }
0x2c9d   :  { %v6420_v52 = vadd.f32 %v3488_v21, %v6362_v28 }
0x2ca4   :  { %v6449_v21 = vpop.f32.mrf.mxu1 }
0x2cb1   :  { %3874 = vmax.xlane.f32.xlu2 %v3873_v57 }
0x2ccb   :  { %v3560_v37 = vpop.xlane.xlu0 %3559 }
0x2ccc   :  { %5156 = vrcp.f32 %v3560_v37  ;;  %v3587_v10 = vand.u32 2147483648, %v3560_v37  ;;  %v3585_v34 = vand.u32 2147483647, %v3560_v37  ;;  %vm3581_vm4 = vweird.f32 %v3560_v37 }
0x2ccd   :  { %v3713_v36 = vpop.xlane.xlu1 %3712 }
0x2cce   :  { %v3715_v39 = vsub.f32 %v3707_v54, %v3713_v36  ;;  %v3588_v15 = vor.u32 1.1754944e-38, %v3587_v10  ;;  %vm3586_vm9 = vcmp.eq.f32.partialorder %v3585_v34, 8.507059e+37 }
0x2cd0   :  { %v3718_v17 = vmul.f32 1.442695, %v3715_v39 }
0x2cd2   :  { %v5157_v33 = vpop.eup %5156  ;;  %5158 = vpow2.f32 %v3718_v17 }
0x2cd3   :  { %v3577_v28 = vmul.f32 %v5157_v33, %v3560_v37  ;;  %vm3582_vm3 = vweird.f32 %v5157_v33 }
0x2cd4   :  { %vm3583_vm5 = vmor %vm3581_vm4, %vm3582_vm3 }
0x2cd5   :  { %v3578_v56 = vsub.f32 1.0, %v3577_v28 }
0x2cd7   :  { %v3579_v11 = vmul.f32 %v5157_v33, %v3578_v56 }
0x2cd8   :  { %v6427_v63 = vpop.eup %5158 }
0x2cd9   :  { %v3580_v24 = vadd.f32 %v5157_v33, %v3579_v11  ;;  %v3723_v49 = vsel %vm2997_vm0, %v6427_v63, 0.0 }
0x2cda   :  { %3724 = vadd.xlane.f32.xlu0 %v3723_v49 }
0x2cdb   :  { %v3584_v58 = vsel %vm3583_vm5, %v5157_v33, %v3580_v24  ;;  %v3722_v45 = vpop.xlane.xlu2 %3721 }
0x2cdc   :  { %v3589_v47 = vsel %vm3586_vm9, %v3588_v15, %v3584_v58  ;;  %5160 = vrcp.f32 %v3722_v45  ;;  %v3737_v13 = vand.u32 2147483648, %v3722_v45  ;;  %v3735_v1 = vand.u32 2147483647, %v3722_v45 }
0x2cdd   :  { %v3590_v14 = vmul.f32 %v5153_v61, %v3589_v47  ;;  %vm3731_vm11 = vweird.f32 %v3722_v45 }
0x2cde   :  { %v3851_v22 = vpop.permute.xlu0 %3850  ;;  %v3738_v42 = vor.u32 1.1754944e-38, %v3737_v13  ;;  %vm3736_vm13 = vcmp.eq.f32.partialorder %v3735_v1, 8.507059e+37 }
0x2cdf   :  { %v3592_v48 = vpack.c.bf16 %v3590_v14, %v3590_v14  ;;  %v3856_v27 = vsel %vm2997_vm0, %v3851_v22, 0 }
0x2ce1   :  { %4734 = vmatmul.msk.bf16.vlgmr.msra.gmra.mxu1 %vm2997_vm0, %v3592_v48 }
0x2ce2   :  { %v5161_v30 = vpop.eup %5160 }
0x2ce3   :  { %v3727_v50 = vmul.f32 %v5161_v30, %v3722_v45  ;;  %v3759_v51 = vpop.permute.xlu2 %3758  ;;  %vm3732_vm10 = vweird.f32 %v5161_v30 }
0x2ce4   :  { %v3764_v12 = vsel %vm3091_vm7, %v3759_v51, 0  ;;  %vm3733_vm12 = vmor %vm3731_vm11, %vm3732_vm10 }
0x2ce5   :  { %v3728_v16 = vsub.f32 1.0, %v3727_v50  ;;  %v3780_v38 = vpop.permute.xlu1 %3779  ;;  %3773 = vmatpush.bf16.msrb.mxu1 %v3764_v12 }
0x2ce6   :  { %v3785_v46 = vsel %vm3091_vm7, %v3780_v38, 0  ;;  %v3991_v55 = vpop.permute.xlu0 %3990 }
0x2ce7   :  { %v3729_v3 = vmul.f32 %v5161_v30, %v3728_v16  ;;  %3794 = vmatpush.bf16.msrb.mxu2 %v3785_v46 }
0x2ce9   :  { %3865 = vmatpush.bf16.xpose.msra.mxu1 %v3856_v27  ;;  %v3730_v2 = vadd.f32 %v5161_v30, %v3729_v3 }
0x2ceb   :  { %v3734_v61 = vsel %vm3733_vm12, %v5161_v30, %v3730_v2  ;;  %v3993_v53 = vpop.permute.xlu2 %3992 }
0x2cec   :  { %v3739_v40 = vsel %vm3736_vm13, %v3738_v42, %v3734_v61  ;;  %v3998_v5 = vsel %vm2997_vm0, %v3993_v53, 0  ;;  %v3802_v61 = vld [vmem:[#allocation15 + $0x10] sm:$0xf] }
0x2ced   :  { %v3740_v54 = vmul.f32 %v6403_v19, %v3739_v40  ;;  %v4014_v42 = vpop.permute.xlu1 %4013  ;;  %v3807_v40 = vsel %vm3091_vm7, %v3802_v61, 0 }
0x2cee   :  { %3923 = vrot.lane.b32.xlu0 %v6284_v0, %s5412_s27  ;;  %3816 = vmatpush.bf16.msrb.mxu3 %v3807_v40 }
0x2cef   :  { %v3756_v9 = vpack.c.bf16 %v3740_v54, %v3740_v54 }
0x2cf1   :  { %4738 = vmatmul.msk.bf16.vlgmr.msrb.gmra.mxu1 %vm2997_vm0, %v3756_v9 }
0x2cf2   :  { %4007 = vmatpush.bf16.xpose.msrb.mxu1 %v3998_v5 }
0x2d01   :  { %4742 = vmatmul.msk.bf16.vlgmr.msra.gmra.mxu1 %vm2997_vm0, %v3849_v23 }
0x2d11   :  { %4746 = vmatmul.msk.bf16.vlgmr.msrb.gmra.mxu1 %vm2997_vm0, %v3991_v55 }
0x2d24   :  { %v3875_v20 = vpop.xlane.xlu2 %3874 }
0x2d25   :  { %v3879_v25 = vsub.f32 %v6422_v7, %v3875_v20 }
0x2d27   :  { %v3881_v60 = vmul.f32 1.442695, %v3879_v25 }
0x2d29   :  { %5162 = vpow2.f32 %v3881_v60 }
0x2d2f   :  { %v6443_v18 = vpop.eup %5162 }
0x2d30   :  { %v3885_v19 = vsel %vm2997_vm0, %v6443_v18, 0.0 }
0x2d31   :  { %3886 = vadd.xlane.f32.xlu2 %v3885_v19 }
0x2d49   :  { %4015 = vrot.lane.b32.xlu2 %v6271_v41, %s5413_s3 }
0x2d4d   :  { %v3725_v6 = vpop.xlane.xlu0 %3724 }
0x2d4e   :  { %5164 = vrcp.f32 %v3725_v6  ;;  %v3752_v39 = vand.u32 2147483648, %v3725_v6  ;;  %vm3746_vm1 = vweird.f32 %v3725_v6  ;;  %v3750_v17 = vand.u32 2147483647, %v3725_v6 }
0x2d50   :  { %v3753_v28 = vor.u32 1.1754944e-38, %v3752_v39  ;;  %vm3751_vm2 = vcmp.eq.f32.partialorder %v3750_v17, 8.507059e+37 }
0x2d54   :  { %v5165_v43 = vpop.eup %5164 }
0x2d55   :  { %v3742_v35 = vmul.f32 %v5165_v43, %v3725_v6  ;;  %vm3747_vm8 = vweird.f32 %v5165_v43 }
0x2d56   :  { %vm3748_vm6 = vmor %vm3746_vm1, %vm3747_vm8 }
0x2d57   :  { %v3743_v57 = vsub.f32 1.0, %v3742_v35  ;;  %v3967_v35 = vld [vmem:[#allocation15 + $0x14] sm:$0xf] }
0x2d59   :  { %v3744_v23 = vmul.f32 %v5165_v43, %v3743_v57 }
0x2d5b   :  { %v3745_v37 = vadd.f32 %v5165_v43, %v3744_v23 }
0x2d5d   :  { %v3749_v33 = vsel %vm3748_vm6, %v5165_v43, %v3745_v37 }
0x2d5e   :  { %v3631_v7 = vpop.f32.mrf.mxu1  ;;  %v3754_v10 = vsel %vm3751_vm2, %v3753_v28, %v3749_v33 }
0x2d5f   :  { %v3635_v26 = vpack.c.bf16 %v3631_v7, %v6398_v44  ;;  %v3755_v11 = vmul.f32 %v6427_v63, %v3754_v10 }
0x2d60   :  { %v3924_v32 = vpop.permute.xlu0 %3923 }
0x2d61   :  { %v3929_v36 = vsel %vm3091_vm7, %v3924_v32, 0  ;;  %4735 = vmatmul.msk.bf16.vlgmr.msra.gmra.mxu2 %vm2997_vm0, %v3635_v26  ;;  %v3757_v34 = vpack.c.bf16 %v3755_v11, %v3755_v11 }
0x2d62   :  { %3938 = vmatpush.bf16.msra.mxu2 %v3929_v36 }
0x2d66   :  { %v3633_v56 = vpop.f32.mrf.mxu1 }
0x2d6e   :  { %v3775_v44 = vpop.f32.mrf.mxu1 }
0x2d71   :  { %4739 = vmatmul.msk.bf16.vlgmr.msrb.gmra.mxu2 %vm2997_vm0, %v3757_v34 }
0x2d76   :  { %v3777_v24 = vpop.f32.mrf.mxu1 }
0x2d7e   :  { %v3867_v49 = vpop.f32.mrf.mxu1 }
0x2d7f   :  { %v3872_v15 = vmul.f32 0.35355338, %v3867_v49 }
0x2d81   :  { %v3876_v58 = vsel %vm2997_vm0, %v3872_v15, -inf }
0x2d82   :  { %3877 = vmax.xlane.f32.xlu1 %v3876_v58 }
0x2d86   :  { %v3869_v45 = vpop.f32.mrf.mxu1 }
0x2d8e   :  { %v4009_v47 = vpop.f32.mrf.mxu1 }
0x2d8f   :  { %v4036_v14 = vmul.f32 0.35355338, %v4009_v47 }
0x2d91   :  { %v4038_v48 = vsel %vm2997_vm0, %v4036_v14, -inf }
0x2d92   :  { %4039 = vmax.xlane.f32.xlu0 %v4038_v48 }
0x2d96   :  { %v4011_v30 = vpop.f32.mrf.mxu1 }
0x2d9b   :  { %3944 = vrot.lane.b32.xlu1 %v6295_v31, %s5412_s27 }
0x2da3   :  { %4180 = vrot.lane.b32.xlu1 %v6271_v41, %s5414_s29 }
0x2da4   :  { %v3887_v63 = vpop.xlane.xlu2 %3886 }
0x2da5   :  { %5166 = vrcp.f32 %v3887_v63  ;;  %v3902_v27 = vand.u32 2147483648, %v3887_v63  ;;  %v3900_v13 = vand.u32 2147483647, %v3887_v63  ;;  %vm3896_vm4 = vweird.f32 %v3887_v63 }
0x2da6   :  { %4088 = vrot.lane.b32.xlu0 %v6284_v0, %s5413_s3 }
0x2da7   :  { %v3903_v46 = vor.u32 1.1754944e-38, %v3902_v27  ;;  %vm3901_vm9 = vcmp.eq.f32.partialorder %v3900_v13, 8.507059e+37 }
0x2dab   :  { %v5167_v22 = vpop.eup %5166  ;;  %4178 = vrot.lane.b32.xlu1 %v6269_v59, %s5414_s29 }
0x2dac   :  { %v3892_v50 = vmul.f32 %v5167_v22, %v3887_v63  ;;  %v4016_v51 = vpop.permute.xlu2 %4015  ;;  %vm3897_vm3 = vweird.f32 %v5167_v22 }
0x2dad   :  { %v4021_v12 = vsel %vm2997_vm0, %v4016_v51, 0  ;;  %vm3898_vm5 = vmor %vm3896_vm4, %vm3897_vm3 }
0x2dae   :  { %v3893_v16 = vsub.f32 1.0, %v3892_v50  ;;  %4030 = vmatpush.bf16.xpose.msrb.mxu2 %v4021_v12 }
0x2db0   :  { %v3894_v38 = vmul.f32 %v5167_v22, %v3893_v16 }
0x2db2   :  { %v3895_v41 = vadd.f32 %v5167_v22, %v3894_v38 }
0x2db3   :  { %4109 = vrot.lane.b32.xlu1 %v6295_v31, %s5413_s3 }
0x2db4   :  { %v3899_v3 = vsel %vm3898_vm5, %v5167_v22, %v3895_v41 }
0x2db5   :  { %v3904_v59 = vsel %vm3901_vm9, %v3903_v46, %v3899_v3 }
0x2db6   :  { %v3905_v1 = vmul.f32 %v6443_v18, %v3904_v59 }
0x2db8   :  { %v3921_v2 = vpack.c.bf16 %v3905_v1, %v3905_v1 }
0x2dba   :  { %4743 = vmatmul.msk.bf16.vlgmr.msra.gmra.mxu2 %vm2997_vm0, %v3921_v2 }
0x2dca   :  { %4747 = vmatmul.msk.bf16.vlgmr.msrb.gmra.mxu2 %vm2997_vm0, %v4014_v42 }
0x2de4   :  { %v3653_v54 = vpop.f32.mrf.mxu2 }
0x2de5   :  { %v3658_v53 = vadd.f32 %v3653_v54, %v6420_v52  ;;  %v3972_v52 = vsel %vm3091_vm7, %v3967_v35, 0 }
0x2de6   :  { %3981 = vmatpush.bf16.msrb.mxu0 %v3972_v52 }
0x2dec   :  { %v6474_v9 = vpop.f32.mrf.mxu2 }
0x2df4   :  { %v3796_v5 = vpop.f32.mrf.mxu2 }
0x2df5   :  { %v3800_v55 = vpack.c.bf16 %v3796_v5, %v3775_v44  ;;  %v3878_v20 = vpop.xlane.xlu1 %3877 }
0x2df6   :  { %v3880_v25 = vsub.f32 %v3872_v15, %v3878_v20 }
0x2df7   :  { %4740 = vmatmul.msk.bf16.vlgmr.msrb.gmra.mxu3 %vm2997_vm0, %v3800_v55 }
0x2df8   :  { %v3883_v60 = vmul.f32 1.442695, %v3880_v25 }
0x2dfa   :  { %5168 = vpow2.f32 %v3883_v60 }
0x2dfc   :  { %v3798_v18 = vpop.f32.mrf.mxu2 }
0x2e00   :  { %v5169_v19 = vpop.eup %5168 }
0x2e01   :  { %v3888_v6 = vsel %vm2997_vm0, %v5169_v19, 0.0 }
0x2e02   :  { %3889 = vadd.xlane.f32.xlu2 %v3888_v6 }
0x2e05   :  { %v4040_v43 = vpop.xlane.xlu0 %4039 }
0x2e06   :  { %v4044_v57 = vsub.f32 %v4036_v14, %v4040_v43 }
0x2e08   :  { %v4046_v23 = vmul.f32 1.442695, %v4044_v57 }
0x2e0a   :  { %5170 = vpow2.f32 %v4046_v23 }
0x2e0d   :  { %v3945_v7 = vpop.permute.xlu1 %3944 }
0x2e0e   :  { %v3950_v26 = vsel %vm3091_vm7, %v3945_v7, 0 }
0x2e0f   :  { %3959 = vmatpush.bf16.msra.mxu3 %v3950_v26 }
0x2e10   :  { %v6480_v32 = vpop.eup %5170 }
0x2e11   :  { %v4050_v37 = vsel %vm2997_vm0, %v6480_v32, 0.0 }
0x2e12   :  { %4051 = vadd.xlane.f32.xlu0 %v4050_v37 }
0x2e15   :  { %v4181_v36 = vpop.permute.xlu1 %4180 }
0x2e16   :  { %v4186_v41 = vsel %vm2997_vm0, %v4181_v36, 0 }
0x2e18   :  { %v4089_v39 = vpop.permute.xlu0 %4088 }
0x2e19   :  { %v4094_v17 = vsel %vm3091_vm7, %v4089_v39, 0 }
0x2e1a   :  { %4103 = vmatpush.bf16.msrb.mxu3 %v4094_v17  ;;  %4157 = vrot.lane.b32.xlu2 %v6260_v62, %s5414_s29 }
0x2e1d   :  { %v4179_v33 = vpop.permute.xlu1 %4178 }
0x2e25   :  { %v4110_v28 = vpop.permute.xlu1 %4109 }
0x2e26   :  { %v4115_v56 = vsel %vm3091_vm7, %v4110_v28, 0  ;;  %4155 = vrot.lane.b32.xlu0 %v6258_v8, %s5414_s29 }
0x2e27   :  { %4124 = vmatpush.bf16.msra.mxu0 %v4115_v56 }
0x2e3d   :  { %v6490_v10 = vpop.f32.mrf.mxu2 }
0x2e45   :  { %v3942_v11 = vpop.f32.mrf.mxu2 }
0x2e4d   :  { %v4032_v44 = vpop.f32.mrf.mxu2 }
0x2e4e   :  { %v4037_v34 = vmul.f32 0.35355338, %v4032_v44 }
0x2e50   :  { %v4041_v24 = vsel %vm2997_vm0, %v4037_v34, -inf }
0x2e51   :  { %4042 = vmax.xlane.f32.xlu2 %v4041_v24 }
0x2e55   :  { %v4034_v49 = vpop.f32.mrf.mxu2 }
0x2e75   :  { %v3890_v15 = vpop.xlane.xlu2 %3889 }
0x2e76   :  { %5172 = vrcp.f32 %v3890_v15  ;;  %v3917_v30 = vand.u32 2147483648, %v3890_v15  ;;  %v3915_v22 = vand.u32 2147483647, %v3890_v15  ;;  %vm3911_vm11 = vweird.f32 %v3890_v15 }
0x2e78   :  { %v3918_v51 = vor.u32 1.1754944e-38, %v3917_v30  ;;  %vm3916_vm13 = vcmp.eq.f32.partialorder %v3915_v22, 8.507059e+37 }
0x2e7a   :  { %v3818_v62 = vpop.f32.mrf.mxu3 }
0x2e7b   :  { %v6493_v58 = vadd.f32 %v3818_v62, %v3658_v53 }
0x2e7c   :  { %v5173_v45 = vpop.eup %5172 }
0x2e7d   :  { %v3907_v47 = vmul.f32 %v5173_v45, %v3890_v15  ;;  %v4158_v14 = vpop.permute.xlu2 %4157  ;;  %vm3912_vm10 = vweird.f32 %v5173_v45 }
0x2e7e   :  { %v4163_v8 = vsel %vm2997_vm0, %v4158_v14, 0  ;;  %vm3913_vm12 = vmor %vm3911_vm11, %vm3912_vm10 }
0x2e7f   :  { %v3908_v48 = vsub.f32 1.0, %v3907_v47  ;;  %4172 = vmatpush.bf16.xpose.msra.mxu2 %v4163_v8 }
0x2e81   :  { %v3909_v63 = vmul.f32 %v5173_v45, %v3908_v48 }
0x2e82   :  { %v3820_v43 = vpop.f32.mrf.mxu3 }
0x2e83   :  { %v3910_v50 = vadd.f32 %v5173_v45, %v3909_v63  ;;  %v3328_v63 = vadd.f32 %v6395_v4, %v6382_v29 }
0x2e85   :  { %v3914_v12 = vsel %vm3913_vm12, %v5173_v45, %v3910_v50  ;;  %v4052_v16 = vpop.xlane.xlu0 %4051  ;;  %v3494_v50 = vadd.f32 %v6449_v21, %v3328_v63  ;;  %v4864_v63 = vld [vmem:[%s6582_s14] ss:$0 sm:$0xff] }
0x2e86   :  { %v3919_v27 = vsel %vm3916_vm13, %v3918_v51, %v3914_v12  ;;  %5174 = vrcp.f32 %v4052_v16  ;;  %v4067_v1 = vand.u32 2147483648, %v4052_v16  ;;  %v4065_v42 = vand.u32 2147483647, %v4052_v16 }
0x2e87   :  { %v3920_v38 = vmul.f32 %v5169_v19, %v3919_v27  ;;  %vm4061_vm1 = vweird.f32 %v4052_v16  ;;  %v3659_v51 = vadd.f32 %v6474_v9, %v3494_v50 }
0x2e88   :  { %v4068_v40 = vor.u32 1.1754944e-38, %v4067_v1  ;;  %vm4066_vm2 = vcmp.eq.f32.partialorder %v4065_v42, 8.507059e+37 }
0x2e89   :  { %v3922_v13 = vpack.c.bf16 %v3920_v38, %v3920_v38  ;;  %v3824_v27 = vadd.f32 %v3820_v43, %v3659_v51 }
0x2e8b   :  { %4744 = vmatmul.msk.bf16.vlgmr.msra.gmra.mxu3 %vm2997_vm0, %v3922_v13 }
0x2e8c   :  { %v5175_v46 = vpop.eup %5174  ;;  %4195 = vmatpush.bf16.xpose.msra.mxu3 %v4186_v41 }
0x2e8d   :  { %v4057_v3 = vmul.f32 %v5175_v46, %v4052_v16  ;;  %vm4062_vm8 = vweird.f32 %v5175_v46 }
0x2e8e   :  { %vm4063_vm6 = vmor %vm4061_vm1, %vm4062_vm8 }
0x2e8f   :  { %v4058_v59 = vsub.f32 1.0, %v4057_v3 }
0x2e91   :  { %v4059_v2 = vmul.f32 %v5175_v46, %v4058_v59 }
0x2e93   :  { %v4060_v61 = vadd.f32 %v5175_v46, %v4059_v2 }
0x2e95   :  { %v4064_v54 = vsel %vm4063_vm6, %v5175_v46, %v4060_v61 }
0x2e96   :  { %v4069_v53 = vsel %vm4066_vm2, %v4068_v40, %v4064_v54 }
0x2e97   :  { %v4070_v5 = vmul.f32 %v6480_v32, %v4069_v53 }
0x2e98   :  { %v4156_v55 = vpop.permute.xlu0 %4155 }
0x2e99   :  { %v4086_v20 = vpack.c.bf16 %v4070_v5, %v4070_v5  ;;  %4751 = vmatmul.msk.bf16.vlgmr.msra.gmra.mxu2 %vm2997_vm0, %v4156_v55 }
0x2e9b   :  { %4748 = vmatmul.msk.bf16.vlgmr.msrb.gmra.mxu3 %vm2997_vm0, %v4086_v20 }
0x2eab   :  { %4752 = vmatmul.msk.bf16.vlgmr.msra.gmra.mxu3 %vm2997_vm0, %v4179_v33 }
0x2ec4   :  { %v4043_v25 = vpop.xlane.xlu2 %4042 }
0x2ec5   :  { %v4045_v60 = vsub.f32 %v4037_v34, %v4043_v25 }
0x2ec7   :  { %v4048_v18 = vmul.f32 1.442695, %v4045_v60 }
0x2ec9   :  { %5176 = vpow2.f32 %v4048_v18 }
0x2ecf   :  { %v5177_v19 = vpop.eup %5176 }
0x2ed0   :  { %v4053_v6 = vsel %vm2997_vm0, %v5177_v19, 0.0 }
0x2ed1   :  { %4054 = vadd.xlane.f32.xlu0 %v4053_v6 }
0x2f0e   :  { %v3961_v35 = vpop.f32.mrf.mxu3 }
0x2f0f   :  { %v3965_v57 = vpack.c.bf16 %v3961_v35, %v6490_v10 }
0x2f11   :  { %4745 = vmatmul.msk.bf16.vlgmr.msrb.gmra.mxu0 %vm2997_vm0, %v3965_v57 }
0x2f16   :  { %v3963_v52 = vpop.f32.mrf.mxu3 }
0x2f1c   :  { %v4174_v23 = vpop.f32.mrf.mxu2 }
0x2f1d   :  { %v4201_v7 = vmul.f32 0.35355338, %v4174_v23 }
0x2f1e   :  { %v4105_v26 = vpop.f32.mrf.mxu3 }
0x2f1f   :  { %v4203_v32 = vsel %vm2997_vm0, %v4201_v7, -inf }
0x2f20   :  { %4204 = vmax.xlane.f32.xlu1 %v4203_v32 }
0x2f24   :  { %v4176_v37 = vpop.f32.mrf.mxu2 }
0x2f26   :  { %v4107_v36 = vpop.f32.mrf.mxu3 }
0x2f2e   :  { %v4197_v39 = vpop.f32.mrf.mxu3 }
0x2f2f   :  { %v4202_v17 = vmul.f32 0.35355338, %v4197_v39 }
0x2f31   :  { %v4206_v33 = vsel %vm2997_vm0, %v4202_v17, -inf }
0x2f32   :  { %4207 = vmax.xlane.f32.xlu2 %v4206_v33 }
0x2f36   :  { %v4199_v28 = vpop.f32.mrf.mxu3 }
0x2f39   :  { %4274 = vrot.lane.b32.xlu1 %v6295_v31, %s5414_s29  ;;  %v4132_v31 = vld [vmem:[#allocation15 + $0x18] sm:$0xf] }
0x2f3a   :  { %v4137_v48 = vsel %vm3091_vm7, %v4132_v31, 0  ;;  %v4831_v31 = vld [vmem:[%s6583_s15 + $0x10] sm:$0xff] }
0x2f3b   :  { %4146 = vmatpush.bf16.msra.mxu1 %v4137_v48  ;;  %v5415_v48 = vmov 8.0  }
0x2f44   :  { %v4055_v56 = vpop.xlane.xlu0 %4054 }
0x2f45   :  { %5178 = vrcp.f32 %v4055_v56  ;;  %v4082_v34 = vand.u32 2147483648, %v4055_v56  ;;  %v4080_v49 = vand.u32 2147483647, %v4055_v56  ;;  %vm4076_vm4 = vweird.f32 %v4055_v56 }
0x2f47   :  { %v4083_v62 = vor.u32 1.1754944e-38, %v4082_v34  ;;  %vm4081_vm9 = vcmp.eq.f32.partialorder %v4080_v49, 8.507059e+37  ;;  %v4297_v34 = vld [vmem:[#allocation15 + $0x1c] sm:$0xf] }
0x2f4b   :  { %v5179_v10 = vpop.eup %5178 }
0x2f4c   :  { %v4072_v11 = vmul.f32 %v5179_v10, %v4055_v56  ;;  %vm4077_vm3 = vweird.f32 %v5179_v10 }
0x2f4d   :  { %vm4078_vm5 = vmor %vm4076_vm4, %vm4077_vm3 }
0x2f4e   :  { %v4073_v44 = vsub.f32 1.0, %v4072_v11 }
0x2f50   :  { %v4074_v24 = vmul.f32 %v5179_v10, %v4073_v44 }
0x2f52   :  { %v4075_v15 = vadd.f32 %v5179_v10, %v4074_v24  ;;  %v4302_v24 = vsel %vm3091_vm7, %v4297_v34, 0 }
0x2f53   :  { %4311 = vmatpush.bf16.msrb.mxu2 %v4302_v24  ;;  %v4867_v24 = vld [vmem:[#allocation4] ss:$0 sm:$0xff] }
0x2f54   :  { %v4079_v45 = vsel %vm4078_vm5, %v5179_v10, %v4075_v15 }
0x2f55   :  { %v4084_v47 = vsel %vm4081_vm9, %v4083_v62, %v4079_v45 }
0x2f56   :  { %v4085_v14 = vmul.f32 %v5177_v19, %v4084_v47 }
0x2f58   :  { %v4087_v8 = vpack.c.bf16 %v4085_v14, %v4085_v14 }
0x2f5a   :  { %4749 = vmatmul.msk.bf16.vlgmr.msra.gmra.mxu0 %vm2997_vm0, %v4087_v8  ;;  %v4832_v8 = vld [vmem:[%s6583_s15 + $0x18] sm:$0xff] }
0x2f5b   :  { %4401 = vmatpush.bf16.msrb.mxu3 %v4832_v8 }
0x2f5f   :  { %4402 = vmatpush.bf16.msrb.mxu3 %v4831_v31 }
0x2f8e   :  { %v3983_v30 = vpop.f32.mrf.mxu0 }
0x2f8f   :  { %v6514_v22 = vadd.f32 %v3983_v30, %v6493_v58  ;;  %v4830_v30 = vld [vmem:[%s6583_s15 + $0x8] sm:$0xff] }
0x2f90   :  { %4403 = vmatpush.bf16.msrb.mxu3 %v4830_v30 }
0x2f93   :  { %v4205_v12 = vpop.xlane.xlu1 %4204 }
0x2f94   :  { %v4209_v16 = vsub.f32 %v4201_v7, %v4205_v12 }
0x2f96   :  { %v4211_v38 = vmul.f32 1.442695, %v4209_v16  ;;  %v3985_v13 = vpop.f32.mrf.mxu0 }
0x2f97   :  { %v6518_v41 = vadd.f32 %v3985_v13, %v3824_v27 }
0x2f98   :  { %5180 = vpow2.f32 %v4211_v38 }
0x2f9e   :  { %v5181_v46 = vpop.eup %5180 }
0x2f9f   :  { %v4215_v3 = vsel %vm2997_vm0, %v5181_v46, 0.0 }
0x2fa0   :  { %4216 = vadd.xlane.f32.xlu0 %v4215_v3 }
0x2fa5   :  { %v4208_v29 = vpop.xlane.xlu2 %4207 }
0x2fa6   :  { %v4210_v4 = vsub.f32 %v4202_v17, %v4208_v29 }
0x2fa8   :  { %v4213_v58 = vmul.f32 1.442695, %v4210_v4 }
0x2faa   :  { %5182 = vpow2.f32 %v4213_v58 }
0x2fab   :  { %v4275_v59 = vpop.permute.xlu1 %4274 }
0x2fac   :  { %v4280_v21 = vsel %vm3091_vm7, %v4275_v59, 0 }
0x2fad   :  { %4289 = vmatpush.bf16.msrb.mxu1 %v4280_v21 }
0x2fb0   :  { %v5183_v9 = vpop.eup %5182 }
0x2fb1   :  { %v4218_v1 = vsel %vm2997_vm0, %v5183_v9, 0.0 }
0x2fb2   :  { %4219 = vadd.xlane.f32.xlu2 %v4218_v1 }
0x2fb4   :  { %4253 = vrot.lane.b32.xlu0 %v6284_v0, %s5414_s29 }
0x2fd7   :  { %v4126_v2 = vpop.f32.mrf.mxu0 }
0x2fd8   :  { %v4130_v42 = vpack.c.bf16 %v4126_v2, %v4105_v26 }
0x2fda   :  { %4750 = vmatmul.msk.bf16.vlgmr.msra.gmra.mxu1 %vm2997_vm0, %v4130_v42 }
0x2fdf   :  { %v4128_v61 = vpop.f32.mrf.mxu0 }
0x3013   :  { %v4217_v40 = vpop.xlane.xlu0 %4216 }
0x3014   :  { %5184 = vrcp.f32 %v4217_v40  ;;  %v4232_v55 = vand.u32 2147483648, %v4217_v40  ;;  %v4230_v25 = vand.u32 2147483647, %v4217_v40  ;;  %vm4226_vm11 = vweird.f32 %v4217_v40 }
0x3016   :  { %v4233_v18 = vor.u32 1.1754944e-38, %v4232_v55  ;;  %vm4231_vm13 = vcmp.eq.f32.partialorder %v4230_v25, 8.507059e+37 }
0x301a   :  { %v5185_v54 = vpop.eup %5184 }
0x301b   :  { %v4222_v53 = vmul.f32 %v5185_v54, %v4217_v40  ;;  %vm4227_vm10 = vweird.f32 %v5185_v54 }
0x301c   :  { %vm4228_vm12 = vmor %vm4226_vm11, %vm4227_vm10 }
0x301d   :  { %v4223_v5 = vsub.f32 1.0, %v4222_v53 }
0x301f   :  { %v4224_v20 = vmul.f32 %v5185_v54, %v4223_v5 }
0x3021   :  { %v4225_v60 = vadd.f32 %v5185_v54, %v4224_v20 }
0x3023   :  { %v4229_v19 = vsel %vm4228_vm12, %v5185_v54, %v4225_v60 }
0x3024   :  { %v4234_v0 = vsel %vm4231_vm13, %v4233_v18, %v4229_v19 }
0x3025   :  { %v4235_v6 = vmul.f32 %v5181_v46, %v4234_v0  ;;  %v4220_v43 = vpop.xlane.xlu2 %4219 }
0x3026   :  { %5186 = vrcp.f32 %v4220_v43  ;;  %v4254_v35 = vpop.permute.xlu0 %4253  ;;  %v4247_v32 = vand.u32 2147483648, %v4220_v43  ;;  %v4245_v36 = vand.u32 2147483647, %v4220_v43  ;;  %vm4241_vm1 = vweird.f32 %v4220_v43 }
0x3027   :  { %v4259_v57 = vsel %vm3091_vm7, %v4254_v35, 0  ;;  %v4251_v52 = vpack.c.bf16 %v4235_v6, %v4235_v6  ;;  %5188 = vrcp.f32 %v5415_v48  ;;  %vm4367_vm7 = vcmask 1041409  }
0x3028   :  { %4268 = vmatpush.bf16.msrb.mxu0 %v4259_v57  ;;  %v4248_v17 = vor.u32 1.1754944e-38, %v4247_v32  ;;  %vm4246_vm2 = vcmp.eq.f32.partialorder %v4245_v36, 8.507059e+37 }
0x302b   :  { %4753 = vmatmul.msk.bf16.vlgmr.msrb.gmra.mxu0 %vm2997_vm0, %v4251_v52  ;;  %v4834_v52 = vld [vmem:[#allocation16 + $0x8] sm:$0xff] }
0x302c   :  { %v5187_v23 = vpop.eup %5186  ;;  %4441 = vmatpush.bf16.msra.mxu0 %v4834_v52 }
0x302d   :  { %v4237_v7 = vmul.f32 %v5187_v23, %v4220_v43  ;;  %vm4242_vm8 = vweird.f32 %v5187_v23  ;;  %v5189_v50 = vpop.eup %5188 }
0x302e   :  { %vm4243_vm6 = vmor %vm4241_vm1, %vm4242_vm8  ;;  %v4341_v27 = vmul.f32 8.0, %v5189_v50 }
0x302f   :  { %v4238_v26 = vsub.f32 1.0, %v4237_v7  ;;  %v4865_v7 = vld [vmem:[%s6584_s16] ss:$0 sm:$0xff] }
0x3030   :  { %v4342_v3 = vsub.f32 1.0, %v4341_v27 }
0x3031   :  { %v4239_v37 = vmul.f32 %v5187_v23, %v4238_v26 }
0x3032   :  { %v4343_v21 = vmul.f32 %v5189_v50, %v4342_v3 }
0x3033   :  { %v4240_v39 = vadd.f32 %v5187_v23, %v4239_v37 }
0x3034   :  { %v4344_v40 = vadd.f32 %v5189_v50, %v4343_v21 }
0x3035   :  { %v4244_v33 = vsel %vm4243_vm6, %v5187_v23, %v4240_v39  ;;  %v4833_v23 = vld [vmem:[#allocation16] sm:$0xff] }
0x3036   :  { %v4249_v28 = vsel %vm4246_vm2, %v4248_v17, %v4244_v33  ;;  %4442 = vmatpush.bf16.msra.mxu0 %v4833_v23  ;;  %v4836_v17 = vld [vmem:[%s6587_s19 + $0x8] sm:$0xff]  ;;  %v4835_v33 = vld [vmem:[%s6587_s19] sm:$0xff] }
0x3037   :  { %v4250_v56 = vmul.f32 %v5183_v9, %v4249_v28  ;;  %4479 = vmatpush.bf16.msra.mxu1 %v4836_v17  ;;  %v4866_v28 = vld [vmem:[%s6586_s18] ss:$0 sm:$0xff] }
0x3039   :  { %v4252_v10 = vpack.c.bf16 %v4250_v56, %v4250_v56 }
0x303b   :  { %4754 = vmatmul.msk.bf16.vlgmr.msrb.gmra.mxu1 %vm2997_vm0, %v4252_v10 }
0x303c   :  { %4480 = vmatpush.bf16.msra.mxu1 %v4835_v33 }
0x3057   :  { %v4148_v11 = vpop.f32.mrf.mxu1 }
0x3058   :  { %v4153_v44 = vadd.f32 %v4148_v11, %v6514_v22  ;;  %v4829_v22 = vld [vmem:[%s6583_s15] sm:$0xff] }
0x3059   :  { %4404 = vmatpush.bf16.msrb.mxu3 %v4829_v22 }
0x305f   :  { %v4150_v15 = vpop.f32.mrf.mxu1 }
0x3060   :  { %v4154_v46 = vadd.f32 %v4150_v15, %v6518_v41 }
0x30a8   :  { %v4270_v49 = vpop.f32.mrf.mxu0 }
0x30b0   :  { %v4272_v62 = vpop.f32.mrf.mxu0 }
0x30b8   :  { %v4291_v45 = vpop.f32.mrf.mxu1 }
0x30b9   :  { %v4295_v47 = vpack.c.bf16 %v4291_v45, %v4270_v49 }
0x30bb   :  { %4755 = vmatmul.msk.bf16.vlgmr.msrb.gmra.mxu2 %vm2997_vm0, %v4295_v47  ;;  %vm4345_vm0 = vweird.f32 %v5189_v50 }
0x30bc   :  { %v4346_v55 = vsel %vm4345_vm0, %v5189_v50, %v4344_v40 }
0x30c0   :  { %v4293_v14 = vpop.f32.mrf.mxu1 }
0x313e   :  { %v4313_v51 = vpop.f32.mrf.mxu2 }
0x313f   :  { %v4318_v12 = vadd.f32 %v4313_v51, %v4153_v44 }
0x3141   :  { %v4324_v16 = vadd.f32 %v4864_v63, %v4318_v12 }
0x3143   :  { %v4326_v38 = vsel %vm417_vm15, %v4324_v16, 0.0 }
0x3144   :  { %v4327_v13 = vrot.slane %v4326_v38, 4 }
0x3146   :  { %v4328_v29 = vadd.f32 %v4327_v13, %v4326_v38  ;;  %v4315_v4 = vpop.f32.mrf.mxu2 }
0x3147   :  { %v4319_v58 = vadd.f32 %v4315_v4, %v4154_v46 }
0x3148   :  { %v4329_v59 = vrot.slane %v4328_v29, 2 }
0x3149   :  { %v4325_v9 = vadd.f32 %v4864_v63, %v4319_v58 }
0x314a   :  { %v4330_v1 = vadd.f32 %v4329_v59, %v4328_v29 }
0x314b   :  { %v4333_v2 = vsel %vm417_vm15, %v4325_v9, 0.0 }
0x314c   :  { %v4331_v42 = vrot.slane %v4330_v1, 1  ;;  %v4334_v61 = vrot.slane %v4333_v2, 4 }
0x314e   :  { %v4335_v54 = vadd.f32 %v4334_v61, %v4333_v2  ;;  %v4332_v53 = vadd.f32 %v4331_v42, %v4330_v1 }
0x3150   :  { %v4336_v5 = vrot.slane %v4335_v54, 2  ;;  %v4347_v41 = vmul.f32 %v4346_v55, %v4332_v53 }
0x3152   :  { %v4337_v20 = vadd.f32 %v4336_v5, %v4335_v54  ;;  %v4349_v18 = vpack.c.bf16 %v4347_v41, %v4347_v41 }
0x3154   :  { %v4338_v25 = vrot.slane %v4337_v20, 1  ;;  %v4365_v6 = vunpack.c.l.b16 %v4349_v18 }
0x3156   :  { %v4339_v60 = vadd.f32 %v4338_v25, %v4337_v20 }
0x3158   :  { %v4348_v19 = vmul.f32 %v4346_v55, %v4339_v60 }
0x315a   :  { %v4350_v0 = vpack.c.bf16 %v4348_v19, %v4348_v19 }
0x315c   :  { %v4366_v43 = vunpack.c.l.b16 %v4350_v0 }
0x315e   :  { %v4368_v35 = vsel %vm4367_vm7, %v4366_v43, %v4365_v6 }
0x315f   :  { %v4369_v57 = vpack.c.b16 %v4368_v35, %v4368_v35 }
0x3161   :  { %4772 = vmatmul.msk.bf16.vlgmr.msrb.gmra.mxu3 %vm417_vm15, %v4369_v57  ;;  %vm4486_vm15 = vcmask 1024  }
0x31e4   :  { %v4406_v26 = vpop.f32.mrf.mxu3 }
0x31e5   :  { %v4407_v32 = vadd.f32 %v4865_v7, %v4406_v26 }
0x31e7   :  { %v4410_v37 = vmax.f32 %v4407_v32, 0.0 }
0x31e9   :  { %v4411_v36 = vpack.c.bf16 %v4410_v37, %v4410_v37 }
0x31eb   :  { %4781 = vmatmul.msk.bf16.vlgmr.msra.gmra.mxu0 %vm556_vm14, %v4411_v36 }
0x31ec   :  { %v4408_v39 = vpop.f32.mrf.mxu3 }
0x3268   :  { %v4444_v56 = vpop.f32.mrf.mxu0 }
0x3269   :  { %v4445_v10 = vadd.f32 %v4866_v28, %v4444_v56 }
0x326b   :  { %v4448_v11 = vmax.f32 %v4445_v10, 0.0 }
0x326d   :  { %v4449_v44 = vpack.c.bf16 %v4448_v11, %v4448_v11 }
0x326f   :  { %4790 = vmatmul.msk.bf16.vlgmr.msra.gmra.mxu1 %vm556_vm14, %v4449_v44 }
0x3270   :  { %v4446_v34 = vpop.f32.mrf.mxu0 }
0x32ec   :  { %v4482_v49 = vpop.f32.mrf.mxu1 }
0x32ed   :  { %v4483_v15 = vadd.f32 %v4867_v24, %v4482_v49 }
0x32ef   :  { %4487 = vst.msk [vmem:[%s6589_s21] sm:$0x3] %vm4486_vm15, %v4483_v15 }
0x32f4   :  { %v4484_v62 = vpop.f32.mrf.mxu1 }
0x32f5   :  { %4492 = vsyncpa [#allocation6], 1 }
0x32f6   :  { %4493 = vsyncpa [#allocation8], 1 }
0x32f7   :  { %4494 = vsyncpa [#allocation11], 1 }
0x32f8   :  { %4495 = vsyncpa [#allocation14], 1 }
0x32f9   :  { %4496 = vsyncpa [#allocation17], 1 }

</bundles_post_ra>
